<compile_context>
chip_gen: v7x
topology: tpu7x:2x2x1
jax: 0.10.0
libtpu: 0.0.40
codegen_flags: <defaults>
</compile_context>

<pallas_src>
import functools

import numpy as np

import jax
import jax.numpy as jnp
from jax import lax
from jax.experimental import pallas as pl


# ---------------------------------------------------------------------------
# Parameter slab packing: every leaf lives in one (rows, 128) f32 slab,
# starting on an 8-row boundary at lane 0 → free static ref slices in-kernel.
# ---------------------------------------------------------------------------
class _SlabPacker:
    LANES = 128

    def __init__(self):
        self._rows = 0
        self._pieces = []
        self.offsets = {}          # name -> (row_offset, rows, cols)

    def add(self, name, arr):
        arr = np.asarray(arr, np.float32)
        if arr.ndim == 1:
            arr = arr.reshape(1, -1)
        r, c = arr.shape
        assert c <= self.LANES, (name, arr.shape)
        rp = r + (-r % 8)
        buf = np.zeros((rp, self.LANES), np.float32)
        buf[:r, :c] = arr
        self.offsets[name] = (self._rows, r, c)
        self._pieces.append(buf)
        self._rows += rp

    def finalize(self):
        return np.concatenate(self._pieces, axis=0)


# ---------------------------------------------------------------------------
# Parameter initialization: builds (a) the packed kernel-layout slab and
# (b) the raw torch-layout weights used by the pure-JAX reference.
# ---------------------------------------------------------------------------
def init_model(B, P, dim, ef, n_head, n_body, h1c, nc, seed=0):
    rng = np.random.default_rng(seed)
    n_total = n_body + n_head + 1

    def lin(in_f, out_f):                       # torch nn.Linear layout (out, in)
        w = (rng.standard_normal((out_f, in_f)) * 0.02).astype(np.float32)
        b = (rng.standard_normal((out_f,)) * 0.02).astype(np.float32)
        return w, b

    pk = _SlabPacker()
    raw = {}

    # feature_linear(8 -> dim)
    fw, fb = lin(8, dim)
    raw['fw'], raw['fb'] = fw, fb
    pk.add('feature_w', fw.T)
    pk.add('feature_b', fb.reshape(1, -1))

    def add_mixer_block(prefix, N, perm=None):
        # token mix (Conv1d k=1) + channel mix (Linear), PreNormResidual pair.
        wt1, bt1 = lin(N, N * ef)
        wt2, bt2 = lin(N * ef, N)
        wc1, bc1 = lin(dim, dim * ef)
        wc2, bc2 = lin(dim * ef, dim)
        # block-diagonal batched token weights (batch-major stacked tokens)
        W1 = np.kron(np.eye(B, dtype=np.float32), wt1)          # (B*N*ef, B*N)
        W2 = np.kron(np.eye(B, dtype=np.float32), wt2)          # (B*N, B*N*ef)
        B1 = np.tile(bt1, B).reshape(-1, 1)
        B2 = np.tile(bt2, B).reshape(-1, 1)
        if perm is not None:                                     # grouped token layout
            W1 = W1[:, perm]
            W2 = W2[perm, :]
            B2 = B2[perm, :]
        pk.add(prefix + 'ln1_g', np.ones((1, dim), np.float32))
        pk.add(prefix + 'ln1_b', np.zeros((1, dim), np.float32))
        pk.add(prefix + 'wt1', W1)
        pk.add(prefix + 'bt1', np.tile(B1, (1, dim)))            # pre-broadcast over dim
        pk.add(prefix + 'wt2', W2)
        pk.add(prefix + 'bt2', np.tile(B2, (1, dim)))
        pk.add(prefix + 'ln2_g', np.ones((1, dim), np.float32))
        pk.add(prefix + 'ln2_b', np.zeros((1, dim), np.float32))
        pk.add(prefix + 'wc1', wc1.T)                            # (dim, dim*ef)
        pk.add(prefix + 'bc1', bc1.reshape(1, -1))
        pk.add(prefix + 'wc2', wc2.T)                            # (dim*ef, dim)
        pk.add(prefix + 'bc2', bc2.reshape(1, -1))
        return dict(wt1=wt1, bt1=bt1, wt2=wt2, bt2=bt2,
                    wc1=wc1, bc1=bc1, wc2=wc2, bc2=bc2)

    def add_extractor(prefix, N, depth):
        ew, eb = lin(P, dim)
        pk.add(prefix + 'embed_w', ew.T)
        pk.add(prefix + 'embed_b', eb.reshape(1, -1))
        blocks = [add_mixer_block(f'{prefix}m{d}_', N) for d in range(depth)]
        pk.add(prefix + 'ln_g', np.ones((1, dim), np.float32))
        pk.add(prefix + 'ln_b', np.zeros((1, dim), np.float32))
        return dict(ew=ew, eb=eb, blocks=blocks)

    raw['head'] = add_extractor('head_', n_head, depth=1)
    raw['body'] = add_extractor('body_', n_body, depth=2)

    # grouped stacking order for the shared mixer layers:
    # rows = [all body tokens (batch-major), all head tokens (batch-major), x1 per batch]
    # perm[g] = canonical interleaved (b*n_total + n) token index of grouped row g.
    perm = np.array(
        [b * n_total + n for b in range(B) for n in range(n_body)]
        + [b * n_total + n_body + n for b in range(B) for n in range(n_head)]
        + [b * n_total + n_body + n_head for b in range(B)], dtype=np.int64)

    def add_mixer_layer(prefix):
        blk = add_mixer_block(prefix + 'm_', n_total, perm=perm)
        pk.add(prefix + 'ln_g', np.ones((1, dim), np.float32))
        pk.add(prefix + 'ln_b', np.zeros((1, dim), np.float32))
        return blk

    raw['mix1'] = add_mixer_layer('mix1_')
    raw['mix2'] = add_mixer_layer('mix2_')
    raw['mix3'] = add_mixer_layer('mix3_')

    # per-batch token mean (Reduce 'b n c -> b c') as a constant matrix on grouped rows
    Mm = np.zeros((B, B * n_total), np.float32)
    for g in range(B * n_total):
        if g < B * n_body:
            b = g // n_body
        elif g < B * (n_body + n_head):
            b = (g - B * n_body) // n_head
        else:
            b = g - B * (n_body + n_head)
        Mm[b, g] = 1.0 / n_total
    pk.add('mean_mat', Mm)

    # output heads: 4 linears collapsed into two lane-dense slabs + one bias
    w11, b11 = lin(dim, h1c)
    w12, b12 = lin(dim, h1c)
    w21, b21 = lin(dim, nc)
    w22, b22 = lin(dim, nc)
    n_out = 2 * (h1c + nc)
    Wt = np.zeros((dim, n_out), np.float32)       # multiplies relu(out2)
    Wb = np.zeros((dim, n_out), np.float32)       # multiplies relu(out2 + out3)
    Wt[:, 0:h1c] = w11.T
    Wb[:, h1c:h1c + nc] = w21.T
    Wt[:, h1c + nc:2 * h1c + nc] = w12.T
    Wb[:, 2 * h1c + nc:] = w22.T
    bo = np.concatenate([b11, b21, b12, b22]).reshape(1, -1)
    pk.add('out_w_top', Wt)
    pk.add('out_w_bot', Wb)
    pk.add('out_b', bo)
    raw.update(w11=w11, b11=b11, w12=w12, b12=b12,
               w21=w21, b21=b21, w22=w22, b22=b22)

    slab = jnp.asarray(pk.finalize())
    return slab, pk.offsets, raw


# ---------------------------------------------------------------------------
# The single fused kernel (no grid: everything resident in VMEM, one launch).
# ---------------------------------------------------------------------------
def _fused_kernel(offsets, dims, xh_ref, xb_ref, x1_ref, slab_ref, out_ref):
    (B, n_head, n_body, n_total, dim, h1c, nc) = dims

    def get(name):
        off, r, c = offsets[name]
        return slab_ref[off:off + r, 0:c]          # static slice → free view + load

    dot = functools.partial(jnp.dot, preferred_element_type=jnp.float32,
                            precision=lax.Precision.HIGHEST)

    def ln(x, g, b):                               # nn.LayerNorm (eps=1e-5, biased var)
        mu = jnp.mean(x, axis=-1, keepdims=True)
        var = jnp.mean(jnp.square(x - mu), axis=-1, keepdims=True)
        return (x - mu) * lax.rsqrt(var + 1e-5) * g + b

    def gelu(x):                                   # exact erf GELU (PyTorch default)
        return 0.5 * x * (1.0 + lax.erf(x * 0.7071067811865476))

    def mixer(x, p):
        # PreNormResidual(token-mix Conv1d MLP, block-diag batched weights)
        y = ln(x, get(p + 'ln1_g'), get(p + 'ln1_b'))
        t = gelu(dot(get(p + 'wt1'), y) + get(p + 'bt1'))
        t = dot(get(p + 'wt2'), t) + get(p + 'bt2')
        x = x + t
        # PreNormResidual(channel-mix Linear MLP)
        z = ln(x, get(p + 'ln2_g'), get(p + 'ln2_b'))
        c = gelu(dot(z, get(p + 'wc1')) + get(p + 'bc1'))
        c = dot(c, get(p + 'wc2')) + get(p + 'bc2')
        return x + c

    def extractor(xp, p, depth):
        h = dot(xp, get(p + 'embed_w')) + get(p + 'embed_b')
        for d in range(depth):
            h = mixer(h, f'{p}m{d}_')
        return ln(h, get(p + 'ln_g'), get(p + 'ln_b'))

    # all B batch elements go through every op together (stacked batch-major rows)
    x1e = dot(x1_ref[...], get('feature_w')) + get('feature_b')          # (B, dim)
    head_ext = extractor(xh_ref[...], 'head_', depth=1)                  # (B*n_head, dim)
    body_ext = extractor(xb_ref[...], 'body_', depth=2)                  # (B*n_body, dim)

    # grouped token layout [body | head | x1]; mixer-layer weights were permuted at init
    tokens = jnp.concatenate([body_ext, head_ext, x1e], axis=0)          # (B*n_total, dim)

    out1 = ln(mixer(tokens, 'mix1_m_'), get('mix1_ln_g'), get('mix1_ln_b'))
    out2f = ln(mixer(out1, 'mix2_m_'), get('mix2_ln_g'), get('mix2_ln_b'))
    out3f = ln(mixer(out1, 'mix3_m_'), get('mix3_ln_g'), get('mix3_ln_b'))
    Mm = get('mean_mat')                                                 # (B, B*n_total)
    out2 = dot(Mm, out2f)                                                # (B, dim)
    out3 = dot(Mm, out3f)                                                # (B, dim)

    r2 = jnp.maximum(out2, 0.0)
    r23 = jnp.maximum(out2 + out3, 0.0)
    # 4 output linears collapsed into 2 lane-dense dots into one (B, 16) slab
    logits = dot(r2, get('out_w_top')) + dot(r23, get('out_w_bot')) + get('out_b')
    col = lax.broadcasted_iota(jnp.int32, logits.shape, 1)
    out_ref[...] = jnp.where(col >= (h1c + nc), jax.nn.sigmoid(logits), logits)


# ---------------------------------------------------------------------------
# Forward wrapper: single pallas_call, single output slab, sliced afterwards.
# ---------------------------------------------------------------------------
def build_forward(offsets, dims, h_index, b_index, patch_size):
    (B, n_head, n_body, n_total, dim, h1c, nc) = dims
    h_idx = np.asarray(h_index)            # static constants -> folded into the jit
    b_idx = np.asarray(b_index)
    n_out = 2 * (h1c + nc)
    kernel = functools.partial(_fused_kernel, offsets, dims)

    def forward(slab, x, x1):
        # index_select + einops Rearrange (C=H=1) == gather + reshape into patches,
        # stacked batch-major so the kernel can batch the whole extractor.
        xh = x[:, h_idx].reshape(B * n_head, patch_size)
        xb = x[:, b_idx].reshape(B * n_body, patch_size)
        out = pl.pallas_call(
            kernel,
            out_shape=jax.ShapeDtypeStruct((B, n_out), jnp.float32),
        )(xh, xb, x1, slab)
        return out[:, :h1c], out[:, h1c:h1c + nc], out[:, h1c + nc:]

    return forward


# ---------------------------------------------------------------------------
# Pure-JAX reference of the original PyTorch forward (for validation).
# ---------------------------------------------------------------------------
def ref_forward(raw, x, x1, h_index, b_index, patch_size):
    B = x.shape[0]

    def ln(a):
        mu = jnp.mean(a, axis=-1, keepdims=True)
        v = jnp.mean(jnp.square(a - mu), axis=-1, keepdims=True)
        return (a - mu) * lax.rsqrt(v + 1e-5)

    def gelu(a):
        return 0.5 * a * (1.0 + lax.erf(a * 0.7071067811865476))

    def linear(a, w, b):
        return jnp.dot(a, w.T) + b

    def block(h, p):
        y = ln(h)
        t = jnp.einsum('oi,bid->bod', p['wt1'], y) + p['bt1'][None, :, None]
        t = gelu(t)
        t = jnp.einsum('oi,bid->bod', p['wt2'], t) + p['bt2'][None, :, None]
        h = h + t
        z = ln(h)
        c = gelu(linear(z, p['wc1'], p['bc1']))
        c = linear(c, p['wc2'], p['bc2'])
        return h + c

    def extractor(xp, p):
        h = linear(xp, p['ew'], p['eb'])
        for blk in p['blocks']:
            h = block(h, blk)
        return ln(h)

    xh = x[:, np.asarray(h_index)].reshape(B, -1, patch_size)
    xb = x[:, np.asarray(b_index)].reshape(B, -1, patch_size)
    x1e = linear(x1, raw['fw'], raw['fb'])[:, None, :]
    he = extractor(xh, raw['head'])
    be = extractor(xb, raw['body'])
    tokens = jnp.concatenate([be, he, x1e], axis=1)
    out1 = ln(block(tokens, raw['mix1']))
    out2 = jnp.mean(ln(block(out1, raw['mix2'])), axis=1)
    out3 = jnp.mean(ln(block(out1, raw['mix3'])), axis=1)
    r2 = jnp.maximum(out2, 0.0)
    r23 = jnp.maximum(out2 + out3, 0.0)
    h1 = linear(r2, raw['w11'], raw['b11'])
    h2 = linear(r23, raw['w21'], raw['b21'])
    cat = jnp.concatenate(
        [jax.nn.sigmoid(linear(r2, raw['w12'], raw['b12'])),
         jax.nn.sigmoid(linear(r23, raw['w22'], raw['b22']))], axis=1)
    return h1, h2, cat


# ---------------------------------------------------------------------------
# main
# ---------------------------------------------------------------------------
if __name__ == "__main__":
    jax.config.update("jax_default_matmul_precision", "highest")

    # hparams (small, consistent with the module)
    B = 2
    L = 64                   # raw signal length
    patch_size = 8
    dim = 32
    ef = 4                   # expansion_factor
    h1_class = 3
    num_class = 5

    h_index = np.arange(0, 32, 2, dtype=np.int32)    # 16 indices -> 2 head patches
    b_index = np.arange(32, 64, dtype=np.int32)      # 32 indices -> 4 body patches
    n_head = h_index.shape[0] // patch_size
    n_body = b_index.shape[0] // patch_size
    n_total = n_head + n_body + 1

    slab, offsets, raw = init_model(B, patch_size, dim, ef, n_head, n_body,
                                    h1_class, num_class, seed=0)

    key = jax.random.PRNGKey(0)
    kx, kx1 = jax.random.split(key)
    x = jax.random.normal(kx, (B, L), jnp.float32)
    x1 = jax.random.normal(kx1, (B, 8), jnp.float32)

    dims = (B, n_head, n_body, n_total, dim, h1_class, num_class)
    fwd = jax.jit(build_forward(offsets, dims, h_index, b_index, patch_size))

    h1_out, h2_out, cat_h1_h2 = fwd(slab, x, x1)
    jax.block_until_ready((h1_out, h2_out, cat_h1_h2))

    assert h1_out.shape == (B, h1_class)
    assert h2_out.shape == (B, num_class)
    assert cat_h1_h2.shape == (B, h1_class + num_class)
    assert bool(jnp.all(jnp.isfinite(cat_h1_h2)))

    # validate against the pure-JAX reference of the torch forward
    r1, r2, r3 = ref_forward(raw, x, x1, h_index, b_index, patch_size)
    np.testing.assert_allclose(np.asarray(h1_out), np.asarray(r1), rtol=1e-3, atol=1e-3)
    np.testing.assert_allclose(np.asarray(h2_out), np.asarray(r2), rtol=1e-3, atol=1e-3)
    np.testing.assert_allclose(np.asarray(cat_h1_h2), np.asarray(r3), rtol=1e-3, atol=1e-3)

    print("KERNEL_OK")
</pallas_src>

<mosaic_0001>
module attributes {stable_mosaic.version = 11 : i64} {
  func.func @_fused_kernel(%arg0: memref<4x8xf32, #tpu.memory_space<vmem>>, %arg1: memref<8x8xf32, #tpu.memory_space<vmem>>, %arg2: memref<2x8xf32, #tpu.memory_space<vmem>>, %arg3: memref<2096x128xf32, #tpu.memory_space<vmem>>, %arg4: memref<2x16xf32, #tpu.memory_space<vmem>>) attributes {dimension_semantics = [], scalar_prefetch = 0 : i64, scratch_operands = 0 : i64, tpu.core_type = #tpu.core_type<tc>} {
    %c0 = arith.constant 0 : index
    %c0_0 = arith.constant 0 : index
    %0 = vector.load %arg2[%c0, %c0_0] : memref<2x8xf32, #tpu.memory_space<vmem>>, vector<2x8xf32>
    %c0_1 = arith.constant 0 : index
    %c0_2 = arith.constant 0 : index
    %1 = vector.load %arg3[%c0_1, %c0_2] : memref<2096x128xf32, #tpu.memory_space<vmem>>, vector<8x32xf32>
    %cst = arith.constant dense<0.000000e+00> : vector<2x32xf32>
    %2 = tpu.matmul %0, %1, %cst {dimension_numbers = #tpu.dot_dimension_numbers<[1], [0], [0], [1], [0, 0, 1, 1], [], []>, precision = #tpu.contract_precision<fp32>} : vector<2x8xf32>, vector<8x32xf32>, vector<2x32xf32> -> vector<2x32xf32>
    %c8 = arith.constant 8 : index
    %c0_3 = arith.constant 0 : index
    %3 = vector.load %arg3[%c8, %c0_3] : memref<2096x128xf32, #tpu.memory_space<vmem>>, vector<1x32xf32>
    %4 = vector.broadcast %3 : vector<1x32xf32> to vector<2x32xf32>
    %5 = arith.addf %2, %4 : vector<2x32xf32>
    %c0_4 = arith.constant 0 : index
    %c0_5 = arith.constant 0 : index
    %6 = vector.load %arg0[%c0_4, %c0_5] : memref<4x8xf32, #tpu.memory_space<vmem>>, vector<4x8xf32>
    %c16 = arith.constant 16 : index
    %c0_6 = arith.constant 0 : index
    %7 = vector.load %arg3[%c16, %c0_6] : memref<2096x128xf32, #tpu.memory_space<vmem>>, vector<8x32xf32>
    %cst_7 = arith.constant dense<0.000000e+00> : vector<4x32xf32>
    %8 = tpu.matmul %6, %7, %cst_7 {dimension_numbers = #tpu.dot_dimension_numbers<[1], [0], [0], [1], [0, 0, 1, 1], [], []>, precision = #tpu.contract_precision<fp32>} : vector<4x8xf32>, vector<8x32xf32>, vector<4x32xf32> -> vector<4x32xf32>
    %c24 = arith.constant 24 : index
    %c0_8 = arith.constant 0 : index
    %9 = vector.load %arg3[%c24, %c0_8] : memref<2096x128xf32, #tpu.memory_space<vmem>>, vector<1x32xf32>
    %10 = vector.broadcast %9 : vector<1x32xf32> to vector<4x32xf32>
    %11 = arith.addf %8, %10 : vector<4x32xf32>
    %c32 = arith.constant 32 : index
    %c0_9 = arith.constant 0 : index
    %12 = vector.load %arg3[%c32, %c0_9] : memref<2096x128xf32, #tpu.memory_space<vmem>>, vector<1x32xf32>
    %c40 = arith.constant 40 : index
    %c0_10 = arith.constant 0 : index
    %13 = vector.load %arg3[%c40, %c0_10] : memref<2096x128xf32, #tpu.memory_space<vmem>>, vector<1x32xf32>
    %cst_11 = arith.constant dense<0.000000e+00> : vector<4xf32>
    %14 = vector.multi_reduction <add>, %11, %cst_11 [1] : vector<4x32xf32> to vector<4xf32>
    %15 = vector.shape_cast %14 : vector<4xf32> to vector<4x1xf32>
    %cst_12 = arith.constant 3.200000e+01 : f32
    %16 = vector.broadcast %cst_12 : f32 to vector<4x1xf32>
    %17 = arith.divf %15, %16 : vector<4x1xf32>
    %18 = vector.broadcast %17 : vector<4x1xf32> to vector<4x32xf32>
    %19 = arith.subf %11, %18 : vector<4x32xf32>
    %20 = arith.mulf %19, %19 : vector<4x32xf32>
    %cst_13 = arith.constant dense<0.000000e+00> : vector<4xf32>
    %21 = vector.multi_reduction <add>, %20, %cst_13 [1] : vector<4x32xf32> to vector<4xf32>
    %22 = vector.shape_cast %21 : vector<4xf32> to vector<4x1xf32>
    %cst_14 = arith.constant 3.200000e+01 : f32
    %23 = vector.broadcast %cst_14 : f32 to vector<4x1xf32>
    %24 = arith.divf %22, %23 : vector<4x1xf32>
    %25 = vector.broadcast %17 : vector<4x1xf32> to vector<4x32xf32>
    %26 = arith.subf %11, %25 : vector<4x32xf32>
    %cst_15 = arith.constant 9.99999974E-6 : f32
    %27 = vector.broadcast %cst_15 : f32 to vector<4x1xf32>
    %28 = arith.addf %24, %27 : vector<4x1xf32>
    %29 = math.rsqrt %28 : vector<4x1xf32>
    %30 = vector.broadcast %29 : vector<4x1xf32> to vector<4x32xf32>
    %31 = arith.mulf %26, %30 : vector<4x32xf32>
    %32 = vector.broadcast %12 : vector<1x32xf32> to vector<4x32xf32>
    %33 = arith.mulf %31, %32 : vector<4x32xf32>
    %34 = vector.broadcast %13 : vector<1x32xf32> to vector<4x32xf32>
    %35 = arith.addf %33, %34 : vector<4x32xf32>
    %c48 = arith.constant 48 : index
    %c0_16 = arith.constant 0 : index
    %36 = vector.load %arg3[%c48, %c0_16] : memref<2096x128xf32, #tpu.memory_space<vmem>>, vector<16x4xf32>
    %cst_17 = arith.constant dense<0.000000e+00> : vector<16x32xf32>
    %37 = tpu.matmul %36, %35, %cst_17 {dimension_numbers = #tpu.dot_dimension_numbers<[1], [0], [0], [1], [0, 0, 1, 1], [], []>, precision = #tpu.contract_precision<fp32>} : vector<16x4xf32>, vector<4x32xf32>, vector<16x32xf32> -> vector<16x32xf32>
    %c64 = arith.constant 64 : index
    %c0_18 = arith.constant 0 : index
    %38 = vector.load %arg3[%c64, %c0_18] : memref<2096x128xf32, #tpu.memory_space<vmem>>, vector<16x32xf32>
    %39 = arith.addf %37, %38 : vector<16x32xf32>
    %cst_19 = arith.constant 5.000000e-01 : f32
    %40 = vector.broadcast %cst_19 : f32 to vector<16x32xf32>
    %41 = arith.mulf %40, %39 : vector<16x32xf32>
    %cst_20 = arith.constant 0.707106769 : f32
    %42 = vector.broadcast %cst_20 : f32 to vector<16x32xf32>
    %43 = arith.mulf %39, %42 : vector<16x32xf32>
    %44 = math.erf %43 : vector<16x32xf32>
    %cst_21 = arith.constant 1.000000e+00 : f32
    %45 = vector.broadcast %cst_21 : f32 to vector<16x32xf32>
    %46 = arith.addf %45, %44 : vector<16x32xf32>
    %47 = arith.mulf %41, %46 : vector<16x32xf32>
    %c80 = arith.constant 80 : index
    %c0_22 = arith.constant 0 : index
    %48 = vector.load %arg3[%c80, %c0_22] : memref<2096x128xf32, #tpu.memory_space<vmem>>, vector<4x16xf32>
    %cst_23 = arith.constant dense<0.000000e+00> : vector<4x32xf32>
    %49 = tpu.matmul %48, %47, %cst_23 {dimension_numbers = #tpu.dot_dimension_numbers<[1], [0], [0], [1], [0, 0, 1, 1], [], []>, precision = #tpu.contract_precision<fp32>} : vector<4x16xf32>, vector<16x32xf32>, vector<4x32xf32> -> vector<4x32xf32>
    %c88 = arith.constant 88 : index
    %c0_24 = arith.constant 0 : index
    %50 = vector.load %arg3[%c88, %c0_24] : memref<2096x128xf32, #tpu.memory_space<vmem>>, vector<4x32xf32>
    %51 = arith.addf %49, %50 : vector<4x32xf32>
    %52 = arith.addf %11, %51 : vector<4x32xf32>
    %c96 = arith.constant 96 : index
    %c0_25 = arith.constant 0 : index
    %53 = vector.load %arg3[%c96, %c0_25] : memref<2096x128xf32, #tpu.memory_space<vmem>>, vector<1x32xf32>
    %c104 = arith.constant 104 : index
    %c0_26 = arith.constant 0 : index
    %54 = vector.load %arg3[%c104, %c0_26] : memref<2096x128xf32, #tpu.memory_space<vmem>>, vector<1x32xf32>
    %cst_27 = arith.constant dense<0.000000e+00> : vector<4xf32>
    %55 = vector.multi_reduction <add>, %52, %cst_27 [1] : vector<4x32xf32> to vector<4xf32>
    %56 = vector.shape_cast %55 : vector<4xf32> to vector<4x1xf32>
    %cst_28 = arith.constant 3.200000e+01 : f32
    %57 = vector.broadcast %cst_28 : f32 to vector<4x1xf32>
    %58 = arith.divf %56, %57 : vector<4x1xf32>
    %59 = vector.broadcast %58 : vector<4x1xf32> to vector<4x32xf32>
    %60 = arith.subf %52, %59 : vector<4x32xf32>
    %61 = arith.mulf %60, %60 : vector<4x32xf32>
    %cst_29 = arith.constant dense<0.000000e+00> : vector<4xf32>
    %62 = vector.multi_reduction <add>, %61, %cst_29 [1] : vector<4x32xf32> to vector<4xf32>
    %63 = vector.shape_cast %62 : vector<4xf32> to vector<4x1xf32>
    %cst_30 = arith.constant 3.200000e+01 : f32
    %64 = vector.broadcast %cst_30 : f32 to vector<4x1xf32>
    %65 = arith.divf %63, %64 : vector<4x1xf32>
    %66 = vector.broadcast %58 : vector<4x1xf32> to vector<4x32xf32>
    %67 = arith.subf %52, %66 : vector<4x32xf32>
    %cst_31 = arith.constant 9.99999974E-6 : f32
    %68 = vector.broadcast %cst_31 : f32 to vector<4x1xf32>
    %69 = arith.addf %65, %68 : vector<4x1xf32>
    %70 = math.rsqrt %69 : vector<4x1xf32>
    %71 = vector.broadcast %70 : vector<4x1xf32> to vector<4x32xf32>
    %72 = arith.mulf %67, %71 : vector<4x32xf32>
    %73 = vector.broadcast %53 : vector<1x32xf32> to vector<4x32xf32>
    %74 = arith.mulf %72, %73 : vector<4x32xf32>
    %75 = vector.broadcast %54 : vector<1x32xf32> to vector<4x32xf32>
    %76 = arith.addf %74, %75 : vector<4x32xf32>
    %c112 = arith.constant 112 : index
    %c0_32 = arith.constant 0 : index
    %77 = vector.load %arg3[%c112, %c0_32] : memref<2096x128xf32, #tpu.memory_space<vmem>>, vector<32x128xf32>
    %cst_33 = arith.constant dense<0.000000e+00> : vector<4x128xf32>
    %78 = tpu.matmul %76, %77, %cst_33 {dimension_numbers = #tpu.dot_dimension_numbers<[1], [0], [0], [1], [0, 0, 1, 1], [], []>, precision = #tpu.contract_precision<fp32>} : vector<4x32xf32>, vector<32x128xf32>, vector<4x128xf32> -> vector<4x128xf32>
    %c144 = arith.constant 144 : index
    %c0_34 = arith.constant 0 : index
    %79 = vector.load %arg3[%c144, %c0_34] : memref<2096x128xf32, #tpu.memory_space<vmem>>, vector<1x128xf32>
    %80 = vector.broadcast %79 : vector<1x128xf32> to vector<4x128xf32>
    %81 = arith.addf %78, %80 : vector<4x128xf32>
    %cst_35 = arith.constant 5.000000e-01 : f32
    %82 = vector.broadcast %cst_35 : f32 to vector<4x128xf32>
    %83 = arith.mulf %82, %81 : vector<4x128xf32>
    %cst_36 = arith.constant 0.707106769 : f32
    %84 = vector.broadcast %cst_36 : f32 to vector<4x128xf32>
    %85 = arith.mulf %81, %84 : vector<4x128xf32>
    %86 = math.erf %85 : vector<4x128xf32>
    %cst_37 = arith.constant 1.000000e+00 : f32
    %87 = vector.broadcast %cst_37 : f32 to vector<4x128xf32>
    %88 = arith.addf %87, %86 : vector<4x128xf32>
    %89 = arith.mulf %83, %88 : vector<4x128xf32>
    %c152 = arith.constant 152 : index
    %c0_38 = arith.constant 0 : index
    %90 = vector.load %arg3[%c152, %c0_38] : memref<2096x128xf32, #tpu.memory_space<vmem>>, vector<128x32xf32>
    %cst_39 = arith.constant dense<0.000000e+00> : vector<4x32xf32>
    %91 = tpu.matmul %89, %90, %cst_39 {dimension_numbers = #tpu.dot_dimension_numbers<[1], [0], [0], [1], [0, 0, 1, 1], [], []>, precision = #tpu.contract_precision<fp32>} : vector<4x128xf32>, vector<128x32xf32>, vector<4x32xf32> -> vector<4x32xf32>
    %c280 = arith.constant 280 : index
    %c0_40 = arith.constant 0 : index
    %92 = vector.load %arg3[%c280, %c0_40] : memref<2096x128xf32, #tpu.memory_space<vmem>>, vector<1x32xf32>
    %93 = vector.broadcast %92 : vector<1x32xf32> to vector<4x32xf32>
    %94 = arith.addf %91, %93 : vector<4x32xf32>
    %95 = arith.addf %52, %94 : vector<4x32xf32>
    %c288 = arith.constant 288 : index
    %c0_41 = arith.constant 0 : index
    %96 = vector.load %arg3[%c288, %c0_41] : memref<2096x128xf32, #tpu.memory_space<vmem>>, vector<1x32xf32>
    %c296 = arith.constant 296 : index
    %c0_42 = arith.constant 0 : index
    %97 = vector.load %arg3[%c296, %c0_42] : memref<2096x128xf32, #tpu.memory_space<vmem>>, vector<1x32xf32>
    %cst_43 = arith.constant dense<0.000000e+00> : vector<4xf32>
    %98 = vector.multi_reduction <add>, %95, %cst_43 [1] : vector<4x32xf32> to vector<4xf32>
    %99 = vector.shape_cast %98 : vector<4xf32> to vector<4x1xf32>
    %cst_44 = arith.constant 3.200000e+01 : f32
    %100 = vector.broadcast %cst_44 : f32 to vector<4x1xf32>
    %101 = arith.divf %99, %100 : vector<4x1xf32>
    %102 = vector.broadcast %101 : vector<4x1xf32> to vector<4x32xf32>
    %103 = arith.subf %95, %102 : vector<4x32xf32>
    %104 = arith.mulf %103, %103 : vector<4x32xf32>
    %cst_45 = arith.constant dense<0.000000e+00> : vector<4xf32>
    %105 = vector.multi_reduction <add>, %104, %cst_45 [1] : vector<4x32xf32> to vector<4xf32>
    %106 = vector.shape_cast %105 : vector<4xf32> to vector<4x1xf32>
    %cst_46 = arith.constant 3.200000e+01 : f32
    %107 = vector.broadcast %cst_46 : f32 to vector<4x1xf32>
    %108 = arith.divf %106, %107 : vector<4x1xf32>
    %109 = vector.broadcast %101 : vector<4x1xf32> to vector<4x32xf32>
    %110 = arith.subf %95, %109 : vector<4x32xf32>
    %cst_47 = arith.constant 9.99999974E-6 : f32
    %111 = vector.broadcast %cst_47 : f32 to vector<4x1xf32>
    %112 = arith.addf %108, %111 : vector<4x1xf32>
    %113 = math.rsqrt %112 : vector<4x1xf32>
    %114 = vector.broadcast %113 : vector<4x1xf32> to vector<4x32xf32>
    %115 = arith.mulf %110, %114 : vector<4x32xf32>
    %116 = vector.broadcast %96 : vector<1x32xf32> to vector<4x32xf32>
    %117 = arith.mulf %115, %116 : vector<4x32xf32>
    %118 = vector.broadcast %97 : vector<1x32xf32> to vector<4x32xf32>
    %119 = arith.addf %117, %118 : vector<4x32xf32>
    %c0_48 = arith.constant 0 : index
    %c0_49 = arith.constant 0 : index
    %120 = vector.load %arg1[%c0_48, %c0_49] : memref<8x8xf32, #tpu.memory_space<vmem>>, vector<8x8xf32>
    %c304 = arith.constant 304 : index
    %c0_50 = arith.constant 0 : index
    %121 = vector.load %arg3[%c304, %c0_50] : memref<2096x128xf32, #tpu.memory_space<vmem>>, vector<8x32xf32>
    %cst_51 = arith.constant dense<0.000000e+00> : vector<8x32xf32>
    %122 = tpu.matmul %120, %121, %cst_51 {dimension_numbers = #tpu.dot_dimension_numbers<[1], [0], [0], [1], [0, 0, 1, 1], [], []>, precision = #tpu.contract_precision<fp32>} : vector<8x8xf32>, vector<8x32xf32>, vector<8x32xf32> -> vector<8x32xf32>
    %c312 = arith.constant 312 : index
    %c0_52 = arith.constant 0 : index
    %123 = vector.load %arg3[%c312, %c0_52] : memref<2096x128xf32, #tpu.memory_space<vmem>>, vector<1x32xf32>
    %124 = vector.broadcast %123 : vector<1x32xf32> to vector<8x32xf32>
    %125 = arith.addf %122, %124 : vector<8x32xf32>
    %c320 = arith.constant 320 : index
    %c0_53 = arith.constant 0 : index
    %126 = vector.load %arg3[%c320, %c0_53] : memref<2096x128xf32, #tpu.memory_space<vmem>>, vector<1x32xf32>
    %c328 = arith.constant 328 : index
    %c0_54 = arith.constant 0 : index
    %127 = vector.load %arg3[%c328, %c0_54] : memref<2096x128xf32, #tpu.memory_space<vmem>>, vector<1x32xf32>
    %cst_55 = arith.constant dense<0.000000e+00> : vector<8xf32>
    %128 = vector.multi_reduction <add>, %125, %cst_55 [1] : vector<8x32xf32> to vector<8xf32>
    %129 = vector.shape_cast %128 : vector<8xf32> to vector<8x1xf32>
    %cst_56 = arith.constant 3.200000e+01 : f32
    %130 = vector.broadcast %cst_56 : f32 to vector<8x1xf32>
    %131 = arith.divf %129, %130 : vector<8x1xf32>
    %132 = vector.broadcast %131 : vector<8x1xf32> to vector<8x32xf32>
    %133 = arith.subf %125, %132 : vector<8x32xf32>
    %134 = arith.mulf %133, %133 : vector<8x32xf32>
    %cst_57 = arith.constant dense<0.000000e+00> : vector<8xf32>
    %135 = vector.multi_reduction <add>, %134, %cst_57 [1] : vector<8x32xf32> to vector<8xf32>
    %136 = vector.shape_cast %135 : vector<8xf32> to vector<8x1xf32>
    %cst_58 = arith.constant 3.200000e+01 : f32
    %137 = vector.broadcast %cst_58 : f32 to vector<8x1xf32>
    %138 = arith.divf %136, %137 : vector<8x1xf32>
    %139 = vector.broadcast %131 : vector<8x1xf32> to vector<8x32xf32>
    %140 = arith.subf %125, %139 : vector<8x32xf32>
    %cst_59 = arith.constant 9.99999974E-6 : f32
    %141 = vector.broadcast %cst_59 : f32 to vector<8x1xf32>
    %142 = arith.addf %138, %141 : vector<8x1xf32>
    %143 = math.rsqrt %142 : vector<8x1xf32>
    %144 = vector.broadcast %143 : vector<8x1xf32> to vector<8x32xf32>
    %145 = arith.mulf %140, %144 : vector<8x32xf32>
    %146 = vector.broadcast %126 : vector<1x32xf32> to vector<8x32xf32>
    %147 = arith.mulf %145, %146 : vector<8x32xf32>
    %148 = vector.broadcast %127 : vector<1x32xf32> to vector<8x32xf32>
    %149 = arith.addf %147, %148 : vector<8x32xf32>
    %c336 = arith.constant 336 : index
    %c0_60 = arith.constant 0 : index
    %150 = vector.load %arg3[%c336, %c0_60] : memref<2096x128xf32, #tpu.memory_space<vmem>>, vector<32x8xf32>
    %cst_61 = arith.constant dense<0.000000e+00> : vector<32x32xf32>
    %151 = tpu.matmul %150, %149, %cst_61 {dimension_numbers = #tpu.dot_dimension_numbers<[1], [0], [0], [1], [0, 0, 1, 1], [], []>, precision = #tpu.contract_precision<fp32>} : vector<32x8xf32>, vector<8x32xf32>, vector<32x32xf32> -> vector<32x32xf32>
    %c368 = arith.constant 368 : index
    %c0_62 = arith.constant 0 : index
    %152 = vector.load %arg3[%c368, %c0_62] : memref<2096x128xf32, #tpu.memory_space<vmem>>, vector<32x32xf32>
    %153 = arith.addf %151, %152 : vector<32x32xf32>
    %cst_63 = arith.constant 5.000000e-01 : f32
    %154 = vector.broadcast %cst_63 : f32 to vector<32x32xf32>
    %155 = arith.mulf %154, %153 : vector<32x32xf32>
    %cst_64 = arith.constant 0.707106769 : f32
    %156 = vector.broadcast %cst_64 : f32 to vector<32x32xf32>
    %157 = arith.mulf %153, %156 : vector<32x32xf32>
    %158 = math.erf %157 : vector<32x32xf32>
    %cst_65 = arith.constant 1.000000e+00 : f32
    %159 = vector.broadcast %cst_65 : f32 to vector<32x32xf32>
    %160 = arith.addf %159, %158 : vector<32x32xf32>
    %161 = arith.mulf %155, %160 : vector<32x32xf32>
    %c400 = arith.constant 400 : index
    %c0_66 = arith.constant 0 : index
    %162 = vector.load %arg3[%c400, %c0_66] : memref<2096x128xf32, #tpu.memory_space<vmem>>, vector<8x32xf32>
    %cst_67 = arith.constant dense<0.000000e+00> : vector<8x32xf32>
    %163 = tpu.matmul %162, %161, %cst_67 {dimension_numbers = #tpu.dot_dimension_numbers<[1], [0], [0], [1], [0, 0, 1, 1], [], []>, precision = #tpu.contract_precision<fp32>} : vector<8x32xf32>, vector<32x32xf32>, vector<8x32xf32> -> vector<8x32xf32>
    %c408 = arith.constant 408 : index
    %c0_68 = arith.constant 0 : index
    %164 = vector.load %arg3[%c408, %c0_68] : memref<2096x128xf32, #tpu.memory_space<vmem>>, vector<8x32xf32>
    %165 = arith.addf %163, %164 : vector<8x32xf32>
    %166 = arith.addf %125, %165 : vector<8x32xf32>
    %c416 = arith.constant 416 : index
    %c0_69 = arith.constant 0 : index
    %167 = vector.load %arg3[%c416, %c0_69] : memref<2096x128xf32, #tpu.memory_space<vmem>>, vector<1x32xf32>
    %c424 = arith.constant 424 : index
    %c0_70 = arith.constant 0 : index
    %168 = vector.load %arg3[%c424, %c0_70] : memref<2096x128xf32, #tpu.memory_space<vmem>>, vector<1x32xf32>
    %cst_71 = arith.constant dense<0.000000e+00> : vector<8xf32>
    %169 = vector.multi_reduction <add>, %166, %cst_71 [1] : vector<8x32xf32> to vector<8xf32>
    %170 = vector.shape_cast %169 : vector<8xf32> to vector<8x1xf32>
    %cst_72 = arith.constant 3.200000e+01 : f32
    %171 = vector.broadcast %cst_72 : f32 to vector<8x1xf32>
    %172 = arith.divf %170, %171 : vector<8x1xf32>
    %173 = vector.broadcast %172 : vector<8x1xf32> to vector<8x32xf32>
    %174 = arith.subf %166, %173 : vector<8x32xf32>
    %175 = arith.mulf %174, %174 : vector<8x32xf32>
    %cst_73 = arith.constant dense<0.000000e+00> : vector<8xf32>
    %176 = vector.multi_reduction <add>, %175, %cst_73 [1] : vector<8x32xf32> to vector<8xf32>
    %177 = vector.shape_cast %176 : vector<8xf32> to vector<8x1xf32>
    %cst_74 = arith.constant 3.200000e+01 : f32
    %178 = vector.broadcast %cst_74 : f32 to vector<8x1xf32>
    %179 = arith.divf %177, %178 : vector<8x1xf32>
    %180 = vector.broadcast %172 : vector<8x1xf32> to vector<8x32xf32>
    %181 = arith.subf %166, %180 : vector<8x32xf32>
    %cst_75 = arith.constant 9.99999974E-6 : f32
    %182 = vector.broadcast %cst_75 : f32 to vector<8x1xf32>
    %183 = arith.addf %179, %182 : vector<8x1xf32>
    %184 = math.rsqrt %183 : vector<8x1xf32>
    %185 = vector.broadcast %184 : vector<8x1xf32> to vector<8x32xf32>
    %186 = arith.mulf %181, %185 : vector<8x32xf32>
    %187 = vector.broadcast %167 : vector<1x32xf32> to vector<8x32xf32>
    %188 = arith.mulf %186, %187 : vector<8x32xf32>
    %189 = vector.broadcast %168 : vector<1x32xf32> to vector<8x32xf32>
    %190 = arith.addf %188, %189 : vector<8x32xf32>
    %c432 = arith.constant 432 : index
    %c0_76 = arith.constant 0 : index
    %191 = vector.load %arg3[%c432, %c0_76] : memref<2096x128xf32, #tpu.memory_space<vmem>>, vector<32x128xf32>
    %cst_77 = arith.constant dense<0.000000e+00> : vector<8x128xf32>
    %192 = tpu.matmul %190, %191, %cst_77 {dimension_numbers = #tpu.dot_dimension_numbers<[1], [0], [0], [1], [0, 0, 1, 1], [], []>, precision = #tpu.contract_precision<fp32>} : vector<8x32xf32>, vector<32x128xf32>, vector<8x128xf32> -> vector<8x128xf32>
    %c464 = arith.constant 464 : index
    %c0_78 = arith.constant 0 : index
    %193 = vector.load %arg3[%c464, %c0_78] : memref<2096x128xf32, #tpu.memory_space<vmem>>, vector<1x128xf32>
    %194 = vector.broadcast %193 : vector<1x128xf32> to vector<8x128xf32>
    %195 = arith.addf %192, %194 : vector<8x128xf32>
    %cst_79 = arith.constant 5.000000e-01 : f32
    %196 = vector.broadcast %cst_79 : f32 to vector<8x128xf32>
    %197 = arith.mulf %196, %195 : vector<8x128xf32>
    %cst_80 = arith.constant 0.707106769 : f32
    %198 = vector.broadcast %cst_80 : f32 to vector<8x128xf32>
    %199 = arith.mulf %195, %198 : vector<8x128xf32>
    %200 = math.erf %199 : vector<8x128xf32>
    %cst_81 = arith.constant 1.000000e+00 : f32
    %201 = vector.broadcast %cst_81 : f32 to vector<8x128xf32>
    %202 = arith.addf %201, %200 : vector<8x128xf32>
    %203 = arith.mulf %197, %202 : vector<8x128xf32>
    %c472 = arith.constant 472 : index
    %c0_82 = arith.constant 0 : index
    %204 = vector.load %arg3[%c472, %c0_82] : memref<2096x128xf32, #tpu.memory_space<vmem>>, vector<128x32xf32>
    %cst_83 = arith.constant dense<0.000000e+00> : vector<8x32xf32>
    %205 = tpu.matmul %203, %204, %cst_83 {dimension_numbers = #tpu.dot_dimension_numbers<[1], [0], [0], [1], [0, 0, 1, 1], [], []>, precision = #tpu.contract_precision<fp32>} : vector<8x128xf32>, vector<128x32xf32>, vector<8x32xf32> -> vector<8x32xf32>
    %c600 = arith.constant 600 : index
    %c0_84 = arith.constant 0 : index
    %206 = vector.load %arg3[%c600, %c0_84] : memref<2096x128xf32, #tpu.memory_space<vmem>>, vector<1x32xf32>
    %207 = vector.broadcast %206 : vector<1x32xf32> to vector<8x32xf32>
    %208 = arith.addf %205, %207 : vector<8x32xf32>
    %209 = arith.addf %166, %208 : vector<8x32xf32>
    %c608 = arith.constant 608 : index
    %c0_85 = arith.constant 0 : index
    %210 = vector.load %arg3[%c608, %c0_85] : memref<2096x128xf32, #tpu.memory_space<vmem>>, vector<1x32xf32>
    %c616 = arith.constant 616 : index
    %c0_86 = arith.constant 0 : index
    %211 = vector.load %arg3[%c616, %c0_86] : memref<2096x128xf32, #tpu.memory_space<vmem>>, vector<1x32xf32>
    %cst_87 = arith.constant dense<0.000000e+00> : vector<8xf32>
    %212 = vector.multi_reduction <add>, %209, %cst_87 [1] : vector<8x32xf32> to vector<8xf32>
    %213 = vector.shape_cast %212 : vector<8xf32> to vector<8x1xf32>
    %cst_88 = arith.constant 3.200000e+01 : f32
    %214 = vector.broadcast %cst_88 : f32 to vector<8x1xf32>
    %215 = arith.divf %213, %214 : vector<8x1xf32>
    %216 = vector.broadcast %215 : vector<8x1xf32> to vector<8x32xf32>
    %217 = arith.subf %209, %216 : vector<8x32xf32>
    %218 = arith.mulf %217, %217 : vector<8x32xf32>
    %cst_89 = arith.constant dense<0.000000e+00> : vector<8xf32>
    %219 = vector.multi_reduction <add>, %218, %cst_89 [1] : vector<8x32xf32> to vector<8xf32>
    %220 = vector.shape_cast %219 : vector<8xf32> to vector<8x1xf32>
    %cst_90 = arith.constant 3.200000e+01 : f32
    %221 = vector.broadcast %cst_90 : f32 to vector<8x1xf32>
    %222 = arith.divf %220, %221 : vector<8x1xf32>
    %223 = vector.broadcast %215 : vector<8x1xf32> to vector<8x32xf32>
    %224 = arith.subf %209, %223 : vector<8x32xf32>
    %cst_91 = arith.constant 9.99999974E-6 : f32
    %225 = vector.broadcast %cst_91 : f32 to vector<8x1xf32>
    %226 = arith.addf %222, %225 : vector<8x1xf32>
    %227 = math.rsqrt %226 : vector<8x1xf32>
    %228 = vector.broadcast %227 : vector<8x1xf32> to vector<8x32xf32>
    %229 = arith.mulf %224, %228 : vector<8x32xf32>
    %230 = vector.broadcast %210 : vector<1x32xf32> to vector<8x32xf32>
    %231 = arith.mulf %229, %230 : vector<8x32xf32>
    %232 = vector.broadcast %211 : vector<1x32xf32> to vector<8x32xf32>
    %233 = arith.addf %231, %232 : vector<8x32xf32>
    %c624 = arith.constant 624 : index
    %c0_92 = arith.constant 0 : index
    %234 = vector.load %arg3[%c624, %c0_92] : memref<2096x128xf32, #tpu.memory_space<vmem>>, vector<32x8xf32>
    %cst_93 = arith.constant dense<0.000000e+00> : vector<32x32xf32>
    %235 = tpu.matmul %234, %233, %cst_93 {dimension_numbers = #tpu.dot_dimension_numbers<[1], [0], [0], [1], [0, 0, 1, 1], [], []>, precision = #tpu.contract_precision<fp32>} : vector<32x8xf32>, vector<8x32xf32>, vector<32x32xf32> -> vector<32x32xf32>
    %c656 = arith.constant 656 : index
    %c0_94 = arith.constant 0 : index
    %236 = vector.load %arg3[%c656, %c0_94] : memref<2096x128xf32, #tpu.memory_space<vmem>>, vector<32x32xf32>
    %237 = arith.addf %235, %236 : vector<32x32xf32>
    %cst_95 = arith.constant 5.000000e-01 : f32
    %238 = vector.broadcast %cst_95 : f32 to vector<32x32xf32>
    %239 = arith.mulf %238, %237 : vector<32x32xf32>
    %cst_96 = arith.constant 0.707106769 : f32
    %240 = vector.broadcast %cst_96 : f32 to vector<32x32xf32>
    %241 = arith.mulf %237, %240 : vector<32x32xf32>
    %242 = math.erf %241 : vector<32x32xf32>
    %cst_97 = arith.constant 1.000000e+00 : f32
    %243 = vector.broadcast %cst_97 : f32 to vector<32x32xf32>
    %244 = arith.addf %243, %242 : vector<32x32xf32>
    %245 = arith.mulf %239, %244 : vector<32x32xf32>
    %c688 = arith.constant 688 : index
    %c0_98 = arith.constant 0 : index
    %246 = vector.load %arg3[%c688, %c0_98] : memref<2096x128xf32, #tpu.memory_space<vmem>>, vector<8x32xf32>
    %cst_99 = arith.constant dense<0.000000e+00> : vector<8x32xf32>
    %247 = tpu.matmul %246, %245, %cst_99 {dimension_numbers = #tpu.dot_dimension_numbers<[1], [0], [0], [1], [0, 0, 1, 1], [], []>, precision = #tpu.contract_precision<fp32>} : vector<8x32xf32>, vector<32x32xf32>, vector<8x32xf32> -> vector<8x32xf32>
    %c696 = arith.constant 696 : index
    %c0_100 = arith.constant 0 : index
    %248 = vector.load %arg3[%c696, %c0_100] : memref<2096x128xf32, #tpu.memory_space<vmem>>, vector<8x32xf32>
    %249 = arith.addf %247, %248 : vector<8x32xf32>
    %250 = arith.addf %209, %249 : vector<8x32xf32>
    %c704 = arith.constant 704 : index
    %c0_101 = arith.constant 0 : index
    %251 = vector.load %arg3[%c704, %c0_101] : memref<2096x128xf32, #tpu.memory_space<vmem>>, vector<1x32xf32>
    %c712 = arith.constant 712 : index
    %c0_102 = arith.constant 0 : index
    %252 = vector.load %arg3[%c712, %c0_102] : memref<2096x128xf32, #tpu.memory_space<vmem>>, vector<1x32xf32>
    %cst_103 = arith.constant dense<0.000000e+00> : vector<8xf32>
    %253 = vector.multi_reduction <add>, %250, %cst_103 [1] : vector<8x32xf32> to vector<8xf32>
    %254 = vector.shape_cast %253 : vector<8xf32> to vector<8x1xf32>
    %cst_104 = arith.constant 3.200000e+01 : f32
    %255 = vector.broadcast %cst_104 : f32 to vector<8x1xf32>
    %256 = arith.divf %254, %255 : vector<8x1xf32>
    %257 = vector.broadcast %256 : vector<8x1xf32> to vector<8x32xf32>
    %258 = arith.subf %250, %257 : vector<8x32xf32>
    %259 = arith.mulf %258, %258 : vector<8x32xf32>
    %cst_105 = arith.constant dense<0.000000e+00> : vector<8xf32>
    %260 = vector.multi_reduction <add>, %259, %cst_105 [1] : vector<8x32xf32> to vector<8xf32>
    %261 = vector.shape_cast %260 : vector<8xf32> to vector<8x1xf32>
    %cst_106 = arith.constant 3.200000e+01 : f32
    %262 = vector.broadcast %cst_106 : f32 to vector<8x1xf32>
    %263 = arith.divf %261, %262 : vector<8x1xf32>
    %264 = vector.broadcast %256 : vector<8x1xf32> to vector<8x32xf32>
    %265 = arith.subf %250, %264 : vector<8x32xf32>
    %cst_107 = arith.constant 9.99999974E-6 : f32
    %266 = vector.broadcast %cst_107 : f32 to vector<8x1xf32>
    %267 = arith.addf %263, %266 : vector<8x1xf32>
    %268 = math.rsqrt %267 : vector<8x1xf32>
    %269 = vector.broadcast %268 : vector<8x1xf32> to vector<8x32xf32>
    %270 = arith.mulf %265, %269 : vector<8x32xf32>
    %271 = vector.broadcast %251 : vector<1x32xf32> to vector<8x32xf32>
    %272 = arith.mulf %270, %271 : vector<8x32xf32>
    %273 = vector.broadcast %252 : vector<1x32xf32> to vector<8x32xf32>
    %274 = arith.addf %272, %273 : vector<8x32xf32>
    %c720 = arith.constant 720 : index
    %c0_108 = arith.constant 0 : index
    %275 = vector.load %arg3[%c720, %c0_108] : memref<2096x128xf32, #tpu.memory_space<vmem>>, vector<32x128xf32>
    %cst_109 = arith.constant dense<0.000000e+00> : vector<8x128xf32>
    %276 = tpu.matmul %274, %275, %cst_109 {dimension_numbers = #tpu.dot_dimension_numbers<[1], [0], [0], [1], [0, 0, 1, 1], [], []>, precision = #tpu.contract_precision<fp32>} : vector<8x32xf32>, vector<32x128xf32>, vector<8x128xf32> -> vector<8x128xf32>
    %c752 = arith.constant 752 : index
    %c0_110 = arith.constant 0 : index
    %277 = vector.load %arg3[%c752, %c0_110] : memref<2096x128xf32, #tpu.memory_space<vmem>>, vector<1x128xf32>
    %278 = vector.broadcast %277 : vector<1x128xf32> to vector<8x128xf32>
    %279 = arith.addf %276, %278 : vector<8x128xf32>
    %cst_111 = arith.constant 5.000000e-01 : f32
    %280 = vector.broadcast %cst_111 : f32 to vector<8x128xf32>
    %281 = arith.mulf %280, %279 : vector<8x128xf32>
    %cst_112 = arith.constant 0.707106769 : f32
    %282 = vector.broadcast %cst_112 : f32 to vector<8x128xf32>
    %283 = arith.mulf %279, %282 : vector<8x128xf32>
    %284 = math.erf %283 : vector<8x128xf32>
    %cst_113 = arith.constant 1.000000e+00 : f32
    %285 = vector.broadcast %cst_113 : f32 to vector<8x128xf32>
    %286 = arith.addf %285, %284 : vector<8x128xf32>
    %287 = arith.mulf %281, %286 : vector<8x128xf32>
    %c760 = arith.constant 760 : index
    %c0_114 = arith.constant 0 : index
    %288 = vector.load %arg3[%c760, %c0_114] : memref<2096x128xf32, #tpu.memory_space<vmem>>, vector<128x32xf32>
    %cst_115 = arith.constant dense<0.000000e+00> : vector<8x32xf32>
    %289 = tpu.matmul %287, %288, %cst_115 {dimension_numbers = #tpu.dot_dimension_numbers<[1], [0], [0], [1], [0, 0, 1, 1], [], []>, precision = #tpu.contract_precision<fp32>} : vector<8x128xf32>, vector<128x32xf32>, vector<8x32xf32> -> vector<8x32xf32>
    %c888 = arith.constant 888 : index
    %c0_116 = arith.constant 0 : index
    %290 = vector.load %arg3[%c888, %c0_116] : memref<2096x128xf32, #tpu.memory_space<vmem>>, vector<1x32xf32>
    %291 = vector.broadcast %290 : vector<1x32xf32> to vector<8x32xf32>
    %292 = arith.addf %289, %291 : vector<8x32xf32>
    %293 = arith.addf %250, %292 : vector<8x32xf32>
    %c896 = arith.constant 896 : index
    %c0_117 = arith.constant 0 : index
    %294 = vector.load %arg3[%c896, %c0_117] : memref<2096x128xf32, #tpu.memory_space<vmem>>, vector<1x32xf32>
    %c904 = arith.constant 904 : index
    %c0_118 = arith.constant 0 : index
    %295 = vector.load %arg3[%c904, %c0_118] : memref<2096x128xf32, #tpu.memory_space<vmem>>, vector<1x32xf32>
    %cst_119 = arith.constant dense<0.000000e+00> : vector<8xf32>
    %296 = vector.multi_reduction <add>, %293, %cst_119 [1] : vector<8x32xf32> to vector<8xf32>
    %297 = vector.shape_cast %296 : vector<8xf32> to vector<8x1xf32>
    %cst_120 = arith.constant 3.200000e+01 : f32
    %298 = vector.broadcast %cst_120 : f32 to vector<8x1xf32>
    %299 = arith.divf %297, %298 : vector<8x1xf32>
    %300 = vector.broadcast %299 : vector<8x1xf32> to vector<8x32xf32>
    %301 = arith.subf %293, %300 : vector<8x32xf32>
    %302 = arith.mulf %301, %301 : vector<8x32xf32>
    %cst_121 = arith.constant dense<0.000000e+00> : vector<8xf32>
    %303 = vector.multi_reduction <add>, %302, %cst_121 [1] : vector<8x32xf32> to vector<8xf32>
    %304 = vector.shape_cast %303 : vector<8xf32> to vector<8x1xf32>
    %cst_122 = arith.constant 3.200000e+01 : f32
    %305 = vector.broadcast %cst_122 : f32 to vector<8x1xf32>
    %306 = arith.divf %304, %305 : vector<8x1xf32>
    %307 = vector.broadcast %299 : vector<8x1xf32> to vector<8x32xf32>
    %308 = arith.subf %293, %307 : vector<8x32xf32>
    %cst_123 = arith.constant 9.99999974E-6 : f32
    %309 = vector.broadcast %cst_123 : f32 to vector<8x1xf32>
    %310 = arith.addf %306, %309 : vector<8x1xf32>
    %311 = math.rsqrt %310 : vector<8x1xf32>
    %312 = vector.broadcast %311 : vector<8x1xf32> to vector<8x32xf32>
    %313 = arith.mulf %308, %312 : vector<8x32xf32>
    %314 = vector.broadcast %294 : vector<1x32xf32> to vector<8x32xf32>
    %315 = arith.mulf %313, %314 : vector<8x32xf32>
    %316 = vector.broadcast %295 : vector<1x32xf32> to vector<8x32xf32>
    %317 = arith.addf %315, %316 : vector<8x32xf32>
    %318 = tpu.concatenate %317, %119, %5 in 0 : vector<8x32xf32>, vector<4x32xf32>, vector<2x32xf32> -> vector<14x32xf32>
    %c912 = arith.constant 912 : index
    %c0_124 = arith.constant 0 : index
    %319 = vector.load %arg3[%c912, %c0_124] : memref<2096x128xf32, #tpu.memory_space<vmem>>, vector<1x32xf32>
    %c920 = arith.constant 920 : index
    %c0_125 = arith.constant 0 : index
    %320 = vector.load %arg3[%c920, %c0_125] : memref<2096x128xf32, #tpu.memory_space<vmem>>, vector<1x32xf32>
    %cst_126 = arith.constant dense<0.000000e+00> : vector<14xf32>
    %321 = vector.multi_reduction <add>, %318, %cst_126 [1] : vector<14x32xf32> to vector<14xf32>
    %322 = vector.shape_cast %321 : vector<14xf32> to vector<14x1xf32>
    %cst_127 = arith.constant 3.200000e+01 : f32
    %323 = vector.broadcast %cst_127 : f32 to vector<14x1xf32>
    %324 = arith.divf %322, %323 : vector<14x1xf32>
    %325 = vector.broadcast %324 : vector<14x1xf32> to vector<14x32xf32>
    %326 = arith.subf %318, %325 : vector<14x32xf32>
    %327 = arith.mulf %326, %326 : vector<14x32xf32>
    %cst_128 = arith.constant dense<0.000000e+00> : vector<14xf32>
    %328 = vector.multi_reduction <add>, %327, %cst_128 [1] : vector<14x32xf32> to vector<14xf32>
    %329 = vector.shape_cast %328 : vector<14xf32> to vector<14x1xf32>
    %cst_129 = arith.constant 3.200000e+01 : f32
    %330 = vector.broadcast %cst_129 : f32 to vector<14x1xf32>
    %331 = arith.divf %329, %330 : vector<14x1xf32>
    %332 = vector.broadcast %324 : vector<14x1xf32> to vector<14x32xf32>
    %333 = arith.subf %318, %332 : vector<14x32xf32>
    %cst_130 = arith.constant 9.99999974E-6 : f32
    %334 = vector.broadcast %cst_130 : f32 to vector<14x1xf32>
    %335 = arith.addf %331, %334 : vector<14x1xf32>
    %336 = math.rsqrt %335 : vector<14x1xf32>
    %337 = vector.broadcast %336 : vector<14x1xf32> to vector<14x32xf32>
    %338 = arith.mulf %333, %337 : vector<14x32xf32>
    %339 = vector.broadcast %319 : vector<1x32xf32> to vector<14x32xf32>
    %340 = arith.mulf %338, %339 : vector<14x32xf32>
    %341 = vector.broadcast %320 : vector<1x32xf32> to vector<14x32xf32>
    %342 = arith.addf %340, %341 : vector<14x32xf32>
    %c928 = arith.constant 928 : index
    %c0_131 = arith.constant 0 : index
    %343 = vector.load %arg3[%c928, %c0_131] : memref<2096x128xf32, #tpu.memory_space<vmem>>, vector<56x14xf32>
    %cst_132 = arith.constant dense<0.000000e+00> : vector<56x32xf32>
    %344 = tpu.matmul %343, %342, %cst_132 {dimension_numbers = #tpu.dot_dimension_numbers<[1], [0], [0], [1], [0, 0, 1, 1], [], []>, precision = #tpu.contract_precision<fp32>} : vector<56x14xf32>, vector<14x32xf32>, vector<56x32xf32> -> vector<56x32xf32>
    %c984 = arith.constant 984 : index
    %c0_133 = arith.constant 0 : index
    %345 = vector.load %arg3[%c984, %c0_133] : memref<2096x128xf32, #tpu.memory_space<vmem>>, vector<56x32xf32>
    %346 = arith.addf %344, %345 : vector<56x32xf32>
    %cst_134 = arith.constant 5.000000e-01 : f32
    %347 = vector.broadcast %cst_134 : f32 to vector<56x32xf32>
    %348 = arith.mulf %347, %346 : vector<56x32xf32>
    %cst_135 = arith.constant 0.707106769 : f32
    %349 = vector.broadcast %cst_135 : f32 to vector<56x32xf32>
    %350 = arith.mulf %346, %349 : vector<56x32xf32>
    %351 = math.erf %350 : vector<56x32xf32>
    %cst_136 = arith.constant 1.000000e+00 : f32
    %352 = vector.broadcast %cst_136 : f32 to vector<56x32xf32>
    %353 = arith.addf %352, %351 : vector<56x32xf32>
    %354 = arith.mulf %348, %353 : vector<56x32xf32>
    %c1040 = arith.constant 1040 : index
    %c0_137 = arith.constant 0 : index
    %355 = vector.load %arg3[%c1040, %c0_137] : memref<2096x128xf32, #tpu.memory_space<vmem>>, vector<14x56xf32>
    %cst_138 = arith.constant dense<0.000000e+00> : vector<14x32xf32>
    %356 = tpu.matmul %355, %354, %cst_138 {dimension_numbers = #tpu.dot_dimension_numbers<[1], [0], [0], [1], [0, 0, 1, 1], [], []>, precision = #tpu.contract_precision<fp32>} : vector<14x56xf32>, vector<56x32xf32>, vector<14x32xf32> -> vector<14x32xf32>
    %c1056 = arith.constant 1056 : index
    %c0_139 = arith.constant 0 : index
    %357 = vector.load %arg3[%c1056, %c0_139] : memref<2096x128xf32, #tpu.memory_space<vmem>>, vector<14x32xf32>
    %358 = arith.addf %356, %357 : vector<14x32xf32>
    %359 = arith.addf %318, %358 : vector<14x32xf32>
    %c1072 = arith.constant 1072 : index
    %c0_140 = arith.constant 0 : index
    %360 = vector.load %arg3[%c1072, %c0_140] : memref<2096x128xf32, #tpu.memory_space<vmem>>, vector<1x32xf32>
    %c1080 = arith.constant 1080 : index
    %c0_141 = arith.constant 0 : index
    %361 = vector.load %arg3[%c1080, %c0_141] : memref<2096x128xf32, #tpu.memory_space<vmem>>, vector<1x32xf32>
    %cst_142 = arith.constant dense<0.000000e+00> : vector<14xf32>
    %362 = vector.multi_reduction <add>, %359, %cst_142 [1] : vector<14x32xf32> to vector<14xf32>
    %363 = vector.shape_cast %362 : vector<14xf32> to vector<14x1xf32>
    %cst_143 = arith.constant 3.200000e+01 : f32
    %364 = vector.broadcast %cst_143 : f32 to vector<14x1xf32>
    %365 = arith.divf %363, %364 : vector<14x1xf32>
    %366 = vector.broadcast %365 : vector<14x1xf32> to vector<14x32xf32>
    %367 = arith.subf %359, %366 : vector<14x32xf32>
    %368 = arith.mulf %367, %367 : vector<14x32xf32>
    %cst_144 = arith.constant dense<0.000000e+00> : vector<14xf32>
    %369 = vector.multi_reduction <add>, %368, %cst_144 [1] : vector<14x32xf32> to vector<14xf32>
    %370 = vector.shape_cast %369 : vector<14xf32> to vector<14x1xf32>
    %cst_145 = arith.constant 3.200000e+01 : f32
    %371 = vector.broadcast %cst_145 : f32 to vector<14x1xf32>
    %372 = arith.divf %370, %371 : vector<14x1xf32>
    %373 = vector.broadcast %365 : vector<14x1xf32> to vector<14x32xf32>
    %374 = arith.subf %359, %373 : vector<14x32xf32>
    %cst_146 = arith.constant 9.99999974E-6 : f32
    %375 = vector.broadcast %cst_146 : f32 to vector<14x1xf32>
    %376 = arith.addf %372, %375 : vector<14x1xf32>
    %377 = math.rsqrt %376 : vector<14x1xf32>
    %378 = vector.broadcast %377 : vector<14x1xf32> to vector<14x32xf32>
    %379 = arith.mulf %374, %378 : vector<14x32xf32>
    %380 = vector.broadcast %360 : vector<1x32xf32> to vector<14x32xf32>
    %381 = arith.mulf %379, %380 : vector<14x32xf32>
    %382 = vector.broadcast %361 : vector<1x32xf32> to vector<14x32xf32>
    %383 = arith.addf %381, %382 : vector<14x32xf32>
    %c1088 = arith.constant 1088 : index
    %c0_147 = arith.constant 0 : index
    %384 = vector.load %arg3[%c1088, %c0_147] : memref<2096x128xf32, #tpu.memory_space<vmem>>, vector<32x128xf32>
    %cst_148 = arith.constant dense<0.000000e+00> : vector<14x128xf32>
    %385 = tpu.matmul %383, %384, %cst_148 {dimension_numbers = #tpu.dot_dimension_numbers<[1], [0], [0], [1], [0, 0, 1, 1], [], []>, precision = #tpu.contract_precision<fp32>} : vector<14x32xf32>, vector<32x128xf32>, vector<14x128xf32> -> vector<14x128xf32>
    %c1120 = arith.constant 1120 : index
    %c0_149 = arith.constant 0 : index
    %386 = vector.load %arg3[%c1120, %c0_149] : memref<2096x128xf32, #tpu.memory_space<vmem>>, vector<1x128xf32>
    %387 = vector.broadcast %386 : vector<1x128xf32> to vector<14x128xf32>
    %388 = arith.addf %385, %387 : vector<14x128xf32>
    %cst_150 = arith.constant 5.000000e-01 : f32
    %389 = vector.broadcast %cst_150 : f32 to vector<14x128xf32>
    %390 = arith.mulf %389, %388 : vector<14x128xf32>
    %cst_151 = arith.constant 0.707106769 : f32
    %391 = vector.broadcast %cst_151 : f32 to vector<14x128xf32>
    %392 = arith.mulf %388, %391 : vector<14x128xf32>
    %393 = math.erf %392 : vector<14x128xf32>
    %cst_152 = arith.constant 1.000000e+00 : f32
    %394 = vector.broadcast %cst_152 : f32 to vector<14x128xf32>
    %395 = arith.addf %394, %393 : vector<14x128xf32>
    %396 = arith.mulf %390, %395 : vector<14x128xf32>
    %c1128 = arith.constant 1128 : index
    %c0_153 = arith.constant 0 : index
    %397 = vector.load %arg3[%c1128, %c0_153] : memref<2096x128xf32, #tpu.memory_space<vmem>>, vector<128x32xf32>
    %cst_154 = arith.constant dense<0.000000e+00> : vector<14x32xf32>
    %398 = tpu.matmul %396, %397, %cst_154 {dimension_numbers = #tpu.dot_dimension_numbers<[1], [0], [0], [1], [0, 0, 1, 1], [], []>, precision = #tpu.contract_precision<fp32>} : vector<14x128xf32>, vector<128x32xf32>, vector<14x32xf32> -> vector<14x32xf32>
    %c1256 = arith.constant 1256 : index
    %c0_155 = arith.constant 0 : index
    %399 = vector.load %arg3[%c1256, %c0_155] : memref<2096x128xf32, #tpu.memory_space<vmem>>, vector<1x32xf32>
    %400 = vector.broadcast %399 : vector<1x32xf32> to vector<14x32xf32>
    %401 = arith.addf %398, %400 : vector<14x32xf32>
    %402 = arith.addf %359, %401 : vector<14x32xf32>
    %c1264 = arith.constant 1264 : index
    %c0_156 = arith.constant 0 : index
    %403 = vector.load %arg3[%c1264, %c0_156] : memref<2096x128xf32, #tpu.memory_space<vmem>>, vector<1x32xf32>
    %c1272 = arith.constant 1272 : index
    %c0_157 = arith.constant 0 : index
    %404 = vector.load %arg3[%c1272, %c0_157] : memref<2096x128xf32, #tpu.memory_space<vmem>>, vector<1x32xf32>
    %cst_158 = arith.constant dense<0.000000e+00> : vector<14xf32>
    %405 = vector.multi_reduction <add>, %402, %cst_158 [1] : vector<14x32xf32> to vector<14xf32>
    %406 = vector.shape_cast %405 : vector<14xf32> to vector<14x1xf32>
    %cst_159 = arith.constant 3.200000e+01 : f32
    %407 = vector.broadcast %cst_159 : f32 to vector<14x1xf32>
    %408 = arith.divf %406, %407 : vector<14x1xf32>
    %409 = vector.broadcast %408 : vector<14x1xf32> to vector<14x32xf32>
    %410 = arith.subf %402, %409 : vector<14x32xf32>
    %411 = arith.mulf %410, %410 : vector<14x32xf32>
    %cst_160 = arith.constant dense<0.000000e+00> : vector<14xf32>
    %412 = vector.multi_reduction <add>, %411, %cst_160 [1] : vector<14x32xf32> to vector<14xf32>
    %413 = vector.shape_cast %412 : vector<14xf32> to vector<14x1xf32>
    %cst_161 = arith.constant 3.200000e+01 : f32
    %414 = vector.broadcast %cst_161 : f32 to vector<14x1xf32>
    %415 = arith.divf %413, %414 : vector<14x1xf32>
    %416 = vector.broadcast %408 : vector<14x1xf32> to vector<14x32xf32>
    %417 = arith.subf %402, %416 : vector<14x32xf32>
    %cst_162 = arith.constant 9.99999974E-6 : f32
    %418 = vector.broadcast %cst_162 : f32 to vector<14x1xf32>
    %419 = arith.addf %415, %418 : vector<14x1xf32>
    %420 = math.rsqrt %419 : vector<14x1xf32>
    %421 = vector.broadcast %420 : vector<14x1xf32> to vector<14x32xf32>
    %422 = arith.mulf %417, %421 : vector<14x32xf32>
    %423 = vector.broadcast %403 : vector<1x32xf32> to vector<14x32xf32>
    %424 = arith.mulf %422, %423 : vector<14x32xf32>
    %425 = vector.broadcast %404 : vector<1x32xf32> to vector<14x32xf32>
    %426 = arith.addf %424, %425 : vector<14x32xf32>
    %c1280 = arith.constant 1280 : index
    %c0_163 = arith.constant 0 : index
    %427 = vector.load %arg3[%c1280, %c0_163] : memref<2096x128xf32, #tpu.memory_space<vmem>>, vector<1x32xf32>
    %c1288 = arith.constant 1288 : index
    %c0_164 = arith.constant 0 : index
    %428 = vector.load %arg3[%c1288, %c0_164] : memref<2096x128xf32, #tpu.memory_space<vmem>>, vector<1x32xf32>
    %cst_165 = arith.constant dense<0.000000e+00> : vector<14xf32>
    %429 = vector.multi_reduction <add>, %426, %cst_165 [1] : vector<14x32xf32> to vector<14xf32>
    %430 = vector.shape_cast %429 : vector<14xf32> to vector<14x1xf32>
    %cst_166 = arith.constant 3.200000e+01 : f32
    %431 = vector.broadcast %cst_166 : f32 to vector<14x1xf32>
    %432 = arith.divf %430, %431 : vector<14x1xf32>
    %433 = vector.broadcast %432 : vector<14x1xf32> to vector<14x32xf32>
    %434 = arith.subf %426, %433 : vector<14x32xf32>
    %435 = arith.mulf %434, %434 : vector<14x32xf32>
    %cst_167 = arith.constant dense<0.000000e+00> : vector<14xf32>
    %436 = vector.multi_reduction <add>, %435, %cst_167 [1] : vector<14x32xf32> to vector<14xf32>
    %437 = vector.shape_cast %436 : vector<14xf32> to vector<14x1xf32>
    %cst_168 = arith.constant 3.200000e+01 : f32
    %438 = vector.broadcast %cst_168 : f32 to vector<14x1xf32>
    %439 = arith.divf %437, %438 : vector<14x1xf32>
    %440 = vector.broadcast %432 : vector<14x1xf32> to vector<14x32xf32>
    %441 = arith.subf %426, %440 : vector<14x32xf32>
    %cst_169 = arith.constant 9.99999974E-6 : f32
    %442 = vector.broadcast %cst_169 : f32 to vector<14x1xf32>
    %443 = arith.addf %439, %442 : vector<14x1xf32>
    %444 = math.rsqrt %443 : vector<14x1xf32>
    %445 = vector.broadcast %444 : vector<14x1xf32> to vector<14x32xf32>
    %446 = arith.mulf %441, %445 : vector<14x32xf32>
    %447 = vector.broadcast %427 : vector<1x32xf32> to vector<14x32xf32>
    %448 = arith.mulf %446, %447 : vector<14x32xf32>
    %449 = vector.broadcast %428 : vector<1x32xf32> to vector<14x32xf32>
    %450 = arith.addf %448, %449 : vector<14x32xf32>
    %c1296 = arith.constant 1296 : index
    %c0_170 = arith.constant 0 : index
    %451 = vector.load %arg3[%c1296, %c0_170] : memref<2096x128xf32, #tpu.memory_space<vmem>>, vector<56x14xf32>
    %cst_171 = arith.constant dense<0.000000e+00> : vector<56x32xf32>
    %452 = tpu.matmul %451, %450, %cst_171 {dimension_numbers = #tpu.dot_dimension_numbers<[1], [0], [0], [1], [0, 0, 1, 1], [], []>, precision = #tpu.contract_precision<fp32>} : vector<56x14xf32>, vector<14x32xf32>, vector<56x32xf32> -> vector<56x32xf32>
    %c1352 = arith.constant 1352 : index
    %c0_172 = arith.constant 0 : index
    %453 = vector.load %arg3[%c1352, %c0_172] : memref<2096x128xf32, #tpu.memory_space<vmem>>, vector<56x32xf32>
    %454 = arith.addf %452, %453 : vector<56x32xf32>
    %cst_173 = arith.constant 5.000000e-01 : f32
    %455 = vector.broadcast %cst_173 : f32 to vector<56x32xf32>
    %456 = arith.mulf %455, %454 : vector<56x32xf32>
    %cst_174 = arith.constant 0.707106769 : f32
    %457 = vector.broadcast %cst_174 : f32 to vector<56x32xf32>
    %458 = arith.mulf %454, %457 : vector<56x32xf32>
    %459 = math.erf %458 : vector<56x32xf32>
    %cst_175 = arith.constant 1.000000e+00 : f32
    %460 = vector.broadcast %cst_175 : f32 to vector<56x32xf32>
    %461 = arith.addf %460, %459 : vector<56x32xf32>
    %462 = arith.mulf %456, %461 : vector<56x32xf32>
    %c1408 = arith.constant 1408 : index
    %c0_176 = arith.constant 0 : index
    %463 = vector.load %arg3[%c1408, %c0_176] : memref<2096x128xf32, #tpu.memory_space<vmem>>, vector<14x56xf32>
    %cst_177 = arith.constant dense<0.000000e+00> : vector<14x32xf32>
    %464 = tpu.matmul %463, %462, %cst_177 {dimension_numbers = #tpu.dot_dimension_numbers<[1], [0], [0], [1], [0, 0, 1, 1], [], []>, precision = #tpu.contract_precision<fp32>} : vector<14x56xf32>, vector<56x32xf32>, vector<14x32xf32> -> vector<14x32xf32>
    %c1424 = arith.constant 1424 : index
    %c0_178 = arith.constant 0 : index
    %465 = vector.load %arg3[%c1424, %c0_178] : memref<2096x128xf32, #tpu.memory_space<vmem>>, vector<14x32xf32>
    %466 = arith.addf %464, %465 : vector<14x32xf32>
    %467 = arith.addf %426, %466 : vector<14x32xf32>
    %c1440 = arith.constant 1440 : index
    %c0_179 = arith.constant 0 : index
    %468 = vector.load %arg3[%c1440, %c0_179] : memref<2096x128xf32, #tpu.memory_space<vmem>>, vector<1x32xf32>
    %c1448 = arith.constant 1448 : index
    %c0_180 = arith.constant 0 : index
    %469 = vector.load %arg3[%c1448, %c0_180] : memref<2096x128xf32, #tpu.memory_space<vmem>>, vector<1x32xf32>
    %cst_181 = arith.constant dense<0.000000e+00> : vector<14xf32>
    %470 = vector.multi_reduction <add>, %467, %cst_181 [1] : vector<14x32xf32> to vector<14xf32>
    %471 = vector.shape_cast %470 : vector<14xf32> to vector<14x1xf32>
    %cst_182 = arith.constant 3.200000e+01 : f32
    %472 = vector.broadcast %cst_182 : f32 to vector<14x1xf32>
    %473 = arith.divf %471, %472 : vector<14x1xf32>
    %474 = vector.broadcast %473 : vector<14x1xf32> to vector<14x32xf32>
    %475 = arith.subf %467, %474 : vector<14x32xf32>
    %476 = arith.mulf %475, %475 : vector<14x32xf32>
    %cst_183 = arith.constant dense<0.000000e+00> : vector<14xf32>
    %477 = vector.multi_reduction <add>, %476, %cst_183 [1] : vector<14x32xf32> to vector<14xf32>
    %478 = vector.shape_cast %477 : vector<14xf32> to vector<14x1xf32>
    %cst_184 = arith.constant 3.200000e+01 : f32
    %479 = vector.broadcast %cst_184 : f32 to vector<14x1xf32>
    %480 = arith.divf %478, %479 : vector<14x1xf32>
    %481 = vector.broadcast %473 : vector<14x1xf32> to vector<14x32xf32>
    %482 = arith.subf %467, %481 : vector<14x32xf32>
    %cst_185 = arith.constant 9.99999974E-6 : f32
    %483 = vector.broadcast %cst_185 : f32 to vector<14x1xf32>
    %484 = arith.addf %480, %483 : vector<14x1xf32>
    %485 = math.rsqrt %484 : vector<14x1xf32>
    %486 = vector.broadcast %485 : vector<14x1xf32> to vector<14x32xf32>
    %487 = arith.mulf %482, %486 : vector<14x32xf32>
    %488 = vector.broadcast %468 : vector<1x32xf32> to vector<14x32xf32>
    %489 = arith.mulf %487, %488 : vector<14x32xf32>
    %490 = vector.broadcast %469 : vector<1x32xf32> to vector<14x32xf32>
    %491 = arith.addf %489, %490 : vector<14x32xf32>
    %c1456 = arith.constant 1456 : index
    %c0_186 = arith.constant 0 : index
    %492 = vector.load %arg3[%c1456, %c0_186] : memref<2096x128xf32, #tpu.memory_space<vmem>>, vector<32x128xf32>
    %cst_187 = arith.constant dense<0.000000e+00> : vector<14x128xf32>
    %493 = tpu.matmul %491, %492, %cst_187 {dimension_numbers = #tpu.dot_dimension_numbers<[1], [0], [0], [1], [0, 0, 1, 1], [], []>, precision = #tpu.contract_precision<fp32>} : vector<14x32xf32>, vector<32x128xf32>, vector<14x128xf32> -> vector<14x128xf32>
    %c1488 = arith.constant 1488 : index
    %c0_188 = arith.constant 0 : index
    %494 = vector.load %arg3[%c1488, %c0_188] : memref<2096x128xf32, #tpu.memory_space<vmem>>, vector<1x128xf32>
    %495 = vector.broadcast %494 : vector<1x128xf32> to vector<14x128xf32>
    %496 = arith.addf %493, %495 : vector<14x128xf32>
    %cst_189 = arith.constant 5.000000e-01 : f32
    %497 = vector.broadcast %cst_189 : f32 to vector<14x128xf32>
    %498 = arith.mulf %497, %496 : vector<14x128xf32>
    %cst_190 = arith.constant 0.707106769 : f32
    %499 = vector.broadcast %cst_190 : f32 to vector<14x128xf32>
    %500 = arith.mulf %496, %499 : vector<14x128xf32>
    %501 = math.erf %500 : vector<14x128xf32>
    %cst_191 = arith.constant 1.000000e+00 : f32
    %502 = vector.broadcast %cst_191 : f32 to vector<14x128xf32>
    %503 = arith.addf %502, %501 : vector<14x128xf32>
    %504 = arith.mulf %498, %503 : vector<14x128xf32>
    %c1496 = arith.constant 1496 : index
    %c0_192 = arith.constant 0 : index
    %505 = vector.load %arg3[%c1496, %c0_192] : memref<2096x128xf32, #tpu.memory_space<vmem>>, vector<128x32xf32>
    %cst_193 = arith.constant dense<0.000000e+00> : vector<14x32xf32>
    %506 = tpu.matmul %504, %505, %cst_193 {dimension_numbers = #tpu.dot_dimension_numbers<[1], [0], [0], [1], [0, 0, 1, 1], [], []>, precision = #tpu.contract_precision<fp32>} : vector<14x128xf32>, vector<128x32xf32>, vector<14x32xf32> -> vector<14x32xf32>
    %c1624 = arith.constant 1624 : index
    %c0_194 = arith.constant 0 : index
    %507 = vector.load %arg3[%c1624, %c0_194] : memref<2096x128xf32, #tpu.memory_space<vmem>>, vector<1x32xf32>
    %508 = vector.broadcast %507 : vector<1x32xf32> to vector<14x32xf32>
    %509 = arith.addf %506, %508 : vector<14x32xf32>
    %510 = arith.addf %467, %509 : vector<14x32xf32>
    %c1632 = arith.constant 1632 : index
    %c0_195 = arith.constant 0 : index
    %511 = vector.load %arg3[%c1632, %c0_195] : memref<2096x128xf32, #tpu.memory_space<vmem>>, vector<1x32xf32>
    %c1640 = arith.constant 1640 : index
    %c0_196 = arith.constant 0 : index
    %512 = vector.load %arg3[%c1640, %c0_196] : memref<2096x128xf32, #tpu.memory_space<vmem>>, vector<1x32xf32>
    %cst_197 = arith.constant dense<0.000000e+00> : vector<14xf32>
    %513 = vector.multi_reduction <add>, %510, %cst_197 [1] : vector<14x32xf32> to vector<14xf32>
    %514 = vector.shape_cast %513 : vector<14xf32> to vector<14x1xf32>
    %cst_198 = arith.constant 3.200000e+01 : f32
    %515 = vector.broadcast %cst_198 : f32 to vector<14x1xf32>
    %516 = arith.divf %514, %515 : vector<14x1xf32>
    %517 = vector.broadcast %516 : vector<14x1xf32> to vector<14x32xf32>
    %518 = arith.subf %510, %517 : vector<14x32xf32>
    %519 = arith.mulf %518, %518 : vector<14x32xf32>
    %cst_199 = arith.constant dense<0.000000e+00> : vector<14xf32>
    %520 = vector.multi_reduction <add>, %519, %cst_199 [1] : vector<14x32xf32> to vector<14xf32>
    %521 = vector.shape_cast %520 : vector<14xf32> to vector<14x1xf32>
    %cst_200 = arith.constant 3.200000e+01 : f32
    %522 = vector.broadcast %cst_200 : f32 to vector<14x1xf32>
    %523 = arith.divf %521, %522 : vector<14x1xf32>
    %524 = vector.broadcast %516 : vector<14x1xf32> to vector<14x32xf32>
    %525 = arith.subf %510, %524 : vector<14x32xf32>
    %cst_201 = arith.constant 9.99999974E-6 : f32
    %526 = vector.broadcast %cst_201 : f32 to vector<14x1xf32>
    %527 = arith.addf %523, %526 : vector<14x1xf32>
    %528 = math.rsqrt %527 : vector<14x1xf32>
    %529 = vector.broadcast %528 : vector<14x1xf32> to vector<14x32xf32>
    %530 = arith.mulf %525, %529 : vector<14x32xf32>
    %531 = vector.broadcast %511 : vector<1x32xf32> to vector<14x32xf32>
    %532 = arith.mulf %530, %531 : vector<14x32xf32>
    %533 = vector.broadcast %512 : vector<1x32xf32> to vector<14x32xf32>
    %534 = arith.addf %532, %533 : vector<14x32xf32>
    %c1648 = arith.constant 1648 : index
    %c0_202 = arith.constant 0 : index
    %535 = vector.load %arg3[%c1648, %c0_202] : memref<2096x128xf32, #tpu.memory_space<vmem>>, vector<1x32xf32>
    %c1656 = arith.constant 1656 : index
    %c0_203 = arith.constant 0 : index
    %536 = vector.load %arg3[%c1656, %c0_203] : memref<2096x128xf32, #tpu.memory_space<vmem>>, vector<1x32xf32>
    %cst_204 = arith.constant dense<0.000000e+00> : vector<14xf32>
    %537 = vector.multi_reduction <add>, %426, %cst_204 [1] : vector<14x32xf32> to vector<14xf32>
    %538 = vector.shape_cast %537 : vector<14xf32> to vector<14x1xf32>
    %cst_205 = arith.constant 3.200000e+01 : f32
    %539 = vector.broadcast %cst_205 : f32 to vector<14x1xf32>
    %540 = arith.divf %538, %539 : vector<14x1xf32>
    %541 = vector.broadcast %540 : vector<14x1xf32> to vector<14x32xf32>
    %542 = arith.subf %426, %541 : vector<14x32xf32>
    %543 = arith.mulf %542, %542 : vector<14x32xf32>
    %cst_206 = arith.constant dense<0.000000e+00> : vector<14xf32>
    %544 = vector.multi_reduction <add>, %543, %cst_206 [1] : vector<14x32xf32> to vector<14xf32>
    %545 = vector.shape_cast %544 : vector<14xf32> to vector<14x1xf32>
    %cst_207 = arith.constant 3.200000e+01 : f32
    %546 = vector.broadcast %cst_207 : f32 to vector<14x1xf32>
    %547 = arith.divf %545, %546 : vector<14x1xf32>
    %548 = vector.broadcast %540 : vector<14x1xf32> to vector<14x32xf32>
    %549 = arith.subf %426, %548 : vector<14x32xf32>
    %cst_208 = arith.constant 9.99999974E-6 : f32
    %550 = vector.broadcast %cst_208 : f32 to vector<14x1xf32>
    %551 = arith.addf %547, %550 : vector<14x1xf32>
    %552 = math.rsqrt %551 : vector<14x1xf32>
    %553 = vector.broadcast %552 : vector<14x1xf32> to vector<14x32xf32>
    %554 = arith.mulf %549, %553 : vector<14x32xf32>
    %555 = vector.broadcast %535 : vector<1x32xf32> to vector<14x32xf32>
    %556 = arith.mulf %554, %555 : vector<14x32xf32>
    %557 = vector.broadcast %536 : vector<1x32xf32> to vector<14x32xf32>
    %558 = arith.addf %556, %557 : vector<14x32xf32>
    %c1664 = arith.constant 1664 : index
    %c0_209 = arith.constant 0 : index
    %559 = vector.load %arg3[%c1664, %c0_209] : memref<2096x128xf32, #tpu.memory_space<vmem>>, vector<56x14xf32>
    %cst_210 = arith.constant dense<0.000000e+00> : vector<56x32xf32>
    %560 = tpu.matmul %559, %558, %cst_210 {dimension_numbers = #tpu.dot_dimension_numbers<[1], [0], [0], [1], [0, 0, 1, 1], [], []>, precision = #tpu.contract_precision<fp32>} : vector<56x14xf32>, vector<14x32xf32>, vector<56x32xf32> -> vector<56x32xf32>
    %c1720 = arith.constant 1720 : index
    %c0_211 = arith.constant 0 : index
    %561 = vector.load %arg3[%c1720, %c0_211] : memref<2096x128xf32, #tpu.memory_space<vmem>>, vector<56x32xf32>
    %562 = arith.addf %560, %561 : vector<56x32xf32>
    %cst_212 = arith.constant 5.000000e-01 : f32
    %563 = vector.broadcast %cst_212 : f32 to vector<56x32xf32>
    %564 = arith.mulf %563, %562 : vector<56x32xf32>
    %cst_213 = arith.constant 0.707106769 : f32
    %565 = vector.broadcast %cst_213 : f32 to vector<56x32xf32>
    %566 = arith.mulf %562, %565 : vector<56x32xf32>
    %567 = math.erf %566 : vector<56x32xf32>
    %cst_214 = arith.constant 1.000000e+00 : f32
    %568 = vector.broadcast %cst_214 : f32 to vector<56x32xf32>
    %569 = arith.addf %568, %567 : vector<56x32xf32>
    %570 = arith.mulf %564, %569 : vector<56x32xf32>
    %c1776 = arith.constant 1776 : index
    %c0_215 = arith.constant 0 : index
    %571 = vector.load %arg3[%c1776, %c0_215] : memref<2096x128xf32, #tpu.memory_space<vmem>>, vector<14x56xf32>
    %cst_216 = arith.constant dense<0.000000e+00> : vector<14x32xf32>
    %572 = tpu.matmul %571, %570, %cst_216 {dimension_numbers = #tpu.dot_dimension_numbers<[1], [0], [0], [1], [0, 0, 1, 1], [], []>, precision = #tpu.contract_precision<fp32>} : vector<14x56xf32>, vector<56x32xf32>, vector<14x32xf32> -> vector<14x32xf32>
    %c1792 = arith.constant 1792 : index
    %c0_217 = arith.constant 0 : index
    %573 = vector.load %arg3[%c1792, %c0_217] : memref<2096x128xf32, #tpu.memory_space<vmem>>, vector<14x32xf32>
    %574 = arith.addf %572, %573 : vector<14x32xf32>
    %575 = arith.addf %426, %574 : vector<14x32xf32>
    %c1808 = arith.constant 1808 : index
    %c0_218 = arith.constant 0 : index
    %576 = vector.load %arg3[%c1808, %c0_218] : memref<2096x128xf32, #tpu.memory_space<vmem>>, vector<1x32xf32>
    %c1816 = arith.constant 1816 : index
    %c0_219 = arith.constant 0 : index
    %577 = vector.load %arg3[%c1816, %c0_219] : memref<2096x128xf32, #tpu.memory_space<vmem>>, vector<1x32xf32>
    %cst_220 = arith.constant dense<0.000000e+00> : vector<14xf32>
    %578 = vector.multi_reduction <add>, %575, %cst_220 [1] : vector<14x32xf32> to vector<14xf32>
    %579 = vector.shape_cast %578 : vector<14xf32> to vector<14x1xf32>
    %cst_221 = arith.constant 3.200000e+01 : f32
    %580 = vector.broadcast %cst_221 : f32 to vector<14x1xf32>
    %581 = arith.divf %579, %580 : vector<14x1xf32>
    %582 = vector.broadcast %581 : vector<14x1xf32> to vector<14x32xf32>
    %583 = arith.subf %575, %582 : vector<14x32xf32>
    %584 = arith.mulf %583, %583 : vector<14x32xf32>
    %cst_222 = arith.constant dense<0.000000e+00> : vector<14xf32>
    %585 = vector.multi_reduction <add>, %584, %cst_222 [1] : vector<14x32xf32> to vector<14xf32>
    %586 = vector.shape_cast %585 : vector<14xf32> to vector<14x1xf32>
    %cst_223 = arith.constant 3.200000e+01 : f32
    %587 = vector.broadcast %cst_223 : f32 to vector<14x1xf32>
    %588 = arith.divf %586, %587 : vector<14x1xf32>
    %589 = vector.broadcast %581 : vector<14x1xf32> to vector<14x32xf32>
    %590 = arith.subf %575, %589 : vector<14x32xf32>
    %cst_224 = arith.constant 9.99999974E-6 : f32
    %591 = vector.broadcast %cst_224 : f32 to vector<14x1xf32>
    %592 = arith.addf %588, %591 : vector<14x1xf32>
    %593 = math.rsqrt %592 : vector<14x1xf32>
    %594 = vector.broadcast %593 : vector<14x1xf32> to vector<14x32xf32>
    %595 = arith.mulf %590, %594 : vector<14x32xf32>
    %596 = vector.broadcast %576 : vector<1x32xf32> to vector<14x32xf32>
    %597 = arith.mulf %595, %596 : vector<14x32xf32>
    %598 = vector.broadcast %577 : vector<1x32xf32> to vector<14x32xf32>
    %599 = arith.addf %597, %598 : vector<14x32xf32>
    %c1824 = arith.constant 1824 : index
    %c0_225 = arith.constant 0 : index
    %600 = vector.load %arg3[%c1824, %c0_225] : memref<2096x128xf32, #tpu.memory_space<vmem>>, vector<32x128xf32>
    %cst_226 = arith.constant dense<0.000000e+00> : vector<14x128xf32>
    %601 = tpu.matmul %599, %600, %cst_226 {dimension_numbers = #tpu.dot_dimension_numbers<[1], [0], [0], [1], [0, 0, 1, 1], [], []>, precision = #tpu.contract_precision<fp32>} : vector<14x32xf32>, vector<32x128xf32>, vector<14x128xf32> -> vector<14x128xf32>
    %c1856 = arith.constant 1856 : index
    %c0_227 = arith.constant 0 : index
    %602 = vector.load %arg3[%c1856, %c0_227] : memref<2096x128xf32, #tpu.memory_space<vmem>>, vector<1x128xf32>
    %603 = vector.broadcast %602 : vector<1x128xf32> to vector<14x128xf32>
    %604 = arith.addf %601, %603 : vector<14x128xf32>
    %cst_228 = arith.constant 5.000000e-01 : f32
    %605 = vector.broadcast %cst_228 : f32 to vector<14x128xf32>
    %606 = arith.mulf %605, %604 : vector<14x128xf32>
    %cst_229 = arith.constant 0.707106769 : f32
    %607 = vector.broadcast %cst_229 : f32 to vector<14x128xf32>
    %608 = arith.mulf %604, %607 : vector<14x128xf32>
    %609 = math.erf %608 : vector<14x128xf32>
    %cst_230 = arith.constant 1.000000e+00 : f32
    %610 = vector.broadcast %cst_230 : f32 to vector<14x128xf32>
    %611 = arith.addf %610, %609 : vector<14x128xf32>
    %612 = arith.mulf %606, %611 : vector<14x128xf32>
    %c1864 = arith.constant 1864 : index
    %c0_231 = arith.constant 0 : index
    %613 = vector.load %arg3[%c1864, %c0_231] : memref<2096x128xf32, #tpu.memory_space<vmem>>, vector<128x32xf32>
    %cst_232 = arith.constant dense<0.000000e+00> : vector<14x32xf32>
    %614 = tpu.matmul %612, %613, %cst_232 {dimension_numbers = #tpu.dot_dimension_numbers<[1], [0], [0], [1], [0, 0, 1, 1], [], []>, precision = #tpu.contract_precision<fp32>} : vector<14x128xf32>, vector<128x32xf32>, vector<14x32xf32> -> vector<14x32xf32>
    %c1992 = arith.constant 1992 : index
    %c0_233 = arith.constant 0 : index
    %615 = vector.load %arg3[%c1992, %c0_233] : memref<2096x128xf32, #tpu.memory_space<vmem>>, vector<1x32xf32>
    %616 = vector.broadcast %615 : vector<1x32xf32> to vector<14x32xf32>
    %617 = arith.addf %614, %616 : vector<14x32xf32>
    %618 = arith.addf %575, %617 : vector<14x32xf32>
    %c2000 = arith.constant 2000 : index
    %c0_234 = arith.constant 0 : index
    %619 = vector.load %arg3[%c2000, %c0_234] : memref<2096x128xf32, #tpu.memory_space<vmem>>, vector<1x32xf32>
    %c2008 = arith.constant 2008 : index
    %c0_235 = arith.constant 0 : index
    %620 = vector.load %arg3[%c2008, %c0_235] : memref<2096x128xf32, #tpu.memory_space<vmem>>, vector<1x32xf32>
    %cst_236 = arith.constant dense<0.000000e+00> : vector<14xf32>
    %621 = vector.multi_reduction <add>, %618, %cst_236 [1] : vector<14x32xf32> to vector<14xf32>
    %622 = vector.shape_cast %621 : vector<14xf32> to vector<14x1xf32>
    %cst_237 = arith.constant 3.200000e+01 : f32
    %623 = vector.broadcast %cst_237 : f32 to vector<14x1xf32>
    %624 = arith.divf %622, %623 : vector<14x1xf32>
    %625 = vector.broadcast %624 : vector<14x1xf32> to vector<14x32xf32>
    %626 = arith.subf %618, %625 : vector<14x32xf32>
    %627 = arith.mulf %626, %626 : vector<14x32xf32>
    %cst_238 = arith.constant dense<0.000000e+00> : vector<14xf32>
    %628 = vector.multi_reduction <add>, %627, %cst_238 [1] : vector<14x32xf32> to vector<14xf32>
    %629 = vector.shape_cast %628 : vector<14xf32> to vector<14x1xf32>
    %cst_239 = arith.constant 3.200000e+01 : f32
    %630 = vector.broadcast %cst_239 : f32 to vector<14x1xf32>
    %631 = arith.divf %629, %630 : vector<14x1xf32>
    %632 = vector.broadcast %624 : vector<14x1xf32> to vector<14x32xf32>
    %633 = arith.subf %618, %632 : vector<14x32xf32>
    %cst_240 = arith.constant 9.99999974E-6 : f32
    %634 = vector.broadcast %cst_240 : f32 to vector<14x1xf32>
    %635 = arith.addf %631, %634 : vector<14x1xf32>
    %636 = math.rsqrt %635 : vector<14x1xf32>
    %637 = vector.broadcast %636 : vector<14x1xf32> to vector<14x32xf32>
    %638 = arith.mulf %633, %637 : vector<14x32xf32>
    %639 = vector.broadcast %619 : vector<1x32xf32> to vector<14x32xf32>
    %640 = arith.mulf %638, %639 : vector<14x32xf32>
    %641 = vector.broadcast %620 : vector<1x32xf32> to vector<14x32xf32>
    %642 = arith.addf %640, %641 : vector<14x32xf32>
    %c2016 = arith.constant 2016 : index
    %c0_241 = arith.constant 0 : index
    %643 = vector.load %arg3[%c2016, %c0_241] : memref<2096x128xf32, #tpu.memory_space<vmem>>, vector<2x14xf32>
    %cst_242 = arith.constant dense<0.000000e+00> : vector<2x32xf32>
    %644 = tpu.matmul %643, %534, %cst_242 {dimension_numbers = #tpu.dot_dimension_numbers<[1], [0], [0], [1], [0, 0, 1, 1], [], []>, precision = #tpu.contract_precision<fp32>} : vector<2x14xf32>, vector<14x32xf32>, vector<2x32xf32> -> vector<2x32xf32>
    %cst_243 = arith.constant dense<0.000000e+00> : vector<2x32xf32>
    %645 = tpu.matmul %643, %642, %cst_243 {dimension_numbers = #tpu.dot_dimension_numbers<[1], [0], [0], [1], [0, 0, 1, 1], [], []>, precision = #tpu.contract_precision<fp32>} : vector<2x14xf32>, vector<14x32xf32>, vector<2x32xf32> -> vector<2x32xf32>
    %cst_244 = arith.constant 0.000000e+00 : f32
    %646 = vector.broadcast %cst_244 : f32 to vector<2x32xf32>
    %647 = arith.maximumf %644, %646 : vector<2x32xf32>
    %648 = arith.addf %644, %645 : vector<2x32xf32>
    %cst_245 = arith.constant 0.000000e+00 : f32
    %649 = vector.broadcast %cst_245 : f32 to vector<2x32xf32>
    %650 = arith.maximumf %648, %649 : vector<2x32xf32>
    %c2024 = arith.constant 2024 : index
    %c0_246 = arith.constant 0 : index
    %651 = vector.load %arg3[%c2024, %c0_246] : memref<2096x128xf32, #tpu.memory_space<vmem>>, vector<32x16xf32>
    %cst_247 = arith.constant dense<0.000000e+00> : vector<2x16xf32>
    %652 = tpu.matmul %647, %651, %cst_247 {dimension_numbers = #tpu.dot_dimension_numbers<[1], [0], [0], [1], [0, 0, 1, 1], [], []>, precision = #tpu.contract_precision<fp32>} : vector<2x32xf32>, vector<32x16xf32>, vector<2x16xf32> -> vector<2x16xf32>
    %c2056 = arith.constant 2056 : index
    %c0_248 = arith.constant 0 : index
    %653 = vector.load %arg3[%c2056, %c0_248] : memref<2096x128xf32, #tpu.memory_space<vmem>>, vector<32x16xf32>
    %cst_249 = arith.constant dense<0.000000e+00> : vector<2x16xf32>
    %654 = tpu.matmul %650, %653, %cst_249 {dimension_numbers = #tpu.dot_dimension_numbers<[1], [0], [0], [1], [0, 0, 1, 1], [], []>, precision = #tpu.contract_precision<fp32>} : vector<2x32xf32>, vector<32x16xf32>, vector<2x16xf32> -> vector<2x16xf32>
    %655 = arith.addf %652, %654 : vector<2x16xf32>
    %c2088 = arith.constant 2088 : index
    %c0_250 = arith.constant 0 : index
    %656 = vector.load %arg3[%c2088, %c0_250] : memref<2096x128xf32, #tpu.memory_space<vmem>>, vector<1x16xf32>
    %657 = vector.broadcast %656 : vector<1x16xf32> to vector<2x16xf32>
    %658 = arith.addf %655, %657 : vector<2x16xf32>
    %659 = tpu.iota {dimensions = array<i32: 1>} : vector<2x16xi32>
    %c8_i32 = arith.constant 8 : i32
    %660 = vector.broadcast %c8_i32 : i32 to vector<2x16xi32>
    %661 = arith.cmpi sge, %659, %660 : vector<2x16xi32>
    %662 = arith.negf %658 : vector<2x16xf32>
    %663 = math.exp %662 : vector<2x16xf32>
    %cst_251 = arith.constant 1.000000e+00 : f32
    %664 = vector.broadcast %cst_251 : f32 to vector<2x16xf32>
    %665 = arith.addf %664, %663 : vector<2x16xf32>
    %666 = arith.divf %664, %665 : vector<2x16xf32>
    %667 = arith.select %661, %666, %658 : vector<2x16xi1>, vector<2x16xf32>
    %c0_252 = arith.constant 0 : index
    %c0_253 = arith.constant 0 : index
    %668 = vector.load %arg4[%c0_252, %c0_253] : memref<2x16xf32, #tpu.memory_space<vmem>>, vector<2x16xf32>
    tpu.vector_store %arg4[%c0_252, %c0_253], %667 {strides = array<i32>} : memref<2x16xf32, #tpu.memory_space<vmem>>, vector<2x16xf32>,
    return
  }
}

</mosaic_0001>

<bundles_post_ra>
// kernel: forward.1
= control target key start
LH: loop header
LB: loop body
LE: loop exit
PB: predicated region body
PF: predicated region fallthrough
CT: control target
= control target key end

     0   :  { %9 = vsyncpa [#allocation3], 0  ;;  %s28699_s0 = inlined_call_operand.vmem [shape: f32[4,8], index: 0, kind: input, shape index: {}]   ;;  %s28700_s1 = inlined_call_operand.vmem [shape: f32[8,8], index: 1, kind: input, shape index: {}]   ;;  %s28701_s2 = inlined_call_operand.hbm [shape: f32[2,8], index: 2, kind: input, shape index: {}]   ;;  %s28702_s3 = inlined_call_operand.hbm [shape: f32[2096,128], index: 3, kind: input, shape index: {}]   ;;  %s28703_s4 = inlined_call_operand.vmem [shape: f32[2,16], index: 4, kind: output, shape index: {}]  }
   0x1   :  { %10 = vsyncpa [#allocation5], 0  ;;  %s25366_s15 = smov [#allocation2]   ;;  %s25367_s17 = smov [#allocation4]  }
   0x2   :  { %s21_s16 = sshll.u32 %s25366_s15, 4  ;;  %s30_s18 = sshll.u32 %s25367_s17, 4  ;;  %s22_s16 = int_to_ptr.vmem [resolvable:$true] %s21_s16  ;;  %s25398_s18 = int_to_ptr.vmem [resolvable:$true] %s30_s18 }
   0x3   :  { %s25318_s21 = scalar_lea.hbm %s28701_s2, 32 }
   0x4   :  { %p25319_p0 = scmp.ne.s32.totalorder %s28701_s2, %s25318_s21  ;;  %p25322_p1 = scmp.lt.u32.totalorder %s25318_s21, %s28701_s2 }
   0x6   :  { %p25324_p2 = pnand %p25322_p1, %p25319_p0 }
   0x8   :  { %25327 = shalt.err (!%p25324_p2)
}
   0x9   :  { %s25328_s26 = scalar_lea.vmem %s22_s16, 32  ;;  %p25333_p4 = scmp.lt.s32.totalorder %s22_s16, %s22_s16 }
   0xa   :  { %p25329_p3 = scmp.ne.s32.totalorder %s22_s16, %s25328_s26  ;;  %p25334_p5 = scmp.lt.s32.totalorder %s25328_s26, %s25328_s26 }
   0xc   :  { %p25335_p6 = por %p25334_p5, %p25333_p4 }
   0xe   :  { %p25336_p7 = pnand %p25335_p6, %p25329_p3 }
  0x10   :  { %25339 = shalt.err (!%p25336_p7)
}
  0x11   :  { %24 = dma.hbm_to_vmem [thread:$0]  %s28701_s2, 32, %s22_s16, [#allocation3]  }
  0x12   :  { %s25340_s5 = scalar_lea.hbm %s28702_s3, 33536 }
  0x13   :  { %p25341_p8 = scmp.ne.s32.totalorder %s28702_s3, %s25340_s5  ;;  %p25344_p9 = scmp.lt.u32.totalorder %s25340_s5, %s28702_s3 }
  0x15   :  { %p25346_p10 = pnand %p25344_p9, %p25341_p8 }
  0x17   :  { %25349 = shalt.err (!%p25346_p10)
}
  0x18   :  { %s25350_s10 = scalar_lea.vmem %s25398_s18, 33536  ;;  %p25355_p12 = scmp.lt.s32.totalorder %s25398_s18, %s25398_s18 }
  0x19   :  { %p25351_p11 = scmp.ne.s32.totalorder %s25398_s18, %s25350_s10  ;;  %p25356_p13 = scmp.lt.s32.totalorder %s25350_s10, %s25350_s10 }
  0x1b   :  { %p25357_p0 = por %p25356_p13, %p25355_p12 }
  0x1d   :  { %p25358_p1 = pnand %p25357_p0, %p25351_p11 }
  0x1f   :  { %25361 = shalt.err (!%p25358_p1)
}
  0x20   :  { %s25368_s2 = smov 128   ;;  %s25369_s11 = smov 8  }
  0x21   :  { %36 = dma.hbm_to_vmem [thread:$0]  %s28702_s3, 33536, %s25398_s18, [#allocation5], %s25368_s2, %s25368_s2, %s25369_s11  }
  0x22   :  { %25362 = dma.done.wait [#allocation3], 32  }
  0x23   :  { %25363 = vsyncadd [#allocation3], 4294967264 }
  0x24   :  { %25364 = dma.done.wait [#allocation5], 33536  }
  0x25   :  { %25365 = vsyncadd [#allocation5], 4294933760  ;;  %v28704_v0 = vmov 0.0   ;;  %vm25371_vm0 = vmmov 0   ;;  %vm50_vm1 = vcmask 64512   ;;  %v501_v1 = vld [vmem:[#allocation4 + $0x10] sm:$0xff] }
  0x26   :  { %19991 = vmatprep.subr.mxu1 %v28704_v0  ;;  %19993 = vmatprep.mubr.msk.f32.mxu1 %vm25371_vm0, %v28704_v0  ;;  %v500_v2 = vld [vmem:[%s28699_s0] sm:$0xf]  ;;  %v511_v3 = vand.u32 4294901760, %v501_v1  ;;  %v18471_v14 = vld [vmem:[#allocation4 + $0x18] ss:$0 sm:$0xff]  ;;  %vm958_vm2 = vcmask 257024  }
  0x27   :  { %19961 = vmatprep.subr.mxu0 %v28704_v0  ;;  %19963 = vmatprep.mubr.msk.f32.mxu0 %vm25371_vm0, %v28704_v0  ;;  %v508_v4 = vsel %vm50_vm1, %v500_v2, 0  ;;  %v44_v19 = vld [vmem:[#allocation4] sm:$0xff]  ;;  %v43_v20 = vld [vmem:[#allocation2] sm:$0x3]  ;;  %v983_v37 = vld [vmem:[#allocation4 + $0x30] sm:$0xff]  ;;  %vm987_vm3 = vcmask 31744  }
  0x28   :  { %v576_v5 = vand.u32 4294901760, %v508_v4  ;;  %19992 = vmatpush3.msra.mxu1 %v511_v3  ;;  %v588_v6 = vsub.f32 %v501_v1, %v511_v3  ;;  %v55_v21 = vand.u32 4294901760, %v44_v19  ;;  %v52_v22 = vsel %vm50_vm1, %v43_v20, 0  ;;  %v984_v48 = vld [vmem:[#allocation4 + $0x38] sm:$0xff]  ;;  %v18472_v54 = vld [vmem:[#allocation4 + $0x20] ss:$0 sm:$0xff] }
  0x29   :  { %19996 = vmatprep.subr.mxu1 %v28704_v0  ;;  %v120_v23 = vand.u32 4294901760, %v52_v22  ;;  %v989_v38 = vsel %vm987_vm3, %v983_v37, 0  ;;  %v992_v50 = vsel %vm987_vm3, %v984_v48, 0  ;;  %v18473_v57 = vld [vmem:[#allocation4 + $0x28] ss:$0 sm:$0xff]  ;;  %vm994_vm4 = vcmask 1043456  }
  0x2a   :  { %v577_v7 = vsub.f32 %v508_v4, %v576_v5  ;;  %v589_v8 = vand.u32 4294901760, %v588_v6  ;;  %19962 = vmatpush3.msra.mxu0 %v55_v21  ;;  %v132_v24 = vsub.f32 %v44_v19, %v55_v21  ;;  %v1064_v39 = vand.u32 4294901760, %v989_v38 }
  0x2b   :  { %v121_v25 = vsub.f32 %v52_v22, %v120_v23  ;;  %19966 = vmatprep.subr.mxu0 %v28704_v0  ;;  %v1074_v51 = vand.u32 4294901760, %v992_v50  ;;  %vm1499_vm5 = vcmask 130048   ;;  %vm1997_vm6 = vcmask 261120  }
  0x2c   :  { %v578_v9 = vand.u32 4294901760, %v577_v7  ;;  %v590_v10 = vsub.f32 %v588_v6, %v589_v8  ;;  %v133_v26 = vand.u32 4294901760, %v132_v24  ;;  %v1065_v40 = vsub.f32 %v989_v38, %v1064_v39 }
  0x2d   :  { %v122_v27 = vand.u32 4294901760, %v121_v25  ;;  %v1075_v52 = vsub.f32 %v992_v50, %v1074_v51  ;;  %vm8311_vm7 = vcmask 259072   ;;  %vm8361_vm8 = vcmask 113664  }
  0x2e   :  { %v579_v11 = vsub.f32 %v577_v7, %v578_v9  ;;  %v591_v12 = vand.u32 4294901760, %v590_v10  ;;  %v134_v28 = vsub.f32 %v132_v24, %v133_v26  ;;  %v1066_v41 = vand.u32 4294901760, %v1065_v40 }
  0x2f   :  { %v123_v29 = vsub.f32 %v121_v25, %v122_v27  ;;  %v1076_v55 = vand.u32 4294901760, %v1075_v52  ;;  %vm8383_vm9 = vcmask 1045504   ;;  %vm9143_vm10 = vcmask 457728  }
  0x30   :  { %v580_v13 = vand.u32 4294901760, %v579_v11  ;;  %v135_v30 = vand.u32 4294901760, %v134_v28  ;;  %v1067_v42 = vsub.f32 %v1065_v40, %v1066_v41  ;;  %vm18462_vm12 = vcmask 123904  }
  0x31   :  { %v124_v31 = vand.u32 4294901760, %v123_v29  ;;  %v1077_v59 = vsub.f32 %v1075_v52, %v1076_v55 }
  0x32   :  { %19994 = vmatmul.mubr.f32.vlgmr.msra.gmra.mrb[0].mxu1 %v580_v13  ;;  %v1068_v43 = vand.u32 4294901760, %v1067_v42 }
  0x33   :  { %19997 = vmatpush3.msra.mxu1 %v591_v12  ;;  %19998 = vmatprep.mubr.msk.f32.mxu1 %vm25371_vm0, %v28704_v0  ;;  %v1078_v63 = vand.u32 4294901760, %v1077_v59  ;;  %v1497_v12 = vld [vmem:[#allocation4 + $0x50] sm:$0xf] }
  0x34   :  { %20001 = vmatprep.subr.mxu1 %v28704_v0  ;;  %19964 = vmatmul.mubr.f32.vlgmr.msra.gmra.mrb[0].mxu0 %v124_v31 }
  0x35   :  { %19967 = vmatpush3.msra.mxu0 %v135_v30  ;;  %19968 = vmatprep.mubr.msk.f32.mxu0 %vm25371_vm0, %v28704_v0 }
  0x36   :  { %19971 = vmatprep.subr.mxu0 %v28704_v0 }
  0x3a   :  { %19999 = vmatmul.mubr.f32.vlgmr.msra.gmra.mrb[0].mxu1 %v576_v5 }
  0x3b   :  { %20002 = vmatpush3.msra.mxu1 %v588_v6  ;;  %20003 = vmatprep.mubr.msk.f32.mxu1 %vm25371_vm0, %v28704_v0  ;;  %v986_v6 = vld [vmem:[#allocation4 + $0x48] sm:$0xff] }
  0x3c   :  { %20006 = vmatprep.subr.mxu1 %v28704_v0  ;;  %19969 = vmatmul.mubr.f32.vlgmr.msra.gmra.mrb[0].mxu0 %v120_v23 }
  0x3d   :  { %19972 = vmatpush3.msra.mxu0 %v132_v24  ;;  %19973 = vmatprep.mubr.msk.f32.mxu0 %vm25371_vm0, %v28704_v0 }
  0x3e   :  { %19976 = vmatprep.subr.mxu0 %v28704_v0 }
  0x42   :  { %20004 = vmatmul.mubr.f32.vlgmr.msra.gmra.mrb[0].mxu1 %v577_v7  ;;  %v985_v7 = vld [vmem:[#allocation4 + $0x40] sm:$0xff] }
  0x43   :  { %20007 = vmatpush3.msra.mxu1 %v511_v3  ;;  %20008 = vmatprep.mubr.msk.f32.mxu1 %vm25371_vm0, %v28704_v0 }
  0x44   :  { %20011 = vmatprep.subr.mxu1 %v28704_v0  ;;  %19974 = vmatmul.mubr.f32.vlgmr.msra.gmra.mrb[0].mxu0 %v121_v25 }
  0x45   :  { %19977 = vmatpush3.msra.mxu0 %v55_v21  ;;  %19978 = vmatprep.mubr.msk.f32.mxu0 %vm25371_vm0, %v28704_v0 }
  0x46   :  { %19981 = vmatprep.subr.mxu0 %v28704_v0 }
  0x4a   :  { %20009 = vmatmul.mubr.f32.vlgmr.msra.gmra.mrb[0].mxu1 %v578_v9 }
  0x4b   :  { %20012 = vmatpush3.msra.mxu1 %v589_v8  ;;  %20013 = vmatprep.mubr.msk.f32.mxu1 %vm25371_vm0, %v28704_v0 }
  0x4c   :  { %20016 = vmatprep.subr.mxu1 %v28704_v0  ;;  %19979 = vmatmul.mubr.f32.vlgmr.msra.gmra.mrb[0].mxu0 %v122_v27 }
  0x4d   :  { %19982 = vmatpush3.msra.mxu0 %v133_v26  ;;  %19983 = vmatprep.mubr.msk.f32.mxu0 %vm25371_vm0, %v28704_v0 }
  0x4e   :  { %19986 = vmatprep.subr.mxu0 %v28704_v0 }
  0x52   :  { %20014 = vmatmul.mubr.f32.vlgmr.msra.gmra.mrb[0].mxu1 %v576_v5 }
  0x53   :  { %20017 = vmatpush3.msra.mxu1 %v511_v3  ;;  %20018 = vmatprep.mubr.msk.f32.mxu1 %vm25371_vm0, %v28704_v0 }
  0x54   :  { %19984 = vmatmul.mubr.f32.vlgmr.msra.gmra.mrb[0].mxu0 %v120_v23 }
  0x55   :  { %19987 = vmatpush3.msra.mxu0 %v55_v21  ;;  %19988 = vmatprep.mubr.msk.f32.mxu0 %vm25371_vm0, %v28704_v0 }
  0x5a   :  { %20019 = vmatmul.mubr.f32.vlgmr.msra.gmra.mrb[0].mxu1 %v576_v5  ;;  %v28706_v5 = vmov 0.0|0.0  }
  0x5b   :  { %20055 = vmatprep.mubr.msk.f32.mxu1 %vm25371_vm0, %v28704_v0  ;;  %22979 = vmatprep.subr.bf16.mxu1 %v28706_v5 }
  0x5c   :  { %19989 = vmatmul.mubr.f32.vlgmr.msra.gmra.mrb[0].mxu0 %v120_v23 }
  0x5d   :  { %20023 = vmatprep.mubr.f32.mxu0 %v1068_v43 }
 0x12d   :  { %v952_v15 = vpop.f32.mrb[0].mxu1 }
 0x12e   :  { %v25456_v16 = vadd.f32 %v18471_v14, %v952_v15  ;;  %v20020_v17 = vpop.f32.mrb[1].mxu1  ;;  %v1501_v15 = vsel %vm1499_vm5, %v1497_v12, 0 }
 0x12f   :  { %v25478_v44 = vpop.f32.mrb[0].mxu0  ;;  %v1570_v17 = vand.u32 4294901760, %v1501_v15 }
 0x130   :  { %v959_v18 = vsel %vm958_vm2, %v25456_v16, 0.0  ;;  %v19990_v45 = vpop.f32.mrb[1].mxu0 }
 0x131   :  { %960 = vadd.xlane.f32.xlu0 %v959_v18  ;;  %v1571_v18 = vsub.f32 %v1501_v15, %v1570_v17 }
 0x133   :  { %v1572_v23 = vand.u32 4294901760, %v1571_v18 }
 0x135   :  { %v1573_v29 = vsub.f32 %v1571_v18, %v1572_v23 }
 0x1be   :  { %v961_v32 = vpop.xlane.xlu0 %960 }
 0x1bf   :  { %v963_v33 = vmul.f32 0.03125, %v961_v32 }
 0x1c1   :  { %v964_v34 = vsub.f32 %v25456_v16, %v963_v33 }
 0x1c3   :  { %v965_v35 = vmul.f32 %v964_v34, %v964_v34 }
 0x1c5   :  { %v966_v36 = vsel %vm958_vm2, %v965_v35, 0.0  ;;  %v1574_v35 = vand.u32 4294901760, %v1573_v29 }
 0x1c6   :  { %967 = vadd.xlane.f32.xlu0 %v966_v36 }
 0x253   :  { %v968_v46 = vpop.xlane.xlu0 %967 }
 0x254   :  { %v969_v47 = vmul.f32 0.03125, %v968_v46 }
 0x256   :  { %v970_v49 = vadd.f32 1e-05, %v969_v47  ;;  %v1498_v47 = vld [vmem:[#allocation4 + $0x58] sm:$0xf] }
 0x258   :  { %25186 = vrsqrt.f32 %v970_v49 }
 0x262   :  { %v25187_v53 = vpop.eup %25186 }
 0x263   :  { %v972_v56 = vmul.f32 %v25187_v53, %v964_v34 }
 0x265   :  { %v977_v58 = vmul.f32 %v18472_v54, %v972_v56 }
 0x267   :  { %v982_v60 = vadd.f32 %v18473_v57, %v977_v58 }
 0x269   :  { %v996_v61 = vsel %vm994_vm4, %v982_v60, 0 }
 0x26a   :  { %v999_v62 = vand.u32 4294901760, %v996_v61 }
 0x26c   :  { %20021 = vmatprep.subr.mxu0 %v999_v62  ;;  %v1086_v1 = vsub.f32 %v996_v61, %v999_v62 }
 0x26d   :  { %20022 = vmatpush3.msra.mxu0 %v999_v62 }
 0x26e   :  { %20024 = vmatmul.mubr.f32.vlgmr.msra.gmra.mrb[2].mxu0 %v1078_v63  ;;  %v1087_v2 = vand.u32 4294901760, %v1086_v1 }
 0x26f   :  { %20028 = vmatprep.mubr.f32.mxu0 %v1064_v39 }
 0x270   :  { %v1088_v3 = vsub.f32 %v1086_v1, %v1087_v2 }
 0x272   :  { %v1089_v4 = vand.u32 4294901760, %v1088_v3 }
 0x274   :  { %20026 = vmatprep.subr.mxu0 %v1089_v4 }
 0x275   :  { %20027 = vmatpush3.msra.mxu0 %v1089_v4 }
 0x276   :  { %20029 = vmatmul.mubr.f32.vlgmr.msra.gmra.mrb[2].mxu0 %v1074_v51  ;;  %20031 = vmatprep.subr.mxu0 %v1086_v1 }
 0x277   :  { %20032 = vmatpush3.msra.mxu0 %v1086_v1  ;;  %20033 = vmatprep.mubr.f32.mxu0 %v1065_v40 }
 0x278   :  { %20036 = vmatprep.subr.mxu0 %v999_v62 }
 0x27e   :  { %20034 = vmatmul.mubr.f32.vlgmr.msra.gmra.mrb[2].mxu0 %v1075_v52 }
 0x27f   :  { %20037 = vmatpush3.msra.mxu0 %v999_v62  ;;  %20038 = vmatprep.mubr.f32.mxu0 %v1066_v41 }
 0x280   :  { %20041 = vmatprep.subr.mxu0 %v1087_v2 }
 0x286   :  { %20039 = vmatmul.mubr.f32.vlgmr.msra.gmra.mrb[2].mxu0 %v1076_v55 }
 0x287   :  { %20042 = vmatpush3.msra.mxu0 %v1087_v2  ;;  %20043 = vmatprep.mubr.f32.mxu0 %v1064_v39 }
 0x288   :  { %20046 = vmatprep.subr.mxu0 %v999_v62 }
 0x28e   :  { %20044 = vmatmul.mubr.f32.vlgmr.msra.gmra.mrb[2].mxu0 %v1074_v51 }
 0x28f   :  { %20047 = vmatpush3.msra.mxu0 %v999_v62  ;;  %20048 = vmatprep.mubr.f32.mxu0 %v1064_v39 }
 0x290   :  { %22997 = vmatprep.subr.bf16.mxu0 %v28706_v5 }
 0x296   :  { %20049 = vmatmul.mubr.f32.vlgmr.msra.gmra.mrb[2].mxu0 %v1074_v51 }
 0x297   :  { %20101 = vmatprep.mubr.msk.f32.mxu0 %vm25371_vm0, %v28704_v0 }
 0x369   :  { %v20050_v8 = vpop.f32.mrb[2].mxu0 }
 0x36a   :  { %v24711_v9 = vadd.f32 %v20050_v8, %v986_v6  ;;  %v1477_v10 = vpop.f32.mrb[3].mxu0 }
 0x36b   :  { %v24712_v11 = vadd.f32 %v1477_v10, %v985_v7  ;;  %v1989_v10 = vld [vmem:[#allocation4 + $0x78] sm:$0xff] }
 0x36c   :  { %v1490_v13 = vmul.f32 0.70710677, %v24711_v9  ;;  %v1488_v21 = vmul.f32 0.5, %v24711_v9  ;;  %v1988_v9 = vld [vmem:[#allocation4 + $0x70] sm:$0xff] }
 0x36d   :  { %v1489_v14 = vmul.f32 0.70710677, %v24712_v11  ;;  %v1487_v24 = vmul.f32 0.5, %v24712_v11  ;;  %v1990_v11 = vld [vmem:[#allocation4 + $0x80] sm:$0xff]  ;;  %v2002_v12 = vand.u32 4294901760, %v1988_v9 }
 0x36e   :  { %25188 = verf.f32 %v1490_v13  ;;  %v2005_v13 = vand.u32 4294901760, %v1989_v10 }
 0x36f   :  { %25190 = verf.f32 %v1489_v14  ;;  %v1991_v14 = vld [vmem:[#allocation4 + $0x88] sm:$0xff] }
 0x370   :  { %v2011_v15 = vand.u32 4294901760, %v1991_v14 }
 0x378   :  { %v25189_v19 = vpop.eup %25188 }
 0x379   :  { %v25191_v20 = vpop.eup %25190  ;;  %v1494_v22 = vadd.f32 1.0, %v25189_v19  ;;  %v2089_v19 = vsub.f32 %v1989_v10, %v2005_v13 }
 0x37a   :  { %v1493_v25 = vadd.f32 1.0, %v25191_v20 }
 0x37b   :  { %v1496_v26 = vmul.f32 %v1494_v22, %v1488_v21  ;;  %v2103_v21 = vsub.f32 %v1991_v14, %v2011_v15 }
 0x37c   :  { %v1495_v27 = vmul.f32 %v1493_v25, %v1487_v24  ;;  %v2090_v24 = vand.u32 4294901760, %v2089_v19 }
 0x37d   :  { %v1507_v28 = vand.u32 4294901760, %v1496_v26 }
 0x37e   :  { %v1504_v30 = vand.u32 4294901760, %v1495_v27 }
 0x37f   :  { %v1589_v31 = vsub.f32 %v1496_v26, %v1507_v28  ;;  %v2091_v26 = vsub.f32 %v2089_v19, %v2090_v24 }
 0x380   :  { %v1582_v32 = vsub.f32 %v1495_v27, %v1504_v30  ;;  %v22980_v33 = vpack.c.bf16 %v1507_v28, %v1504_v30  ;;  %v2104_v30 = vand.u32 4294901760, %v2103_v21 }
 0x381   :  { %v1590_v34 = vand.u32 4294901760, %v1589_v31  ;;  %v2092_v28 = vand.u32 4294901760, %v2091_v26  ;;  %v2500_v26 = vld [vmem:[#allocation4 + $0xe0] sm:$0xff] }
 0x382   :  { %v1583_v36 = vand.u32 4294901760, %v1582_v32  ;;  %22981 = vmatpush3.bf16.msra.mxu1 %v22980_v33  ;;  %v22986_v37 = vpack.c.bf16 %v1589_v31, %v1582_v32 }
 0x383   :  { %22982 = vmatprep.subr.bf16.mxu1 %v28706_v5  ;;  %v1591_v38 = vsub.f32 %v1589_v31, %v1590_v34 }
 0x384   :  { %v1584_v39 = vsub.f32 %v1582_v32, %v1583_v36  ;;  %v22992_v40 = vpack.c.bf16 %v1590_v34, %v1583_v36 }
 0x385   :  { %20056 = vmatmul.mubr.f32.vlgmr.msra.gmra.mrb[2].mxu1 %v1574_v35  ;;  %v1592_v41 = vand.u32 4294901760, %v1591_v38 }
 0x386   :  { %v1585_v42 = vand.u32 4294901760, %v1584_v39  ;;  %20062 = vmatprep.mubr.msk.f32.mxu1 %vm25371_vm0, %v28704_v0 }
 0x388   :  { %v22983_v43 = vpack.c.bf16 %v1592_v41, %v1585_v42  ;;  %v2491_v41 = vld [vmem:[#allocation4 + $0x98] sm:$0xff]  ;;  %v2492_v42 = vld [vmem:[#allocation4 + $0xa0] sm:$0xff] }
 0x38a   :  { %22984 = vmatpush3.bf16.msra.mxu1 %v22983_v43  ;;  %v2513_v43 = vand.u32 4294901760, %v2491_v41 }
 0x38b   :  { %22985 = vmatprep.subr.bf16.mxu1 %v28706_v5 }
 0x38d   :  { %20063 = vmatmul.mubr.f32.vlgmr.msra.gmra.mrb[4].mxu1 %v1570_v17 }
 0x38e   :  { %22987 = vmatpush3.bf16.msra.mxu1 %v22986_v37  ;;  %20069 = vmatprep.mubr.msk.f32.mxu1 %vm25371_vm0, %v28704_v0 }
 0x38f   :  { %22988 = vmatprep.subr.bf16.mxu1 %v28706_v5 }
 0x391   :  { %20070 = vmatmul.mubr.f32.vlgmr.msra.gmra.mrb[6].mxu1 %v1571_v18  ;;  %v2082_v18 = vsub.f32 %v1988_v9, %v2002_v12 }
 0x392   :  { %22990 = vmatpush3.bf16.msra.mxu1 %v22980_v33  ;;  %20076 = vmatprep.mubr.msk.f32.mxu1 %vm25371_vm0, %v28704_v0 }
 0x393   :  { %22991 = vmatprep.subr.bf16.mxu1 %v28706_v5  ;;  %v23010_v37 = vpack.c.bf16 %v2089_v19, %v2082_v18 }
 0x395   :  { %20077 = vmatmul.mubr.f32.vlgmr.msra.gmra.mrb[8].mxu1 %v1572_v23  ;;  %v2083_v23 = vand.u32 4294901760, %v2082_v18 }
 0x396   :  { %22993 = vmatpush3.bf16.msra.mxu1 %v22992_v40  ;;  %20083 = vmatprep.mubr.msk.f32.mxu1 %vm25371_vm0, %v28704_v0 }
 0x397   :  { %22994 = vmatprep.subr.bf16.mxu1 %v28706_v5  ;;  %v2084_v25 = vsub.f32 %v2082_v18, %v2083_v23  ;;  %v23022_v39 = vpack.c.bf16 %v2090_v24, %v2083_v23  ;;  %v2498_v18 = vld [vmem:[#allocation4 + $0xd0] sm:$0xff] }
 0x399   :  { %20084 = vmatmul.mubr.f32.vlgmr.msra.gmra.mrb[10].mxu1 %v1570_v17  ;;  %v2085_v27 = vand.u32 4294901760, %v2084_v25  ;;  %v2499_v25 = vld [vmem:[#allocation4 + $0xd8] sm:$0xff] }
 0x39a   :  { %22996 = vmatpush3.bf16.msra.mxu1 %v22980_v33  ;;  %20090 = vmatprep.mubr.msk.f32.mxu1 %vm25371_vm0, %v28704_v0  ;;  %v2105_v33 = vsub.f32 %v2103_v21, %v2104_v30 }
 0x39b   :  { %23033 = vmatprep.subr.bf16.mxu1 %v28706_v5  ;;  %v23004_v31 = vpack.c.bf16 %v2092_v28, %v2085_v27  ;;  %v2537_v28 = vand.u32 4294901760, %v2499_v25 }
 0x39c   :  { %v2106_v35 = vand.u32 4294901760, %v2105_v33  ;;  %v2501_v33 = vld [vmem:[#allocation4 + $0xe8] sm:$0xff] }
 0x39d   :  { %20091 = vmatmul.mubr.f32.vlgmr.msra.gmra.mrb[12].mxu1 %v1570_v17  ;;  %v25510_v17 = vpack.c.bf16 %v2005_v13, %v2002_v12  ;;  %v2496_v12 = vld [vmem:[#allocation4 + $0xc0] sm:$0xff] }
 0x39e   :  { %20191 = vmatprep.mubr.msk.f32.mxu1 %vm25371_vm0, %v28704_v0  ;;  %v2528_v14 = vand.u32 4294901760, %v2496_v12 }
 0x39f   :  { %22999 = vmatpush3.bf16.msra.mxu0 %v25510_v17 }
 0x3a0   :  { %23000 = vmatprep.subr.bf16.mxu0 %v28706_v5 }
 0x458   :  { %v1576_v45 = vpop.f32.mrb[2].mxu1 }
 0x459   :  { %v20057_v46 = vpop.f32.mrb[3].mxu1  ;;  %v1577_v48 = vadd.f32 %v1576_v45, %v1498_v47  ;;  %v2516_v45 = vand.u32 4294901760, %v2492_v42 }
 0x45a   :  { %v25518_v46 = vsub.f32 %v2491_v41, %v2513_v43  ;;  %v2503_v41 = vld [vmem:[#allocation4 + $0xf8] sm:$0xff] }
 0x45b   :  { %v25520_v47 = vsub.f32 %v2492_v42, %v2516_v45  ;;  %v2504_v42 = vld [vmem:[#allocation4 + $0x100] sm:$0xff] }
 0x460   :  { %v1657_v49 = vpop.f32.mrb[4].mxu1 }
 0x461   :  { %v1658_v50 = vadd.f32 %v1657_v49, %v1577_v48  ;;  %v20064_v51 = vpop.f32.mrb[5].mxu1  ;;  %v25522_v48 = vpack.c.bf16 %v2516_v45, %v2513_v43  ;;  %v2549_v45 = vand.u32 4294901760, %v2503_v41 }
 0x463   :  { %23035 = vmatpush3.bf16.msra.mxu1 %v25522_v48 }
 0x464   :  { %v1733_v52 = vpop.f32.mrb[6].mxu1  ;;  %23036 = vmatprep.subr.bf16.mxu1 %v28706_v5 }
 0x465   :  { %v1734_v53 = vadd.f32 %v1733_v52, %v1658_v50  ;;  %v20071_v54 = vpop.f32.mrb[7].mxu1 }
 0x468   :  { %v1808_v55 = vpop.f32.mrb[8].mxu1 }
 0x469   :  { %v1809_v56 = vadd.f32 %v1808_v55, %v1734_v53  ;;  %v20078_v57 = vpop.f32.mrb[9].mxu1  ;;  %v18474_v53 = vld [vmem:[#allocation4 + $0x60] ss:$0 sm:$0xff]  ;;  %v18475_v55 = vld [vmem:[#allocation4 + $0x68] ss:$0 sm:$0xff] }
 0x46c   :  { %v1885_v58 = vpop.f32.mrb[10].mxu1 }
 0x46d   :  { %v1886_v59 = vadd.f32 %v1885_v58, %v1809_v56  ;;  %v20085_v60 = vpop.f32.mrb[11].mxu1 }
 0x470   :  { %v1958_v61 = vpop.f32.mrb[12].mxu1 }
 0x471   :  { %v1959_v62 = vadd.f32 %v1958_v61, %v1886_v59  ;;  %v20092_v63 = vpop.f32.mrb[13].mxu1 }
 0x473   :  { %v25504_v1 = vadd.f32 %v25456_v16, %v1959_v62  ;;  %v2008_v16 = vand.u32 4294901760, %v1990_v11 }
 0x475   :  { %v1965_v2 = vsel %vm958_vm2, %v25504_v1, 0.0  ;;  %v2096_v20 = vsub.f32 %v1990_v11, %v2008_v16  ;;  %v25513_v22 = vpack.c.bf16 %v2011_v15, %v2008_v16  ;;  %v2495_v11 = vld [vmem:[#allocation4 + $0xb8] sm:$0xff]  ;;  %v25565_v15 = vsub.f32 %v2496_v12, %v2528_v14 }
 0x476   :  { %1966 = vadd.xlane.f32.xlu1 %v1965_v2  ;;  %v2493_v2 = vld [vmem:[#allocation4 + $0xa8] sm:$0xff]  ;;  %v2525_v13 = vand.u32 4294901760, %v2495_v11 }
 0x477   :  { %23002 = vmatpush3.bf16.msra.mxu0 %v25513_v22  ;;  %v2097_v29 = vand.u32 4294901760, %v2096_v20  ;;  %v23013_v38 = vpack.c.bf16 %v2103_v21, %v2096_v20  ;;  %v2534_v21 = vand.u32 4294901760, %v2498_v18 }
 0x478   :  { %23003 = vmatprep.subr.bf16.mxu0 %v28706_v5  ;;  %v25563_v16 = vsub.f32 %v2495_v11, %v2525_v13 }
 0x479   :  { %v2098_v32 = vsub.f32 %v2096_v20, %v2097_v29  ;;  %v23025_v40 = vpack.c.bf16 %v2104_v30, %v2097_v29  ;;  %v25573_v24 = vsub.f32 %v2498_v18, %v2534_v21  ;;  %v2540_v29 = vand.u32 4294901760, %v2500_v26 }
 0x47a   :  { %v23088_v19 = vpack.c.bf16 %v25565_v15, %v25563_v16  ;;  %v25580_v30 = vpack.c.bf16 %v2528_v14, %v2525_v13 }
 0x47b   :  { %v2099_v34 = vand.u32 4294901760, %v2098_v32  ;;  %v25584_v32 = vsub.f32 %v2500_v26, %v2540_v29 }
 0x47d   :  { %v23007_v36 = vpack.c.bf16 %v2106_v35, %v2099_v34  ;;  %v2502_v34 = vld [vmem:[#allocation4 + $0xf0] sm:$0xff]  ;;  %v2669_v18 = vand.u32 4294901760, %v25584_v32 }
 0x503   :  { %v1967_v3 = vpop.xlane.xlu1 %1966 }
 0x504   :  { %v1968_v4 = vmul.f32 0.03125, %v1967_v3  ;;  %v2494_v3 = vld [vmem:[#allocation4 + $0xb0] sm:$0xff] }
 0x506   :  { %v1969_v6 = vsub.f32 %v25504_v1, %v1968_v4  ;;  %v2519_v4 = vand.u32 4294901760, %v2493_v2 }
 0x508   :  { %v1970_v7 = vmul.f32 %v1969_v6, %v1969_v6 }
 0x50a   :  { %v1971_v8 = vsel %vm958_vm2, %v1970_v7, 0.0  ;;  %v23082_v7 = vpack.c.bf16 %v25520_v47, %v25518_v46 }
 0x50b   :  { %1972 = vadd.xlane.f32.xlu1 %v1971_v8  ;;  %v25552_v8 = vsub.f32 %v2493_v2, %v2519_v4  ;;  %v2634_v2 = vand.u32 4294901760, %v25563_v16 }
 0x598   :  { %v1973_v49 = vpop.xlane.xlu1 %1972 }
 0x599   :  { %v1974_v50 = vmul.f32 0.03125, %v1973_v49  ;;  %v2552_v49 = vand.u32 4294901760, %v2504_v42 }
 0x59b   :  { %v1975_v51 = vadd.f32 1e-05, %v1974_v50  ;;  %v25602_v50 = vpack.c.bf16 %v2540_v29, %v2537_v28 }
 0x59d   :  { %25192 = vrsqrt.f32 %v1975_v51  ;;  %v25604_v51 = vsub.f32 %v2503_v41, %v2549_v45 }
 0x5a7   :  { %v25193_v52 = vpop.eup %25192 }
 0x5a8   :  { %v1977_v54 = vmul.f32 %v25193_v52, %v1969_v6  ;;  %v2522_v6 = vand.u32 4294901760, %v2494_v3  ;;  %v25606_v52 = vsub.f32 %v2504_v42, %v2552_v49 }
 0x5aa   :  { %v1982_v56 = vmul.f32 %v18474_v53, %v1977_v54  ;;  %v25554_v9 = vsub.f32 %v2494_v3, %v2522_v6  ;;  %v2505_v53 = vld [vmem:[#allocation4 + $0x108] sm:$0xff]  ;;  %v2506_v54 = vld [vmem:[#allocation4 + $0x110] sm:$0xff]  ;;  %v2641_v3 = vand.u32 4294901760, %v25565_v15 }
 0x5ac   :  { %v1987_v57 = vadd.f32 %v18475_v55, %v1982_v56  ;;  %v23085_v10 = vpack.c.bf16 %v25554_v9, %v25552_v8  ;;  %v23100_v55 = vpack.c.bf16 %v25606_v52, %v25604_v51  ;;  %v2555_v56 = vand.u32 4294901760, %v2505_v53 }
 0x5ad   :  { %v2642_v11 = vsub.f32 %v25565_v15, %v2641_v3 }
 0x5ae   :  { %v1999_v58 = vsel %vm1997_vm6, %v1987_v57, 0  ;;  %v2558_v57 = vand.u32 4294901760, %v2506_v54 }
 0x5af   :  { %v2070_v59 = vand.u32 4294901760, %v1999_v58  ;;  %v2643_v14 = vand.u32 4294901760, %v2642_v11 }
 0x5b1   :  { %v2071_v60 = vsub.f32 %v1999_v58, %v2070_v59 }
 0x5b3   :  { %v2072_v61 = vand.u32 4294901760, %v2071_v60 }
 0x5b5   :  { %v2073_v62 = vsub.f32 %v2071_v60, %v2072_v61 }
 0x5b7   :  { %v2074_v63 = vand.u32 4294901760, %v2073_v62  ;;  %v25618_v62 = vpack.c.bf16 %v2552_v49, %v2549_v45 }
 0x5b9   :  { %20102 = vmatmul.mubr.f32.vlgmr.msra.gmra.mrb[4].mxu0 %v2074_v63  ;;  %v25623_v63 = vpack.c.bf16 %v2558_v57, %v2555_v56 }
 0x5ba   :  { %23005 = vmatpush3.bf16.msra.mxu0 %v23004_v31  ;;  %20112 = vmatprep.mubr.msk.f32.mxu0 %vm25371_vm0, %v28704_v0  ;;  %v25582_v31 = vsub.f32 %v2499_v25, %v2537_v28 }
 0x5bb   :  { %23006 = vmatprep.subr.bf16.mxu0 %v28706_v5 }
 0x5bc   :  { %v23094_v35 = vpack.c.bf16 %v25584_v32, %v25582_v31 }
 0x5be   :  { %23008 = vmatpush3.bf16.msra.mxu0 %v23007_v36  ;;  %v2543_v36 = vand.u32 4294901760, %v2501_v33 }
 0x5bf   :  { %23009 = vmatprep.subr.bf16.mxu0 %v28706_v5 }
 0x5c1   :  { %20113 = vmatmul.mubr.f32.vlgmr.msra.gmra.mrb[4].mxu0 %v2070_v59 }
 0x5c2   :  { %23011 = vmatpush3.bf16.msra.mxu0 %v23010_v37  ;;  %20123 = vmatprep.mubr.msk.f32.mxu0 %vm25371_vm0, %v28704_v0  ;;  %v2546_v37 = vand.u32 4294901760, %v2502_v34 }
 0x5c3   :  { %23012 = vmatprep.subr.bf16.mxu0 %v28706_v5 }
 0x5c4   :  { %v25613_v58 = vpack.c.bf16 %v2546_v37, %v2543_v36 }
 0x5c6   :  { %23014 = vmatpush3.bf16.msra.mxu0 %v23013_v38 }
 0x5c7   :  { %23015 = vmatprep.subr.bf16.mxu0 %v28706_v5 }
 0x5c9   :  { %20124 = vmatmul.mubr.f32.vlgmr.msra.gmra.mrb[4].mxu0 %v2071_v60  ;;  %v2710_v60 = vsub.f32 %v2506_v54, %v2558_v57 }
 0x5ca   :  { %23017 = vmatpush3.bf16.msra.mxu0 %v25510_v17  ;;  %20134 = vmatprep.mubr.msk.f32.mxu0 %vm25371_vm0, %v28704_v0 }
 0x5cb   :  { %23018 = vmatprep.subr.bf16.mxu0 %v28706_v5 }
 0x5ce   :  { %23020 = vmatpush3.bf16.msra.mxu0 %v25513_v22 }
 0x5cf   :  { %23021 = vmatprep.subr.bf16.mxu0 %v28706_v5 }
 0x5d1   :  { %20135 = vmatmul.mubr.f32.vlgmr.msra.gmra.mrb[4].mxu0 %v2072_v61 }
 0x5d2   :  { %23023 = vmatpush3.bf16.msra.mxu0 %v23022_v39  ;;  %20145 = vmatprep.mubr.msk.f32.mxu0 %vm25371_vm0, %v28704_v0  ;;  %v25593_v39 = vsub.f32 %v2501_v33, %v2543_v36  ;;  %v2670_v33 = vsub.f32 %v25584_v32, %v2669_v18  ;;  %v2697_v36 = vand.u32 4294901760, %v25606_v52 }
 0x5d3   :  { %23024 = vmatprep.subr.bf16.mxu0 %v28706_v5 }
 0x5d4   :  { %v2676_v15 = vand.u32 4294901760, %v25593_v39 }
 0x5d6   :  { %23026 = vmatpush3.bf16.msra.mxu0 %v23025_v40  ;;  %v25595_v40 = vsub.f32 %v2502_v34, %v2546_v37  ;;  %v2677_v37 = vsub.f32 %v25593_v39, %v2676_v15 }
 0x5d7   :  { %23027 = vmatprep.subr.bf16.mxu0 %v28706_v5 }
 0x5d8   :  { %v23097_v43 = vpack.c.bf16 %v25595_v40, %v25593_v39  ;;  %v2683_v28 = vand.u32 4294901760, %v25595_v40  ;;  %v2678_v45 = vand.u32 4294901760, %v2677_v37 }
 0x5d9   :  { %20146 = vmatmul.mubr.f32.vlgmr.msra.gmra.mrb[4].mxu0 %v2070_v59 }
 0x5da   :  { %23029 = vmatpush3.bf16.msra.mxu0 %v25510_v17  ;;  %20156 = vmatprep.mubr.msk.f32.mxu0 %vm25371_vm0, %v28704_v0  ;;  %v2497_v17 = vld [vmem:[#allocation4 + $0xc8] sm:$0xff]  ;;  %v25651_v34 = vpack.c.bf16 %v2683_v28, %v2676_v15  ;;  %v2684_v41 = vsub.f32 %v25595_v40, %v2683_v28  ;;  %v2620_v28 = vand.u32 4294901760, %v25552_v8 }
 0x5db   :  { %23030 = vmatprep.subr.bf16.mxu0 %v28706_v5  ;;  %v2531_v20 = vand.u32 4294901760, %v2497_v17 }
 0x5dd   :  { %v25571_v23 = vsub.f32 %v2497_v17, %v2531_v20  ;;  %v25591_v38 = vpack.c.bf16 %v2534_v21, %v2531_v20  ;;  %v2662_v17 = vand.u32 4294901760, %v25582_v31 }
 0x5de   :  { %23032 = vmatpush3.bf16.msra.mxu0 %v25513_v22  ;;  %v25569_v22 = vpack.c.bf16 %v2522_v6, %v2519_v4  ;;  %v25629_v4 = vpack.c.bf16 %v2641_v3, %v2634_v2 }
 0x5df   :  { %23081 = vmatprep.subr.bf16.mxu0 %v28706_v5  ;;  %v23091_v27 = vpack.c.bf16 %v25573_v24, %v25571_v23  ;;  %v2648_v6 = vand.u32 4294901760, %v25571_v23  ;;  %v25643_v25 = vpack.c.bf16 %v2669_v18, %v2662_v17  ;;  %v2663_v29 = vsub.f32 %v25582_v31, %v2662_v17 }
 0x5e0   :  { %23038 = vmatpush3.bf16.msra.mxu1 %v25569_v22  ;;  %v2685_v31 = vand.u32 4294901760, %v2684_v41 }
 0x5e1   :  { %20157 = vmatmul.mubr.f32.vlgmr.msra.gmra.mrb[4].mxu0 %v2070_v59  ;;  %23039 = vmatprep.subr.bf16.mxu1 %v28706_v5  ;;  %v2703_v59 = vsub.f32 %v2505_v53, %v2555_v56  ;;  %v2711_v53 = vand.u32 4294901760, %v2710_v60 }
 0x5e2   :  { %23083 = vmatpush3.bf16.msra.mxu0 %v23082_v7  ;;  %20261 = vmatprep.mubr.msk.f32.mxu0 %vm25371_vm0, %v28704_v0  ;;  %v2655_v7 = vand.u32 4294901760, %v25573_v24  ;;  %v25661_v49 = vpack.c.bf16 %v2685_v31, %v2678_v45 }
 0x5e3   :  { %23084 = vmatprep.subr.bf16.mxu0 %v28706_v5  ;;  %v23103_v61 = vpack.c.bf16 %v2710_v60, %v2703_v59  ;;  %v2704_v32 = vand.u32 4294901760, %v2703_v59  ;;  %v2712_v40 = vsub.f32 %v2710_v60, %v2711_v53 }
 0x5e4   :  { %23041 = vmatpush3.bf16.msra.mxu1 %v25580_v30  ;;  %v25635_v12 = vpack.c.bf16 %v2655_v7, %v2648_v6  ;;  %v2656_v20 = vsub.f32 %v25573_v24, %v2655_v7  ;;  %v2671_v24 = vand.u32 4294901760, %v2670_v33 }
 0x5e5   :  { %23042 = vmatprep.subr.bf16.mxu1 %v28706_v5  ;;  %v25665_v56 = vpack.c.bf16 %v2711_v53, %v2704_v32 }
 0x5e6   :  { %23086 = vmatpush3.bf16.msra.mxu0 %v23085_v10  ;;  %v2635_v10 = vsub.f32 %v25563_v16, %v2634_v2  ;;  %v2657_v16 = vand.u32 4294901760, %v2656_v20 }
 0x5e7   :  { %23087 = vmatprep.subr.bf16.mxu0 %v28706_v5 }
 0x5e8   :  { %23044 = vmatpush3.bf16.msra.mxu1 %v25591_v38  ;;  %v2636_v13 = vand.u32 4294901760, %v2635_v10  ;;  %v18476_v10 = vld [vmem:[#allocation4 + $0x90] ss:$0 sm:$0xff] }
 0x5e9   :  { %23045 = vmatprep.subr.bf16.mxu1 %v28706_v5 }
 0x5ea   :  { %23089 = vmatpush3.bf16.msra.mxu0 %v23088_v19  ;;  %v2649_v19 = vsub.f32 %v25571_v23, %v2648_v6  ;;  %v25641_v21 = vpack.c.bf16 %v2643_v14, %v2636_v13  ;;  %v2664_v23 = vand.u32 4294901760, %v2663_v29  ;;  %v2713_v6 = vand.u32 4294901760, %v2712_v40 }
 0x5eb   :  { %23090 = vmatprep.subr.bf16.mxu0 %v28706_v5  ;;  %v2627_v29 = vand.u32 4294901760, %v25554_v9 }
 0x5ec   :  { %23047 = vmatpush3.bf16.msra.mxu1 %v25602_v50  ;;  %v2650_v26 = vand.u32 4294901760, %v2649_v19  ;;  %v25657_v42 = vpack.c.bf16 %v2671_v24, %v2664_v23  ;;  %v2606_v19 = vand.u32 4294901760, %v25518_v46 }
 0x5ed   :  { %23048 = vmatprep.subr.bf16.mxu1 %v28706_v5 }
 0x5ee   :  { %23092 = vmatpush3.bf16.msra.mxu0 %v23091_v27  ;;  %v25645_v27 = vpack.c.bf16 %v2657_v16, %v2650_v26  ;;  %v2607_v20 = vsub.f32 %v25518_v46, %v2606_v19 }
 0x5ef   :  { %23093 = vmatprep.subr.bf16.mxu0 %v28706_v5 }
 0x5f0   :  { %23050 = vmatpush3.bf16.msra.mxu1 %v25613_v58  ;;  %v2608_v23 = vand.u32 4294901760, %v2607_v20 }
 0x5f1   :  { %23051 = vmatprep.subr.bf16.mxu1 %v28706_v5 }
 0x5f2   :  { %23095 = vmatpush3.bf16.msra.mxu0 %v23094_v35  ;;  %v2690_v35 = vand.u32 4294901760, %v25604_v51 }
 0x5f3   :  { %23096 = vmatprep.subr.bf16.mxu0 %v28706_v5 }
 0x5f4   :  { %23053 = vmatpush3.bf16.msra.mxu1 %v25618_v62  ;;  %v2691_v54 = vsub.f32 %v25604_v51, %v2690_v35 }
 0x5f5   :  { %23054 = vmatprep.subr.bf16.mxu1 %v28706_v5 }
 0x5f6   :  { %23098 = vmatpush3.bf16.msra.mxu0 %v23097_v43  ;;  %v25659_v43 = vpack.c.bf16 %v2697_v36, %v2690_v35  ;;  %v2692_v57 = vand.u32 4294901760, %v2691_v54  ;;  %v2621_v35 = vsub.f32 %v25552_v8, %v2620_v28  ;;  %v3180_v54 = vld [vmem:[#allocation4 + $0x130] sm:$0xff] }
 0x5f7   :  { %23099 = vmatprep.subr.bf16.mxu0 %v28706_v5 }
 0x5f8   :  { %23056 = vmatpush3.bf16.msra.mxu1 %v25623_v63  ;;  %v2622_v45 = vand.u32 4294901760, %v2621_v35  ;;  %v3661_v35 = vld [vmem:[#allocation4 + $0x158] sm:$0xff] }
 0x5f9   :  { %23057 = vmatprep.subr.bf16.mxu1 %v28706_v5 }
 0x5fa   :  { %23101 = vmatpush3.bf16.msra.mxu0 %v23100_v55  ;;  %v2698_v55 = vsub.f32 %v25606_v52, %v2697_v36  ;;  %v2628_v36 = vsub.f32 %v25554_v9, %v2627_v29 }
 0x5fb   :  { %23102 = vmatprep.subr.bf16.mxu0 %v28706_v5 }
 0x5fc   :  { %v2699_v39 = vand.u32 4294901760, %v2698_v55  ;;  %v2629_v8 = vand.u32 4294901760, %v2628_v36  ;;  %v25710_v55 = vand.u32 4294901760, %v3180_v54 }
 0x5fe   :  { %23104 = vmatpush3.bf16.msra.mxu0 %v23103_v61  ;;  %v2705_v61 = vsub.f32 %v2703_v59, %v2704_v32  ;;  %v25667_v2 = vpack.c.bf16 %v2699_v39, %v2692_v57  ;;  %v2613_v59 = vand.u32 4294901760, %v25520_v47  ;;  %v23061_v9 = vpack.c.bf16 %v2629_v8, %v2622_v45  ;;  %v3179_v32 = vld [vmem:[%s28700_s1] sm:$0xff]  ;;  %v3663_v45 = vld [vmem:[#allocation4 + $0x168] sm:$0xff] }
 0x5ff   :  { %23129 = vmatprep.subr.bf16.mxu0 %v28706_v5  ;;  %v3187_v53 = vsel %vm50_vm1, %v3179_v32, 0 }
 0x600   :  { %v2706_v3 = vand.u32 4294901760, %v2705_v61  ;;  %v2614_v26 = vsub.f32 %v25520_v47, %v2613_v59  ;;  %v23130_v15 = vpack.c.bf16 %v2613_v59, %v2606_v19  ;;  %v23133_v47 = vpack.c.bf16 %v2627_v29, %v2620_v28 }
 0x602   :  { %v25669_v7 = vpack.c.bf16 %v2713_v6, %v2706_v3  ;;  %v2615_v24 = vand.u32 4294901760, %v2614_v26  ;;  %v3660_v26 = vld [vmem:[#allocation4 + $0x150] sm:$0xff] }
 0x604   :  { %v23058_v41 = vpack.c.bf16 %v2615_v24, %v2608_v23 }
 0x6b4   :  { %v2482_v11 = vpop.f32.mrb[4].mxu0 }
 0x6b5   :  { %v24713_v13 = vadd.f32 %v18476_v10, %v2482_v11  ;;  %v20158_v14 = vpop.f32.mrb[5].mxu0  ;;  %v18480_v10 = vld [vmem:[#allocation4 + $0x138] ss:$0 sm:$0xff] }
 0x6b7   :  { %v2487_v17 = vmul.f32 0.70710677, %v24713_v13  ;;  %v2486_v52 = vmul.f32 0.5, %v24713_v13 }
 0x6b9   :  { %25194 = verf.f32 %v2487_v17 }
 0x6c3   :  { %v25195_v51 = vpop.eup %25194 }
 0x6c4   :  { %v2489_v18 = vadd.f32 1.0, %v25195_v51 }
 0x6c6   :  { %v2490_v60 = vmul.f32 %v2489_v18, %v2486_v52 }
 0x6c8   :  { %v25675_v16 = vand.u32 4294901760, %v2490_v60 }
 0x6ca   :  { %v25680_v33 = vsub.f32 %v2490_v60, %v25675_v16 }
 0x6cc   :  { %20262 = vmatmul.mubr.f32.vlgmr.msra.gmra.mrb[6].mxu0 %v25680_v33  ;;  %v2595_v46 = vand.u32 4294901760, %v25680_v33 }
 0x6cd   :  { %23131 = vmatpush3.bf16.msra.mxu0 %v23130_v15  ;;  %20331 = vmatprep.mubr.msk.f32.mxu0 %vm25371_vm0, %v28704_v0 }
 0x6ce   :  { %23132 = vmatprep.subr.bf16.mxu0 %v28706_v5  ;;  %v2596_v37 = vsub.f32 %v25680_v33, %v2595_v46 }
 0x6d0   :  { %v2597_v31 = vand.u32 4294901760, %v2596_v37  ;;  %v3672_v37 = vsel %vm50_vm1, %v3661_v35, 0 }
 0x6d1   :  { %23134 = vmatpush3.bf16.msra.mxu0 %v23133_v47  ;;  %v3756_v8 = vand.u32 4294901760, %v3672_v37 }
 0x6d2   :  { %20192 = vmatmul.mubr.f32.vlgmr.msra.gmra.mrb[14].mxu1 %v2597_v31  ;;  %23135 = vmatprep.subr.bf16.mxu0 %v28706_v5 }
 0x6d3   :  { %23059 = vmatpush3.bf16.msra.mxu1 %v23058_v41  ;;  %20226 = vmatprep.mubr.msk.f32.mxu1 %vm25371_vm0, %v28704_v0  ;;  %v3757_v32 = vsub.f32 %v3672_v37, %v3756_v8 }
 0x6d4   :  { %23060 = vmatprep.subr.bf16.mxu1 %v28706_v5 }
 0x6d5   :  { %23137 = vmatpush3.bf16.msra.mxu0 %v25629_v4  ;;  %v25707_v4 = vand.u32 4294901760, %v3187_v53 }
 0x6d6   :  { %23138 = vmatprep.subr.bf16.mxu0 %v28706_v5 }
 0x6d7   :  { %23062 = vmatpush3.bf16.msra.mxu1 %v23061_v9  ;;  %v3678_v9 = vsel %vm50_vm1, %v3663_v45, 0 }
 0x6d8   :  { %23063 = vmatprep.subr.bf16.mxu1 %v28706_v5 }
 0x6d9   :  { %23140 = vmatpush3.bf16.msra.mxu0 %v25635_v12  ;;  %v3256_v12 = vsub.f32 %v3187_v53, %v25707_v4  ;;  %v3776_v53 = vand.u32 4294901760, %v3678_v9 }
 0x6da   :  { %23141 = vmatprep.subr.bf16.mxu0 %v28706_v5 }
 0x6db   :  { %23065 = vmatpush3.bf16.msra.mxu1 %v25641_v21  ;;  %v3267_v21 = vsub.f32 %v3180_v54, %v25710_v55 }
 0x6dc   :  { %23066 = vmatprep.subr.bf16.mxu1 %v28706_v5 }
 0x6dd   :  { %23143 = vmatpush3.bf16.msra.mxu0 %v25643_v25  ;;  %v3257_v25 = vand.u32 4294901760, %v3256_v12  ;;  %v3268_v57 = vand.u32 4294901760, %v3267_v21 }
 0x6de   :  { %23144 = vmatprep.subr.bf16.mxu0 %v28706_v5 }
 0x6df   :  { %23068 = vmatpush3.bf16.msra.mxu1 %v25645_v27  ;;  %v3258_v27 = vsub.f32 %v3256_v12, %v3257_v25 }
 0x6e0   :  { %23069 = vmatprep.subr.bf16.mxu1 %v28706_v5 }
 0x6e1   :  { %23146 = vmatpush3.bf16.msra.mxu0 %v25651_v34  ;;  %v3269_v34 = vsub.f32 %v3267_v21, %v3268_v57 }
 0x6e2   :  { %23147 = vmatprep.subr.bf16.mxu0 %v28706_v5 }
 0x6e3   :  { %23071 = vmatpush3.bf16.msra.mxu1 %v25657_v42  ;;  %v3259_v42 = vand.u32 4294901760, %v3258_v27  ;;  %v18482_v27 = vld [vmem:[#allocation4 + $0x148] ss:$0 sm:$0xff] }
 0x6e4   :  { %23072 = vmatprep.subr.bf16.mxu1 %v28706_v5 }
 0x6e5   :  { %23149 = vmatpush3.bf16.msra.mxu0 %v25659_v43  ;;  %v3270_v43 = vand.u32 4294901760, %v3269_v34 }
 0x6e6   :  { %23150 = vmatprep.subr.bf16.mxu0 %v28706_v5 }
 0x6e7   :  { %23074 = vmatpush3.bf16.msra.mxu1 %v25661_v49 }
 0x6e8   :  { %23075 = vmatprep.subr.bf16.mxu1 %v28706_v5 }
 0x6e9   :  { %23152 = vmatpush3.bf16.msra.mxu0 %v25665_v56  ;;  %v18477_v56 = vld [vmem:[#allocation4 + $0x118] ss:$0 sm:$0xff] }
 0x6ea   :  { %20369 = vmatprep.subr.mxu0 %v28704_v0 }
 0x6eb   :  { %23077 = vmatpush3.bf16.msra.mxu1 %v25667_v2 }
 0x6ec   :  { %20332 = vmatmul.mubr.f32.vlgmr.msra.gmra.mrb[8].mxu0 %v25675_v16  ;;  %23078 = vmatprep.subr.bf16.mxu1 %v28706_v5 }
 0x6ed   :  { %20370 = vmatpush3.msra.mxu0 %v25710_v55  ;;  %20371 = vmatprep.mubr.msk.f32.mxu0 %vm25371_vm0, %v28704_v0 }
 0x6ee   :  { %20374 = vmatprep.subr.mxu0 %v28704_v0 }
 0x6ef   :  { %23080 = vmatpush3.bf16.msra.mxu1 %v25669_v7 }
 0x6f0   :  { %20372 = vmatmul.mubr.f32.vlgmr.msra.gmra.mrb[10].mxu0 %v3259_v42  ;;  %23105 = vmatprep.subr.bf16.mxu1 %v28706_v5 }
 0x6f1   :  { %20375 = vmatpush3.msra.mxu0 %v3270_v43  ;;  %20376 = vmatprep.mubr.msk.f32.mxu0 %vm25371_vm0, %v28704_v0 }
 0x6f2   :  { %20227 = vmatmul.mubr.f32.vlgmr.msra.gmra.mrb[16].mxu1 %v25675_v16  ;;  %20379 = vmatprep.subr.mxu0 %v28704_v0 }
 0x6f3   :  { %23107 = vmatpush3.bf16.msra.mxu1 %v25522_v48  ;;  %20296 = vmatprep.mubr.msk.f32.mxu1 %vm25371_vm0, %v28704_v0 }
 0x6f4   :  { %23108 = vmatprep.subr.bf16.mxu1 %v28706_v5 }
 0x6f7   :  { %23110 = vmatpush3.bf16.msra.mxu1 %v25569_v22 }
 0x6f8   :  { %20377 = vmatmul.mubr.f32.vlgmr.msra.gmra.mrb[10].mxu0 %v25707_v4  ;;  %23111 = vmatprep.subr.bf16.mxu1 %v28706_v5 }
 0x6f9   :  { %20380 = vmatpush3.msra.mxu0 %v3267_v21  ;;  %20381 = vmatprep.mubr.msk.f32.mxu0 %vm25371_vm0, %v28704_v0  ;;  %v18481_v21 = vld [vmem:[#allocation4 + $0x140] ss:$0 sm:$0xff] }
 0x6fa   :  { %20384 = vmatprep.subr.mxu0 %v28704_v0 }
 0x6fb   :  { %23113 = vmatpush3.bf16.msra.mxu1 %v25580_v30 }
 0x6fc   :  { %23114 = vmatprep.subr.bf16.mxu1 %v28706_v5 }
 0x6ff   :  { %23116 = vmatpush3.bf16.msra.mxu1 %v25591_v38 }
 0x700   :  { %20382 = vmatmul.mubr.f32.vlgmr.msra.gmra.mrb[10].mxu0 %v3256_v12  ;;  %23117 = vmatprep.subr.bf16.mxu1 %v28706_v5 }
 0x701   :  { %20385 = vmatpush3.msra.mxu0 %v25710_v55  ;;  %20386 = vmatprep.mubr.msk.f32.mxu0 %vm25371_vm0, %v28704_v0 }
 0x702   :  { %20389 = vmatprep.subr.mxu0 %v28704_v0 }
 0x703   :  { %23119 = vmatpush3.bf16.msra.mxu1 %v25602_v50 }
 0x704   :  { %23120 = vmatprep.subr.bf16.mxu1 %v28706_v5 }
 0x707   :  { %23122 = vmatpush3.bf16.msra.mxu1 %v25613_v58 }
 0x708   :  { %20387 = vmatmul.mubr.f32.vlgmr.msra.gmra.mrb[10].mxu0 %v3257_v25  ;;  %23123 = vmatprep.subr.bf16.mxu1 %v28706_v5 }
 0x709   :  { %20390 = vmatpush3.msra.mxu0 %v3268_v57  ;;  %20391 = vmatprep.mubr.msk.f32.mxu0 %vm25371_vm0, %v28704_v0 }
 0x70a   :  { %20394 = vmatprep.subr.mxu0 %v28704_v0 }
 0x70b   :  { %23125 = vmatpush3.bf16.msra.mxu1 %v25618_v62 }
 0x70c   :  { %23126 = vmatprep.subr.bf16.mxu1 %v28706_v5 }
 0x70f   :  { %23128 = vmatpush3.bf16.msra.mxu1 %v25623_v63 }
 0x710   :  { %20392 = vmatmul.mubr.f32.vlgmr.msra.gmra.mrb[10].mxu0 %v25707_v4  ;;  %23153 = vmatprep.subr.bf16.mxu1 %v28706_v5 }
 0x711   :  { %20395 = vmatpush3.msra.mxu0 %v25710_v55  ;;  %20396 = vmatprep.mubr.msk.f32.mxu0 %vm25371_vm0, %v28704_v0  ;;  %v3777_v55 = vsub.f32 %v3678_v9, %v3776_v53 }
 0x712   :  { %20297 = vmatmul.mubr.f32.vlgmr.msra.gmra.mrb[18].mxu1 %v2595_v46  ;;  %23177 = vmatprep.subr.bf16.mxu0 %v28706_v5  ;;  %v3662_v46 = vld [vmem:[#allocation4 + $0x160] sm:$0xff] }
 0x713   :  { %23155 = vmatpush3.bf16.msra.mxu1 %v25522_v48  ;;  %20366 = vmatprep.mubr.msk.f32.mxu1 %vm25371_vm0, %v28704_v0  ;;  %v3675_v41 = vsel %vm50_vm1, %v3662_v46, 0  ;;  %v3778_v43 = vand.u32 4294901760, %v3777_v55 }
 0x714   :  { %23156 = vmatprep.subr.bf16.mxu1 %v28706_v5  ;;  %v3766_v31 = vand.u32 4294901760, %v3675_v41 }
 0x716   :  { %v3767_v54 = vsub.f32 %v3675_v41, %v3766_v31 }
 0x717   :  { %23158 = vmatpush3.bf16.msra.mxu1 %v25569_v22 }
 0x718   :  { %20397 = vmatmul.mubr.f32.vlgmr.msra.gmra.mrb[10].mxu0 %v25707_v4  ;;  %23159 = vmatprep.subr.bf16.mxu1 %v28706_v5  ;;  %v3758_v4 = vand.u32 4294901760, %v3757_v32  ;;  %v3768_v25 = vand.u32 4294901760, %v3767_v54 }
 0x719   :  { %20455 = vmatprep.mubr.msk.f32.mxu0 %vm25371_vm0, %v28704_v0 }
 0x71a   :  { %v3759_v42 = vsub.f32 %v3757_v32, %v3758_v4 }
 0x71b   :  { %23161 = vmatpush3.bf16.msra.mxu1 %v25580_v30 }
 0x71c   :  { %23162 = vmatprep.subr.bf16.mxu1 %v28706_v5 }
 0x71f   :  { %23164 = vmatpush3.bf16.msra.mxu1 %v25591_v38 }
 0x720   :  { %23165 = vmatprep.subr.bf16.mxu1 %v28706_v5 }
 0x723   :  { %23167 = vmatpush3.bf16.msra.mxu1 %v25602_v50 }
 0x724   :  { %23168 = vmatprep.subr.bf16.mxu1 %v28706_v5 }
 0x727   :  { %23170 = vmatpush3.bf16.msra.mxu1 %v25613_v58 }
 0x728   :  { %23171 = vmatprep.subr.bf16.mxu1 %v28706_v5 }
 0x72b   :  { %23173 = vmatpush3.bf16.msra.mxu1 %v25618_v62 }
 0x72c   :  { %23174 = vmatprep.subr.bf16.mxu1 %v28706_v5 }
 0x72f   :  { %23176 = vmatpush3.bf16.msra.mxu1 %v25623_v63 }
 0x732   :  { %20367 = vmatmul.mubr.f32.vlgmr.msra.gmra.mrb[20].mxu1 %v25675_v16  ;;  %v3669_v16 = vsel %vm50_vm1, %v3660_v26, 0 }
 0x733   :  { %v25806_v15 = vand.u32 4294901760, %v3669_v16 }
 0x735   :  { %v3747_v28 = vsub.f32 %v3669_v16, %v25806_v15 }
 0x737   :  { %v3748_v29 = vand.u32 4294901760, %v3747_v28 }
 0x739   :  { %v3749_v33 = vsub.f32 %v3747_v28, %v3748_v29 }
 0x73b   :  { %v3750_v23 = vand.u32 4294901760, %v3749_v33 }
 0x73d   :  { %20401 = vmatprep.mubr.f32.mxu1 %v3750_v23 }
 0x79f   :  { %v2854_v48 = vpop.f32.mrb[6].mxu0 }
 0x7a0   :  { %v20263_v22 = vpop.f32.mrb[7].mxu0 }
 0x7a5   :  { %v2599_v30 = vpop.f32.mrb[14].mxu1 }
 0x7a6   :  { %v20193_v38 = vpop.f32.mrb[15].mxu1  ;;  %v2600_v39 = vadd.f32 %v18477_v56, %v2599_v30 }
 0x7a7   :  { %v3760_v38 = vand.u32 4294901760, %v3759_v42 }
 0x7bf   :  { %v3062_v49 = vpop.f32.mrb[8].mxu0 }
 0x7c0   :  { %v20333_v50 = vpop.f32.mrb[9].mxu0 }
 0x7c5   :  { %v2750_v61 = vpop.f32.mrb[16].mxu1 }
 0x7c6   :  { %v2751_v58 = vadd.f32 %v2750_v61, %v2600_v39  ;;  %v20228_v40 = vpop.f32.mrb[17].mxu1 }
 0x7c8   :  { %v2855_v2 = vadd.f32 %v2854_v48, %v2751_v58  ;;  %v3769_v48 = vsub.f32 %v3767_v54, %v3768_v25 }
 0x7ca   :  { %v3770_v50 = vand.u32 4294901760, %v3769_v48 }
 0x7e5   :  { %v2943_v3 = vpop.f32.mrb[18].mxu1 }
 0x7e6   :  { %v2944_v62 = vadd.f32 %v2943_v3, %v2855_v2  ;;  %v20298_v6 = vpop.f32.mrb[19].mxu1  ;;  %v3665_v2 = vld [vmem:[#allocation4 + $0x178] sm:$0xff]  ;;  %v3664_v3 = vld [vmem:[#allocation4 + $0x170] sm:$0xff] }
 0x7e8   :  { %v3063_v7 = vadd.f32 %v3062_v49, %v2944_v62  ;;  %v3779_v49 = vsub.f32 %v3777_v55, %v3778_v43 }
 0x7ea   :  { %v3780_v39 = vand.u32 4294901760, %v3779_v49 }
 0x7eb   :  { %v3631_v63 = vpop.f32.mrb[10].mxu0 }
 0x7ec   :  { %v25797_v11 = vadd.f32 %v18480_v10, %v3631_v63  ;;  %v20398_v13 = vpop.f32.mrb[11].mxu0  ;;  %v3667_v63 = vld [vmem:[#allocation4 + $0x188] sm:$0xff] }
 0x7ee   :  { %v3637_v14 = vsel %vm1997_vm6, %v25797_v11, 0.0 }
 0x7ef   :  { %3638 = vadd.xlane.f32.xlu0 %v3637_v14  ;;  %v3666_v14 = vld [vmem:[#allocation4 + $0x180] sm:$0xff] }
 0x805   :  { %v3149_v17 = vpop.f32.mrb[20].mxu1 }
 0x806   :  { %v25801_v51 = vadd.f32 %v3149_v17, %v3063_v7  ;;  %v20368_v52 = vpop.f32.mrb[21].mxu1 }
 0x87c   :  { %v3639_v18 = vpop.xlane.xlu0 %3638 }
 0x87d   :  { %v3640_v19 = vmul.f32 0.03125, %v3639_v18 }
 0x87f   :  { %v3641_v59 = vsub.f32 %v25797_v11, %v3640_v19 }
 0x881   :  { %v3642_v60 = vmul.f32 %v3641_v59, %v3641_v59 }
 0x883   :  { %v3643_v20 = vsel %vm1997_vm6, %v3642_v60, 0.0  ;;  %v4275_v60 = vld [vmem:[#allocation4 + $0x190] sm:$0xff] }
 0x884   :  { %3644 = vadd.xlane.f32.xlu1 %v3643_v20  ;;  %v4278_v16 = vsel %vm1997_vm6, %v4275_v60, 0 }
 0x911   :  { %v3645_v24 = vpop.xlane.xlu1 %3644 }
 0x912   :  { %v3646_v36 = vmul.f32 0.03125, %v3645_v24 }
 0x914   :  { %v3647_v47 = vadd.f32 1e-05, %v3646_v36 }
 0x916   :  { %25196 = vrsqrt.f32 %v3647_v47 }
 0x920   :  { %v25197_v12 = vpop.eup %25196 }
 0x921   :  { %v3649_v57 = vmul.f32 %v25197_v12, %v3641_v59 }
 0x923   :  { %v3654_v34 = vmul.f32 %v18481_v21, %v3649_v57 }
 0x925   :  { %v3659_v22 = vadd.f32 %v18482_v27, %v3654_v34 }
 0x927   :  { %v3681_v30 = vand.u32 4294901760, %v3659_v22 }
 0x929   :  { %20399 = vmatprep.subr.mxu1 %v3681_v30  ;;  %v3788_v56 = vsub.f32 %v3659_v22, %v3681_v30 }
 0x92a   :  { %20400 = vmatpush3.msra.mxu1 %v3681_v30 }
 0x92b   :  { %20402 = vmatmul.mubr.f32.vlgmr.msra.gmra.mrb[22].mxu1 %v3760_v38  ;;  %v3789_v61 = vand.u32 4294901760, %v3788_v56 }
 0x92c   :  { %20404 = vmatprep.mubr.f32.mxu1 %v3770_v50 }
 0x92d   :  { %v3790_v58 = vsub.f32 %v3788_v56, %v3789_v61 }
 0x92f   :  { %20405 = vmatmul.mubr.f32.gmra.mrb[24].mxu1 %v3780_v39  ;;  %v3791_v40 = vand.u32 4294901760, %v3790_v58 }
 0x930   :  { %20409 = vmatprep.mubr.f32.mxu1 %v25806_v15 }
 0x931   :  { %20407 = vmatprep.subr.mxu1 %v3791_v40 }
 0x932   :  { %20408 = vmatpush3.msra.mxu1 %v3791_v40 }
 0x933   :  { %20410 = vmatmul.mubr.f32.vlgmr.msra.gmra.mrb[22].mxu1 %v3756_v8  ;;  %20415 = vmatprep.subr.mxu1 %v3788_v56 }
 0x934   :  { %20416 = vmatpush3.msra.mxu1 %v3788_v56  ;;  %20412 = vmatprep.mubr.f32.mxu1 %v3766_v31 }
 0x935   :  { %20423 = vmatprep.subr.mxu1 %v3681_v30 }
 0x937   :  { %20413 = vmatmul.mubr.f32.gmra.mrb[24].mxu1 %v3776_v53 }
 0x938   :  { %20417 = vmatprep.mubr.f32.mxu1 %v3747_v28 }
 0x93b   :  { %20418 = vmatmul.mubr.f32.vlgmr.msra.gmra.mrb[22].mxu1 %v3757_v32 }
 0x93c   :  { %20424 = vmatpush3.msra.mxu1 %v3681_v30  ;;  %20420 = vmatprep.mubr.f32.mxu1 %v3767_v54 }
 0x93d   :  { %20431 = vmatprep.subr.mxu1 %v3789_v61 }
 0x93f   :  { %20421 = vmatmul.mubr.f32.gmra.mrb[24].mxu1 %v3777_v55 }
 0x940   :  { %20425 = vmatprep.mubr.f32.mxu1 %v3748_v29 }
 0x943   :  { %20426 = vmatmul.mubr.f32.vlgmr.msra.gmra.mrb[22].mxu1 %v3758_v4 }
 0x944   :  { %20432 = vmatpush3.msra.mxu1 %v3789_v61  ;;  %20428 = vmatprep.mubr.f32.mxu1 %v3768_v25 }
 0x945   :  { %20439 = vmatprep.subr.mxu1 %v3681_v30 }
 0x947   :  { %20429 = vmatmul.mubr.f32.gmra.mrb[24].mxu1 %v3778_v43 }
 0x948   :  { %20433 = vmatprep.mubr.f32.mxu1 %v25806_v15 }
 0x94b   :  { %20434 = vmatmul.mubr.f32.vlgmr.msra.gmra.mrb[22].mxu1 %v3756_v8 }
 0x94c   :  { %20440 = vmatpush3.msra.mxu1 %v3681_v30  ;;  %20436 = vmatprep.mubr.f32.mxu1 %v3766_v31 }
 0x94d   :  { %23207 = vmatprep.subr.bf16.mxu1 %v28706_v5 }
 0x94f   :  { %20437 = vmatmul.mubr.f32.gmra.mrb[24].mxu1 %v3776_v53 }
 0x950   :  { %20441 = vmatprep.mubr.f32.mxu1 %v25806_v15  ;;  %v25819_v15 = vand.u32 4294901760, %v4278_v16 }
 0x952   :  { %v25822_v24 = vsub.f32 %v4278_v16, %v25819_v15 }
 0x953   :  { %20442 = vmatmul.mubr.f32.vlgmr.msra.gmra.mrb[22].mxu1 %v3756_v8 }
 0x954   :  { %20444 = vmatprep.mubr.f32.mxu1 %v3766_v31  ;;  %v4351_v9 = vand.u32 4294901760, %v25822_v24 }
 0x956   :  { %v4352_v34 = vsub.f32 %v25822_v24, %v4351_v9 }
 0x957   :  { %20445 = vmatmul.mubr.f32.gmra.mrb[24].mxu1 %v3776_v53 }
 0x958   :  { %20510 = vmatprep.mubr.msk.f32.mxu1 %vm25371_vm0, %v28704_v0  ;;  %v4353_v61 = vand.u32 4294901760, %v4352_v34 }
 0xa26   :  { %v20443_v62 = vpop.f32.mrb[22].mxu1 }
 0xa27   :  { %v24715_v6 = vadd.f32 %v20443_v62, %v3665_v2  ;;  %v4233_v7 = vpop.f32.mrb[23].mxu1 }
 0xa28   :  { %v24716_v10 = vadd.f32 %v4233_v7, %v3664_v3 }
 0xa29   :  { %v4260_v13 = vmul.f32 0.70710677, %v24715_v6  ;;  %v4256_v33 = vmul.f32 0.5, %v24715_v6 }
 0xa2a   :  { %v4259_v17 = vmul.f32 0.70710677, %v24716_v10  ;;  %v20446_v52 = vpop.f32.mrb[24].mxu1  ;;  %v4255_v35 = vmul.f32 0.5, %v24716_v10 }
 0xa2b   :  { %25198 = verf.f32 %v4260_v13  ;;  %v24717_v18 = vadd.f32 %v20446_v52, %v3667_v63  ;;  %v4245_v19 = vpop.f32.mrb[25].mxu1 }
 0xa2c   :  { %25200 = verf.f32 %v4259_v17  ;;  %v24718_v59 = vadd.f32 %v4245_v19, %v3666_v14 }
 0xa2d   :  { %v4262_v20 = vmul.f32 0.70710677, %v24717_v18  ;;  %v4258_v8 = vmul.f32 0.5, %v24717_v18 }
 0xa2e   :  { %v4261_v26 = vmul.f32 0.70710677, %v24718_v59  ;;  %v4257_v53 = vmul.f32 0.5, %v24718_v59  ;;  %v4276_v59 = vld [vmem:[#allocation4 + $0x198] sm:$0xff] }
 0xa2f   :  { %25202 = verf.f32 %v4262_v20 }
 0xa30   :  { %25204 = verf.f32 %v4261_v26 }
 0xa35   :  { %v25199_v28 = vpop.eup %25198 }
 0xa36   :  { %v25201_v29 = vpop.eup %25200  ;;  %v4268_v23 = vadd.f32 1.0, %v25199_v28 }
 0xa37   :  { %v4267_v36 = vadd.f32 1.0, %v25201_v29 }
 0xa38   :  { %v4272_v46 = vmul.f32 %v4268_v23, %v4256_v33 }
 0xa39   :  { %v25203_v47 = vpop.eup %25202  ;;  %v4271_v37 = vmul.f32 %v4267_v36, %v4255_v35 }
 0xa3a   :  { %v25205_v41 = vpop.eup %25204  ;;  %v4284_v45 = vand.u32 4294901760, %v4272_v46  ;;  %v4270_v31 = vadd.f32 1.0, %v25203_v47 }
 0xa3b   :  { %v4281_v32 = vand.u32 4294901760, %v4271_v37  ;;  %v4269_v54 = vadd.f32 1.0, %v25205_v41 }
 0xa3c   :  { %v4368_v4 = vsub.f32 %v4272_v46, %v4284_v45  ;;  %v4274_v55 = vmul.f32 %v4270_v31, %v4258_v8 }
 0xa3d   :  { %v4361_v12 = vsub.f32 %v4271_v37, %v4281_v32  ;;  %v4273_v21 = vmul.f32 %v4269_v54, %v4257_v53  ;;  %v23178_v25 = vpack.c.bf16 %v4284_v45, %v4281_v32  ;;  %v4791_v53 = vld [vmem:[#allocation4 + $0x1b0] sm:$0xff]  ;;  %v4792_v54 = vld [vmem:[#allocation4 + $0x1b8] sm:$0xff] }
 0xa3e   :  { %v4369_v57 = vand.u32 4294901760, %v4368_v4  ;;  %v4290_v27 = vand.u32 4294901760, %v4274_v55 }
 0xa3f   :  { %v4362_v42 = vand.u32 4294901760, %v4361_v12  ;;  %v4287_v43 = vand.u32 4294901760, %v4273_v21  ;;  %23179 = vmatpush3.bf16.msra.mxu0 %v23178_v25  ;;  %23209 = vmatpush3.bf16.msra.mxu1 %v23178_v25  ;;  %v23190_v48 = vpack.c.bf16 %v4368_v4, %v4361_v12 }
 0xa40   :  { %v4382_v22 = vsub.f32 %v4274_v55, %v4290_v27  ;;  %23180 = vmatprep.subr.bf16.mxu0 %v28706_v5  ;;  %23210 = vmatprep.subr.bf16.mxu1 %v28706_v5  ;;  %v4370_v30 = vsub.f32 %v4368_v4, %v4369_v57  ;;  %v4793_v4 = vld [vmem:[#allocation4 + $0x1c0] sm:$0xff]  ;;  %v4804_v55 = vand.u32 4294901760, %v4791_v53 }
 0xa41   :  { %v4375_v38 = vsub.f32 %v4273_v21, %v4287_v43  ;;  %v23181_v49 = vpack.c.bf16 %v4290_v27, %v4287_v43  ;;  %v4363_v50 = vsub.f32 %v4361_v12, %v4362_v42  ;;  %v23202_v56 = vpack.c.bf16 %v4369_v57, %v4362_v42  ;;  %v4794_v21 = vld [vmem:[#allocation4 + $0x1c8] sm:$0xff] }
 0xa42   :  { %v4383_v39 = vand.u32 4294901760, %v4382_v22  ;;  %v4371_v58 = vand.u32 4294901760, %v4370_v30  ;;  %v4807_v12 = vand.u32 4294901760, %v4792_v54  ;;  %v4884_v27 = vsub.f32 %v4791_v53, %v4804_v55 }
 0xa43   :  { %v4376_v40 = vand.u32 4294901760, %v4375_v38  ;;  %23182 = vmatpush3.bf16.msra.mxu0 %v23181_v49  ;;  %23212 = vmatpush3.bf16.msra.mxu1 %v23181_v49  ;;  %v4364_v2 = vand.u32 4294901760, %v4363_v50  ;;  %v23193_v3 = vpack.c.bf16 %v4382_v22, %v4375_v38 }
 0xa44   :  { %23183 = vmatprep.subr.bf16.mxu0 %v28706_v5  ;;  %v4384_v62 = vsub.f32 %v4382_v22, %v4383_v39  ;;  %23249 = vmatprep.subr.bf16.mxu1 %v28706_v5  ;;  %v25861_v57 = vpack.c.bf16 %v4807_v12, %v4804_v55  ;;  %v4891_v34 = vsub.f32 %v4792_v54, %v4807_v12  ;;  %v4885_v22 = vand.u32 4294901760, %v4884_v27  ;;  %v5297_v12 = vld [vmem:[#allocation4 + $0x1f8] sm:$0xff] }
 0xa45   :  { %v23184_v6 = vpack.c.bf16 %v4371_v58, %v4364_v2  ;;  %v4377_v7 = vsub.f32 %v4375_v38, %v4376_v40  ;;  %v23205_v10 = vpack.c.bf16 %v4383_v39, %v4376_v40 }
 0xa46   :  { %20456 = vmatmul.mubr.f32.vlgmr.msra.gmra.mrb[12].mxu0 %v4353_v61  ;;  %v4385_v63 = vand.u32 4294901760, %v4384_v62  ;;  %20511 = vmatmul.mubr.f32.vlgmr.msra.gmra.mrb[26].mxu1 %v25819_v15  ;;  %v4892_v30 = vand.u32 4294901760, %v4891_v34  ;;  %v4886_v38 = vsub.f32 %v4884_v27, %v4885_v22 }
 0xa47   :  { %23185 = vmatpush3.bf16.msra.mxu0 %v23184_v6  ;;  %v4378_v13 = vand.u32 4294901760, %v4377_v7  ;;  %20466 = vmatprep.mubr.msk.f32.mxu0 %vm25371_vm0, %v28704_v0  ;;  %v23226_v7 = vpack.c.bf16 %v4891_v34, %v4884_v27 }
 0xa48   :  { %23186 = vmatprep.subr.bf16.mxu0 %v28706_v5  ;;  %20611 = vmatprep.mubr.msk.f32.mxu1 %vm25371_vm0, %v28704_v0  ;;  %v4887_v50 = vand.u32 4294901760, %v4886_v38 }
 0xa49   :  { %v23187_v14 = vpack.c.bf16 %v4385_v63, %v4378_v13  ;;  %v23238_v63 = vpack.c.bf16 %v4892_v30, %v4885_v22 }
 0xa4b   :  { %23188 = vmatpush3.bf16.msra.mxu0 %v23187_v14  ;;  %v5293_v14 = vld [vmem:[#allocation4 + $0x1d8] sm:$0xff] }
 0xa4c   :  { %23189 = vmatprep.subr.bf16.mxu0 %v28706_v5 }
 0xa4e   :  { %20467 = vmatmul.mubr.f32.vlgmr.msra.gmra.mrb[14].mxu0 %v25819_v15 }
 0xa4f   :  { %23191 = vmatpush3.bf16.msra.mxu0 %v23190_v48  ;;  %20477 = vmatprep.mubr.msk.f32.mxu0 %vm25371_vm0, %v28704_v0 }
 0xa50   :  { %23192 = vmatprep.subr.bf16.mxu0 %v28706_v5 }
 0xa53   :  { %23194 = vmatpush3.bf16.msra.mxu0 %v23193_v3 }
 0xa54   :  { %23195 = vmatprep.subr.bf16.mxu0 %v28706_v5 }
 0xa56   :  { %20478 = vmatmul.mubr.f32.vlgmr.msra.gmra.mrb[16].mxu0 %v25822_v24 }
 0xa57   :  { %23197 = vmatpush3.bf16.msra.mxu0 %v23178_v25  ;;  %20488 = vmatprep.mubr.msk.f32.mxu0 %vm25371_vm0, %v28704_v0  ;;  %v4813_v25 = vand.u32 4294901760, %v4794_v21 }
 0xa58   :  { %23198 = vmatprep.subr.bf16.mxu0 %v28706_v5 }
 0xa59   :  { %v4905_v43 = vsub.f32 %v4794_v21, %v4813_v25  ;;  %v5298_v21 = vld [vmem:[#allocation4 + $0x200] sm:$0xff] }
 0xa5b   :  { %23200 = vmatpush3.bf16.msra.mxu0 %v23181_v49  ;;  %v4893_v49 = vsub.f32 %v4891_v34, %v4892_v30  ;;  %v4906_v61 = vand.u32 4294901760, %v4905_v43  ;;  %v5299_v34 = vld [vmem:[#allocation4 + $0x208] sm:$0xff] }
 0xa5c   :  { %23201 = vmatprep.subr.bf16.mxu0 %v28706_v5 }
 0xa5d   :  { %v4907_v2 = vsub.f32 %v4905_v43, %v4906_v61 }
 0xa5e   :  { %20489 = vmatmul.mubr.f32.vlgmr.msra.gmra.mrb[18].mxu0 %v4351_v9 }
 0xa5f   :  { %23203 = vmatpush3.bf16.msra.mxu0 %v23202_v56  ;;  %20499 = vmatprep.mubr.msk.f32.mxu0 %vm25371_vm0, %v28704_v0  ;;  %v4894_v56 = vand.u32 4294901760, %v4893_v49  ;;  %v4908_v62 = vand.u32 4294901760, %v4907_v2 }
 0xa60   :  { %23204 = vmatprep.subr.bf16.mxu0 %v28706_v5 }
 0xa61   :  { %v23220_v58 = vpack.c.bf16 %v4894_v56, %v4887_v50  ;;  %v5301_v50 = vld [vmem:[#allocation4 + $0x218] sm:$0xff]  ;;  %v5302_v56 = vld [vmem:[#allocation4 + $0x220] sm:$0xff] }
 0xa63   :  { %23206 = vmatpush3.bf16.msra.mxu0 %v23205_v10 }
 0xa64   :  { %23213 = vmatprep.subr.bf16.mxu0 %v28706_v5 }
 0xa66   :  { %20500 = vmatmul.mubr.f32.vlgmr.msra.gmra.mrb[20].mxu0 %v25819_v15 }
 0xa67   :  { %20521 = vmatprep.mubr.msk.f32.mxu0 %vm25371_vm0, %v28704_v0  ;;  %23215 = vmatpush3.bf16.msra.mxu0 %v25861_v57 }
 0xa68   :  { %23216 = vmatprep.subr.bf16.mxu0 %v28706_v5 }
 0xb19   :  { %v4355_v17 = vpop.f32.mrb[12].mxu0  ;;  %v4761_v52 = vpop.f32.mrb[26].mxu1 }
 0xb1a   :  { %v20457_v18 = vpop.f32.mrb[13].mxu0  ;;  %v20512_v19 = vpop.f32.mrb[27].mxu1  ;;  %v4356_v60 = vadd.f32 %v4355_v17, %v4276_v59  ;;  %v5294_v17 = vld [vmem:[#allocation4 + $0x1e0] sm:$0xff] }
 0xb1b   :  { %v5318_v18 = vand.u32 4294901760, %v5294_v17 }
 0xb1d   :  { %v25871_v59 = vsub.f32 %v5294_v17, %v5318_v18 }
 0xb21   :  { %v4446_v20 = vpop.f32.mrb[14].mxu0 }
 0xb22   :  { %v4447_v26 = vadd.f32 %v4446_v20, %v4356_v60  ;;  %v20468_v16 = vpop.f32.mrb[15].mxu0 }
 0xb29   :  { %v4526_v28 = vpop.f32.mrb[16].mxu0 }
 0xb2a   :  { %v4527_v29 = vadd.f32 %v4526_v28, %v4447_v26  ;;  %v20479_v33 = vpop.f32.mrb[17].mxu0 }
 0xb31   :  { %v4603_v23 = vpop.f32.mrb[18].mxu0 }
 0xb32   :  { %v4604_v24 = vadd.f32 %v4603_v23, %v4527_v29  ;;  %v20490_v35 = vpop.f32.mrb[19].mxu0  ;;  %v18483_v29 = vld [vmem:[#allocation4 + $0x1a0] ss:$0 sm:$0xff]  ;;  %v18484_v23 = vld [vmem:[#allocation4 + $0x1a8] ss:$0 sm:$0xff] }
 0xb39   :  { %v4686_v36 = vpop.f32.mrb[20].mxu0 }
 0xb3a   :  { %v4687_v15 = vadd.f32 %v4686_v36, %v4604_v24  ;;  %v20501_v46 = vpop.f32.mrb[21].mxu0 }
 0xb3c   :  { %v4762_v47 = vadd.f32 %v4761_v52, %v4687_v15  ;;  %v5315_v52 = vand.u32 4294901760, %v5293_v14 }
 0xb3e   :  { %v25855_v37 = vadd.f32 %v25797_v11, %v4762_v47  ;;  %v4810_v11 = vand.u32 4294901760, %v4793_v4  ;;  %v25869_v19 = vsub.f32 %v5293_v14, %v5315_v52  ;;  %v25873_v60 = vpack.c.bf16 %v5318_v18, %v5315_v52  ;;  %v5305_v52 = vld [vmem:[#allocation4 + $0x238] sm:$0xff]  ;;  %v5306_v18 = vld [vmem:[#allocation4 + $0x240] sm:$0xff] }
 0xb40   :  { %v4768_v41 = vsel %vm1997_vm6, %v25855_v37, 0.0  ;;  %v4898_v42 = vsub.f32 %v4793_v4, %v4810_v11  ;;  %v25864_v48 = vpack.c.bf16 %v4813_v25, %v4810_v11  ;;  %23251 = vmatpush3.bf16.msra.mxu1 %v25873_v60  ;;  %v23298_v53 = vpack.c.bf16 %v25871_v59, %v25869_v19 }
 0xb41   :  { %4769 = vadd.xlane.f32.xlu0 %v4768_v41  ;;  %23252 = vmatprep.subr.bf16.mxu1 %v28706_v5  ;;  %v5327_v11 = vand.u32 4294901760, %v5297_v12  ;;  %v5330_v25 = vand.u32 4294901760, %v5298_v21 }
 0xb42   :  { %23218 = vmatpush3.bf16.msra.mxu0 %v25864_v48  ;;  %v4899_v39 = vand.u32 4294901760, %v4898_v42  ;;  %v23229_v10 = vpack.c.bf16 %v4905_v43, %v4898_v42 }
 0xb43   :  { %23219 = vmatprep.subr.bf16.mxu0 %v28706_v5  ;;  %v25916_v27 = vsub.f32 %v5298_v21, %v5330_v25 }
 0xb44   :  { %v4900_v40 = vsub.f32 %v4898_v42, %v4899_v39  ;;  %v23241_v13 = vpack.c.bf16 %v4906_v61, %v4899_v39  ;;  %v5300_v42 = vld [vmem:[#allocation4 + $0x210] sm:$0xff]  ;;  %v5339_v61 = vand.u32 4294901760, %v5301_v50 }
 0xb45   :  { %v5336_v22 = vand.u32 4294901760, %v5300_v42 }
 0xb46   :  { %v4901_v3 = vand.u32 4294901760, %v4900_v40  ;;  %v25931_v40 = vpack.c.bf16 %v5330_v25, %v5327_v11  ;;  %v25933_v2 = vsub.f32 %v5301_v50, %v5339_v61 }
 0xb47   :  { %v25924_v49 = vsub.f32 %v5300_v42, %v5336_v22 }
 0xb48   :  { %v23223_v6 = vpack.c.bf16 %v4908_v62, %v4901_v3  ;;  %v5303_v62 = vld [vmem:[#allocation4 + $0x228] sm:$0xff] }
 0xbce   :  { %v4770_v45 = vpop.xlane.xlu0 %4769 }
 0xbcf   :  { %v4771_v8 = vmul.f32 0.03125, %v4770_v45 }
 0xbd1   :  { %v4772_v31 = vsub.f32 %v25855_v37, %v4771_v8  ;;  %v5295_v8 = vld [vmem:[#allocation4 + $0x1e8] sm:$0xff] }
 0xbd3   :  { %v4773_v9 = vmul.f32 %v4772_v31, %v4772_v31 }
 0xbd5   :  { %v4774_v32 = vsel %vm1997_vm6, %v4773_v9, 0.0  ;;  %v5321_v9 = vand.u32 4294901760, %v5295_v8 }
 0xbd6   :  { %4775 = vadd.xlane.f32.xlu1 %v4774_v32 }
 0xbd7   :  { %v25903_v54 = vsub.f32 %v5295_v8, %v5321_v9 }
 0xc63   :  { %v4776_v20 = vpop.xlane.xlu1 %4775 }
 0xc64   :  { %v4777_v26 = vmul.f32 0.03125, %v4776_v20 }
 0xc66   :  { %v4778_v16 = vadd.f32 1e-05, %v4777_v26  ;;  %v5351_v26 = vand.u32 4294901760, %v5305_v52 }
 0xc68   :  { %25206 = vrsqrt.f32 %v4778_v16  ;;  %v5354_v16 = vand.u32 4294901760, %v5306_v18 }
 0xc6a   :  { %v25969_v8 = vpack.c.bf16 %v5354_v16, %v5351_v26 }
 0xc72   :  { %v25207_v28 = vpop.eup %25206 }
 0xc73   :  { %v4780_v33 = vmul.f32 %v25207_v28, %v4772_v31  ;;  %v5296_v31 = vld [vmem:[#allocation4 + $0x1f0] sm:$0xff] }
 0xc74   :  { %v5324_v32 = vand.u32 4294901760, %v5296_v31 }
 0xc75   :  { %v4785_v24 = vmul.f32 %v18483_v29, %v4780_v33  ;;  %v25955_v29 = vsub.f32 %v5305_v52, %v5351_v26  ;;  %v25957_v33 = vsub.f32 %v5306_v18, %v5354_v16 }
 0xc76   :  { %v25905_v4 = vsub.f32 %v5296_v31, %v5324_v32  ;;  %v25920_v30 = vpack.c.bf16 %v5324_v32, %v5321_v9  ;;  %v5443_v32 = vand.u32 4294901760, %v25916_v27 }
 0xc77   :  { %v4790_v35 = vadd.f32 %v18484_v23, %v4785_v24  ;;  %v5307_v23 = vld [vmem:[#allocation4 + $0x248] sm:$0xff]  ;;  %v5308_v24 = vld [vmem:[#allocation4 + $0x250] sm:$0xff]  ;;  %v5499_v52 = vand.u32 4294901760, %v25957_v33 }
 0xc78   :  { %v23301_v55 = vpack.c.bf16 %v25905_v4, %v25903_v54  ;;  %23254 = vmatpush3.bf16.msra.mxu1 %v25920_v30 }
 0xc79   :  { %v4801_v36 = vsel %vm1997_vm6, %v4790_v35, 0  ;;  %23255 = vmatprep.subr.bf16.mxu1 %v28706_v5  ;;  %v23316_v35 = vpack.c.bf16 %v25957_v33, %v25955_v29 }
 0xc7a   :  { %v4872_v15 = vand.u32 4294901760, %v4801_v36 }
 0xc7c   :  { %v4873_v46 = vsub.f32 %v4801_v36, %v4872_v15  ;;  %23257 = vmatpush3.bf16.msra.mxu1 %v25931_v40  ;;  %v5357_v36 = vand.u32 4294901760, %v5307_v23 }
 0xc7d   :  { %23258 = vmatprep.subr.bf16.mxu1 %v28706_v5 }
 0xc7e   :  { %v4874_v47 = vand.u32 4294901760, %v4873_v46 }
 0xc80   :  { %v4875_v41 = vsub.f32 %v4873_v46, %v4874_v47 }
 0xc82   :  { %v4876_v45 = vand.u32 4294901760, %v4875_v41 }
 0xc84   :  { %20522 = vmatmul.mubr.f32.vlgmr.msra.gmra.mrb[22].mxu0 %v4876_v45 }
 0xc85   :  { %23221 = vmatpush3.bf16.msra.mxu0 %v23220_v58  ;;  %20532 = vmatprep.mubr.msk.f32.mxu0 %vm25371_vm0, %v28704_v0  ;;  %v5342_v58 = vand.u32 4294901760, %v5302_v56 }
 0xc86   :  { %23222 = vmatprep.subr.bf16.mxu0 %v28706_v5 }
 0xc87   :  { %v25935_v3 = vsub.f32 %v5302_v56, %v5342_v58  ;;  %v25953_v28 = vpack.c.bf16 %v5342_v58, %v5339_v61 }
 0xc89   :  { %23224 = vmatpush3.bf16.msra.mxu0 %v23223_v6  ;;  %v5304_v6 = vld [vmem:[#allocation4 + $0x230] sm:$0xff] }
 0xc8a   :  { %23225 = vmatprep.subr.bf16.mxu0 %v28706_v5 }
 0xc8c   :  { %20533 = vmatmul.mubr.f32.vlgmr.msra.gmra.mrb[22].mxu0 %v4872_v15 }
 0xc8d   :  { %23227 = vmatpush3.bf16.msra.mxu0 %v23226_v7  ;;  %20543 = vmatprep.mubr.msk.f32.mxu0 %vm25371_vm0, %v28704_v0  ;;  %v23310_v7 = vpack.c.bf16 %v25935_v3, %v25933_v2 }
 0xc8e   :  { %23228 = vmatprep.subr.bf16.mxu0 %v28706_v5 }
 0xc91   :  { %23230 = vmatpush3.bf16.msra.mxu0 %v23229_v10  ;;  %v5345_v10 = vand.u32 4294901760, %v5303_v62 }
 0xc92   :  { %23231 = vmatprep.subr.bf16.mxu0 %v28706_v5 }
 0xc93   :  { %v25944_v14 = vsub.f32 %v5303_v62, %v5345_v10 }
 0xc94   :  { %20544 = vmatmul.mubr.f32.vlgmr.msra.gmra.mrb[22].mxu0 %v4873_v46 }
 0xc95   :  { %23233 = vmatpush3.bf16.msra.mxu0 %v25861_v57  ;;  %20554 = vmatprep.mubr.msk.f32.mxu0 %vm25371_vm0, %v28704_v0 }
 0xc96   :  { %23234 = vmatprep.subr.bf16.mxu0 %v28706_v5 }
 0xc99   :  { %23236 = vmatpush3.bf16.msra.mxu0 %v25864_v48 }
 0xc9a   :  { %23237 = vmatprep.subr.bf16.mxu0 %v28706_v5 }
 0xc9c   :  { %20555 = vmatmul.mubr.f32.vlgmr.msra.gmra.mrb[22].mxu0 %v4874_v47  ;;  %v5505_v47 = vsub.f32 %v5307_v23, %v5357_v36 }
 0xc9d   :  { %23239 = vmatpush3.bf16.msra.mxu0 %v23238_v63  ;;  %20565 = vmatprep.mubr.msk.f32.mxu0 %vm25371_vm0, %v28704_v0  ;;  %v5348_v63 = vand.u32 4294901760, %v5304_v6 }
 0xc9e   :  { %23240 = vmatprep.subr.bf16.mxu0 %v28706_v5 }
 0xc9f   :  { %v25946_v17 = vsub.f32 %v5304_v6, %v5348_v63  ;;  %v25964_v46 = vpack.c.bf16 %v5348_v63, %v5345_v10  ;;  %v5492_v63 = vand.u32 4294901760, %v25955_v29 }
 0xca1   :  { %23242 = vmatpush3.bf16.msra.mxu0 %v23241_v13  ;;  %v23313_v20 = vpack.c.bf16 %v25946_v17, %v25944_v14  ;;  %v5485_v62 = vand.u32 4294901760, %v25946_v17  ;;  %v26010_v16 = vpack.c.bf16 %v5499_v52, %v5492_v63 }
 0xca2   :  { %23243 = vmatprep.subr.bf16.mxu0 %v28706_v5 }
 0xca4   :  { %20566 = vmatmul.mubr.f32.vlgmr.msra.gmra.mrb[22].mxu0 %v4872_v15 }
 0xca5   :  { %23245 = vmatpush3.bf16.msra.mxu0 %v25861_v57  ;;  %20576 = vmatprep.mubr.msk.f32.mxu0 %vm25371_vm0, %v28704_v0  ;;  %v25914_v57 = vsub.f32 %v5297_v12, %v5327_v11  ;;  %v5457_v12 = vand.u32 4294901760, %v25924_v49  ;;  %v5444_v11 = vsub.f32 %v25916_v27, %v5443_v32 }
 0xca6   :  { %23246 = vmatprep.subr.bf16.mxu0 %v28706_v5 }
 0xca7   :  { %v23304_v43 = vpack.c.bf16 %v25916_v27, %v25914_v57  ;;  %v5436_v9 = vand.u32 4294901760, %v25914_v57  ;;  %v5445_v42 = vand.u32 4294901760, %v5444_v11  ;;  %v5458_v50 = vsub.f32 %v25924_v49, %v5457_v12 }
 0xca8   :  { %v5478_v27 = vand.u32 4294901760, %v25944_v14 }
 0xca9   :  { %23248 = vmatpush3.bf16.msra.mxu0 %v25864_v48  ;;  %v5333_v48 = vand.u32 4294901760, %v5299_v34  ;;  %v5437_v21 = vsub.f32 %v25914_v57, %v5436_v9  ;;  %v5459_v57 = vand.u32 4294901760, %v5458_v50 }
 0xcaa   :  { %23297 = vmatprep.subr.bf16.mxu0 %v28706_v5  ;;  %v26002_v10 = vpack.c.bf16 %v5485_v62, %v5478_v27  ;;  %v5479_v18 = vsub.f32 %v25944_v14, %v5478_v27 }
 0xcab   :  { %v25922_v38 = vsub.f32 %v5299_v34, %v5333_v48  ;;  %v25942_v13 = vpack.c.bf16 %v5336_v22, %v5333_v48  ;;  %v5438_v34 = vand.u32 4294901760, %v5437_v21  ;;  %v5471_v48 = vand.u32 4294901760, %v25935_v3 }
 0xcac   :  { %20577 = vmatmul.mubr.f32.vlgmr.msra.gmra.mrb[22].mxu0 %v4872_v15  ;;  %v5360_v15 = vand.u32 4294901760, %v5308_v24  ;;  %v5480_v23 = vand.u32 4294901760, %v5479_v18 }
 0xcad   :  { %23299 = vmatpush3.bf16.msra.mxu0 %v23298_v53  ;;  %20681 = vmatprep.mubr.msk.f32.mxu0 %vm25371_vm0, %v28704_v0  ;;  %v23307_v39 = vpack.c.bf16 %v25924_v49, %v25922_v38  ;;  %v25980_v53 = vpack.c.bf16 %v5443_v32, %v5436_v9  ;;  %v25992_v56 = vpack.c.bf16 %v5445_v42, %v5438_v34  ;;  %v18485_v34 = vld [vmem:[#allocation4 + $0x1d0] ss:$0 sm:$0xff] }
 0xcae   :  { %23300 = vmatprep.subr.bf16.mxu0 %v28706_v5  ;;  %23260 = vmatpush3.bf16.msra.mxu1 %v25942_v13  ;;  %v5512_v41 = vsub.f32 %v5308_v24, %v5360_v15  ;;  %v25974_v31 = vpack.c.bf16 %v5360_v15, %v5357_v36  ;;  %v5493_v36 = vsub.f32 %v25955_v29, %v5492_v63 }
 0xcaf   :  { %23261 = vmatprep.subr.bf16.mxu1 %v28706_v5  ;;  %v5500_v15 = vsub.f32 %v25957_v33, %v5499_v52 }
 0xcb0   :  { %v23319_v45 = vpack.c.bf16 %v5512_v41, %v5505_v47  ;;  %v5494_v9 = vand.u32 4294901760, %v5493_v36 }
 0xcb1   :  { %23302 = vmatpush3.bf16.msra.mxu0 %v23301_v55  ;;  %v5450_v55 = vand.u32 4294901760, %v25922_v38  ;;  %v5501_v14 = vand.u32 4294901760, %v5500_v15 }
 0xcb2   :  { %23303 = vmatprep.subr.bf16.mxu0 %v28706_v5  ;;  %23263 = vmatpush3.bf16.msra.mxu1 %v25953_v28 }
 0xcb3   :  { %23264 = vmatprep.subr.bf16.mxu1 %v28706_v5  ;;  %v25986_v25 = vpack.c.bf16 %v5457_v12, %v5450_v55  ;;  %v5451_v22 = vsub.f32 %v25922_v38, %v5450_v55  ;;  %v26018_v55 = vpack.c.bf16 %v5501_v14, %v5494_v9 }
 0xcb5   :  { %23305 = vmatpush3.bf16.msra.mxu0 %v23304_v43  ;;  %v5464_v43 = vand.u32 4294901760, %v25933_v2  ;;  %v5452_v61 = vand.u32 4294901760, %v5451_v22 }
 0xcb6   :  { %23306 = vmatprep.subr.bf16.mxu0 %v28706_v5  ;;  %23266 = vmatpush3.bf16.msra.mxu1 %v25964_v46 }
 0xcb7   :  { %23267 = vmatprep.subr.bf16.mxu1 %v28706_v5  ;;  %v25996_v58 = vpack.c.bf16 %v5459_v57, %v5452_v61  ;;  %v5465_v6 = vsub.f32 %v25933_v2, %v5464_v43  ;;  %v5408_v61 = vand.u32 4294901760, %v25869_v19 }
 0xcb9   :  { %23308 = vmatpush3.bf16.msra.mxu0 %v23307_v39  ;;  %v25994_v39 = vpack.c.bf16 %v5471_v48, %v5464_v43  ;;  %v5466_v38 = vand.u32 4294901760, %v5465_v6  ;;  %v5409_v57 = vsub.f32 %v25869_v19, %v5408_v61 }
 0xcba   :  { %23309 = vmatprep.subr.bf16.mxu0 %v28706_v5  ;;  %23269 = vmatpush3.bf16.msra.mxu1 %v25969_v8 }
 0xcbb   :  { %23270 = vmatprep.subr.bf16.mxu1 %v28706_v5  ;;  %v5410_v63 = vand.u32 4294901760, %v5409_v57  ;;  %v5984_v57 = vld [vmem:[#allocation4 + $0x288] sm:$0xff] }
 0xcbd   :  { %23311 = vmatpush3.bf16.msra.mxu0 %v23310_v7  ;;  %v5472_v7 = vsub.f32 %v25935_v3, %v5471_v48  ;;  %v5506_v3 = vand.u32 4294901760, %v5505_v47 }
 0xcbe   :  { %23312 = vmatprep.subr.bf16.mxu0 %v28706_v5  ;;  %23272 = vmatpush3.bf16.msra.mxu1 %v25974_v31 }
 0xcbf   :  { %23273 = vmatprep.subr.bf16.mxu1 %v28706_v5  ;;  %v5473_v49 = vand.u32 4294901760, %v5472_v7  ;;  %v5507_v32 = vsub.f32 %v5505_v47, %v5506_v3  ;;  %v5415_v47 = vand.u32 4294901760, %v25871_v59  ;;  %v5422_v7 = vand.u32 4294901760, %v25903_v54 }
 0xcc1   :  { %23314 = vmatpush3.bf16.msra.mxu0 %v23313_v20  ;;  %v5486_v20 = vsub.f32 %v25946_v17, %v5485_v62  ;;  %v26008_v26 = vpack.c.bf16 %v5473_v49, %v5466_v38  ;;  %v5508_v12 = vand.u32 4294901760, %v5507_v32  ;;  %v5416_v27 = vsub.f32 %v25871_v59, %v5415_v47 }
 0xcc2   :  { %23315 = vmatprep.subr.bf16.mxu0 %v28706_v5  ;;  %v23346_v6 = vpack.c.bf16 %v5415_v47, %v5408_v61  ;;  %v5429_v38 = vand.u32 4294901760, %v25905_v4  ;;  %v5423_v18 = vsub.f32 %v25903_v54, %v5422_v7 }
 0xcc3   :  { %v5487_v2 = vand.u32 4294901760, %v5486_v20  ;;  %v5417_v52 = vand.u32 4294901760, %v5416_v27 }
 0xcc4   :  { %v5430_v20 = vsub.f32 %v25905_v4, %v5429_v38  ;;  %v23349_v59 = vpack.c.bf16 %v5429_v38, %v5422_v7 }
 0xcc5   :  { %23317 = vmatpush3.bf16.msra.mxu0 %v23316_v35  ;;  %v26012_v24 = vpack.c.bf16 %v5487_v2, %v5480_v23  ;;  %v5513_v35 = vand.u32 4294901760, %v5512_v41  ;;  %v23274_v2 = vpack.c.bf16 %v5417_v52, %v5410_v63 }
 0xcc6   :  { %23318 = vmatprep.subr.bf16.mxu0 %v28706_v5 }
 0xcc7   :  { %v5514_v17 = vsub.f32 %v5512_v41, %v5513_v35 }
 0xcc9   :  { %23320 = vmatpush3.bf16.msra.mxu0 %v23319_v45  ;;  %v26016_v45 = vpack.c.bf16 %v5513_v35, %v5506_v3  ;;  %v5515_v21 = vand.u32 4294901760, %v5514_v17  ;;  %v5424_v3 = vand.u32 4294901760, %v5423_v18  ;;  %v5431_v35 = vand.u32 4294901760, %v5430_v20  ;;  %v18487_v20 = vld [vmem:[#allocation4 + $0x260] ss:$0 sm:$0xff] }
 0xcca   :  { %23345 = vmatprep.subr.bf16.mxu0 %v28706_v5 }
 0xccb   :  { %v26020_v11 = vpack.c.bf16 %v5515_v21, %v5508_v12  ;;  %v23277_v54 = vpack.c.bf16 %v5431_v35, %v5424_v3  ;;  %v5981_v21 = vld [vmem:[#allocation4 + $0x270] sm:$0xff] }
 0xd7f   :  { %v5284_v42 = vpop.f32.mrb[22].mxu0 }
 0xd80   :  { %v24719_v43 = vadd.f32 %v18485_v34, %v5284_v42  ;;  %v20578_v48 = vpop.f32.mrb[23].mxu0 }
 0xd82   :  { %v5289_v22 = vmul.f32 0.70710677, %v24719_v43  ;;  %v5288_v33 = vmul.f32 0.5, %v24719_v43 }
 0xd84   :  { %25208 = verf.f32 %v5289_v22 }
 0xd8e   :  { %v25209_v29 = vpop.eup %25208 }
 0xd8f   :  { %v5291_v50 = vadd.f32 1.0, %v25209_v29  ;;  %v5982_v29 = vld [vmem:[#allocation4 + $0x278] sm:$0xff] }
 0xd90   :  { %v5993_v47 = vsel %vm50_vm1, %v5982_v29, 0 }
 0xd91   :  { %v5292_v41 = vmul.f32 %v5291_v50, %v5288_v33  ;;  %v5983_v50 = vld [vmem:[#allocation4 + $0x280] sm:$0xff]  ;;  %v6077_v27 = vand.u32 4294901760, %v5993_v47 }
 0xd93   :  { %v26026_v62 = vand.u32 4294901760, %v5292_v41  ;;  %v6078_v7 = vsub.f32 %v5993_v47, %v6077_v27 }
 0xd95   :  { %v26031_v49 = vsub.f32 %v5292_v41, %v26026_v62  ;;  %v5996_v41 = vsel %vm50_vm1, %v5983_v50, 0  ;;  %v6079_v63 = vand.u32 4294901760, %v6078_v7 }
 0xd97   :  { %20682 = vmatmul.mubr.f32.vlgmr.msra.gmra.mrb[24].mxu0 %v26031_v49  ;;  %v5397_v19 = vand.u32 4294901760, %v26031_v49  ;;  %v6080_v3 = vsub.f32 %v6078_v7, %v6079_v63 }
 0xd98   :  { %23347 = vmatpush3.bf16.msra.mxu0 %v23346_v6  ;;  %20751 = vmatprep.mubr.msk.f32.mxu0 %vm25371_vm0, %v28704_v0  ;;  %v5999_v6 = vsel %vm50_vm1, %v5984_v57, 0 }
 0xd99   :  { %23348 = vmatprep.subr.bf16.mxu0 %v28706_v5  ;;  %v5398_v23 = vsub.f32 %v26031_v49, %v5397_v19  ;;  %v6097_v38 = vand.u32 4294901760, %v5999_v6 }
 0xd9b   :  { %v5399_v36 = vand.u32 4294901760, %v5398_v23  ;;  %v6098_v52 = vsub.f32 %v5999_v6, %v6097_v38  ;;  %v18488_v23 = vld [vmem:[#allocation4 + $0x268] ss:$0 sm:$0xff] }
 0xd9c   :  { %23350 = vmatpush3.bf16.msra.mxu0 %v23349_v59 }
 0xd9d   :  { %20612 = vmatmul.mubr.f32.vlgmr.msra.gmra.mrb[28].mxu1 %v5399_v36  ;;  %23351 = vmatprep.subr.bf16.mxu0 %v28706_v5  ;;  %v6099_v35 = vand.u32 4294901760, %v6098_v52 }
 0xd9e   :  { %23275 = vmatpush3.bf16.msra.mxu1 %v23274_v2  ;;  %20646 = vmatprep.mubr.msk.f32.mxu1 %vm25371_vm0, %v28704_v0 }
 0xd9f   :  { %23276 = vmatprep.subr.bf16.mxu1 %v28706_v5 }
 0xda0   :  { %23353 = vmatpush3.bf16.msra.mxu0 %v25980_v53 }
 0xda1   :  { %23354 = vmatprep.subr.bf16.mxu0 %v28706_v5 }
 0xda2   :  { %23278 = vmatpush3.bf16.msra.mxu1 %v23277_v54 }
 0xda3   :  { %23279 = vmatprep.subr.bf16.mxu1 %v28706_v5 }
 0xda4   :  { %23356 = vmatpush3.bf16.msra.mxu0 %v25986_v25 }
 0xda5   :  { %23357 = vmatprep.subr.bf16.mxu0 %v28706_v5 }
 0xda6   :  { %23281 = vmatpush3.bf16.msra.mxu1 %v25992_v56 }
 0xda7   :  { %23282 = vmatprep.subr.bf16.mxu1 %v28706_v5 }
 0xda8   :  { %23359 = vmatpush3.bf16.msra.mxu0 %v25994_v39 }
 0xda9   :  { %23360 = vmatprep.subr.bf16.mxu0 %v28706_v5 }
 0xdaa   :  { %23284 = vmatpush3.bf16.msra.mxu1 %v25996_v58 }
 0xdab   :  { %23285 = vmatprep.subr.bf16.mxu1 %v28706_v5 }
 0xdac   :  { %23362 = vmatpush3.bf16.msra.mxu0 %v26002_v10 }
 0xdad   :  { %23363 = vmatprep.subr.bf16.mxu0 %v28706_v5 }
 0xdae   :  { %23287 = vmatpush3.bf16.msra.mxu1 %v26008_v26 }
 0xdaf   :  { %23288 = vmatprep.subr.bf16.mxu1 %v28706_v5 }
 0xdb0   :  { %23365 = vmatpush3.bf16.msra.mxu0 %v26010_v16 }
 0xdb1   :  { %23366 = vmatprep.subr.bf16.mxu0 %v28706_v5 }
 0xdb2   :  { %23290 = vmatpush3.bf16.msra.mxu1 %v26012_v24 }
 0xdb3   :  { %23291 = vmatprep.subr.bf16.mxu1 %v28706_v5 }
 0xdb4   :  { %23368 = vmatpush3.bf16.msra.mxu0 %v26016_v45 }
 0xdb6   :  { %23293 = vmatpush3.bf16.msra.mxu1 %v26018_v55 }
 0xdb7   :  { %20752 = vmatmul.mubr.f32.vlgmr.msra.gmra.mrb[26].mxu0 %v26026_v62  ;;  %23294 = vmatprep.subr.bf16.mxu1 %v28706_v5 }
 0xdba   :  { %23296 = vmatpush3.bf16.msra.mxu1 %v26020_v11  ;;  %v5990_v11 = vsel %vm50_vm1, %v5981_v21, 0 }
 0xdbb   :  { %23321 = vmatprep.subr.bf16.mxu1 %v28706_v5  ;;  %v26118_v34 = vand.u32 4294901760, %v5990_v11 }
 0xdbd   :  { %20647 = vmatmul.mubr.f32.vlgmr.msra.gmra.mrb[30].mxu1 %v26026_v62 }
 0xdbe   :  { %23323 = vmatpush3.bf16.msra.mxu1 %v25873_v60  ;;  %20716 = vmatprep.mubr.msk.f32.mxu1 %vm25371_vm0, %v28704_v0 }
 0xdbf   :  { %23324 = vmatprep.subr.bf16.mxu1 %v28706_v5 }
 0xdc2   :  { %23326 = vmatpush3.bf16.msra.mxu1 %v25920_v30 }
 0xdc3   :  { %23327 = vmatprep.subr.bf16.mxu1 %v28706_v5 }
 0xdc6   :  { %23329 = vmatpush3.bf16.msra.mxu1 %v25931_v40 }
 0xdc7   :  { %23330 = vmatprep.subr.bf16.mxu1 %v28706_v5 }
 0xdca   :  { %23332 = vmatpush3.bf16.msra.mxu1 %v25942_v13 }
 0xdcb   :  { %23333 = vmatprep.subr.bf16.mxu1 %v28706_v5 }
 0xdce   :  { %23335 = vmatpush3.bf16.msra.mxu1 %v25953_v28 }
 0xdcf   :  { %23336 = vmatprep.subr.bf16.mxu1 %v28706_v5 }
 0xdd2   :  { %23338 = vmatpush3.bf16.msra.mxu1 %v25964_v46 }
 0xdd3   :  { %23339 = vmatprep.subr.bf16.mxu1 %v28706_v5 }
 0xdd6   :  { %23341 = vmatpush3.bf16.msra.mxu1 %v25969_v8 }
 0xdd7   :  { %23342 = vmatprep.subr.bf16.mxu1 %v28706_v5 }
 0xdda   :  { %23344 = vmatpush3.bf16.msra.mxu1 %v25974_v31 }
 0xddb   :  { %23369 = vmatprep.subr.bf16.mxu1 %v28706_v5 }
 0xddd   :  { %20717 = vmatmul.mubr.f32.vlgmr.msra.gmra.mrb[32].mxu1 %v5397_v19 }
 0xdde   :  { %23371 = vmatpush3.bf16.msra.mxu1 %v25873_v60  ;;  %20786 = vmatprep.mubr.msk.f32.mxu1 %vm25371_vm0, %v28704_v0 }
 0xddf   :  { %23372 = vmatprep.subr.bf16.mxu1 %v28706_v5 }
 0xde2   :  { %23374 = vmatpush3.bf16.msra.mxu1 %v25920_v30 }
 0xde3   :  { %23375 = vmatprep.subr.bf16.mxu1 %v28706_v5 }
 0xde6   :  { %23377 = vmatpush3.bf16.msra.mxu1 %v25931_v40 }
 0xde7   :  { %23378 = vmatprep.subr.bf16.mxu1 %v28706_v5 }
 0xdea   :  { %23380 = vmatpush3.bf16.msra.mxu1 %v25942_v13 }
 0xdeb   :  { %23381 = vmatprep.subr.bf16.mxu1 %v28706_v5 }
 0xdee   :  { %23383 = vmatpush3.bf16.msra.mxu1 %v25953_v28 }
 0xdef   :  { %23384 = vmatprep.subr.bf16.mxu1 %v28706_v5 }
 0xdf2   :  { %23386 = vmatpush3.bf16.msra.mxu1 %v25964_v46  ;;  %v18486_v46 = vld [vmem:[#allocation4 + $0x258] ss:$0 sm:$0xff] }
 0xdf3   :  { %23387 = vmatprep.subr.bf16.mxu1 %v28706_v5 }
 0xdf6   :  { %23389 = vmatpush3.bf16.msra.mxu1 %v25969_v8 }
 0xdf7   :  { %23390 = vmatprep.subr.bf16.mxu1 %v28706_v5 }
 0xdfa   :  { %23392 = vmatpush3.bf16.msra.mxu1 %v25974_v31 }
 0xdfb   :  { %23393 = vmatprep.subr.bf16.mxu1 %v28706_v5 }
 0xdfd   :  { %20787 = vmatmul.mubr.f32.vlgmr.msra.gmra.mrb[34].mxu1 %v26026_v62  ;;  %v6087_v62 = vand.u32 4294901760, %v5996_v41 }
 0xdfe   :  { %20845 = vmatprep.mubr.msk.f32.mxu1 %vm25371_vm0, %v28704_v0 }
 0xdff   :  { %v6088_v49 = vsub.f32 %v5996_v41, %v6087_v62 }
 0xe01   :  { %v6089_v19 = vand.u32 4294901760, %v6088_v49 }
 0xe03   :  { %v6090_v36 = vsub.f32 %v6088_v49, %v6089_v19 }
 0xe6a   :  { %v5656_v60 = vpop.f32.mrb[24].mxu0 }
 0xe6b   :  { %v20683_v4 = vpop.f32.mrb[25].mxu0 }
 0xe6c   :  { %v6081_v4 = vand.u32 4294901760, %v6080_v3 }
 0xe70   :  { %v5401_v30 = vpop.f32.mrb[28].mxu1 }
 0xe71   :  { %v20613_v40 = vpop.f32.mrb[29].mxu1  ;;  %v5402_v53 = vadd.f32 %v18486_v46, %v5401_v30  ;;  %v6100_v30 = vsub.f32 %v6098_v52, %v6099_v35 }
 0xe72   :  { %v6091_v40 = vand.u32 4294901760, %v6090_v36 }
 0xe8a   :  { %v5864_v13 = vpop.f32.mrb[26].mxu0 }
 0xe8b   :  { %v20753_v28 = vpop.f32.mrb[27].mxu0 }
 0xe8c   :  { %v6101_v28 = vand.u32 4294901760, %v6100_v30 }
 0xe90   :  { %v5552_v8 = vpop.f32.mrb[30].mxu1 }
 0xe91   :  { %v5553_v25 = vadd.f32 %v5552_v8, %v5402_v53  ;;  %v20648_v56 = vpop.f32.mrb[31].mxu1 }
 0xe92   :  { %v5985_v56 = vld [vmem:[#allocation4 + $0x290] sm:$0xff] }
 0xe93   :  { %v5657_v39 = vadd.f32 %v5656_v60, %v5553_v25  ;;  %v5986_v25 = vld [vmem:[#allocation4 + $0x298] sm:$0xff] }
 0xeb0   :  { %v5745_v31 = vpop.f32.mrb[32].mxu1 }
 0xeb1   :  { %v5746_v58 = vadd.f32 %v5745_v31, %v5657_v39  ;;  %v20718_v10 = vpop.f32.mrb[33].mxu1 }
 0xeb3   :  { %v5865_v26 = vadd.f32 %v5864_v13, %v5746_v58 }
 0xed0   :  { %v5951_v16 = vpop.f32.mrb[34].mxu1 }
 0xed1   :  { %v5952_v24 = vadd.f32 %v5951_v16, %v5865_v26  ;;  %v20788_v15 = vpop.f32.mrb[35].mxu1  ;;  %v5988_v26 = vld [vmem:[#allocation4 + $0x2a8] sm:$0xff] }
 0xed3   :  { %v26111_v45 = vadd.f32 %v5952_v24, %v25855_v37  ;;  %v6068_v37 = vsub.f32 %v5990_v11, %v26118_v34  ;;  %v5987_v24 = vld [vmem:[#allocation4 + $0x2a0] sm:$0xff] }
 0xed5   :  { %v5958_v9 = vsel %vm1997_vm6, %v26111_v45, 0.0  ;;  %v6069_v42 = vand.u32 4294901760, %v6068_v37 }
 0xed6   :  { %5959 = vadd.xlane.f32.xlu0 %v5958_v9 }
 0xed7   :  { %v6070_v43 = vsub.f32 %v6068_v37, %v6069_v42 }
 0xed9   :  { %v6071_v48 = vand.u32 4294901760, %v6070_v43 }
 0xedb   :  { %20791 = vmatprep.mubr.f32.mxu0 %v6071_v48 }
 0xf63   :  { %v5960_v14 = vpop.xlane.xlu0 %5959 }
 0xf64   :  { %v5961_v32 = vmul.f32 0.03125, %v5960_v14 }
 0xf66   :  { %v5962_v17 = vsub.f32 %v26111_v45, %v5961_v32 }
 0xf68   :  { %v5963_v55 = vmul.f32 %v5962_v17, %v5962_v17 }
 0xf6a   :  { %v5964_v12 = vsel %vm1997_vm6, %v5963_v55, 0.0  ;;  %v6596_v55 = vld [vmem:[#allocation4 + $0x2b0] sm:$0xff] }
 0xf6b   :  { %5965 = vadd.xlane.f32.xlu1 %v5964_v12  ;;  %v6599_v11 = vsel %vm1997_vm6, %v6596_v55, 0 }
 0xff8   :  { %v5966_v22 = vpop.xlane.xlu1 %5965 }
 0xff9   :  { %v5967_v33 = vmul.f32 0.03125, %v5966_v22 }
 0xffb   :  { %v5968_v61 = vadd.f32 1e-05, %v5967_v33 }
 0xffd   :  { %25210 = vrsqrt.f32 %v5968_v61 }
0x1007   :  { %v25211_v18 = vpop.eup %25210 }
0x1008   :  { %v5970_v59 = vmul.f32 %v25211_v18, %v5962_v17 }
0x100a   :  { %v5975_v2 = vmul.f32 %v18487_v20, %v5970_v59 }
0x100c   :  { %v5980_v54 = vadd.f32 %v18488_v23, %v5975_v2 }
0x100e   :  { %v6002_v60 = vand.u32 4294901760, %v5980_v54 }
0x1010   :  { %20789 = vmatprep.subr.mxu0 %v6002_v60  ;;  %v6109_v13 = vsub.f32 %v5980_v54, %v6002_v60 }
0x1011   :  { %20790 = vmatpush3.msra.mxu0 %v6002_v60 }
0x1012   :  { %20792 = vmatmul.mubr.f32.vlgmr.msra.gmra.mrb[28].mxu0 %v6081_v4  ;;  %v6110_v46 = vand.u32 4294901760, %v6109_v13 }
0x1013   :  { %20794 = vmatprep.mubr.f32.mxu0 %v6091_v40 }
0x1014   :  { %v6111_v53 = vsub.f32 %v6109_v13, %v6110_v46 }
0x1016   :  { %20795 = vmatmul.mubr.f32.gmra.mrb[30].mxu0 %v6101_v28  ;;  %v6112_v8 = vand.u32 4294901760, %v6111_v53 }
0x1017   :  { %20799 = vmatprep.mubr.f32.mxu0 %v26118_v34 }
0x1018   :  { %20797 = vmatprep.subr.mxu0 %v6112_v8 }
0x1019   :  { %20798 = vmatpush3.msra.mxu0 %v6112_v8 }
0x101a   :  { %20800 = vmatmul.mubr.f32.vlgmr.msra.gmra.mrb[28].mxu0 %v6077_v27  ;;  %20805 = vmatprep.subr.mxu0 %v6109_v13 }
0x101b   :  { %20806 = vmatpush3.msra.mxu0 %v6109_v13  ;;  %20802 = vmatprep.mubr.f32.mxu0 %v6087_v62 }
0x101c   :  { %20813 = vmatprep.subr.mxu0 %v6002_v60 }
0x101e   :  { %20803 = vmatmul.mubr.f32.gmra.mrb[30].mxu0 %v6097_v38 }
0x101f   :  { %20807 = vmatprep.mubr.f32.mxu0 %v6068_v37 }
0x1022   :  { %20808 = vmatmul.mubr.f32.vlgmr.msra.gmra.mrb[28].mxu0 %v6078_v7 }
0x1023   :  { %20814 = vmatpush3.msra.mxu0 %v6002_v60  ;;  %20810 = vmatprep.mubr.f32.mxu0 %v6088_v49 }
0x1024   :  { %20821 = vmatprep.subr.mxu0 %v6110_v46 }
0x1026   :  { %20811 = vmatmul.mubr.f32.gmra.mrb[30].mxu0 %v6098_v52 }
0x1027   :  { %20815 = vmatprep.mubr.f32.mxu0 %v6069_v42 }
0x102a   :  { %20816 = vmatmul.mubr.f32.vlgmr.msra.gmra.mrb[28].mxu0 %v6079_v63 }
0x102b   :  { %20822 = vmatpush3.msra.mxu0 %v6110_v46  ;;  %20818 = vmatprep.mubr.f32.mxu0 %v6089_v19 }
0x102c   :  { %20829 = vmatprep.subr.mxu0 %v6002_v60 }
0x102e   :  { %20819 = vmatmul.mubr.f32.gmra.mrb[30].mxu0 %v6099_v35 }
0x102f   :  { %20823 = vmatprep.mubr.f32.mxu0 %v26118_v34 }
0x1032   :  { %20824 = vmatmul.mubr.f32.vlgmr.msra.gmra.mrb[28].mxu0 %v6077_v27 }
0x1033   :  { %20830 = vmatpush3.msra.mxu0 %v6002_v60  ;;  %20826 = vmatprep.mubr.f32.mxu0 %v6087_v62 }
0x1034   :  { %23411 = vmatprep.subr.bf16.mxu0 %v28706_v5 }
0x1036   :  { %20827 = vmatmul.mubr.f32.gmra.mrb[30].mxu0 %v6097_v38 }
0x1037   :  { %20831 = vmatprep.mubr.f32.mxu0 %v26118_v34  ;;  %v26131_v34 = vand.u32 4294901760, %v6599_v11 }
0x1039   :  { %v26134_v22 = vsub.f32 %v6599_v11, %v26131_v34 }
0x103a   :  { %20832 = vmatmul.mubr.f32.vlgmr.msra.gmra.mrb[28].mxu0 %v6077_v27 }
0x103b   :  { %20834 = vmatprep.mubr.f32.mxu0 %v6087_v62  ;;  %v6672_v6 = vand.u32 4294901760, %v26134_v22 }
0x103d   :  { %v6673_v2 = vsub.f32 %v26134_v22, %v6672_v6 }
0x103e   :  { %20835 = vmatmul.mubr.f32.gmra.mrb[30].mxu0 %v6097_v38 }
0x103f   :  { %20878 = vmatprep.mubr.msk.f32.mxu0 %vm25371_vm0, %v28704_v0  ;;  %v6674_v46 = vand.u32 4294901760, %v6673_v2 }
0x110d   :  { %v20833_v39 = vpop.f32.mrb[28].mxu0 }
0x110e   :  { %v24720_v31 = vadd.f32 %v20833_v39, %v5986_v25  ;;  %v6554_v58 = vpop.f32.mrb[29].mxu0 }
0x110f   :  { %v24721_v10 = vadd.f32 %v6554_v58, %v5985_v56 }
0x1110   :  { %v6581_v16 = vmul.f32 0.70710677, %v24720_v31  ;;  %v6577_v43 = vmul.f32 0.5, %v24720_v31 }
0x1111   :  { %v6580_v15 = vmul.f32 0.70710677, %v24721_v10  ;;  %v20836_v9 = vpop.f32.mrb[30].mxu0  ;;  %v6576_v29 = vmul.f32 0.5, %v24721_v10 }
0x1112   :  { %25212 = verf.f32 %v6581_v16  ;;  %v24722_v14 = vadd.f32 %v20836_v9, %v5988_v26  ;;  %v6566_v32 = vpop.f32.mrb[31].mxu0 }
0x1113   :  { %25214 = verf.f32 %v6580_v15  ;;  %v24723_v17 = vadd.f32 %v6566_v32, %v5987_v24 }
0x1114   :  { %v6583_v12 = vmul.f32 0.70710677, %v24722_v14  ;;  %v6579_v27 = vmul.f32 0.5, %v24722_v14 }
0x1115   :  { %v6582_v21 = vmul.f32 0.70710677, %v24723_v17  ;;  %v6578_v38 = vmul.f32 0.5, %v24723_v17  ;;  %v6597_v17 = vld [vmem:[#allocation4 + $0x2b8] sm:$0xff] }
0x1116   :  { %25216 = verf.f32 %v6583_v12 }
0x1117   :  { %25218 = verf.f32 %v6582_v21 }
0x111c   :  { %v25213_v37 = vpop.eup %25212 }
0x111d   :  { %v25215_v42 = vpop.eup %25214  ;;  %v6589_v48 = vadd.f32 1.0, %v25213_v37 }
0x111e   :  { %v6588_v33 = vadd.f32 1.0, %v25215_v42 }
0x111f   :  { %v6593_v50 = vmul.f32 %v6589_v48, %v6577_v43 }
0x1120   :  { %v25217_v61 = vpop.eup %25216  ;;  %v6592_v47 = vmul.f32 %v6588_v33, %v6576_v29 }
0x1121   :  { %v25219_v41 = vpop.eup %25218  ;;  %v6605_v57 = vand.u32 4294901760, %v6593_v50  ;;  %v6591_v62 = vadd.f32 1.0, %v25217_v61 }
0x1122   :  { %v6602_v7 = vand.u32 4294901760, %v6592_v47  ;;  %v6590_v49 = vadd.f32 1.0, %v25219_v41 }
0x1123   :  { %v6689_v63 = vsub.f32 %v6593_v50, %v6605_v57  ;;  %v6595_v52 = vmul.f32 %v6591_v62, %v6579_v27 }
0x1124   :  { %v6682_v18 = vsub.f32 %v6592_v47, %v6602_v7  ;;  %v6594_v20 = vmul.f32 %v6590_v49, %v6578_v38  ;;  %v23394_v19 = vpack.c.bf16 %v6605_v57, %v6602_v7  ;;  %v3153_v57 = vadd.f32 %v25801_v51, %v25504_v1  ;;  %v7112_v1 = vld [vmem:[#allocation4 + $0x2d0] sm:$0xff]  ;;  %v7113_v51 = vld [vmem:[#allocation4 + $0x2d8] sm:$0xff] }
0x1125   :  { %v6690_v59 = vand.u32 4294901760, %v6689_v63  ;;  %v6611_v23 = vand.u32 4294901760, %v6595_v52 }
0x1126   :  { %v6683_v3 = vand.u32 4294901760, %v6682_v18  ;;  %v6608_v35 = vand.u32 4294901760, %v6594_v20  ;;  %23395 = vmatpush3.bf16.msra.mxu1 %v23394_v19  ;;  %23413 = vmatpush3.bf16.msra.mxu0 %v23394_v19  ;;  %v23406_v36 = vpack.c.bf16 %v6689_v63, %v6682_v18  ;;  %v3156_v27 = vsel %vm958_vm2, %v3153_v57, 0.0 }
0x1127   :  { %v6703_v54 = vsub.f32 %v6595_v52, %v6611_v23  ;;  %23396 = vmatprep.subr.bf16.mxu1 %v28706_v5  ;;  %23414 = vmatprep.subr.bf16.mxu0 %v28706_v5  ;;  %v6691_v60 = vsub.f32 %v6689_v63, %v6690_v59 }
0x1128   :  { %v6696_v4 = vsub.f32 %v6594_v20, %v6608_v35  ;;  %v23397_v30 = vpack.c.bf16 %v6611_v23, %v6608_v35  ;;  %v6684_v40 = vsub.f32 %v6682_v18, %v6683_v3  ;;  %v23418_v13 = vpack.c.bf16 %v6690_v59, %v6683_v3  ;;  %v7114_v35 = vld [vmem:[#allocation4 + $0x2e0] sm:$0xff] }
0x1129   :  { %v6704_v28 = vand.u32 4294901760, %v6703_v54  ;;  %v6692_v53 = vand.u32 4294901760, %v6691_v60  ;;  %v7128_v59 = vand.u32 4294901760, %v7113_v51 }
0x112a   :  { %v6697_v8 = vand.u32 4294901760, %v6696_v4  ;;  %23398 = vmatpush3.bf16.msra.mxu1 %v23397_v30  ;;  %23416 = vmatpush3.bf16.msra.mxu0 %v23397_v30  ;;  %v6685_v25 = vand.u32 4294901760, %v6684_v40  ;;  %v23409_v56 = vpack.c.bf16 %v6703_v54, %v6696_v4 }
0x112b   :  { %23399 = vmatprep.subr.bf16.mxu1 %v28706_v5  ;;  %23423 = vmatprep.subr.bf16.mxu0 %v28706_v5  ;;  %v6705_v39 = vsub.f32 %v6703_v54, %v6704_v28  ;;  %v26181_v3 = vsub.f32 %v7113_v51, %v7128_v59  ;;  %v7131_v54 = vand.u32 4294901760, %v7114_v35  ;;  %v7615_v51 = vld [vmem:[#allocation4 + $0x300] sm:$0xff] }
0x112c   :  { %v23400_v31 = vpack.c.bf16 %v6692_v53, %v6685_v25  ;;  %v6698_v58 = vsub.f32 %v6696_v4, %v6697_v8  ;;  %v23421_v10 = vpack.c.bf16 %v6704_v28, %v6697_v8 }
0x112d   :  { %20846 = vmatmul.mubr.f32.vlgmr.msra.gmra.mrb[36].mxu1 %v6674_v46  ;;  %20879 = vmatmul.mubr.f32.vlgmr.msra.gmra.mrb[32].mxu0 %v6672_v6  ;;  %v6706_v26 = vand.u32 4294901760, %v6705_v39 }
0x112e   :  { %23401 = vmatpush3.bf16.msra.mxu1 %v23400_v31  ;;  %23425 = vmatpush3.bf16.msra.mxu0 %v23394_v19  ;;  %v6699_v16 = vand.u32 4294901760, %v6698_v58  ;;  %v7125_v19 = vand.u32 4294901760, %v7112_v1 }
0x112f   :  { %23402 = vmatprep.subr.bf16.mxu1 %v28706_v5  ;;  %23426 = vmatprep.subr.bf16.mxu0 %v28706_v5 }
0x1130   :  { %v23403_v24 = vpack.c.bf16 %v6706_v26, %v6699_v16  ;;  %20856 = vmatprep.mubr.msk.f32.mxu1 %vm25371_vm0, %v28704_v0  ;;  %20900 = vmatprep.mubr.msk.f32.mxu0 %vm25371_vm0, %v28704_v0  ;;  %v26177_v23 = vpack.c.bf16 %v7128_v59, %v7125_v19  ;;  %v26179_v2 = vsub.f32 %v7112_v1, %v7125_v19  ;;  %v7614_v1 = vld [vmem:[#allocation4 + $0x2f8] sm:$0xff]  ;;  %v7639_v59 = vand.u32 4294901760, %v7615_v51 }
0x1131   :  { %v7636_v19 = vand.u32 4294901760, %v7614_v1 }
0x1132   :  { %23404 = vmatpush3.bf16.msra.mxu1 %v23403_v24  ;;  %23428 = vmatpush3.bf16.msra.mxu0 %v23397_v30  ;;  %v7206_v4 = vand.u32 4294901760, %v26179_v2  ;;  %v7213_v30 = vand.u32 4294901760, %v26181_v3 }
0x1133   :  { %23405 = vmatprep.subr.bf16.mxu1 %v28706_v5  ;;  %23465 = vmatprep.subr.bf16.mxu0 %v28706_v5 }
0x1134   :  { %v7207_v46 = vsub.f32 %v26179_v2, %v7206_v4  ;;  %v7214_v53 = vsub.f32 %v26181_v3, %v7213_v30 }
0x1135   :  { %20857 = vmatmul.mubr.f32.vlgmr.msra.gmra.mrb[38].mxu1 %v26131_v34  ;;  %20901 = vmatmul.mubr.f32.vlgmr.msra.gmra.mrb[34].mxu0 %v26131_v34 }
0x1136   :  { %23407 = vmatpush3.bf16.msra.mxu1 %v23406_v36  ;;  %20867 = vmatprep.mubr.msk.f32.mxu1 %vm25371_vm0, %v28704_v0  ;;  %v7115_v36 = vld [vmem:[#allocation4 + $0x2e8] sm:$0xff]  ;;  %v7208_v8 = vand.u32 4294901760, %v7207_v46  ;;  %v7215_v39 = vand.u32 4294901760, %v7214_v53  ;;  %v7619_v46 = vld [vmem:[#allocation4 + $0x320] sm:$0xff] }
0x1137   :  { %23408 = vmatprep.subr.bf16.mxu1 %v28706_v5  ;;  %21001 = vmatprep.mubr.msk.f32.mxu0 %vm25371_vm0, %v28704_v0  ;;  %v7134_v60 = vand.u32 4294901760, %v7115_v36 }
0x1139   :  { %v26187_v40 = vpack.c.bf16 %v7134_v60, %v7131_v54  ;;  %v7226_v28 = vsub.f32 %v7115_v36, %v7134_v60  ;;  %v26232_v36 = vsub.f32 %v7614_v1, %v7636_v19 }
0x113a   :  { %23410 = vmatpush3.bf16.msra.mxu1 %v23409_v56 }
0x113b   :  { %23417 = vmatprep.subr.bf16.mxu1 %v28706_v5  ;;  %v7227_v56 = vand.u32 4294901760, %v7226_v28 }
0x113d   :  { %20868 = vmatmul.mubr.f32.vlgmr.msra.gmra.mrb[40].mxu1 %v26134_v22  ;;  %v7228_v58 = vsub.f32 %v7226_v28, %v7227_v56 }
0x113e   :  { %23419 = vmatpush3.bf16.msra.mxu1 %v23418_v13  ;;  %20889 = vmatprep.mubr.msk.f32.mxu1 %vm25371_vm0, %v28704_v0  ;;  %v26189_v13 = vsub.f32 %v7114_v35, %v7131_v54  ;;  %v7617_v35 = vld [vmem:[#allocation4 + $0x310] sm:$0xff]  ;;  %v26234_v54 = vsub.f32 %v7615_v51, %v7639_v59 }
0x113f   :  { %23420 = vmatprep.subr.bf16.mxu1 %v28706_v5  ;;  %v7229_v16 = vand.u32 4294901760, %v7228_v58 }
0x1140   :  { %v7220_v25 = vand.u32 4294901760, %v26189_v13 }
0x1142   :  { %23422 = vmatpush3.bf16.msra.mxu1 %v23421_v10  ;;  %v7221_v31 = vsub.f32 %v26189_v13, %v7220_v25  ;;  %v23436_v10 = vpack.c.bf16 %v7215_v39, %v7208_v8  ;;  %v7651_v8 = vand.u32 4294901760, %v7619_v46  ;;  %v7620_v39 = vld [vmem:[#allocation4 + $0x328] sm:$0xff] }
0x1143   :  { %23429 = vmatprep.subr.bf16.mxu1 %v28706_v5 }
0x1144   :  { %v7222_v26 = vand.u32 4294901760, %v7221_v31  ;;  %v7621_v31 = vld [vmem:[#allocation4 + $0x330] sm:$0xff] }
0x1145   :  { %20890 = vmatmul.mubr.f32.vlgmr.msra.gmra.mrb[42].mxu1 %v26131_v34 }
0x1146   :  { %20911 = vmatprep.mubr.msk.f32.mxu1 %vm25371_vm0, %v28704_v0  ;;  %23431 = vmatpush3.bf16.msra.mxu1 %v26177_v23  ;;  %v23439_v24 = vpack.c.bf16 %v7229_v16, %v7222_v26  ;;  %v7657_v26 = vand.u32 4294901760, %v7621_v31 }
0x1147   :  { %23432 = vmatprep.subr.bf16.mxu1 %v28706_v5 }
0x114a   :  { %23434 = vmatpush3.bf16.msra.mxu1 %v26187_v40 }
0x114b   :  { %23435 = vmatprep.subr.bf16.mxu1 %v28706_v5 }
0x1200   :  { %v6676_v15 = vpop.f32.mrb[36].mxu1  ;;  %v6924_v9 = vpop.f32.mrb[32].mxu0 }
0x1201   :  { %v20847_v14 = vpop.f32.mrb[37].mxu1  ;;  %v20880_v32 = vpop.f32.mrb[33].mxu0  ;;  %v6677_v55 = vadd.f32 %v6676_v15, %v6597_v17  ;;  %v23442_v15 = vpack.c.bf16 %v26181_v3, %v26179_v2  ;;  %v26219_v2 = vpack.c.bf16 %v7639_v59, %v7636_v19  ;;  %v7616_v3 = vld [vmem:[#allocation4 + $0x308] sm:$0xff] }
0x1202   :  { %v23454_v14 = vpack.c.bf16 %v7213_v30, %v7206_v4  ;;  %v23457_v32 = vpack.c.bf16 %v7227_v56, %v7220_v25  ;;  %v7642_v60 = vand.u32 4294901760, %v7616_v3  ;;  %v7645_v4 = vand.u32 4294901760, %v7617_v35 }
0x1203   :  { %23467 = vmatpush3.bf16.msra.mxu0 %v26219_v2  ;;  %v23514_v30 = vpack.c.bf16 %v26234_v54, %v26232_v36  ;;  %v26253_v56 = vsub.f32 %v7619_v46, %v7651_v8 }
0x1204   :  { %23468 = vmatprep.subr.bf16.mxu0 %v28706_v5  ;;  %v26257_v16 = vpack.c.bf16 %v7645_v4, %v7642_v60 }
0x1207   :  { %23470 = vmatpush3.bf16.msra.mxu0 %v26257_v16 }
0x1208   :  { %v6767_v12 = vpop.f32.mrb[38].mxu1  ;;  %v7082_v21 = vpop.f32.mrb[34].mxu0  ;;  %23471 = vmatprep.subr.bf16.mxu0 %v28706_v5 }
0x1209   :  { %v6768_v11 = vadd.f32 %v6767_v12, %v6677_v55  ;;  %v20858_v37 = vpop.f32.mrb[39].mxu1  ;;  %v20902_v42 = vpop.f32.mrb[35].mxu0 }
0x1210   :  { %v6847_v43 = vpop.f32.mrb[40].mxu1 }
0x1211   :  { %v6848_v48 = vadd.f32 %v6847_v43, %v6768_v11  ;;  %v20869_v22 = vpop.f32.mrb[41].mxu1  ;;  %v18489_v43 = vld [vmem:[#allocation4 + $0x2c0] ss:$0 sm:$0xff] }
0x1212   :  { %v18470_v22 = vld [vmem:[#allocation4 + $0x8] ss:$0 sm:$0xff] }
0x1213   :  { %v6925_v29 = vadd.f32 %v6924_v9, %v6848_v48  ;;  %v23445_v9 = vpack.c.bf16 %v7226_v28, %v26189_v13  ;;  %v26240_v13 = vsub.f32 %v7616_v3, %v7642_v60  ;;  %v26242_v28 = vsub.f32 %v7617_v35, %v7645_v4 }
0x1218   :  { %v7007_v33 = vpop.f32.mrb[42].mxu1 }
0x1219   :  { %v7008_v34 = vadd.f32 %v7007_v33, %v6925_v29  ;;  %v20891_v50 = vpop.f32.mrb[43].mxu1  ;;  %v18490_v29 = vld [vmem:[#allocation4 + $0x2c8] ss:$0 sm:$0xff] }
0x121a   :  { %v18478_v50 = vld [vmem:[#allocation4 + $0x120] ss:$0 sm:$0xff] }
0x121b   :  { %v7083_v61 = vadd.f32 %v7082_v21, %v7008_v34 }
0x121d   :  { %v26167_v47 = vadd.f32 %v7083_v61, %v26111_v45  ;;  %v24709_v61 = vadd.f32 %v18470_v22, %v25478_v44 }
0x121f   :  { %v7089_v41 = vsel %vm1997_vm6, %v26167_v47, 0.0 }
0x1220   :  { %7090 = vadd.xlane.f32.xlu0 %v7089_v41 }
0x1224   :  { %3157 = vadd.xlane.f32.xlu0 %v3156_v27  ;;  %v18479_v27 = vld [vmem:[#allocation4 + $0x128] ss:$0 sm:$0xff] }
0x12ad   :  { %v7091_v62 = vpop.xlane.xlu0 %7090 }
0x12ae   :  { %v7092_v6 = vmul.f32 0.03125, %v7091_v62 }
0x12b0   :  { %v7093_v7 = vsub.f32 %v26167_v47, %v7092_v6 }
0x12b1   :  { %v3158_v38 = vpop.xlane.xlu0 %3157 }
0x12b2   :  { %v3159_v49 = vmul.f32 0.03125, %v3158_v38  ;;  %v7094_v63 = vmul.f32 %v7093_v7, %v7093_v7 }
0x12b4   :  { %v3160_v52 = vsub.f32 %v3153_v57, %v3159_v49  ;;  %v7095_v45 = vsel %vm1997_vm6, %v7094_v63, 0.0  ;;  %v8303_v49 = vrot.slane %v24709_v61, 4  ;;  %v7627_v61 = vld [vmem:[#allocation4 + $0x360] sm:$0xff] }
0x12b5   :  { %7096 = vadd.xlane.f32.xlu1 %v7095_v45 }
0x12b6   :  { %v3161_v18 = vmul.f32 %v3160_v52, %v3160_v52 }
0x12b8   :  { %v3162_v20 = vsel %vm958_vm2, %v3161_v18, 0.0 }
0x12b9   :  { %3163 = vadd.xlane.f32.xlu0 %v3162_v20 }
0x1342   :  { %v7097_v17 = vpop.xlane.xlu1 %7096 }
0x1343   :  { %v7098_v55 = vmul.f32 0.03125, %v7097_v17 }
0x1345   :  { %v7099_v12 = vadd.f32 1e-05, %v7098_v55 }
0x1346   :  { %v3164_v21 = vpop.xlane.xlu0 %3163 }
0x1347   :  { %25220 = vrsqrt.f32 %v7099_v12  ;;  %v3165_v11 = vmul.f32 0.03125, %v3164_v21 }
0x1349   :  { %v3166_v37 = vadd.f32 1e-05, %v3165_v11 }
0x134b   :  { %25222 = vrsqrt.f32 %v3166_v37  ;;  %v7624_v37 = vld [vmem:[#allocation4 + $0x348] sm:$0xff] }
0x1351   :  { %v25221_v42 = vpop.eup %25220 }
0x1352   :  { %v7101_v48 = vmul.f32 %v25221_v42, %v7093_v7  ;;  %v7625_v42 = vld [vmem:[#allocation4 + $0x350] sm:$0xff] }
0x1353   :  { %v7669_v22 = vand.u32 4294901760, %v7625_v42 }
0x1354   :  { %v7106_v33 = vmul.f32 %v18489_v43, %v7101_v48  ;;  %v7666_v48 = vand.u32 4294901760, %v7624_v37 }
0x1355   :  { %v25223_v34 = vpop.eup %25222 }
0x1356   :  { %v3168_v41 = vmul.f32 %v25223_v34, %v3160_v52  ;;  %v7111_v57 = vadd.f32 %v18490_v29, %v7106_v33  ;;  %v26281_v33 = vsub.f32 %v7624_v37, %v7666_v48  ;;  %v26283_v34 = vsub.f32 %v7625_v42, %v7669_v22 }
0x1357   :  { %v26304_v51 = vpack.c.bf16 %v7669_v22, %v7666_v48 }
0x1358   :  { %v3173_v62 = vmul.f32 %v18478_v50, %v3168_v41  ;;  %v7122_v6 = vsel %vm1997_vm6, %v7111_v57, 0  ;;  %v7626_v50 = vld [vmem:[#allocation4 + $0x358] sm:$0xff]  ;;  %v23529_v41 = vpack.c.bf16 %v26283_v34, %v26281_v33  ;;  %v7806_v48 = vand.u32 4294901760, %v26283_v34 }
0x1359   :  { %v7193_v38 = vand.u32 4294901760, %v7122_v6  ;;  %v7672_v57 = vand.u32 4294901760, %v7626_v50 }
0x135a   :  { %v3178_v63 = vadd.f32 %v18479_v27, %v3173_v62  ;;  %v7675_v27 = vand.u32 4294901760, %v7627_v61 }
0x135b   :  { %v7194_v45 = vsub.f32 %v7122_v6, %v7193_v38 }
0x135c   :  { %v26203_v7 = vsel %vm994_vm4, %v3178_v63, %v8303_v49  ;;  %v26294_v49 = vsub.f32 %v7627_v61, %v7675_v27  ;;  %v26312_v4 = vpack.c.bf16 %v7675_v27, %v7672_v57 }
0x135d   :  { %v8312_v18 = vsel %vm8311_vm7, %v26203_v7, 0.0  ;;  %v7195_v20 = vand.u32 4294901760, %v7194_v45 }
0x135e   :  { %8313 = vadd.xlane.f32.xlu0 %v8312_v18  ;;  %v7629_v18 = vld [vmem:[#allocation4 + $0x370] sm:$0xff] }
0x135f   :  { %v7196_v44 = vsub.f32 %v7194_v45, %v7195_v20 }
0x1361   :  { %v7197_v52 = vand.u32 4294901760, %v7196_v44 }
0x1363   :  { %20912 = vmatmul.mubr.f32.vlgmr.msra.gmra.mrb[44].mxu1 %v7197_v52  ;;  %v7681_v52 = vand.u32 4294901760, %v7629_v18 }
0x1364   :  { %23437 = vmatpush3.bf16.msra.mxu1 %v23436_v10  ;;  %20922 = vmatprep.mubr.msk.f32.mxu1 %vm25371_vm0, %v28704_v0  ;;  %v7654_v10 = vand.u32 4294901760, %v7620_v39 }
0x1365   :  { %23438 = vmatprep.subr.bf16.mxu1 %v28706_v5  ;;  %v7833_v59 = vsub.f32 %v7629_v18, %v7681_v52 }
0x1366   :  { %v26279_v29 = vpack.c.bf16 %v7657_v26, %v7654_v10 }
0x1368   :  { %23440 = vmatpush3.bf16.msra.mxu1 %v23439_v24  ;;  %v26259_v24 = vsub.f32 %v7620_v39, %v7654_v10 }
0x1369   :  { %23441 = vmatprep.subr.bf16.mxu1 %v28706_v5 }
0x136b   :  { %20923 = vmatmul.mubr.f32.vlgmr.msra.gmra.mrb[44].mxu1 %v7193_v38 }
0x136c   :  { %23443 = vmatpush3.bf16.msra.mxu1 %v23442_v15  ;;  %20933 = vmatprep.mubr.msk.f32.mxu1 %vm25371_vm0, %v28704_v0  ;;  %v26261_v15 = vsub.f32 %v7621_v31, %v7657_v26 }
0x136d   :  { %23444 = vmatprep.subr.bf16.mxu1 %v28706_v5 }
0x1370   :  { %23446 = vmatpush3.bf16.msra.mxu1 %v23445_v9  ;;  %v7622_v9 = vld [vmem:[#allocation4 + $0x338] sm:$0xff] }
0x1371   :  { %23447 = vmatprep.subr.bf16.mxu1 %v28706_v5  ;;  %v7660_v17 = vand.u32 4294901760, %v7622_v9 }
0x1373   :  { %20934 = vmatmul.mubr.f32.vlgmr.msra.gmra.mrb[44].mxu1 %v7194_v45  ;;  %v26270_v21 = vsub.f32 %v7622_v9, %v7660_v17  ;;  %v7628_v45 = vld [vmem:[#allocation4 + $0x368] sm:$0xff] }
0x1374   :  { %23449 = vmatpush3.bf16.msra.mxu1 %v26177_v23  ;;  %20944 = vmatprep.mubr.msk.f32.mxu1 %vm25371_vm0, %v28704_v0  ;;  %v7678_v44 = vand.u32 4294901760, %v7628_v45 }
0x1375   :  { %23450 = vmatprep.subr.bf16.mxu1 %v28706_v5  ;;  %v7785_v9 = vand.u32 4294901760, %v26270_v21 }
0x1376   :  { %v7826_v19 = vsub.f32 %v7628_v45, %v7678_v44 }
0x1377   :  { %v7786_v22 = vsub.f32 %v26270_v21, %v7785_v9 }
0x1378   :  { %23452 = vmatpush3.bf16.msra.mxu1 %v26187_v40  ;;  %v23535_v35 = vpack.c.bf16 %v7833_v59, %v7826_v19 }
0x1379   :  { %23453 = vmatprep.subr.bf16.mxu1 %v28706_v5 }
0x137b   :  { %20945 = vmatmul.mubr.f32.vlgmr.msra.gmra.mrb[44].mxu1 %v7195_v20 }
0x137c   :  { %23455 = vmatpush3.bf16.msra.mxu1 %v23454_v14  ;;  %20955 = vmatprep.mubr.msk.f32.mxu1 %vm25371_vm0, %v28704_v0  ;;  %v7623_v14 = vld [vmem:[#allocation4 + $0x340] sm:$0xff] }
0x137d   :  { %23456 = vmatprep.subr.bf16.mxu1 %v28706_v5  ;;  %v7663_v55 = vand.u32 4294901760, %v7623_v14 }
0x137f   :  { %v26272_v11 = vsub.f32 %v7623_v14, %v7663_v55  ;;  %v26290_v6 = vpack.c.bf16 %v7663_v55, %v7660_v17 }
0x1380   :  { %23458 = vmatpush3.bf16.msra.mxu1 %v23457_v32  ;;  %v23523_v32 = vpack.c.bf16 %v26261_v15, %v26259_v24 }
0x1381   :  { %23459 = vmatprep.subr.bf16.mxu1 %v28706_v5  ;;  %v23526_v43 = vpack.c.bf16 %v26272_v11, %v26270_v21  ;;  %v7792_v14 = vand.u32 4294901760, %v26272_v11 }
0x1383   :  { %20956 = vmatmul.mubr.f32.vlgmr.msra.gmra.mrb[44].mxu1 %v7193_v38  ;;  %v26337_v37 = vpack.c.bf16 %v7792_v14, %v7785_v9 }
0x1384   :  { %23461 = vmatpush3.bf16.msra.mxu1 %v26177_v23  ;;  %20966 = vmatprep.mubr.msk.f32.mxu1 %vm25371_vm0, %v28704_v0  ;;  %v23517_v23 = vpack.c.bf16 %v26242_v28, %v26240_v13 }
0x1385   :  { %23462 = vmatprep.subr.bf16.mxu1 %v28706_v5 }
0x1388   :  { %23464 = vmatpush3.bf16.msra.mxu1 %v26187_v40  ;;  %v7618_v40 = vld [vmem:[#allocation4 + $0x318] sm:$0xff] }
0x1389   :  { %23513 = vmatprep.subr.bf16.mxu1 %v28706_v5  ;;  %v7648_v53 = vand.u32 4294901760, %v7618_v40 }
0x138b   :  { %20967 = vmatmul.mubr.f32.vlgmr.msra.gmra.mrb[44].mxu1 %v7193_v38  ;;  %v26251_v25 = vsub.f32 %v7618_v40, %v7648_v53  ;;  %v26268_v12 = vpack.c.bf16 %v7651_v8, %v7648_v53  ;;  %v26292_v38 = vsub.f32 %v7626_v50, %v7672_v57  ;;  %v7764_v40 = vand.u32 4294901760, %v26253_v56 }
0x138c   :  { %23515 = vmatpush3.bf16.msra.mxu1 %v23514_v30  ;;  %21071 = vmatprep.mubr.msk.f32.mxu1 %vm25371_vm0, %v28704_v0  ;;  %v26317_v30 = vpack.c.bf16 %v7681_v52, %v7678_v44  ;;  %v7771_v53 = vand.u32 4294901760, %v26259_v24  ;;  %v7778_v8 = vand.u32 4294901760, %v26261_v15  ;;  %v7793_v50 = vsub.f32 %v26272_v11, %v7792_v14 }
0x138d   :  { %23516 = vmatprep.subr.bf16.mxu1 %v28706_v5  ;;  %v23520_v58 = vpack.c.bf16 %v26253_v56, %v26251_v25  ;;  %23473 = vmatpush3.bf16.msra.mxu0 %v26268_v12  ;;  %v23532_v20 = vpack.c.bf16 %v26294_v49, %v26292_v38  ;;  %v7765_v31 = vsub.f32 %v26253_v56, %v7764_v40  ;;  %v7799_v56 = vand.u32 4294901760, %v26281_v33 }
0x138e   :  { %23474 = vmatprep.subr.bf16.mxu0 %v28706_v5  ;;  %v7779_v17 = vsub.f32 %v26261_v15, %v7778_v8  ;;  %v7794_v15 = vand.u32 4294901760, %v7793_v50  ;;  %v7820_v57 = vand.u32 4294901760, %v26294_v49  ;;  %v7827_v11 = vand.u32 4294901760, %v7826_v19 }
0x138f   :  { %v7766_v26 = vand.u32 4294901760, %v7765_v31  ;;  %v26345_v61 = vpack.c.bf16 %v7806_v48, %v7799_v56  ;;  %v7800_v27 = vsub.f32 %v26281_v33, %v7799_v56  ;;  %v7834_v44 = vand.u32 4294901760, %v7833_v59  ;;  %v18491_v31 = vld [vmem:[#allocation4 + $0x2f0] ss:$0 sm:$0xff] }
0x1390   :  { %23518 = vmatpush3.bf16.msra.mxu1 %v23517_v23  ;;  %v7757_v23 = vand.u32 4294901760, %v26251_v25  ;;  %v7750_v50 = vand.u32 4294901760, %v26242_v28 }
0x1391   :  { %23519 = vmatprep.subr.bf16.mxu1 %v28706_v5  ;;  %23476 = vmatpush3.bf16.msra.mxu0 %v26279_v29  ;;  %v7801_v18 = vand.u32 4294901760, %v7800_v27 }
0x1392   :  { %23477 = vmatprep.subr.bf16.mxu0 %v28706_v5  ;;  %v26323_v46 = vpack.c.bf16 %v7764_v40, %v7757_v23  ;;  %v7758_v39 = vsub.f32 %v26251_v25, %v7757_v23  ;;  %v7780_v25 = vand.u32 4294901760, %v7779_v17  ;;  %v7828_v23 = vsub.f32 %v7826_v19, %v7827_v11 }
0x1393   :  { %v7729_v17 = vand.u32 4294901760, %v26232_v36  ;;  %v7736_v19 = vand.u32 4294901760, %v26234_v54  ;;  %v7751_v27 = vsub.f32 %v26242_v28, %v7750_v50 }
0x1394   :  { %23521 = vmatpush3.bf16.msra.mxu1 %v23520_v58  ;;  %v26329_v58 = vpack.c.bf16 %v7778_v8, %v7771_v53  ;;  %v7759_v10 = vand.u32 4294901760, %v7758_v39 }
0x1395   :  { %23522 = vmatprep.subr.bf16.mxu1 %v28706_v5  ;;  %23479 = vmatpush3.bf16.msra.mxu0 %v26290_v6 }
0x1396   :  { %23480 = vmatprep.subr.bf16.mxu0 %v28706_v5  ;;  %v26335_v55 = vpack.c.bf16 %v7766_v26, %v7759_v10 }
0x1398   :  { %23524 = vmatpush3.bf16.msra.mxu1 %v23523_v32  ;;  %v7772_v32 = vsub.f32 %v26259_v24, %v7771_v53  ;;  %v7787_v24 = vand.u32 4294901760, %v7786_v22  ;;  %v7829_v53 = vand.u32 4294901760, %v7828_v23  ;;  %v7743_v22 = vand.u32 4294901760, %v26240_v13 }
0x1399   :  { %23525 = vmatprep.subr.bf16.mxu1 %v28706_v5  ;;  %23482 = vmatpush3.bf16.msra.mxu0 %v26304_v51 }
0x139a   :  { %23483 = vmatprep.subr.bf16.mxu0 %v28706_v5  ;;  %v7773_v42 = vand.u32 4294901760, %v7772_v32 }
0x139c   :  { %23527 = vmatpush3.bf16.msra.mxu1 %v23526_v43  ;;  %v26339_v43 = vpack.c.bf16 %v7780_v25, %v7773_v42  ;;  %v7730_v42 = vsub.f32 %v26232_v36, %v7729_v17  ;;  %v7737_v25 = vsub.f32 %v26234_v54, %v7736_v19  ;;  %v23565_v54 = vpack.c.bf16 %v7750_v50, %v7743_v22 }
0x139d   :  { %23528 = vmatprep.subr.bf16.mxu1 %v28706_v5  ;;  %23485 = vmatpush3.bf16.msra.mxu0 %v26312_v4 }
0x139e   :  { %23486 = vmatprep.subr.bf16.mxu0 %v28706_v5 }
0x13a0   :  { %23530 = vmatpush3.bf16.msra.mxu1 %v23529_v41  ;;  %v7813_v41 = vand.u32 4294901760, %v26292_v38 }
0x13a1   :  { %23531 = vmatprep.subr.bf16.mxu1 %v28706_v5  ;;  %23488 = vmatpush3.bf16.msra.mxu0 %v26317_v30 }
0x13a2   :  { %23489 = vmatprep.subr.bf16.mxu0 %v28706_v5  ;;  %v26353_v45 = vpack.c.bf16 %v7820_v57, %v7813_v41  ;;  %v7814_v52 = vsub.f32 %v26292_v38, %v7813_v41  ;;  %v7738_v41 = vand.u32 4294901760, %v7737_v25 }
0x13a4   :  { %23533 = vmatpush3.bf16.msra.mxu1 %v23532_v20 }
0x13a5   :  { %23534 = vmatprep.subr.bf16.mxu1 %v28706_v5 }
0x13a8   :  { %23536 = vmatpush3.bf16.msra.mxu1 %v23535_v35  ;;  %v26359_v35 = vpack.c.bf16 %v7834_v44, %v7827_v11  ;;  %v7752_v11 = vand.u32 4294901760, %v7751_v27 }
0x13a9   :  { %23561 = vmatprep.subr.bf16.mxu1 %v28706_v5 }
0x13eb   :  { %v8314_v62 = vpop.xlane.xlu0 %8313 }
0x13ec   :  { %v8316_v63 = vmul.f32 0.03125, %v8314_v62  ;;  %v7807_v62 = vsub.f32 %v26283_v34, %v7806_v48  ;;  %v7835_v34 = vsub.f32 %v7833_v59, %v7834_v44  ;;  %v23562_v48 = vpack.c.bf16 %v7736_v19, %v7729_v17 }
0x13ee   :  { %v26301_v1 = vsub.f32 %v26203_v7, %v8316_v63  ;;  %v26351_v63 = vpack.c.bf16 %v7794_v15, %v7787_v24  ;;  %v7808_v21 = vand.u32 4294901760, %v7807_v62  ;;  %v7836_v8 = vand.u32 4294901760, %v7835_v34 }
0x13ef   :  { %v7731_v15 = vand.u32 4294901760, %v7730_v42 }
0x13f0   :  { %v8320_v3 = vmul.f32 %v26301_v1, %v26301_v1  ;;  %v26355_v20 = vpack.c.bf16 %v7808_v21, %v7801_v18  ;;  %v26363_v39 = vpack.c.bf16 %v7836_v8, %v7829_v53 }
0x13f1   :  { %v23490_v18 = vpack.c.bf16 %v7738_v41, %v7731_v15  ;;  %v8352_v41 = vld [vmem:[#allocation4 + $0x3c8] sm:$0xff] }
0x13f2   :  { %v8324_v60 = vsel %vm8311_vm7, %v8320_v3, 0.0  ;;  %v7821_v3 = vsub.f32 %v26294_v49, %v7820_v57  ;;  %v7744_v57 = vsub.f32 %v26240_v13, %v7743_v22 }
0x13f3   :  { %8325 = vadd.xlane.f32.xlu0 %v8324_v60  ;;  %v7815_v60 = vand.u32 4294901760, %v7814_v52 }
0x13f4   :  { %v7822_v33 = vand.u32 4294901760, %v7821_v3  ;;  %v7745_v21 = vand.u32 4294901760, %v7744_v57 }
0x13f6   :  { %v26361_v40 = vpack.c.bf16 %v7822_v33, %v7815_v60  ;;  %v23493_v13 = vpack.c.bf16 %v7752_v11, %v7745_v21  ;;  %v8347_v11 = vld [vmem:[#allocation4 + $0x3a0] sm:$0xff] }
0x145e   :  { %v7605_v10 = vpop.f32.mrb[44].mxu1 }
0x145f   :  { %v24724_v26 = vadd.f32 %v18491_v31, %v7605_v10  ;;  %v20968_v9 = vpop.f32.mrb[45].mxu1  ;;  %v18493_v10 = vld [vmem:[#allocation4 + $0x380] ss:$0 sm:$0xff] }
0x1460   :  { %v18494_v9 = vld [vmem:[#allocation4 + $0x388] ss:$0 sm:$0xff] }
0x1461   :  { %v7610_v14 = vmul.f32 0.70710677, %v24724_v26  ;;  %v7609_v49 = vmul.f32 0.5, %v24724_v26 }
0x1463   :  { %25224 = verf.f32 %v7610_v14 }
0x146d   :  { %v25225_v38 = vpop.eup %25224 }
0x146e   :  { %v7612_v32 = vadd.f32 1.0, %v25225_v38 }
0x1470   :  { %v7613_v59 = vmul.f32 %v7612_v32, %v7609_v49 }
0x1472   :  { %v26369_v56 = vand.u32 4294901760, %v7613_v59 }
0x1474   :  { %v26374_v24 = vsub.f32 %v7613_v59, %v26369_v56 }
0x1476   :  { %21072 = vmatmul.mubr.f32.vlgmr.msra.gmra.mrb[46].mxu1 %v26374_v24  ;;  %v7718_v36 = vand.u32 4294901760, %v26374_v24 }
0x1477   :  { %23563 = vmatpush3.bf16.msra.mxu1 %v23562_v48  ;;  %21141 = vmatprep.mubr.msk.f32.mxu1 %vm25371_vm0, %v28704_v0 }
0x1478   :  { %23564 = vmatprep.subr.bf16.mxu1 %v28706_v5  ;;  %v7719_v62 = vsub.f32 %v26374_v24, %v7718_v36  ;;  %v18495_v24 = vld [vmem:[#allocation4 + $0x390] ss:$0 sm:$0xff] }
0x147a   :  { %v7720_v44 = vand.u32 4294901760, %v7719_v62 }
0x147b   :  { %23566 = vmatpush3.bf16.msra.mxu1 %v23565_v54  ;;  %v8378_v54 = vsel %vm8361_vm8, %v8352_v41, 0 }
0x147c   :  { %21002 = vmatmul.mubr.f32.vlgmr.msra.gmra.mrb[36].mxu0 %v7720_v44  ;;  %23567 = vmatprep.subr.bf16.mxu1 %v28706_v5  ;;  %v26467_v21 = vand.u32 4294901760, %v8378_v54 }
0x147d   :  { %23491 = vmatpush3.bf16.msra.mxu0 %v23490_v18  ;;  %21036 = vmatprep.mubr.msk.f32.mxu0 %vm25371_vm0, %v28704_v0  ;;  %v8353_v18 = vld [vmem:[#allocation4 + $0x3d0] sm:$0xff] }
0x147e   :  { %23492 = vmatprep.subr.bf16.mxu0 %v28706_v5  ;;  %v8381_v44 = vsel %vm8361_vm8, %v8353_v18, 0 }
0x147f   :  { %23569 = vmatpush3.bf16.msra.mxu1 %v26323_v46 }
0x1480   :  { %23570 = vmatprep.subr.bf16.mxu1 %v28706_v5  ;;  %v8326_v42 = vpop.xlane.xlu0 %8325 }
0x1481   :  { %23494 = vmatpush3.bf16.msra.mxu0 %v23493_v13  ;;  %v8328_v25 = vmul.f32 0.03125, %v8326_v42  ;;  %v26472_v13 = vsub.f32 %v8378_v54, %v26467_v21 }
0x1482   :  { %23495 = vmatprep.subr.bf16.mxu0 %v28706_v5 }
0x1483   :  { %23572 = vmatpush3.bf16.msra.mxu1 %v26329_v58 }
0x1484   :  { %23573 = vmatprep.subr.bf16.mxu1 %v28706_v5 }
0x1485   :  { %23497 = vmatpush3.bf16.msra.mxu0 %v26335_v55 }
0x1486   :  { %23498 = vmatprep.subr.bf16.mxu0 %v28706_v5 }
0x1487   :  { %23575 = vmatpush3.bf16.msra.mxu1 %v26337_v37 }
0x1488   :  { %23576 = vmatprep.subr.bf16.mxu1 %v28706_v5 }
0x1489   :  { %23500 = vmatpush3.bf16.msra.mxu0 %v26339_v43 }
0x148a   :  { %23501 = vmatprep.subr.bf16.mxu0 %v28706_v5 }
0x148b   :  { %23578 = vmatpush3.bf16.msra.mxu1 %v26345_v61 }
0x148c   :  { %23579 = vmatprep.subr.bf16.mxu1 %v28706_v5 }
0x148d   :  { %23503 = vmatpush3.bf16.msra.mxu0 %v26351_v63 }
0x148e   :  { %23504 = vmatprep.subr.bf16.mxu0 %v28706_v5 }
0x148f   :  { %23581 = vmatpush3.bf16.msra.mxu1 %v26353_v45 }
0x1490   :  { %23582 = vmatprep.subr.bf16.mxu1 %v28706_v5 }
0x1491   :  { %23506 = vmatpush3.bf16.msra.mxu0 %v26355_v20 }
0x1492   :  { %23507 = vmatprep.subr.bf16.mxu0 %v28706_v5 }
0x1493   :  { %23584 = vmatpush3.bf16.msra.mxu1 %v26359_v35 }
0x1494   :  { %24707 = vmatprep.subr.bf16.mxu1 %v28706_v5 }
0x1495   :  { %23509 = vmatpush3.bf16.msra.mxu0 %v26361_v40 }
0x1496   :  { %21142 = vmatmul.mubr.f32.vlgmr.msra.gmra.mrb[48].mxu1 %v26369_v56  ;;  %23510 = vmatprep.subr.bf16.mxu0 %v28706_v5 }
0x1497   :  { %21198 = vmatprep.mubr.msk.f32.mxu1 %vm25371_vm0, %v28704_v0 }
0x1499   :  { %23512 = vmatpush3.bf16.msra.mxu0 %v26363_v39 }
0x149a   :  { %23537 = vmatprep.subr.bf16.mxu0 %v28706_v5 }
0x149c   :  { %21037 = vmatmul.mubr.f32.vlgmr.msra.gmra.mrb[38].mxu0 %v26369_v56 }
0x149d   :  { %23539 = vmatpush3.bf16.msra.mxu0 %v26219_v2  ;;  %21106 = vmatprep.mubr.msk.f32.mxu0 %vm25371_vm0, %v28704_v0 }
0x149e   :  { %23540 = vmatprep.subr.bf16.mxu0 %v28706_v5 }
0x14a1   :  { %23542 = vmatpush3.bf16.msra.mxu0 %v26257_v16 }
0x14a2   :  { %23543 = vmatprep.subr.bf16.mxu0 %v28706_v5 }
0x14a5   :  { %23545 = vmatpush3.bf16.msra.mxu0 %v26268_v12 }
0x14a6   :  { %23546 = vmatprep.subr.bf16.mxu0 %v28706_v5 }
0x14a9   :  { %23548 = vmatpush3.bf16.msra.mxu0 %v26279_v29 }
0x14aa   :  { %23549 = vmatprep.subr.bf16.mxu0 %v28706_v5 }
0x14ad   :  { %23551 = vmatpush3.bf16.msra.mxu0 %v26290_v6 }
0x14ae   :  { %23552 = vmatprep.subr.bf16.mxu0 %v28706_v5 }
0x14b1   :  { %23554 = vmatpush3.bf16.msra.mxu0 %v26304_v51 }
0x14b2   :  { %23555 = vmatprep.subr.bf16.mxu0 %v28706_v5 }
0x14b5   :  { %23557 = vmatpush3.bf16.msra.mxu0 %v26312_v4 }
0x14b6   :  { %23558 = vmatprep.subr.bf16.mxu0 %v28706_v5 }
0x14b9   :  { %23560 = vmatpush3.bf16.msra.mxu0 %v26317_v30 }
0x14ba   :  { %23585 = vmatprep.subr.bf16.mxu0 %v28706_v5 }
0x14bc   :  { %21107 = vmatmul.mubr.f32.vlgmr.msra.gmra.mrb[40].mxu0 %v7718_v36  ;;  %v18496_v36 = vld [vmem:[#allocation4 + $0x398] ss:$0 sm:$0xff] }
0x14bd   :  { %23587 = vmatpush3.bf16.msra.mxu0 %v26219_v2  ;;  %21176 = vmatprep.mubr.msk.f32.mxu0 %vm25371_vm0, %v28704_v0 }
0x14be   :  { %23588 = vmatprep.subr.bf16.mxu0 %v28706_v5 }
0x14c1   :  { %23590 = vmatpush3.bf16.msra.mxu0 %v26257_v16 }
0x14c2   :  { %23591 = vmatprep.subr.bf16.mxu0 %v28706_v5 }
0x14c5   :  { %23593 = vmatpush3.bf16.msra.mxu0 %v26268_v12 }
0x14c6   :  { %23594 = vmatprep.subr.bf16.mxu0 %v28706_v5 }
0x14c9   :  { %23596 = vmatpush3.bf16.msra.mxu0 %v26279_v29 }
0x14ca   :  { %23597 = vmatprep.subr.bf16.mxu0 %v28706_v5 }
0x14cd   :  { %23599 = vmatpush3.bf16.msra.mxu0 %v26290_v6 }
0x14ce   :  { %23600 = vmatprep.subr.bf16.mxu0 %v28706_v5 }
0x14d1   :  { %23602 = vmatpush3.bf16.msra.mxu0 %v26304_v51  ;;  %v18492_v51 = vld [vmem:[#allocation4 + $0x378] ss:$0 sm:$0xff] }
0x14d2   :  { %23603 = vmatprep.subr.bf16.mxu0 %v28706_v5 }
0x14d5   :  { %23605 = vmatpush3.bf16.msra.mxu0 %v26312_v4 }
0x14d6   :  { %23606 = vmatprep.subr.bf16.mxu0 %v28706_v5 }
0x14d9   :  { %23608 = vmatpush3.bf16.msra.mxu0 %v26317_v30 }
0x14da   :  { %23609 = vmatprep.subr.bf16.mxu0 %v28706_v5 }
0x14dc   :  { %21177 = vmatmul.mubr.f32.vlgmr.msra.gmra.mrb[42].mxu0 %v26369_v56  ;;  %v8330_v56 = vadd.f32 1e-05, %v8328_v25 }
0x14dd   :  { %21183 = vmatprep.mubr.msk.f32.mxu0 %vm25371_vm0, %v28704_v0 }
0x1549   :  { %v7977_v2 = vpop.f32.mrb[46].mxu1 }
0x154a   :  { %v21073_v28 = vpop.f32.mrb[47].mxu1 }
0x154b   :  { %v26475_v28 = vand.u32 4294901760, %v8381_v44 }
0x154f   :  { %v7722_v16 = vpop.f32.mrb[36].mxu0 }
0x1550   :  { %v21003_v12 = vpop.f32.mrb[37].mxu0  ;;  %v7723_v46 = vadd.f32 %v18492_v51, %v7722_v16  ;;  %v8348_v16 = vld [vmem:[#allocation4 + $0x3a8] sm:$0xff] }
0x1569   :  { %v8185_v29 = vpop.f32.mrb[48].mxu1 }
0x156a   :  { %v21143_v6 = vpop.f32.mrb[49].mxu1 }
0x156f   :  { %v7873_v4 = vpop.f32.mrb[38].mxu0 }
0x1570   :  { %v7874_v58 = vadd.f32 %v7873_v4, %v7723_v46  ;;  %v21038_v55 = vpop.f32.mrb[39].mxu0  ;;  %v8506_v46 = vand.u32 4294901760, %v26472_v13  ;;  %v8366_v4 = vsel %vm8361_vm8, %v8348_v16, 0 }
0x1571   :  { %v8349_v55 = vld [vmem:[#allocation4 + $0x3b0] sm:$0xff] }
0x1572   :  { %v7978_v37 = vadd.f32 %v7977_v2, %v7874_v58  ;;  %v8363_v2 = vsel %vm8361_vm8, %v8347_v11, 0  ;;  %v26482_v58 = vsub.f32 %v8381_v44, %v26475_v28 }
0x1573   :  { %v26477_v6 = vand.u32 4294901760, %v8363_v2 }
0x158f   :  { %v8066_v30 = vpop.f32.mrb[40].mxu0 }
0x1590   :  { %v8067_v43 = vadd.f32 %v8066_v30, %v7978_v37  ;;  %v21108_v61 = vpop.f32.mrb[41].mxu0  ;;  %v26485_v37 = vsub.f32 %v8363_v2, %v26477_v6 }
0x1591   :  { %v26487_v61 = vand.u32 4294901760, %v8366_v4 }
0x1592   :  { %v8186_v63 = vadd.f32 %v8185_v29, %v8067_v43 }
0x15af   :  { %v8272_v45 = vpop.f32.mrb[42].mxu0 }
0x15b0   :  { %v8273_v20 = vadd.f32 %v8272_v45, %v8186_v63  ;;  %v21178_v52 = vpop.f32.mrb[43].mxu0  ;;  %v8456_v63 = vand.u32 4294901760, %v26485_v37 }
0x15b1   :  { %v8369_v52 = vsel %vm8361_vm8, %v8349_v55, 0 }
0x15b2   :  { %v8276_v3 = vadd.f32 %v8273_v20, %v26167_v47  ;;  %v8507_v20 = vsub.f32 %v26472_v13, %v8506_v46 }
0x15b4   :  { %v8279_v35 = vsel %vm1997_vm6, %v8276_v3, 0.0 }
0x15b5   :  { %8280 = vadd.xlane.f32.xlu1 %v8279_v35  ;;  %v8350_v35 = vld [vmem:[#allocation4 + $0x3b8] sm:$0xff] }
0x1642   :  { %v8281_v60 = vpop.xlane.xlu1 %8280 }
0x1643   :  { %v8282_v33 = vmul.f32 0.03125, %v8281_v60  ;;  %v26496_v60 = vsub.f32 %v8366_v4, %v26487_v61 }
0x1645   :  { %v8283_v23 = vsub.f32 %v8276_v3, %v8282_v33  ;;  %v8516_v3 = vand.u32 4294901760, %v26482_v58  ;;  %v8457_v33 = vsub.f32 %v26485_v37, %v8456_v63 }
0x1647   :  { %v8284_v34 = vmul.f32 %v8283_v23, %v8283_v23 }
0x1649   :  { %v8285_v40 = vsel %vm1997_vm6, %v8284_v34, 0.0 }
0x164a   :  { %8286 = vadd.xlane.f32.xlu1 %v8285_v40  ;;  %v26501_v40 = vand.u32 4294901760, %v8369_v52 }
0x16d7   :  { %v8287_v53 = vpop.xlane.xlu1 %8286 }
0x16d8   :  { %v8288_v8 = vmul.f32 0.03125, %v8287_v53  ;;  %v8466_v53 = vand.u32 4294901760, %v26496_v60 }
0x16da   :  { %v8289_v39 = vadd.f32 1e-05, %v8288_v8 }
0x16dc   :  { %25226 = vrsqrt.f32 %v8289_v39 }
0x16dd   :  { %25228 = vrsqrt.f32 %v8330_v56 }
0x16e6   :  { %v25227_v31 = vpop.eup %25226 }
0x16e7   :  { %v8291_v26 = vmul.f32 %v25227_v31, %v8283_v23  ;;  %v25229_v48 = vpop.eup %25228  ;;  %v8508_v31 = vand.u32 4294901760, %v8507_v20  ;;  %v8354_v20 = vld [vmem:[#allocation4 + $0x3d8] sm:$0xff] }
0x16e8   :  { %v8334_v22 = vmul.f32 %v25229_v48, %v26301_v1 }
0x16e9   :  { %v8296_v14 = vmul.f32 %v18493_v10, %v8291_v26  ;;  %v8372_v10 = vsel %vm8361_vm8, %v8350_v35, 0  ;;  %v8517_v26 = vsub.f32 %v26482_v58, %v8516_v3 }
0x16ea   :  { %v8340_v27 = vmul.f32 %v18495_v24, %v8334_v22 }
0x16eb   :  { %v26459_v47 = vadd.f32 %v18494_v9, %v8296_v14  ;;  %v8351_v9 = vld [vmem:[#allocation4 + $0x3c0] sm:$0xff]  ;;  %v26511_v14 = vsub.f32 %v8369_v52, %v26501_v40  ;;  %v8518_v48 = vand.u32 4294901760, %v8517_v26 }
0x16ec   :  { %v8346_v62 = vadd.f32 %v18496_v36, %v8340_v27  ;;  %v8375_v25 = vsel %vm8361_vm8, %v8351_v9, 0 }
0x16ed   :  { %v8308_v38 = vsel %vm1997_vm6, %v26459_v47, 0.0 }
0x16ee   :  { %8309 = vadd.xlane.f32.xlu1 %v8308_v38  ;;  %v8385_v1 = vsel %vm8383_vm9, %v8346_v62, 0  ;;  %v8458_v38 = vand.u32 4294901760, %v8457_v33 }
0x16ef   :  { %v8391_v12 = vand.u32 4294901760, %v8385_v1 }
0x16f1   :  { %v8533_v43 = vsub.f32 %v8385_v1, %v8391_v12 }
0x16f3   :  { %v8534_v34 = vand.u32 4294901760, %v8533_v43 }
0x177b   :  { %v8310_v49 = vpop.xlane.xlu1 %8309 }
0x177c   :  { %v8315_v32 = vmul.f32 0.03125, %v8310_v49  ;;  %v8467_v49 = vsub.f32 %v26496_v60, %v8466_v53 }
0x177e   :  { %v8317_v17 = vsub.f32 %v26459_v47, %v8315_v32 }
0x1780   :  { %v8319_v19 = vmul.f32 %v8317_v17, %v8317_v17 }
0x1782   :  { %v8321_v59 = vsel %vm1997_vm6, %v8319_v19, 0.0  ;;  %v26519_v19 = vand.u32 4294901760, %v8372_v10 }
0x1783   :  { %8322 = vadd.xlane.f32.xlu1 %v8321_v59  ;;  %v8476_v59 = vand.u32 4294901760, %v26511_v14 }
0x1784   :  { %v26526_v22 = vsub.f32 %v8372_v10, %v26519_v19  ;;  %v8357_v10 = vld [vmem:[#allocation4 + $0x3f0] sm:$0xff] }
0x1786   :  { %v8486_v27 = vand.u32 4294901760, %v26526_v22 }
0x1788   :  { %v8487_v18 = vsub.f32 %v26526_v22, %v8486_v27 }
0x178a   :  { %v8488_v1 = vand.u32 4294901760, %v8487_v18 }
0x1810   :  { %v8323_v50 = vpop.xlane.xlu1 %8322 }
0x1811   :  { %v8327_v15 = vmul.f32 0.03125, %v8323_v50  ;;  %v8468_v50 = vand.u32 4294901760, %v8467_v49 }
0x1813   :  { %v8329_v57 = vadd.f32 1e-05, %v8327_v15 }
0x1815   :  { %25230 = vrsqrt.f32 %v8329_v57  ;;  %v26535_v57 = vand.u32 4294901760, %v8375_v25 }
0x1817   :  { %v8495_v54 = vsub.f32 %v8375_v25, %v26535_v57 }
0x1819   :  { %v8496_v11 = vand.u32 4294901760, %v8495_v54 }
0x181b   :  { %v8497_v2 = vsub.f32 %v8495_v54, %v8496_v11 }
0x181d   :  { %v8498_v16 = vand.u32 4294901760, %v8497_v2 }
0x181f   :  { %v25231_v29 = vpop.eup %25230 }
0x1820   :  { %v8333_v51 = vmul.f32 %v25231_v29, %v8317_v17  ;;  %v8535_v17 = vsub.f32 %v8533_v43, %v8534_v34 }
0x1822   :  { %v8339_v30 = vmul.f32 %v18495_v24, %v8333_v51  ;;  %v8477_v24 = vsub.f32 %v26511_v14, %v8476_v59  ;;  %v8536_v41 = vand.u32 4294901760, %v8535_v17 }
0x1824   :  { %v8345_v45 = vadd.f32 %v18496_v36, %v8339_v30  ;;  %v8478_v62 = vand.u32 4294901760, %v8477_v24  ;;  %v9139_v30 = vld [vmem:[#allocation4 + $0x410] sm:$0xff] }
0x1826   :  { %v8388_v23 = vand.u32 4294901760, %v8345_v45 }
0x1828   :  { %v26504_v8 = vpack.c.bf16 %v8391_v12, %v8388_v23  ;;  %v8526_v39 = vsub.f32 %v8345_v45, %v8388_v23 }
0x182a   :  { %23611 = vmatpush3.bf16.msra.mxu0 %v26504_v8  ;;  %24708 = vmatpush3.bf16.msra.mxu1 %v26504_v8  ;;  %v8527_v32 = vand.u32 4294901760, %v8526_v39  ;;  %v23616_v44 = vpack.c.bf16 %v8533_v43, %v8526_v39  ;;  %v9145_v43 = vsel %vm9143_vm10, %v9139_v30, 0 }
0x182b   :  { %23612 = vmatprep.subr.bf16.mxu1 %v28706_v5 }
0x182c   :  { %v8528_v42 = vsub.f32 %v8526_v39, %v8527_v32  ;;  %v26523_v56 = vpack.c.bf16 %v8534_v34, %v8527_v32  ;;  %v8356_v34 = vld [vmem:[#allocation4 + $0x3e8] sm:$0xff]  ;;  %v8358_v32 = vld [vmem:[#allocation4 + $0x3f8] sm:$0xff] }
0x182d   :  { %21199 = vmatmul.mubr.f32.vlgmr.msra.gmra.mrb[50].mxu1 %v8508_v31  ;;  %21184 = vmatmul.mubr.f32.vlgmr.msra.gmra.mrb[44].mxu0 %v8458_v38 }
0x182e   :  { %21201 = vmatprep.mubr.msk.f32.mxu1 %vm25371_vm0, %v28704_v0  ;;  %v8529_v15 = vand.u32 4294901760, %v8528_v42  ;;  %21186 = vmatprep.mubr.msk.f32.mxu0 %vm25371_vm0, %v28704_v0 }
0x1830   :  { %v23613_v36 = vpack.c.bf16 %v8536_v41, %v8529_v15 }
0x1831   :  { %21202 = vmatmul.mubr.f32.gmra.mrb[52].mxu1 %v8518_v48  ;;  %21187 = vmatmul.mubr.f32.gmra.mrb[46].mxu0 %v8468_v50 }
0x1832   :  { %23614 = vmatpush3.bf16.msra.mxu1 %v23613_v36  ;;  %21208 = vmatprep.mubr.msk.f32.mxu1 %vm25371_vm0, %v28704_v0 }
0x1833   :  { %23615 = vmatprep.subr.bf16.mxu1 %v28706_v5  ;;  %21189 = vmatprep.mubr.msk.f32.mxu0 %vm25371_vm0, %v28704_v0 }
0x1835   :  { %21209 = vmatmul.mubr.f32.vlgmr.msra.gmra.mrb[54].mxu1 %v26477_v6  ;;  %21190 = vmatmul.mubr.f32.gmra.mrb[48].mxu0 %v8478_v62 }
0x1836   :  { %23617 = vmatpush3.bf16.msra.mxu1 %v23616_v44  ;;  %21211 = vmatprep.mubr.msk.f32.mxu1 %vm25371_vm0, %v28704_v0 }
0x1837   :  { %23618 = vmatprep.subr.bf16.mxu1 %v28706_v5  ;;  %21192 = vmatprep.mubr.msk.f32.mxu0 %vm25371_vm0, %v28704_v0 }
0x1839   :  { %21212 = vmatmul.mubr.f32.gmra.mrb[56].mxu1 %v26487_v61  ;;  %21193 = vmatmul.mubr.f32.gmra.mrb[50].mxu0 %v8488_v1 }
0x183a   :  { %21214 = vmatprep.mubr.msk.f32.mxu1 %vm25371_vm0, %v28704_v0  ;;  %21195 = vmatprep.mubr.msk.f32.mxu0 %vm25371_vm0, %v28704_v0 }
0x183d   :  { %21215 = vmatmul.mubr.f32.gmra.mrb[58].mxu1 %v26501_v40  ;;  %21196 = vmatmul.mubr.f32.gmra.mrb[52].mxu0 %v8498_v16 }
0x183e   :  { %21217 = vmatprep.mubr.msk.f32.mxu1 %vm25371_vm0, %v28704_v0 }
0x1841   :  { %21218 = vmatmul.mubr.f32.gmra.mrb[60].mxu1 %v26519_v19 }
0x1842   :  { %21220 = vmatprep.mubr.msk.f32.mxu1 %vm25371_vm0, %v28704_v0 }
0x1845   :  { %21221 = vmatmul.mubr.f32.gmra.mrb[62].mxu1 %v26535_v57 }
0x1846   :  { %21223 = vmatprep.mubr.msk.f32.mxu1 %vm25371_vm0, %v28704_v0 }
0x1849   :  { %21224 = vmatmul.mubr.f32.gmra.mrb[50].mxu1 %v26467_v21 }
0x184a   :  { %21226 = vmatprep.mubr.msk.f32.mxu1 %vm25371_vm0, %v28704_v0 }
0x184d   :  { %21227 = vmatmul.mubr.f32.gmra.mrb[52].mxu1 %v26475_v28 }
0x184e   :  { %21233 = vmatprep.mubr.msk.f32.mxu1 %vm25371_vm0, %v28704_v0 }
0x1851   :  { %21234 = vmatmul.mubr.f32.vlgmr.msra.gmra.mrb[54].mxu1 %v26485_v37 }
0x1852   :  { %23620 = vmatpush3.bf16.msra.mxu1 %v26504_v8  ;;  %21236 = vmatprep.mubr.msk.f32.mxu1 %vm25371_vm0, %v28704_v0 }
0x1853   :  { %23621 = vmatprep.subr.bf16.mxu1 %v28706_v5 }
0x1855   :  { %21237 = vmatmul.mubr.f32.gmra.mrb[56].mxu1 %v26496_v60 }
0x1856   :  { %21239 = vmatprep.mubr.msk.f32.mxu1 %vm25371_vm0, %v28704_v0 }
0x1859   :  { %21240 = vmatmul.mubr.f32.gmra.mrb[58].mxu1 %v26511_v14 }
0x185a   :  { %21242 = vmatprep.mubr.msk.f32.mxu1 %vm25371_vm0, %v28704_v0 }
0x185d   :  { %21243 = vmatmul.mubr.f32.gmra.mrb[60].mxu1 %v26526_v22 }
0x185e   :  { %21245 = vmatprep.mubr.msk.f32.mxu1 %vm25371_vm0, %v28704_v0 }
0x1861   :  { %21246 = vmatmul.mubr.f32.gmra.mrb[62].mxu1 %v8495_v54 }
0x1862   :  { %21248 = vmatprep.mubr.msk.f32.mxu1 %vm25371_vm0, %v28704_v0 }
0x1865   :  { %21249 = vmatmul.mubr.f32.gmra.mrb[50].mxu1 %v26472_v13 }
0x1866   :  { %21251 = vmatprep.mubr.msk.f32.mxu1 %vm25371_vm0, %v28704_v0 }
0x1869   :  { %21252 = vmatmul.mubr.f32.gmra.mrb[52].mxu1 %v26482_v58 }
0x186a   :  { %21258 = vmatprep.mubr.msk.f32.mxu1 %vm25371_vm0, %v28704_v0 }
0x186d   :  { %21259 = vmatmul.mubr.f32.vlgmr.msra.gmra.mrb[54].mxu1 %v8456_v63 }
0x186e   :  { %23623 = vmatpush3.bf16.msra.mxu1 %v26523_v56  ;;  %21261 = vmatprep.mubr.msk.f32.mxu1 %vm25371_vm0, %v28704_v0 }
0x186f   :  { %23624 = vmatprep.subr.bf16.mxu1 %v28706_v5 }
0x1871   :  { %21262 = vmatmul.mubr.f32.gmra.mrb[56].mxu1 %v8466_v53 }
0x1872   :  { %21264 = vmatprep.mubr.msk.f32.mxu1 %vm25371_vm0, %v28704_v0 }
0x1875   :  { %21265 = vmatmul.mubr.f32.gmra.mrb[58].mxu1 %v8476_v59 }
0x1876   :  { %21267 = vmatprep.mubr.msk.f32.mxu1 %vm25371_vm0, %v28704_v0 }
0x1879   :  { %21268 = vmatmul.mubr.f32.gmra.mrb[60].mxu1 %v8486_v27  ;;  %v8359_v27 = vld [vmem:[#allocation4 + $0x400] sm:$0xff] }
0x187a   :  { %21270 = vmatprep.mubr.msk.f32.mxu1 %vm25371_vm0, %v28704_v0 }
0x187d   :  { %21271 = vmatmul.mubr.f32.gmra.mrb[62].mxu1 %v8496_v11 }
0x187e   :  { %21273 = vmatprep.mubr.msk.f32.mxu1 %vm25371_vm0, %v28704_v0 }
0x1881   :  { %21274 = vmatmul.mubr.f32.gmra.mrb[50].mxu1 %v8506_v46 }
0x1882   :  { %21276 = vmatprep.mubr.msk.f32.mxu1 %vm25371_vm0, %v28704_v0 }
0x1885   :  { %21277 = vmatmul.mubr.f32.gmra.mrb[52].mxu1 %v8516_v3  ;;  %v8355_v3 = vld [vmem:[#allocation4 + $0x3e0] sm:$0xff] }
0x1886   :  { %21283 = vmatprep.mubr.msk.f32.mxu1 %vm25371_vm0, %v28704_v0 }
0x1889   :  { %21284 = vmatmul.mubr.f32.vlgmr.msra.gmra.mrb[54].mxu1 %v26477_v6 }
0x188a   :  { %23626 = vmatpush3.bf16.msra.mxu1 %v26504_v8  ;;  %21286 = vmatprep.mubr.msk.f32.mxu1 %vm25371_vm0, %v28704_v0 }
0x188d   :  { %21287 = vmatmul.mubr.f32.gmra.mrb[56].mxu1 %v26487_v61 }
0x188e   :  { %21289 = vmatprep.mubr.msk.f32.mxu1 %vm25371_vm0, %v28704_v0 }
0x1891   :  { %21290 = vmatmul.mubr.f32.gmra.mrb[58].mxu1 %v26501_v40 }
0x1892   :  { %21292 = vmatprep.mubr.msk.f32.mxu1 %vm25371_vm0, %v28704_v0 }
0x1895   :  { %21293 = vmatmul.mubr.f32.gmra.mrb[60].mxu1 %v26519_v19 }
0x1896   :  { %21295 = vmatprep.mubr.msk.f32.mxu1 %vm25371_vm0, %v28704_v0 }
0x1899   :  { %21296 = vmatmul.mubr.f32.gmra.mrb[62].mxu1 %v26535_v57 }
0x189a   :  { %21298 = vmatprep.mubr.msk.f32.mxu1 %vm25371_vm0, %v28704_v0 }
0x189d   :  { %21299 = vmatmul.mubr.f32.gmra.mrb[50].mxu1 %v26467_v21 }
0x189e   :  { %21301 = vmatprep.mubr.msk.f32.mxu1 %vm25371_vm0, %v28704_v0 }
0x18a1   :  { %21302 = vmatmul.mubr.f32.gmra.mrb[52].mxu1 %v26475_v28 }
0x18a2   :  { %21308 = vmatprep.mubr.msk.f32.mxu1 %vm25371_vm0, %v28704_v0 }
0x18a5   :  { %21309 = vmatmul.mubr.f32.vlgmr.msra.gmra.mrb[54].mxu1 %v26477_v6 }
0x18a6   :  { %21311 = vmatprep.mubr.msk.f32.mxu1 %vm25371_vm0, %v28704_v0 }
0x18a9   :  { %21312 = vmatmul.mubr.f32.gmra.mrb[56].mxu1 %v26487_v61 }
0x18aa   :  { %21314 = vmatprep.mubr.msk.f32.mxu1 %vm25371_vm0, %v28704_v0 }
0x18ad   :  { %21315 = vmatmul.mubr.f32.gmra.mrb[58].mxu1 %v26501_v40 }
0x18ae   :  { %21317 = vmatprep.mubr.msk.f32.mxu1 %vm25371_vm0, %v28704_v0 }
0x18b1   :  { %21318 = vmatmul.mubr.f32.gmra.mrb[60].mxu1 %v26519_v19 }
0x18b2   :  { %21320 = vmatprep.mubr.msk.f32.mxu1 %vm25371_vm0, %v28704_v0 }
0x18b5   :  { %21321 = vmatmul.mubr.f32.gmra.mrb[62].mxu1 %v26535_v57 }
0x18b6   :  { %21323 = vmatprep.mubr.msk.f32.mxu1 %vm25371_vm0, %v28704_v0 }
0x18b9   :  { %21324 = vmatmul.mubr.f32.gmra.mrb[50].mxu1 %v26467_v21  ;;  %v26661_v21 = vand.u32 4294901760, %v9145_v43 }
0x18ba   :  { %21326 = vmatprep.mubr.msk.f32.mxu1 %vm25371_vm0, %v28704_v0 }
0x18bb   :  { %v26664_v61 = vsub.f32 %v9145_v43, %v26661_v21 }
0x18bd   :  { %21327 = vmatmul.mubr.f32.gmra.mrb[52].mxu1 %v26475_v28  ;;  %v9224_v28 = vand.u32 4294901760, %v26664_v61 }
0x18bf   :  { %v9225_v63 = vsub.f32 %v26664_v61, %v9224_v28 }
0x18c1   :  { %v9226_v45 = vand.u32 4294901760, %v9225_v63 }
0x18c3   :  { %21343 = vmatprep.mubr.f32.mxu0 %v9226_v45 }
0x1900   :  { %v8460_v13 = vpop.f32.mrb[44].mxu0 }
0x1901   :  { %v21185_v12 = vpop.f32.mrb[45].mxu0  ;;  %v8461_v52 = vadd.f32 %v8460_v13, %v8354_v20 }
0x1902   :  { %v8360_v12 = vld [vmem:[#allocation4 + $0x408] sm:$0xff] }
0x1904   :  { %v8470_v29 = vpop.f32.mrb[46].mxu0 }
0x1905   :  { %v21188_v6 = vpop.f32.mrb[47].mxu0  ;;  %v8471_v23 = vadd.f32 %v8470_v29, %v8355_v3 }
0x1908   :  { %v8480_v51 = vpop.f32.mrb[48].mxu0 }
0x1909   :  { %v21191_v46 = vpop.f32.mrb[49].mxu0  ;;  %v8481_v31 = vadd.f32 %v8480_v51, %v8356_v34  ;;  %v9140_v51 = vld [vmem:[#allocation4 + $0x418] sm:$0x3f] }
0x190c   :  { %v8490_v4 = vpop.f32.mrb[50].mxu0 }
0x190d   :  { %v21194_v58 = vpop.f32.mrb[51].mxu0  ;;  %v8491_v49 = vadd.f32 %v8490_v4, %v8357_v10 }
0x1910   :  { %v8500_v55 = vpop.f32.mrb[52].mxu0 }
0x1911   :  { %v21197_v37 = vpop.f32.mrb[53].mxu0  ;;  %v8501_v25 = vadd.f32 %v8500_v55, %v8358_v32 }
0x1978   :  { %v9064_v35 = vpop.f32.mrb[54].mxu1 }
0x1979   :  { %v24726_v60 = vadd.f32 %v9064_v35, %v8461_v52  ;;  %v21310_v33 = vpop.f32.mrb[55].mxu1  ;;  %v9148_v52 = vsel %vm9143_vm10, %v9140_v51, 0 }
0x197b   :  { %v9111_v40 = vmul.f32 0.70710677, %v24726_v60  ;;  %v9104_v22 = vmul.f32 0.5, %v24726_v60 }
0x197c   :  { %v9070_v53 = vpop.f32.mrb[56].mxu1 }
0x197d   :  { %25232 = verf.f32 %v9111_v40  ;;  %v24728_v8 = vadd.f32 %v9070_v53, %v8471_v23  ;;  %v21313_v39 = vpop.f32.mrb[57].mxu1  ;;  %v26675_v53 = vand.u32 4294901760, %v9148_v52 }
0x197f   :  { %v9112_v26 = vmul.f32 0.70710677, %v24728_v8  ;;  %v9105_v18 = vmul.f32 0.5, %v24728_v8 }
0x1980   :  { %v9076_v9 = vpop.f32.mrb[58].mxu1 }
0x1981   :  { %25234 = verf.f32 %v9112_v26  ;;  %v24730_v14 = vadd.f32 %v9076_v9, %v8481_v31  ;;  %v21316_v38 = vpop.f32.mrb[59].mxu1 }
0x1983   :  { %v9113_v17 = vmul.f32 0.70710677, %v24730_v14  ;;  %v9106_v4 = vmul.f32 0.5, %v24730_v14 }
0x1984   :  { %v9082_v19 = vpop.f32.mrb[60].mxu1 }
0x1985   :  { %25236 = verf.f32 %v9113_v17  ;;  %v24732_v59 = vadd.f32 %v9082_v19, %v8491_v49  ;;  %v21319_v42 = vpop.f32.mrb[61].mxu1 }
0x1987   :  { %v25233_v56 = vpop.eup %25232  ;;  %v9114_v48 = vmul.f32 0.70710677, %v24732_v59  ;;  %v9107_v23 = vmul.f32 0.5, %v24732_v59  ;;  %v26682_v59 = vsub.f32 %v9148_v52, %v26675_v53 }
0x1988   :  { %v9125_v50 = vadd.f32 1.0, %v25233_v56  ;;  %v9088_v24 = vpop.f32.mrb[62].mxu1 }
0x1989   :  { %25238 = verf.f32 %v9114_v48  ;;  %v24734_v15 = vadd.f32 %v9088_v24, %v8501_v25  ;;  %v21322_v41 = vpop.f32.mrb[63].mxu1 }
0x198a   :  { %v9132_v57 = vmul.f32 %v9125_v50, %v9104_v22 }
0x198b   :  { %v25235_v36 = vpop.eup %25234  ;;  %v9115_v54 = vmul.f32 0.70710677, %v24734_v15  ;;  %v9108_v14 = vmul.f32 0.5, %v24734_v15 }
0x198c   :  { %v9151_v62 = vand.u32 4294901760, %v9132_v57  ;;  %v9126_v11 = vadd.f32 1.0, %v25235_v36  ;;  %v9094_v44 = vpop.f32.mrb[50].mxu1  ;;  %v9234_v36 = vand.u32 4294901760, %v26682_v59 }
0x198d   :  { %25240 = verf.f32 %v9115_v54  ;;  %v24735_v1 = vadd.f32 %v9094_v44, %v8359_v27  ;;  %v21325_v2 = vpop.f32.mrb[51].mxu1 }
0x198e   :  { %v9244_v16 = vsub.f32 %v9132_v57, %v9151_v62  ;;  %v9133_v13 = vmul.f32 %v9126_v11, %v9105_v18 }
0x198f   :  { %v25237_v29 = vpop.eup %25236  ;;  %v9116_v6 = vmul.f32 0.70710677, %v24735_v1  ;;  %v9109_v50 = vmul.f32 0.5, %v24735_v1 }
0x1990   :  { %v9154_v46 = vand.u32 4294901760, %v9133_v13  ;;  %v9127_v58 = vadd.f32 1.0, %v25237_v29  ;;  %v9100_v55 = vpop.f32.mrb[52].mxu1  ;;  %v9245_v37 = vand.u32 4294901760, %v9244_v16 }
0x1991   :  { %25242 = verf.f32 %v9116_v6  ;;  %v24736_v30 = vadd.f32 %v9100_v55, %v8360_v12  ;;  %v21328_v43 = vpop.f32.mrb[53].mxu1  ;;  %v9235_v6 = vsub.f32 %v26682_v59, %v9234_v36 }
0x1992   :  { %v26670_v63 = vpack.c.bf16 %v9154_v46, %v9151_v62  ;;  %v9251_v45 = vsub.f32 %v9133_v13, %v9154_v46  ;;  %v9134_v20 = vmul.f32 %v9127_v58, %v9106_v4  ;;  %v9246_v60 = vsub.f32 %v9244_v16, %v9245_v37 }
0x1993   :  { %v25239_v3 = vpop.eup %25238  ;;  %v9117_v35 = vmul.f32 0.70710677, %v24736_v30  ;;  %v9110_v2 = vmul.f32 0.5, %v24736_v30 }
0x1994   :  { %v9157_v33 = vand.u32 4294901760, %v9134_v20  ;;  %v9128_v34 = vadd.f32 1.0, %v25239_v3  ;;  %23628 = vmatprep.subr.bf16.mxu0 %v26670_v63  ;;  %v9252_v40 = vand.u32 4294901760, %v9251_v45  ;;  %v26677_v8 = vpack.c.bf16 %v9251_v45, %v9244_v16 }
0x1995   :  { %25244 = verf.f32 %v9117_v35  ;;  %23630 = vmatpush3.bf16.msra.mxu0 %v26670_v63  ;;  %v9247_v38 = vand.u32 4294901760, %v9246_v60 }
0x1996   :  { %v9258_v39 = vsub.f32 %v9134_v20, %v9157_v33  ;;  %v9135_v31 = vmul.f32 %v9128_v34, %v9107_v23  ;;  %v9253_v10 = vsub.f32 %v9251_v45, %v9252_v40  ;;  %v26679_v26 = vpack.c.bf16 %v9252_v40, %v9245_v37 }
0x1997   :  { %v25241_v9 = vpop.eup %25240  ;;  %v9236_v20 = vand.u32 4294901760, %v9235_v6 }
0x1998   :  { %v9160_v49 = vand.u32 4294901760, %v9135_v31  ;;  %v9129_v32 = vadd.f32 1.0, %v25241_v9  ;;  %v9254_v17 = vand.u32 4294901760, %v9253_v10  ;;  %v9259_v19 = vand.u32 4294901760, %v9258_v39 }
0x199a   :  { %v26684_v42 = vpack.c.bf16 %v9160_v49, %v9157_v33  ;;  %v9265_v25 = vsub.f32 %v9135_v31, %v9160_v49  ;;  %v9136_v56 = vmul.f32 %v9129_v32, %v9108_v14  ;;  %v23639_v48 = vpack.c.bf16 %v9254_v17, %v9247_v38 }
0x199b   :  { %v25243_v22 = vpop.eup %25242  ;;  %v9260_v24 = vsub.f32 %v9258_v39, %v9259_v19 }
0x199c   :  { %v9163_v41 = vand.u32 4294901760, %v9136_v56  ;;  %v9130_v57 = vadd.f32 1.0, %v25243_v22  ;;  %23632 = vmatprep.subr.bf16.mxu0 %v26684_v42  ;;  %v9266_v15 = vand.u32 4294901760, %v9265_v25  ;;  %v23655_v27 = vpack.c.bf16 %v9265_v25, %v9258_v39 }
0x199d   :  { %23634 = vmatpush3.bf16.msra.mxu0 %v26684_v42  ;;  %v9261_v16 = vand.u32 4294901760, %v9260_v24 }
0x199e   :  { %v9272_v54 = vsub.f32 %v9136_v56, %v9163_v41  ;;  %v9137_v62 = vmul.f32 %v9130_v57, %v9109_v50  ;;  %v9267_v18 = vsub.f32 %v9265_v25, %v9266_v15  ;;  %v26689_v11 = vpack.c.bf16 %v9266_v15, %v9259_v19  ;;  %v9760_v25 = vld [vmem:[#allocation4 + $0x448] sm:$0xff]  ;;  %v9761_v56 = vld [vmem:[#allocation4 + $0x450] sm:$0xff]  ;;  %v9762_v50 = vld [vmem:[#allocation4 + $0x458] sm:$0xff] }
0x199f   :  { %v25245_v44 = vpop.eup %25244  ;;  %v9778_v22 = vand.u32 4294901760, %v9760_v25  ;;  %v9781_v24 = vand.u32 4294901760, %v9761_v56 }
0x19a0   :  { %v9166_v1 = vand.u32 4294901760, %v9137_v62  ;;  %v9131_v13 = vadd.f32 1.0, %v25245_v44  ;;  %v9268_v12 = vand.u32 4294901760, %v9267_v18  ;;  %v9273_v29 = vand.u32 4294901760, %v9272_v54 }
0x19a1   :  { %v9879_v44 = vsub.f32 %v9761_v56, %v9781_v24 }
0x19a2   :  { %v26694_v51 = vpack.c.bf16 %v9166_v1, %v9163_v41  ;;  %v9279_v46 = vsub.f32 %v9137_v62, %v9166_v1  ;;  %v9138_v4 = vmul.f32 %v9131_v13, %v9110_v2  ;;  %v23643_v58 = vpack.c.bf16 %v9268_v12, %v9261_v16 }
0x19a3   :  { %v9274_v37 = vsub.f32 %v9272_v54, %v9273_v29  ;;  %v9784_v41 = vand.u32 4294901760, %v9762_v50  ;;  %v9880_v13 = vand.u32 4294901760, %v9879_v44 }
0x19a4   :  { %v26696_v55 = vand.u32 4294901760, %v9138_v4  ;;  %23636 = vmatprep.subr.bf16.mxu0 %v26694_v51  ;;  %v9280_v30 = vand.u32 4294901760, %v9279_v46  ;;  %v23659_v43 = vpack.c.bf16 %v9279_v46, %v9272_v54 }
0x19a5   :  { %23638 = vmatpush3.bf16.msra.mxu0 %v26694_v51  ;;  %v9275_v35 = vand.u32 4294901760, %v9274_v37  ;;  %v26761_v15 = vpack.c.bf16 %v9784_v41, %v9781_v24  ;;  %v9886_v2 = vsub.f32 %v9762_v50, %v9784_v41  ;;  %v9881_v6 = vsub.f32 %v9879_v44, %v9880_v13  ;;  %v10315_v24 = vld [vmem:[#allocation4 + $0x480] sm:$0xff] }
0x19a6   :  { %v9286_v45 = vsub.f32 %v9138_v4, %v26696_v55  ;;  %21341 = vmatprep.subr.mxu0 %v26696_v55  ;;  %v9281_v52 = vsub.f32 %v9279_v46, %v9280_v30  ;;  %v23683_v3 = vpack.c.bf16 %v9280_v30, %v9273_v29 }
0x19a7   :  { %v9887_v12 = vand.u32 4294901760, %v9886_v2  ;;  %v9882_v46 = vand.u32 4294901760, %v9881_v6  ;;  %v23719_v37 = vpack.c.bf16 %v9886_v2, %v9879_v44  ;;  %v10319_v44 = vld [vmem:[#allocation4 + $0x4a0] sm:$0xff] }
0x19a8   :  { %v9282_v60 = vand.u32 4294901760, %v9281_v52  ;;  %v9287_v23 = vand.u32 4294901760, %v9286_v45 }
0x19a9   :  { %21342 = vmatpush3.msra.mxu0 %v26696_v55 }
0x19aa   :  { %23640 = vmatprep.subr.bf16.mxu0 %v23639_v48  ;;  %21344 = vmatmul.mubr.f32.vlgmr.msra.gmra.mrb[54].mxu0 %v9236_v20  ;;  %v23647_v33 = vpack.c.bf16 %v9282_v60, %v9275_v35  ;;  %v9288_v34 = vsub.f32 %v9286_v45, %v9287_v23  ;;  %v26769_v20 = vld [vmem:[#allocation4 + $0x470] sm:$0xff] }
0x19ab   :  { %23642 = vmatpush3.bf16.msra.mxu0 %v23639_v48  ;;  %21360 = vmatprep.mubr.f32.mxu0 %v26661_v21 }
0x19ac   :  { %23644 = vmatprep.subr.bf16.mxu0 %v23643_v58  ;;  %v9289_v40 = vand.u32 4294901760, %v9288_v34 }
0x19af   :  { %23646 = vmatpush3.bf16.msra.mxu0 %v23643_v58 }
0x19b0   :  { %23648 = vmatprep.subr.bf16.mxu0 %v23647_v33 }
0x19b3   :  { %23650 = vmatpush3.bf16.msra.mxu0 %v23647_v33 }
0x19b4   :  { %21358 = vmatprep.subr.mxu0 %v9289_v40 }
0x19b7   :  { %21359 = vmatpush3.msra.mxu0 %v9289_v40 }
0x19b8   :  { %23652 = vmatprep.subr.bf16.mxu0 %v26677_v8  ;;  %21361 = vmatmul.mubr.f32.vlgmr.msra.gmra.mrb[54].mxu0 %v26675_v53 }
0x19b9   :  { %23654 = vmatpush3.bf16.msra.mxu0 %v26677_v8  ;;  %21377 = vmatprep.mubr.f32.mxu0 %v26664_v61  ;;  %v9142_v61 = vld [vmem:[#allocation4 + $0x428] sm:$0x3f] }
0x19ba   :  { %23656 = vmatprep.subr.bf16.mxu0 %v23655_v27 }
0x19bd   :  { %23658 = vmatpush3.bf16.msra.mxu0 %v23655_v27 }
0x19be   :  { %23660 = vmatprep.subr.bf16.mxu0 %v23659_v43 }
0x19c1   :  { %23662 = vmatpush3.bf16.msra.mxu0 %v23659_v43  ;;  %v23735_v43 = vpack.c.bf16 %v9887_v12, %v9880_v13  ;;  %v26806_v13 = vld [vmem:[#allocation4 + $0x4a8] sm:$0xff] }
0x19c2   :  { %21375 = vmatprep.subr.mxu0 %v9286_v45 }
0x19c5   :  { %21376 = vmatpush3.msra.mxu0 %v9286_v45  ;;  %v26767_v45 = vld [vmem:[#allocation4 + $0x468] sm:$0xff] }
0x19c6   :  { %23664 = vmatprep.subr.bf16.mxu0 %v26670_v63  ;;  %21378 = vmatmul.mubr.f32.vlgmr.msra.gmra.mrb[54].mxu0 %v26682_v59  ;;  %v10334_v52 = vand.u32 4294901760, %v26767_v45 }
0x19c7   :  { %23666 = vmatpush3.bf16.msra.mxu0 %v26670_v63  ;;  %21394 = vmatprep.mubr.f32.mxu0 %v9224_v28  ;;  %v9141_v28 = vld [vmem:[#allocation4 + $0x420] sm:$0xff] }
0x19c8   :  { %23668 = vmatprep.subr.bf16.mxu0 %v26684_v42 }
0x19cb   :  { %23670 = vmatpush3.bf16.msra.mxu0 %v26684_v42 }
0x19cc   :  { %23672 = vmatprep.subr.bf16.mxu0 %v26694_v51 }
0x19cf   :  { %23674 = vmatpush3.bf16.msra.mxu0 %v26694_v51 }
0x19d0   :  { %21392 = vmatprep.subr.mxu0 %v26696_v55 }
0x19d3   :  { %21393 = vmatpush3.msra.mxu0 %v26696_v55 }
0x19d4   :  { %23676 = vmatprep.subr.bf16.mxu0 %v26679_v26  ;;  %21395 = vmatmul.mubr.f32.vlgmr.msra.gmra.mrb[54].mxu0 %v9234_v36  ;;  %v9872_v36 = vsub.f32 %v9760_v25, %v9778_v22 }
0x19d5   :  { %23678 = vmatpush3.bf16.msra.mxu0 %v26679_v26  ;;  %21411 = vmatprep.mubr.f32.mxu0 %v26661_v21 }
0x19d6   :  { %23680 = vmatprep.subr.bf16.mxu0 %v26689_v11  ;;  %v9873_v62 = vand.u32 4294901760, %v9872_v36 }
0x19d9   :  { %23682 = vmatpush3.bf16.msra.mxu0 %v26689_v11  ;;  %v9874_v11 = vsub.f32 %v9872_v36, %v9873_v62 }
0x19da   :  { %23684 = vmatprep.subr.bf16.mxu0 %v23683_v3 }
0x19db   :  { %v9875_v1 = vand.u32 4294901760, %v9874_v11  ;;  %v10318_v11 = vld [vmem:[#allocation4 + $0x498] sm:$0xff] }
0x19dd   :  { %23686 = vmatpush3.bf16.msra.mxu0 %v23683_v3  ;;  %v10337_v3 = vand.u32 4294901760, %v26769_v20 }
0x19de   :  { %21409 = vmatprep.subr.mxu0 %v9287_v23 }
0x19df   :  { %v26777_v35 = vpack.c.bf16 %v10337_v3, %v10334_v52 }
0x19e1   :  { %21410 = vmatpush3.msra.mxu0 %v9287_v23  ;;  %23748 = vmatprep.subr.bf16.mxu1 %v26777_v35 }
0x19e2   :  { %23688 = vmatprep.subr.bf16.mxu0 %v26670_v63  ;;  %21412 = vmatmul.mubr.f32.vlgmr.msra.gmra.mrb[54].mxu0 %v26675_v53 }
0x19e3   :  { %23690 = vmatpush3.bf16.msra.mxu0 %v26670_v63  ;;  %21428 = vmatprep.mubr.f32.mxu0 %v26661_v21 }
0x19e4   :  { %23692 = vmatprep.subr.bf16.mxu0 %v26684_v42  ;;  %23750 = vmatpush3.bf16.msra.mxu1 %v26777_v35 }
0x19e7   :  { %23694 = vmatpush3.bf16.msra.mxu0 %v26684_v42  ;;  %v9759_v42 = vld [vmem:[#allocation4 + $0x440] sm:$0xff] }
0x19e8   :  { %23696 = vmatprep.subr.bf16.mxu0 %v26694_v51  ;;  %v9775_v48 = vand.u32 4294901760, %v9759_v42 }
0x19ea   :  { %v26759_v57 = vpack.c.bf16 %v9778_v22, %v9775_v48  ;;  %v9865_v27 = vsub.f32 %v9759_v42, %v9775_v48 }
0x19eb   :  { %23698 = vmatpush3.bf16.msra.mxu0 %v26694_v51  ;;  %v9888_v51 = vsub.f32 %v9886_v2, %v9887_v12  ;;  %v10352_v2 = vand.u32 4294901760, %v10318_v11  ;;  %v26808_v12 = vld [vmem:[#allocation4 + $0x4b0] sm:$0xff] }
0x19ec   :  { %21426 = vmatprep.subr.mxu0 %v26696_v55  ;;  %v9866_v54 = vand.u32 4294901760, %v9865_v27  ;;  %v10361_v6 = vand.u32 4294901760, %v26808_v12 }
0x19ed   :  { %v9889_v4 = vand.u32 4294901760, %v9888_v51 }
0x19ee   :  { %v9867_v18 = vsub.f32 %v9865_v27, %v9866_v54  ;;  %v23731_v30 = vpack.c.bf16 %v9873_v62, %v9866_v54  ;;  %v10316_v54 = vld [vmem:[#allocation4 + $0x488] sm:$0xff]  ;;  %v10317_v62 = vld [vmem:[#allocation4 + $0x490] sm:$0xff] }
0x19ef   :  { %21427 = vmatpush3.msra.mxu0 %v26696_v55  ;;  %v23711_v58 = vpack.c.bf16 %v9889_v4, %v9882_v46  ;;  %v23715_v55 = vpack.c.bf16 %v9872_v36, %v9865_v27  ;;  %v10343_v27 = vand.u32 4294901760, %v10315_v24  ;;  %v26816_v46 = vld [vmem:[#allocation4 + $0x4b8] sm:$0xff]  ;;  %v26818_v4 = vld [vmem:[#allocation4 + $0x4c0] sm:$0xff] }
0x19f0   :  { %21429 = vmatmul.mubr.f32.vlgmr.msra.gmra.mrb[54].mxu0 %v26675_v53  ;;  %23700 = vmatprep.subr.bf16.mxu0 %v26759_v57  ;;  %v9868_v16 = vand.u32 4294901760, %v9867_v18  ;;  %v10349_v18 = vand.u32 4294901760, %v10317_v62 }
0x19f1   :  { %23702 = vmatpush3.bf16.msra.mxu0 %v26759_v57 }
0x19f2   :  { %23704 = vmatprep.subr.bf16.mxu0 %v26761_v15  ;;  %v23707_v29 = vpack.c.bf16 %v9875_v1, %v9868_v16  ;;  %v10355_v16 = vand.u32 4294901760, %v10319_v44 }
0x19f4   :  { %v26804_v1 = vpack.c.bf16 %v10355_v16, %v10352_v2 }
0x19f5   :  { %23706 = vmatpush3.bf16.msra.mxu0 %v26761_v15 }
0x19f6   :  { %23708 = vmatprep.subr.bf16.mxu0 %v23707_v29 }
0x1ac3   :  { %v21430_v8 = vpop.f32.mrb[54].mxu0 }
0x1ac4   :  { %v24737_v63 = vadd.f32 %v21430_v8, %v9142_v61  ;;  %v9707_v39 = vpop.f32.mrb[55].mxu0  ;;  %v18497_v8 = vld [vmem:[#allocation4 + $0x430] ss:$0 sm:$0xff] }
0x1ac5   :  { %v24738_v21 = vadd.f32 %v9707_v39, %v9141_v28 }
0x1ac6   :  { %v26738_v31 = vadd.f32 %v24737_v63, %v26203_v7 }
0x1ac7   :  { %v26741_v10 = vadd.f32 %v24738_v21, %v26459_v47 }
0x1ac8   :  { %v9724_v26 = vsel %vm8311_vm7, %v26738_v31, 0.0 }
0x1ac9   :  { %9725 = vadd.xlane.f32.xlu1 %v9724_v26  ;;  %v9721_v9 = vsel %vm1997_vm6, %v26741_v10, 0.0  ;;  %v18498_v26 = vld [vmem:[#allocation4 + $0x438] ss:$0 sm:$0xff] }
0x1aca   :  { %9722 = vadd.xlane.f32.xlu0 %v9721_v9 }
0x1b56   :  { %v9726_v53 = vpop.xlane.xlu1 %9725 }
0x1b57   :  { %v9728_v14 = vmul.f32 0.03125, %v9726_v53  ;;  %v9723_v38 = vpop.xlane.xlu0 %9722 }
0x1b58   :  { %v9727_v49 = vmul.f32 0.03125, %v9723_v38 }
0x1b59   :  { %v26748_v32 = vsub.f32 %v26738_v31, %v9728_v14 }
0x1b5a   :  { %v26751_v7 = vsub.f32 %v26741_v10, %v9727_v49 }
0x1b5b   :  { %v9732_v47 = vmul.f32 %v26748_v32, %v26748_v32 }
0x1b5c   :  { %v9731_v17 = vmul.f32 %v26751_v7, %v26751_v7 }
0x1b5d   :  { %v9736_v19 = vsel %vm8311_vm7, %v9732_v47, 0.0 }
0x1b5e   :  { %9737 = vadd.xlane.f32.xlu1 %v9736_v19  ;;  %v9733_v59 = vsel %vm1997_vm6, %v9731_v17, 0.0 }
0x1b5f   :  { %9734 = vadd.xlane.f32.xlu0 %v9733_v59 }
0x1beb   :  { %v9738_v60 = vpop.xlane.xlu1 %9737 }
0x1bec   :  { %v9740_v33 = vmul.f32 0.03125, %v9738_v60  ;;  %v9735_v23 = vpop.xlane.xlu0 %9734 }
0x1bed   :  { %v9739_v34 = vmul.f32 0.03125, %v9735_v23 }
0x1bee   :  { %v9742_v40 = vadd.f32 1e-05, %v9740_v33 }
0x1bef   :  { %v9741_v61 = vadd.f32 1e-05, %v9739_v34  ;;  %v26843_v34 = vsub.f32 %v26767_v45, %v10334_v52 }
0x1bf0   :  { %25246 = vrsqrt.f32 %v9742_v40  ;;  %v26848_v40 = vsub.f32 %v26769_v20, %v10337_v3 }
0x1bf1   :  { %25248 = vrsqrt.f32 %v9741_v61  ;;  %v26850_v61 = vld [vmem:[#allocation4 + $0x4d8] sm:$0xff] }
0x1bf2   :  { %v10444_v45 = vand.u32 4294901760, %v26848_v40 }
0x1bf4   :  { %v10445_v3 = vsub.f32 %v26848_v40, %v10444_v45 }
0x1bfa   :  { %v25247_v28 = vpop.eup %25246 }
0x1bfb   :  { %v25249_v63 = vpop.eup %25248  ;;  %v9746_v39 = vmul.f32 %v25247_v28, %v26748_v32  ;;  %v26852_v28 = vld [vmem:[#allocation4 + $0x4e0] sm:$0xff] }
0x1bfc   :  { %v9745_v21 = vmul.f32 %v25249_v63, %v26751_v7  ;;  %v10314_v7 = vld [vmem:[#allocation4 + $0x478] sm:$0xff]  ;;  %v10379_v63 = vand.u32 4294901760, %v26852_v28 }
0x1bfd   :  { %v9752_v9 = vmul.f32 %v18497_v8, %v9746_v39  ;;  %v10340_v41 = vand.u32 4294901760, %v10314_v7  ;;  %v10437_v39 = vand.u32 4294901760, %v26843_v34 }
0x1bfe   :  { %v9751_v53 = vmul.f32 %v18497_v8, %v9745_v21  ;;  %v10376_v8 = vand.u32 4294901760, %v26850_v61 }
0x1bff   :  { %v9758_v14 = vadd.f32 %v18498_v26, %v9752_v9  ;;  %v26796_v36 = vpack.c.bf16 %v10343_v27, %v10340_v41  ;;  %v10438_v52 = vsub.f32 %v26843_v34, %v10437_v39  ;;  %v26872_v21 = vsub.f32 %v10314_v7, %v10340_v41 }
0x1c00   :  { %v9757_v38 = vadd.f32 %v18498_v26, %v9751_v53  ;;  %v26864_v20 = vpack.c.bf16 %v10379_v63, %v10376_v8  ;;  %v26874_v26 = vsub.f32 %v10315_v24, %v10343_v27  ;;  %v10446_v53 = vand.u32 4294901760, %v10445_v3 }
0x1c01   :  { %v9772_v49 = vsel %vm1997_vm6, %v9758_v14, 0  ;;  %23752 = vmatprep.subr.bf16.mxu1 %v26796_v36  ;;  %v10439_v9 = vand.u32 4294901760, %v10438_v52  ;;  %v10451_v14 = vand.u32 4294901760, %v26872_v21  ;;  %v26903_v7 = vsub.f32 %v10319_v44, %v10355_v16 }
0x1c02   :  { %v9769_v47 = vsel %vm1997_vm6, %v9757_v38, 0  ;;  %v9853_v17 = vand.u32 4294901760, %v9772_v49  ;;  %23754 = vmatpush3.bf16.msra.mxu1 %v26796_v36  ;;  %v10458_v38 = vand.u32 4294901760, %v26874_v26 }
0x1c03   :  { %v9843_v19 = vand.u32 4294901760, %v9769_v47 }
0x1c04   :  { %v9854_v59 = vsub.f32 %v9772_v49, %v9853_v17  ;;  %v26880_v49 = vpack.c.bf16 %v10446_v53, %v10439_v9 }
0x1c05   :  { %v9844_v42 = vsub.f32 %v9769_v47, %v9843_v19  ;;  %v10452_v47 = vsub.f32 %v26872_v21, %v10451_v14 }
0x1c06   :  { %v9855_v25 = vand.u32 4294901760, %v9854_v59 }
0x1c07   :  { %v9845_v56 = vand.u32 4294901760, %v9844_v42 }
0x1c08   :  { %v9856_v48 = vsub.f32 %v9854_v59, %v9855_v25 }
0x1c09   :  { %v9846_v22 = vsub.f32 %v9844_v42, %v9845_v56 }
0x1c0a   :  { %v9857_v50 = vand.u32 4294901760, %v9856_v48 }
0x1c0b   :  { %v9847_v32 = vand.u32 4294901760, %v9846_v22 }
0x1c0d   :  { %21439 = vmatprep.mubr.f32.mxu0 %v9847_v32 }
0x1c0e   :  { %21440 = vmatmul.mubr.f32.vlgmr.msra.gmra.mrb[56].mxu0 %v9857_v50  ;;  %v26901_v50 = vsub.f32 %v10318_v11, %v10352_v2  ;;  %v26921_v2 = vsub.f32 %v26808_v12, %v10361_v6 }
0x1c0f   :  { %23710 = vmatpush3.bf16.msra.mxu0 %v23707_v29  ;;  %21450 = vmatprep.mubr.f32.mxu0 %v9843_v19  ;;  %v10358_v29 = vand.u32 4294901760, %v26806_v13 }
0x1c10   :  { %23712 = vmatprep.subr.bf16.mxu0 %v23711_v58  ;;  %v28714_v9 = vand.u32 4294901760, %v26921_v2 }
0x1c11   :  { %v26814_v51 = vpack.c.bf16 %v10361_v6, %v10358_v29  ;;  %v26918_v44 = vsub.f32 %v26806_v13, %v10358_v29 }
0x1c12   :  { %v10501_v12 = vsub.f32 %v26921_v2, %v28714_v9 }
0x1c13   :  { %23714 = vmatpush3.bf16.msra.mxu0 %v23711_v58  ;;  %v10364_v58 = vand.u32 4294901760, %v26816_v46  ;;  %v28715_v3 = vand.u32 4294901760, %v26918_v44 }
0x1c14   :  { %23716 = vmatprep.subr.bf16.mxu0 %v23715_v55 }
0x1c16   :  { %21451 = vmatmul.mubr.f32.vlgmr.msra.gmra.mrb[56].mxu0 %v9853_v17 }
0x1c17   :  { %23718 = vmatpush3.bf16.msra.mxu0 %v23715_v55  ;;  %21461 = vmatprep.mubr.f32.mxu0 %v9844_v42  ;;  %v10367_v55 = vand.u32 4294901760, %v26818_v4  ;;  %v10453_v42 = vand.u32 4294901760, %v10452_v47  ;;  %v10494_v47 = vsub.f32 %v26918_v44, %v28715_v3 }
0x1c18   :  { %23720 = vmatprep.subr.bf16.mxu0 %v23719_v37 }
0x1c19   :  { %v26934_v13 = vsub.f32 %v26818_v4, %v10367_v55  ;;  %v10495_v29 = vand.u32 4294901760, %v10494_v47 }
0x1c1b   :  { %23722 = vmatpush3.bf16.msra.mxu0 %v23719_v37  ;;  %v26824_v37 = vpack.c.bf16 %v10367_v55, %v10364_v58 }
0x1c1c   :  { %23724 = vmatprep.subr.bf16.mxu0 %v26759_v57 }
0x1c1e   :  { %21462 = vmatmul.mubr.f32.vlgmr.msra.gmra.mrb[56].mxu0 %v9854_v59  ;;  %v10459_v59 = vsub.f32 %v26874_v26, %v10458_v38 }
0x1c1f   :  { %23726 = vmatpush3.bf16.msra.mxu0 %v26759_v57  ;;  %21472 = vmatprep.mubr.f32.mxu0 %v9845_v56 }
0x1c20   :  { %23728 = vmatprep.subr.bf16.mxu0 %v26761_v15  ;;  %v10460_v48 = vand.u32 4294901760, %v10459_v59  ;;  %v26931_v59 = vsub.f32 %v26816_v46, %v10364_v58 }
0x1c22   :  { %v26905_v24 = vpack.c.bf16 %v10460_v48, %v10453_v42  ;;  %v28713_v6 = vand.u32 4294901760, %v26931_v59  ;;  %v28712_v42 = vand.u32 4294901760, %v26934_v13  ;;  %v10502_v48 = vand.u32 4294901760, %v10501_v12 }
0x1c23   :  { %23730 = vmatpush3.bf16.msra.mxu0 %v26761_v15 }
0x1c24   :  { %23732 = vmatprep.subr.bf16.mxu0 %v23731_v30  ;;  %v10515_v46 = vsub.f32 %v26934_v13, %v28712_v42  ;;  %v26957_v55 = vpack.c.bf16 %v10502_v48, %v10495_v29 }
0x1c26   :  { %21473 = vmatmul.mubr.f32.vlgmr.msra.gmra.mrb[56].mxu0 %v9855_v25 }
0x1c27   :  { %23734 = vmatpush3.bf16.msra.mxu0 %v23731_v30  ;;  %21483 = vmatprep.mubr.f32.mxu0 %v9843_v19  ;;  %v26826_v30 = vld [vmem:[#allocation4 + $0x4c8] sm:$0xff] }
0x1c28   :  { %23736 = vmatprep.subr.bf16.mxu0 %v23735_v43  ;;  %v10370_v60 = vand.u32 4294901760, %v26826_v30 }
0x1c2a   :  { %v26950_v4 = vsub.f32 %v26826_v30, %v10370_v60 }
0x1c2b   :  { %23738 = vmatpush3.bf16.msra.mxu0 %v23735_v43  ;;  %v26828_v43 = vld [vmem:[#allocation4 + $0x4d0] sm:$0xff] }
0x1c2c   :  { %23740 = vmatprep.subr.bf16.mxu0 %v26759_v57  ;;  %v10373_v33 = vand.u32 4294901760, %v26828_v43 }
0x1c2e   :  { %21484 = vmatmul.mubr.f32.vlgmr.msra.gmra.mrb[56].mxu0 %v9853_v17  ;;  %v26838_v23 = vpack.c.bf16 %v10373_v33, %v10370_v60  ;;  %v26955_v58 = vsub.f32 %v26828_v43, %v10373_v33  ;;  %v26970_v43 = vsub.f32 %v26850_v61, %v10376_v8  ;;  %v26975_v60 = vsub.f32 %v26852_v28, %v10379_v63 }
0x1c2f   :  { %23742 = vmatpush3.bf16.msra.mxu0 %v26759_v57  ;;  %21494 = vmatprep.mubr.f32.mxu0 %v9843_v19  ;;  %v10346_v57 = vand.u32 4294901760, %v10316_v54  ;;  %v26887_v19 = vsub.f32 %v10317_v62, %v10349_v18  ;;  %v28716_v62 = vand.u32 4294901760, %v26903_v7  ;;  %v23811_v28 = vpack.c.bf16 %v26848_v40, %v26843_v34 }
0x1c30   :  { %23744 = vmatprep.subr.bf16.mxu0 %v26761_v15  ;;  %v28709_v47 = vand.u32 4294901760, %v26970_v43  ;;  %v28708_v12 = vand.u32 4294901760, %v26975_v60  ;;  %v23815_v63 = vpack.c.bf16 %v26874_v26, %v26872_v21  ;;  %v28752_v26 = vand.u32 4294901760, %v26918_v44 }
0x1c31   :  { %v28718_v56 = vand.u32 4294901760, %v26887_v19  ;;  %v10487_v11 = vsub.f32 %v26903_v7, %v28716_v62  ;;  %v28749_v34 = vand.u32 4294901760, %v26887_v19 }
0x1c32   :  { %v10536_v48 = vsub.f32 %v26970_v43, %v28709_v47  ;;  %v10543_v61 = vsub.f32 %v26975_v60, %v28708_v12 }
0x1c33   :  { %23746 = vmatpush3.bf16.msra.mxu0 %v26761_v15  ;;  %v26800_v15 = vpack.c.bf16 %v10349_v18, %v10346_v57  ;;  %v10473_v32 = vsub.f32 %v26887_v19, %v28718_v56  ;;  %v10488_v52 = vand.u32 4294901760, %v10487_v11 }
0x1c34   :  { %23939 = vmatprep.subr.bf16.mxu0 %v28706_v5  ;;  %v10537_v8 = vand.u32 4294901760, %v10536_v48  ;;  %v18499_v48 = vld [vmem:[#allocation4 + $0x460] ss:$0 sm:$0xff] }
0x1c35   :  { %23756 = vmatprep.subr.bf16.mxu1 %v26800_v15  ;;  %v10474_v27 = vand.u32 4294901760, %v10473_v32 }
0x1c36   :  { %21495 = vmatmul.mubr.f32.vlgmr.msra.gmra.mrb[56].mxu0 %v9853_v17  ;;  %23758 = vmatpush3.bf16.msra.mxu1 %v26800_v15  ;;  %v26885_v17 = vsub.f32 %v10316_v54, %v10346_v57  ;;  %v28717_v54 = vand.u32 4294901760, %v26901_v50 }
0x1c37   :  { %21711 = vmatprep.mubr.msk.f32.mxu0 %vm25371_vm0, %v28704_v0  ;;  %23760 = vmatprep.subr.bf16.mxu1 %v26804_v1 }
0x1c38   :  { %v10465_v25 = vand.u32 4294901760, %v26885_v17  ;;  %v10480_v18 = vsub.f32 %v26901_v50, %v28717_v54 }
0x1c3a   :  { %23762 = vmatpush3.bf16.msra.mxu1 %v26804_v1  ;;  %v10466_v22 = vsub.f32 %v26885_v17, %v10465_v25  ;;  %v10481_v16 = vand.u32 4294901760, %v10480_v18  ;;  %v28710_v18 = vand.u32 4294901760, %v26955_v58  ;;  %v23883_v40 = vpack.c.bf16 %v28749_v34, %v10465_v25 }
0x1c3b   :  { %23764 = vmatprep.subr.bf16.mxu1 %v26814_v51 }
0x1c3c   :  { %v10467_v41 = vand.u32 4294901760, %v10466_v22  ;;  %v26925_v53 = vpack.c.bf16 %v10488_v52, %v10481_v16  ;;  %v10508_v22 = vsub.f32 %v26931_v59, %v28713_v6  ;;  %v10529_v30 = vsub.f32 %v26955_v58, %v28710_v18 }
0x1c3e   :  { %23766 = vmatpush3.bf16.msra.mxu1 %v26814_v51  ;;  %v26909_v57 = vpack.c.bf16 %v10474_v27, %v10467_v41  ;;  %v10509_v32 = vand.u32 4294901760, %v10508_v22  ;;  %v10516_v41 = vand.u32 4294901760, %v10515_v46  ;;  %v28711_v27 = vand.u32 4294901760, %v26950_v4 }
0x1c3f   :  { %23768 = vmatprep.subr.bf16.mxu1 %v26824_v37  ;;  %v10530_v52 = vand.u32 4294901760, %v10529_v30  ;;  %v10544_v22 = vand.u32 4294901760, %v10543_v61  ;;  %v23831_v30 = vpack.c.bf16 %v26934_v13, %v26931_v59 }
0x1c40   :  { %v23799_v11 = vpack.c.bf16 %v10516_v41, %v10509_v32  ;;  %v10522_v16 = vsub.f32 %v26950_v4, %v28711_v27  ;;  %v23819_v32 = vpack.c.bf16 %v26887_v19, %v26885_v17  ;;  %v23823_v41 = vpack.c.bf16 %v26903_v7, %v26901_v50 }
0x1c41   :  { %v23807_v46 = vpack.c.bf16 %v10544_v22, %v10537_v8  ;;  %v28754_v17 = vand.u32 4294901760, %v26931_v59  ;;  %v28755_v19 = vand.u32 4294901760, %v26934_v13 }
0x1c42   :  { %23770 = vmatpush3.bf16.msra.mxu1 %v26824_v37  ;;  %v10523_v33 = vand.u32 4294901760, %v10522_v16  ;;  %v23827_v16 = vpack.c.bf16 %v26921_v2, %v26918_v44  ;;  %v28759_v44 = vand.u32 4294901760, %v26975_v60 }
0x1c43   :  { %23772 = vmatprep.subr.bf16.mxu1 %v26838_v23  ;;  %v23895_v25 = vpack.c.bf16 %v28755_v19, %v28754_v17 }
0x1c44   :  { %v23803_v29 = vpack.c.bf16 %v10530_v52, %v10523_v33  ;;  %v23835_v33 = vpack.c.bf16 %v26955_v58, %v26950_v4  ;;  %v23839_v52 = vpack.c.bf16 %v26975_v60, %v26970_v43 }
0x1c46   :  { %23774 = vmatpush3.bf16.msra.mxu1 %v26838_v23 }
0x1c47   :  { %23776 = vmatprep.subr.bf16.mxu1 %v26864_v20 }
0x1c4a   :  { %23778 = vmatpush3.bf16.msra.mxu1 %v26864_v20 }
0x1c4b   :  { %23780 = vmatprep.subr.bf16.mxu1 %v26880_v49 }
0x1d09   :  { %v21496_v61 = vpop.f32.mrb[56].mxu0 }
0x1d0a   :  { %v24739_v8 = vadd.f32 %v21496_v61, %v18499_v48  ;;  %v10292_v22 = vpop.f32.mrb[57].mxu0 }
0x1d0b   :  { %v24740_v0 = vadd.f32 %v18499_v48, %v10292_v22 }
0x1d0c   :  { %v10305_v5 = vmul.f32 0.70710677, %v24739_v8  ;;  %v10303_v27 = vmul.f32 0.5, %v24739_v8 }
0x1d0d   :  { %v10304_v12 = vmul.f32 0.70710677, %v24740_v0  ;;  %v10302_v6 = vmul.f32 0.5, %v24740_v0 }
0x1d0e   :  { %25250 = verf.f32 %v10305_v5 }
0x1d0f   :  { %25252 = verf.f32 %v10304_v12 }
0x1d18   :  { %v25251_v47 = vpop.eup %25250 }
0x1d19   :  { %v25253_v18 = vpop.eup %25252  ;;  %v10309_v42 = vadd.f32 1.0, %v25251_v47 }
0x1d1a   :  { %v10308_v9 = vadd.f32 1.0, %v25253_v18 }
0x1d1b   :  { %v10311_v3 = vmul.f32 %v10309_v42, %v10303_v27 }
0x1d1c   :  { %v10310_v62 = vmul.f32 %v10308_v9, %v10302_v6 }
0x1d1d   :  { %v27001_v54 = vand.u32 4294901760, %v10311_v3 }
0x1d1e   :  { %v27003_v56 = vand.u32 4294901760, %v10310_v62 }
0x1d1f   :  { %v27006_v61 = vsub.f32 %v10311_v3, %v27001_v54 }
0x1d20   :  { %v10415_v48 = vsub.f32 %v10310_v62, %v27003_v56 }
0x1d21   :  { %v10426_v5 = vand.u32 4294901760, %v27006_v61 }
0x1d22   :  { %v10416_v12 = vand.u32 4294901760, %v10415_v48 }
0x1d23   :  { %v10427_v47 = vsub.f32 %v27006_v61, %v10426_v5 }
0x1d24   :  { %v10417_v0 = vsub.f32 %v10415_v48, %v10416_v12 }
0x1d25   :  { %v10428_v42 = vand.u32 4294901760, %v10427_v47 }
0x1d26   :  { %v10418_v18 = vand.u32 4294901760, %v10417_v0 }
0x1d28   :  { %21529 = vmatprep.mubr.f32.mxu1 %v10418_v18 }
0x1d29   :  { %21530 = vmatmul.mubr.f32.vlgmr.msra.gmra.mrb[64].mxu1 %v10428_v42 }
0x1d2a   :  { %23782 = vmatpush3.bf16.msra.mxu1 %v26880_v49  ;;  %21564 = vmatprep.mubr.f32.mxu1 %v27003_v56  ;;  %v23875_v49 = vpack.c.bf16 %v10444_v45, %v10437_v39  ;;  %v28750_v39 = vand.u32 4294901760, %v26901_v50  ;;  %v28751_v45 = vand.u32 4294901760, %v26903_v7  ;;  %v28756_v50 = vand.u32 4294901760, %v26950_v4 }
0x1d2b   :  { %23784 = vmatprep.subr.bf16.mxu1 %v26905_v24  ;;  %v28757_v7 = vand.u32 4294901760, %v26955_v58 }
0x1d2c   :  { %v23887_v21 = vpack.c.bf16 %v28751_v45, %v28750_v39 }
0x1d2d   :  { %v23899_v62 = vpack.c.bf16 %v28757_v7, %v28756_v50 }
0x1d2e   :  { %23786 = vmatpush3.bf16.msra.mxu1 %v26905_v24  ;;  %v23879_v24 = vpack.c.bf16 %v10458_v38, %v10451_v14  ;;  %v28753_v14 = vand.u32 4294901760, %v26921_v2 }
0x1d2f   :  { %23788 = vmatprep.subr.bf16.mxu1 %v26909_v57 }
0x1d30   :  { %v23891_v38 = vpack.c.bf16 %v28753_v14, %v28752_v26  ;;  %v11099_v26 = vld [vmem:[#allocation4 + $0x510] sm:$0xff] }
0x1d31   :  { %v11114_v17 = vsel %vm8361_vm8, %v11099_v26, 0  ;;  %v11105_v26 = vld [vmem:[#allocation4 + $0x540] sm:$0xff] }
0x1d32   :  { %23790 = vmatpush3.bf16.msra.mxu1 %v26909_v57  ;;  %v28758_v57 = vand.u32 4294901760, %v26970_v43  ;;  %v27115_v50 = vand.u32 4294901760, %v11114_v17 }
0x1d33   :  { %23792 = vmatprep.subr.bf16.mxu1 %v26925_v53 }
0x1d34   :  { %v23903_v2 = vpack.c.bf16 %v28759_v44, %v28758_v57  ;;  %v27121_v57 = vsub.f32 %v11114_v17, %v27115_v50 }
0x1d36   :  { %23794 = vmatpush3.bf16.msra.mxu1 %v26925_v53 }
0x1d37   :  { %23796 = vmatprep.subr.bf16.mxu1 %v26957_v55 }
0x1d3a   :  { %23798 = vmatpush3.bf16.msra.mxu1 %v26957_v55 }
0x1d3b   :  { %23800 = vmatprep.subr.bf16.mxu1 %v23799_v11 }
0x1d3e   :  { %23802 = vmatpush3.bf16.msra.mxu1 %v23799_v11 }
0x1d3f   :  { %23804 = vmatprep.subr.bf16.mxu1 %v23803_v29 }
0x1d42   :  { %23806 = vmatpush3.bf16.msra.mxu1 %v23803_v29 }
0x1d43   :  { %23808 = vmatprep.subr.bf16.mxu1 %v23807_v46 }
0x1d46   :  { %23810 = vmatpush3.bf16.msra.mxu1 %v23807_v46  ;;  %v18501_v46 = vld [vmem:[#allocation4 + $0x4f0] ss:$0 sm:$0xff] }
0x1d47   :  { %23812 = vmatprep.subr.bf16.mxu1 %v23811_v28 }
0x1d49   :  { %21565 = vmatmul.mubr.f32.vlgmr.msra.gmra.mrb[64].mxu1 %v27001_v54 }
0x1d4a   :  { %23814 = vmatpush3.bf16.msra.mxu1 %v23811_v28  ;;  %21599 = vmatprep.mubr.f32.mxu1 %v10415_v48 }
0x1d4b   :  { %23816 = vmatprep.subr.bf16.mxu1 %v23815_v63 }
0x1d4e   :  { %23818 = vmatpush3.bf16.msra.mxu1 %v23815_v63 }
0x1d4f   :  { %23820 = vmatprep.subr.bf16.mxu1 %v23819_v32 }
0x1d52   :  { %23822 = vmatpush3.bf16.msra.mxu1 %v23819_v32  ;;  %v18502_v32 = vld [vmem:[#allocation4 + $0x4f8] ss:$0 sm:$0xff] }
0x1d53   :  { %23824 = vmatprep.subr.bf16.mxu1 %v23823_v41 }
0x1d56   :  { %23826 = vmatpush3.bf16.msra.mxu1 %v23823_v41 }
0x1d57   :  { %23828 = vmatprep.subr.bf16.mxu1 %v23827_v16 }
0x1d5a   :  { %23830 = vmatpush3.bf16.msra.mxu1 %v23827_v16 }
0x1d5b   :  { %23832 = vmatprep.subr.bf16.mxu1 %v23831_v30 }
0x1d5e   :  { %23834 = vmatpush3.bf16.msra.mxu1 %v23831_v30 }
0x1d5f   :  { %23836 = vmatprep.subr.bf16.mxu1 %v23835_v33 }
0x1d62   :  { %23838 = vmatpush3.bf16.msra.mxu1 %v23835_v33 }
0x1d63   :  { %23840 = vmatprep.subr.bf16.mxu1 %v23839_v52 }
0x1d66   :  { %23842 = vmatpush3.bf16.msra.mxu1 %v23839_v52 }
0x1d67   :  { %23844 = vmatprep.subr.bf16.mxu1 %v26777_v35 }
0x1d69   :  { %21600 = vmatmul.mubr.f32.vlgmr.msra.gmra.mrb[64].mxu1 %v27006_v61 }
0x1d6a   :  { %23846 = vmatpush3.bf16.msra.mxu1 %v26777_v35  ;;  %21634 = vmatprep.mubr.f32.mxu1 %v10416_v12 }
0x1d6b   :  { %23848 = vmatprep.subr.bf16.mxu1 %v26796_v36 }
0x1d6e   :  { %23850 = vmatpush3.bf16.msra.mxu1 %v26796_v36 }
0x1d6f   :  { %23852 = vmatprep.subr.bf16.mxu1 %v26800_v15 }
0x1d72   :  { %23854 = vmatpush3.bf16.msra.mxu1 %v26800_v15 }
0x1d73   :  { %23856 = vmatprep.subr.bf16.mxu1 %v26804_v1 }
0x1d76   :  { %23858 = vmatpush3.bf16.msra.mxu1 %v26804_v1 }
0x1d77   :  { %23860 = vmatprep.subr.bf16.mxu1 %v26814_v51 }
0x1d7a   :  { %23862 = vmatpush3.bf16.msra.mxu1 %v26814_v51 }
0x1d7b   :  { %23864 = vmatprep.subr.bf16.mxu1 %v26824_v37 }
0x1d7e   :  { %23866 = vmatpush3.bf16.msra.mxu1 %v26824_v37 }
0x1d7f   :  { %23868 = vmatprep.subr.bf16.mxu1 %v26838_v23 }
0x1d82   :  { %23870 = vmatpush3.bf16.msra.mxu1 %v26838_v23 }
0x1d83   :  { %23872 = vmatprep.subr.bf16.mxu1 %v26864_v20 }
0x1d86   :  { %23874 = vmatpush3.bf16.msra.mxu1 %v26864_v20 }
0x1d87   :  { %23876 = vmatprep.subr.bf16.mxu1 %v23875_v49 }
0x1d89   :  { %21635 = vmatmul.mubr.f32.vlgmr.msra.gmra.mrb[64].mxu1 %v10426_v5 }
0x1d8a   :  { %23878 = vmatpush3.bf16.msra.mxu1 %v23875_v49  ;;  %21669 = vmatprep.mubr.f32.mxu1 %v27003_v56 }
0x1d8b   :  { %23880 = vmatprep.subr.bf16.mxu1 %v23879_v24 }
0x1d8e   :  { %23882 = vmatpush3.bf16.msra.mxu1 %v23879_v24 }
0x1d8f   :  { %23884 = vmatprep.subr.bf16.mxu1 %v23883_v40 }
0x1d92   :  { %23886 = vmatpush3.bf16.msra.mxu1 %v23883_v40 }
0x1d93   :  { %23888 = vmatprep.subr.bf16.mxu1 %v23887_v21 }
0x1d96   :  { %23890 = vmatpush3.bf16.msra.mxu1 %v23887_v21 }
0x1d97   :  { %23892 = vmatprep.subr.bf16.mxu1 %v23891_v38 }
0x1d9a   :  { %23894 = vmatpush3.bf16.msra.mxu1 %v23891_v38  ;;  %v11100_v38 = vld [vmem:[#allocation4 + $0x518] sm:$0xff] }
0x1d9b   :  { %23896 = vmatprep.subr.bf16.mxu1 %v23895_v25  ;;  %v11117_v19 = vsel %vm8361_vm8, %v11100_v38, 0 }
0x1d9c   :  { %v27117_v7 = vand.u32 4294901760, %v11117_v19 }
0x1d9e   :  { %23898 = vmatpush3.bf16.msra.mxu1 %v23895_v25  ;;  %v11101_v25 = vld [vmem:[#allocation4 + $0x520] sm:$0xff]  ;;  %v27124_v44 = vsub.f32 %v11117_v19, %v27117_v7 }
0x1d9f   :  { %23900 = vmatprep.subr.bf16.mxu1 %v23899_v62 }
0x1da2   :  { %23902 = vmatpush3.bf16.msra.mxu1 %v23899_v62  ;;  %v11120_v62 = vsel %vm8361_vm8, %v11101_v25, 0 }
0x1da3   :  { %23904 = vmatprep.subr.bf16.mxu1 %v23903_v2 }
0x1da6   :  { %23906 = vmatpush3.bf16.msra.mxu1 %v23903_v2  ;;  %v27126_v2 = vand.u32 4294901760, %v11120_v62 }
0x1da7   :  { %23908 = vmatprep.subr.bf16.mxu1 %v26777_v35 }
0x1da9   :  { %21670 = vmatmul.mubr.f32.vlgmr.msra.gmra.mrb[64].mxu1 %v27001_v54 }
0x1daa   :  { %23910 = vmatpush3.bf16.msra.mxu1 %v26777_v35  ;;  %21704 = vmatprep.mubr.f32.mxu1 %v27003_v56  ;;  %v18500_v35 = vld [vmem:[#allocation4 + $0x4e8] ss:$0 sm:$0xff] }
0x1dab   :  { %23912 = vmatprep.subr.bf16.mxu1 %v26796_v36 }
0x1dae   :  { %23914 = vmatpush3.bf16.msra.mxu1 %v26796_v36 }
0x1daf   :  { %23916 = vmatprep.subr.bf16.mxu1 %v26800_v15 }
0x1db2   :  { %23918 = vmatpush3.bf16.msra.mxu1 %v26800_v15 }
0x1db3   :  { %23920 = vmatprep.subr.bf16.mxu1 %v26804_v1 }
0x1db6   :  { %23922 = vmatpush3.bf16.msra.mxu1 %v26804_v1 }
0x1db7   :  { %23924 = vmatprep.subr.bf16.mxu1 %v26814_v51 }
0x1dba   :  { %23926 = vmatpush3.bf16.msra.mxu1 %v26814_v51 }
0x1dbb   :  { %23928 = vmatprep.subr.bf16.mxu1 %v26824_v37 }
0x1dbe   :  { %23930 = vmatpush3.bf16.msra.mxu1 %v26824_v37 }
0x1dbf   :  { %23932 = vmatprep.subr.bf16.mxu1 %v26838_v23 }
0x1dc2   :  { %23934 = vmatpush3.bf16.msra.mxu1 %v26838_v23 }
0x1dc3   :  { %23936 = vmatprep.subr.bf16.mxu1 %v26864_v20 }
0x1dc6   :  { %23938 = vmatpush3.bf16.msra.mxu1 %v26864_v20 }
0x1dc9   :  { %21705 = vmatmul.mubr.f32.vlgmr.msra.gmra.mrb[64].mxu1 %v27001_v54 }
0x1e9c   :  { %v21706_v36 = vpop.f32.mrb[64].mxu1 }
0x1e9d   :  { %v24741_v15 = vadd.f32 %v21706_v36, %v18500_v35  ;;  %v11007_v1 = vpop.f32.mrb[65].mxu1 }
0x1e9e   :  { %v24742_v56 = vadd.f32 %v18500_v35, %v11007_v1  ;;  %v11102_v35 = vld [vmem:[#allocation4 + $0x528] sm:$0xff]  ;;  %v18511_v1 = vld [vmem:[#allocation4 + $0x670] ss:$0 sm:$0xff] }
0x1e9f   :  { %v11018_v51 = vadd.f32 %v24741_v15, %v26738_v31  ;;  %v18503_v15 = vld [vmem:[#allocation4 + $0x500] ss:$0 sm:$0xff] }
0x1ea0   :  { %v11017_v3 = vadd.f32 %v24742_v56, %v26741_v10 }
0x1ea1   :  { %v11024_v37 = vsel %vm8311_vm7, %v11018_v51, 0.0 }
0x1ea2   :  { %11025 = vadd.xlane.f32.xlu0 %v11024_v37  ;;  %v11021_v23 = vsel %vm1997_vm6, %v11017_v3, 0.0  ;;  %v18504_v37 = vld [vmem:[#allocation4 + $0x508] ss:$0 sm:$0xff] }
0x1ea3   :  { %11022 = vadd.xlane.f32.xlu1 %v11021_v23  ;;  %v11206_v23 = vand.u32 4294901760, %v27121_v57 }
0x1f2f   :  { %v11026_v9 = vpop.xlane.xlu0 %11025 }
0x1f30   :  { %v11028_v53 = vmul.f32 0.03125, %v11026_v9  ;;  %v11023_v20 = vpop.xlane.xlu1 %11022  ;;  %v11123_v9 = vsel %vm8361_vm8, %v11102_v35, 0 }
0x1f31   :  { %v11027_v59 = vmul.f32 0.03125, %v11023_v20 }
0x1f32   :  { %v11030_v54 = vsub.f32 %v11018_v51, %v11028_v53  ;;  %v18512_v53 = vld [vmem:[#allocation4 + $0x678] ss:$0 sm:$0xff] }
0x1f33   :  { %v11029_v13 = vsub.f32 %v11017_v3, %v11027_v59  ;;  %v11216_v59 = vand.u32 4294901760, %v27124_v44 }
0x1f34   :  { %v11032_v6 = vmul.f32 %v11030_v54, %v11030_v54 }
0x1f35   :  { %v11031_v4 = vmul.f32 %v11029_v13, %v11029_v13 }
0x1f36   :  { %v11036_v58 = vsel %vm8311_vm7, %v11032_v6, 0.0 }
0x1f37   :  { %11037 = vadd.xlane.f32.xlu0 %v11036_v58  ;;  %v11033_v31 = vsel %vm1997_vm6, %v11031_v4, 0.0 }
0x1f38   :  { %11034 = vadd.xlane.f32.xlu1 %v11033_v31 }
0x1fc4   :  { %v11038_v10 = vpop.xlane.xlu0 %11037 }
0x1fc5   :  { %v11040_v55 = vmul.f32 0.03125, %v11038_v10  ;;  %v11035_v27 = vpop.xlane.xlu1 %11034  ;;  %v27134_v10 = vand.u32 4294901760, %v11123_v9 }
0x1fc6   :  { %v11039_v11 = vmul.f32 0.03125, %v11035_v27 }
0x1fc7   :  { %v11042_v43 = vadd.f32 1e-05, %v11040_v55 }
0x1fc8   :  { %v11041_v60 = vadd.f32 1e-05, %v11039_v11  ;;  %v11207_v11 = vsub.f32 %v27121_v57, %v11206_v23 }
0x1fc9   :  { %25254 = vrsqrt.f32 %v11042_v43 }
0x1fca   :  { %25256 = vrsqrt.f32 %v11041_v60 }
0x1fd3   :  { %v25255_v29 = vpop.eup %25254 }
0x1fd4   :  { %v25257_v28 = vpop.eup %25256  ;;  %v11046_v63 = vmul.f32 %v25255_v29, %v11030_v54  ;;  %v27132_v54 = vsub.f32 %v11120_v62, %v27126_v2 }
0x1fd5   :  { %v11045_v41 = vmul.f32 %v25257_v28, %v11029_v13  ;;  %v11103_v13 = vld [vmem:[#allocation4 + $0x530] sm:$0xff] }
0x1fd6   :  { %v11052_v16 = vmul.f32 %v18501_v46, %v11046_v63  ;;  %v11126_v43 = vsel %vm8361_vm8, %v11103_v13, 0  ;;  %v11226_v28 = vand.u32 4294901760, %v27132_v54 }
0x1fd7   :  { %v11051_v30 = vmul.f32 %v18501_v46, %v11045_v41  ;;  %v11217_v46 = vsub.f32 %v27124_v44, %v11216_v59 }
0x1fd8   :  { %v27101_v33 = vadd.f32 %v18502_v32, %v11052_v16 }
0x1fd9   :  { %v27103_v52 = vadd.f32 %v18502_v32, %v11051_v30 }
0x1fda   :  { %v11064_v8 = vsel %vm8311_vm7, %v27101_v33, 0.0 }
0x1fdb   :  { %11065 = vadd.xlane.f32.xlu0 %v11064_v8  ;;  %v11061_v22 = vsel %vm1997_vm6, %v27103_v52, 0.0  ;;  %v27147_v8 = vsub.f32 %v11123_v9, %v27134_v10  ;;  %v11132_v9 = vsel %vm8361_vm8, %v11105_v26, 0 }
0x1fdc   :  { %11062 = vadd.xlane.f32.xlu1 %v11061_v22  ;;  %v27149_v22 = vand.u32 4294901760, %v11126_v43 }
0x1fde   :  { %v27179_v62 = vsub.f32 %v11126_v43, %v27149_v22 }
0x2068   :  { %v11066_v61 = vpop.xlane.xlu0 %11065 }
0x2069   :  { %v11068_v48 = vmul.f32 0.03125, %v11066_v61  ;;  %v11063_v5 = vpop.xlane.xlu1 %11062  ;;  %v11104_v61 = vld [vmem:[#allocation4 + $0x538] sm:$0xff] }
0x206a   :  { %v11067_v12 = vmul.f32 0.03125, %v11063_v5 }
0x206b   :  { %v11070_v47 = vsub.f32 %v27101_v33, %v11068_v48 }
0x206c   :  { %v11069_v0 = vsub.f32 %v27103_v52, %v11067_v12 }
0x206d   :  { %v11072_v18 = vmul.f32 %v11070_v47, %v11070_v47 }
0x206e   :  { %v11071_v42 = vmul.f32 %v11069_v0, %v11069_v0 }
0x206f   :  { %v11076_v49 = vsel %vm8311_vm7, %v11072_v18, 0.0  ;;  %v11218_v18 = vand.u32 4294901760, %v11217_v46 }
0x2070   :  { %11077 = vadd.xlane.f32.xlu0 %v11076_v49  ;;  %v11073_v24 = vsel %vm1997_vm6, %v11071_v42, 0.0 }
0x2071   :  { %11074 = vadd.xlane.f32.xlu1 %v11073_v24 }
0x20fd   :  { %v11078_v34 = vpop.xlane.xlu0 %11077 }
0x20fe   :  { %v11080_v40 = vmul.f32 0.03125, %v11078_v34  ;;  %v11075_v39 = vpop.xlane.xlu1 %11074 }
0x20ff   :  { %v11079_v45 = vmul.f32 0.03125, %v11075_v39  ;;  %v11129_v39 = vsel %vm8361_vm8, %v11104_v61, 0 }
0x2100   :  { %v11082_v21 = vadd.f32 1e-05, %v11080_v40  ;;  %v11227_v40 = vsub.f32 %v27132_v54, %v11226_v28 }
0x2101   :  { %v11081_v14 = vadd.f32 1e-05, %v11079_v45  ;;  %v28760_v45 = vmov 0.0|0.0  }
0x2102   :  { %25258 = vrsqrt.f32 %v11082_v21  ;;  %v11236_v21 = vand.u32 4294901760, %v27147_v8 }
0x2103   :  { %25260 = vrsqrt.f32 %v11081_v14 }
0x210c   :  { %v25259_v36 = vpop.eup %25258 }
0x210d   :  { %v25261_v56 = vpop.eup %25260  ;;  %v11086_v51 = vmul.f32 %v25259_v36, %v11070_v47  ;;  %v27183_v36 = vand.u32 4294901760, %v11129_v39 }
0x210e   :  { %v11085_v3 = vmul.f32 %v25261_v56, %v11069_v0  ;;  %v11208_v0 = vand.u32 4294901760, %v11207_v11 }
0x210f   :  { %v11092_v20 = vmul.f32 %v18503_v15, %v11086_v51  ;;  %v13815_v6 = vmul.f32 %v18511_v1, %v11086_v51  ;;  %v28761_v51 = vmov 0.0  }
0x2110   :  { %v11091_v4 = vmul.f32 %v18503_v15, %v11085_v3  ;;  %v13814_v58 = vmul.f32 %v18511_v1, %v11085_v3 }
0x2111   :  { %v11098_v31 = vadd.f32 %v18504_v37, %v11092_v20  ;;  %v13821_v55 = vadd.f32 %v18512_v53, %v13815_v6  ;;  %v11228_v6 = vand.u32 4294901760, %v11227_v40 }
0x2112   :  { %v11097_v27 = vadd.f32 %v18504_v37, %v11091_v4  ;;  %v13820_v60 = vadd.f32 %v18512_v53, %v13814_v58  ;;  %v11237_v4 = vsub.f32 %v27147_v8, %v11236_v21  ;;  %v11246_v58 = vand.u32 4294901760, %v27179_v62 }
0x2113   :  { %v11135_v29 = vsel %vm8383_vm9, %v11098_v31, 0  ;;  %v13858_v63 = vsel %vm8383_vm9, %v13821_v55, 0  ;;  %v27197_v31 = vsub.f32 %v11129_v39, %v27183_v36  ;;  %v27199_v55 = vand.u32 4294901760, %v11132_v9 }
0x2114   :  { %v11138_v32 = vand.u32 4294901760, %v11097_v27  ;;  %v11141_v41 = vand.u32 4294901760, %v11135_v29  ;;  %v13861_v16 = vand.u32 4294901760, %v13820_v60  ;;  %v13864_v30 = vand.u32 4294901760, %v13858_v63 }
0x2115   :  { %v11238_v11 = vand.u32 4294901760, %v11237_v4  ;;  %v11247_v43 = vsub.f32 %v27179_v62, %v11246_v58 }
0x2116   :  { %v27151_v48 = vpack.c.bf16 %v11141_v41, %v11138_v32  ;;  %v27153_v5 = vsub.f32 %v11097_v27, %v11138_v32  ;;  %v27155_v12 = vsub.f32 %v11135_v29, %v11141_v41  ;;  %v27157_v47 = vpack.c.bf16 %v13864_v30, %v13861_v16 }
0x2117   :  { %v27159_v42 = vsub.f32 %v13820_v60, %v13861_v16  ;;  %v27161_v49 = vsub.f32 %v13858_v63, %v13864_v30  ;;  %v11256_v60 = vand.u32 4294901760, %v27197_v31  ;;  %v27211_v29 = vsub.f32 %v11132_v9, %v27199_v55 }
0x2118   :  { %23941 = vmatpush3.bf16.msra.mxu0 %v27151_v48  ;;  %v11277_v24 = vand.u32 4294901760, %v27153_v5  ;;  %v11284_v34 = vand.u32 4294901760, %v27155_v12  ;;  %v11248_v46 = vand.u32 4294901760, %v11247_v43  ;;  %v23946_v61 = vpack.c.bf16 %v27155_v12, %v27153_v5 }
0x2119   :  { %23942 = vmatprep.subr.bf16.mxu0 %v28760_v45  ;;  %v14000_v14 = vand.u32 4294901760, %v27159_v42  ;;  %v14007_v38 = vand.u32 4294901760, %v27161_v49  ;;  %v24276_v17 = vpack.c.bf16 %v27161_v49, %v27159_v42  ;;  %v11257_v63 = vsub.f32 %v27197_v31, %v11256_v60 }
0x211a   :  { %v11278_v19 = vsub.f32 %v27153_v5, %v11277_v24  ;;  %v11285_v25 = vsub.f32 %v27155_v12, %v11284_v34  ;;  %v27181_v35 = vpack.c.bf16 %v11284_v34, %v11277_v24  ;;  %v11266_v32 = vand.u32 4294901760, %v27211_v29 }
0x211b   :  { %21712 = vmatmul.mubr.f32.vlgmr.msra.gmra.mrb[58].mxu0 %v11208_v0  ;;  %v14001_v15 = vsub.f32 %v27159_v42, %v14000_v14  ;;  %v14008_v1 = vsub.f32 %v27161_v49, %v14007_v38  ;;  %v27187_v56 = vpack.c.bf16 %v14007_v38, %v14000_v14  ;;  %v11258_v41 = vand.u32 4294901760, %v11257_v63  ;;  %v11891_v42 = vld [vmem:[#allocation4 + $0x590] sm:$0xff] }
0x211c   :  { %21714 = vmatprep.mubr.msk.f32.mxu0 %vm25371_vm0, %v28761_v51  ;;  %v11279_v3 = vand.u32 4294901760, %v11278_v19  ;;  %v11286_v37 = vand.u32 4294901760, %v11285_v25  ;;  %v11267_v16 = vsub.f32 %v27211_v29, %v11266_v32  ;;  %v11110_v25 = vld [vmem:[#allocation4 + $0x568] sm:$0xff] }
0x211d   :  { %v14002_v53 = vand.u32 4294901760, %v14001_v15  ;;  %v14009_v20 = vand.u32 4294901760, %v14008_v1 }
0x211e   :  { %v23943_v13 = vpack.c.bf16 %v11286_v37, %v11279_v3  ;;  %v11268_v30 = vand.u32 4294901760, %v11267_v16 }
0x211f   :  { %21715 = vmatmul.mubr.f32.gmra.mrb[60].mxu0 %v11218_v18  ;;  %v27201_v27 = vpack.c.bf16 %v14009_v20, %v14002_v53  ;;  %v11108_v18 = vld [vmem:[#allocation4 + $0x558] sm:$0xff]  ;;  %v11111_v53 = vld [vmem:[#allocation4 + $0x570] sm:$0xff] }
0x2120   :  { %23944 = vmatpush3.bf16.msra.mxu0 %v23943_v13  ;;  %21717 = vmatprep.mubr.msk.f32.mxu0 %vm25371_vm0, %v28761_v51 }
0x2121   :  { %23945 = vmatprep.subr.bf16.mxu0 %v28760_v45 }
0x2123   :  { %21718 = vmatmul.mubr.f32.gmra.mrb[62].mxu0 %v11228_v6 }
0x2124   :  { %21720 = vmatprep.mubr.msk.f32.mxu0 %vm25371_vm0, %v28761_v51 }
0x2127   :  { %21721 = vmatmul.mubr.f32.gmra.mrb[64].mxu0 %v11238_v11 }
0x2128   :  { %21723 = vmatprep.mubr.msk.f32.mxu0 %vm25371_vm0, %v28761_v51 }
0x212b   :  { %21724 = vmatmul.mubr.f32.gmra.mrb[66].mxu0 %v11248_v46 }
0x212c   :  { %21726 = vmatprep.mubr.msk.f32.mxu0 %vm25371_vm0, %v28761_v51 }
0x212f   :  { %21727 = vmatmul.mubr.f32.gmra.mrb[68].mxu0 %v11258_v41 }
0x2130   :  { %21729 = vmatprep.mubr.msk.f32.mxu0 %vm25371_vm0, %v28761_v51 }
0x2133   :  { %21730 = vmatmul.mubr.f32.gmra.mrb[70].mxu0 %v11268_v30 }
0x2134   :  { %21736 = vmatprep.mubr.msk.f32.mxu0 %vm25371_vm0, %v28761_v51 }
0x2137   :  { %21737 = vmatmul.mubr.f32.vlgmr.msra.gmra.mrb[58].mxu0 %v27115_v50 }
0x2138   :  { %23947 = vmatpush3.bf16.msra.mxu0 %v23946_v61  ;;  %21739 = vmatprep.mubr.msk.f32.mxu0 %vm25371_vm0, %v28761_v51 }
0x2139   :  { %23948 = vmatprep.subr.bf16.mxu0 %v28760_v45 }
0x213b   :  { %21740 = vmatmul.mubr.f32.gmra.mrb[60].mxu0 %v27117_v7 }
0x213c   :  { %21742 = vmatprep.mubr.msk.f32.mxu0 %vm25371_vm0, %v28761_v51 }
0x213f   :  { %21743 = vmatmul.mubr.f32.gmra.mrb[62].mxu0 %v27126_v2 }
0x2140   :  { %21745 = vmatprep.mubr.msk.f32.mxu0 %vm25371_vm0, %v28761_v51 }
0x2143   :  { %21746 = vmatmul.mubr.f32.gmra.mrb[64].mxu0 %v27134_v10 }
0x2144   :  { %21748 = vmatprep.mubr.msk.f32.mxu0 %vm25371_vm0, %v28761_v51 }
0x2147   :  { %21749 = vmatmul.mubr.f32.gmra.mrb[66].mxu0 %v27149_v22 }
0x2148   :  { %21751 = vmatprep.mubr.msk.f32.mxu0 %vm25371_vm0, %v28761_v51 }
0x214b   :  { %21752 = vmatmul.mubr.f32.gmra.mrb[68].mxu0 %v27183_v36 }
0x214c   :  { %21754 = vmatprep.mubr.msk.f32.mxu0 %vm25371_vm0, %v28761_v51 }
0x214f   :  { %21755 = vmatmul.mubr.f32.gmra.mrb[70].mxu0 %v27199_v55 }
0x2150   :  { %21761 = vmatprep.mubr.msk.f32.mxu0 %vm25371_vm0, %v28761_v51 }
0x2153   :  { %21762 = vmatmul.mubr.f32.vlgmr.msra.gmra.mrb[58].mxu0 %v27121_v57 }
0x2154   :  { %23950 = vmatpush3.bf16.msra.mxu0 %v27151_v48  ;;  %21764 = vmatprep.mubr.msk.f32.mxu0 %vm25371_vm0, %v28761_v51 }
0x2155   :  { %23951 = vmatprep.subr.bf16.mxu0 %v28760_v45 }
0x2157   :  { %21765 = vmatmul.mubr.f32.gmra.mrb[60].mxu0 %v27124_v44 }
0x2158   :  { %21767 = vmatprep.mubr.msk.f32.mxu0 %vm25371_vm0, %v28761_v51 }
0x215b   :  { %21768 = vmatmul.mubr.f32.gmra.mrb[62].mxu0 %v27132_v54  ;;  %v11106_v54 = vld [vmem:[#allocation4 + $0x548] sm:$0xff] }
0x215c   :  { %21770 = vmatprep.mubr.msk.f32.mxu0 %vm25371_vm0, %v28761_v51 }
0x215f   :  { %21771 = vmatmul.mubr.f32.gmra.mrb[64].mxu0 %v27147_v8 }
0x2160   :  { %21773 = vmatprep.mubr.msk.f32.mxu0 %vm25371_vm0, %v28761_v51 }
0x2163   :  { %21774 = vmatmul.mubr.f32.gmra.mrb[66].mxu0 %v27179_v62 }
0x2164   :  { %21776 = vmatprep.mubr.msk.f32.mxu0 %vm25371_vm0, %v28761_v51 }
0x2167   :  { %21777 = vmatmul.mubr.f32.gmra.mrb[68].mxu0 %v27197_v31 }
0x2168   :  { %21779 = vmatprep.mubr.msk.f32.mxu0 %vm25371_vm0, %v28761_v51 }
0x216b   :  { %21780 = vmatmul.mubr.f32.gmra.mrb[70].mxu0 %v27211_v29  ;;  %v11112_v29 = vld [vmem:[#allocation4 + $0x578] sm:$0xff] }
0x216c   :  { %21786 = vmatprep.mubr.msk.f32.mxu0 %vm25371_vm0, %v28761_v51 }
0x216f   :  { %21787 = vmatmul.mubr.f32.vlgmr.msra.gmra.mrb[58].mxu0 %v11206_v23 }
0x2170   :  { %23953 = vmatpush3.bf16.msra.mxu0 %v27181_v35  ;;  %21789 = vmatprep.mubr.msk.f32.mxu0 %vm25371_vm0, %v28761_v51 }
0x2171   :  { %23954 = vmatprep.subr.bf16.mxu0 %v28760_v45 }
0x2173   :  { %21790 = vmatmul.mubr.f32.gmra.mrb[60].mxu0 %v11216_v59 }
0x2174   :  { %21792 = vmatprep.mubr.msk.f32.mxu0 %vm25371_vm0, %v28761_v51 }
0x2177   :  { %21793 = vmatmul.mubr.f32.gmra.mrb[62].mxu0 %v11226_v28 }
0x2178   :  { %21795 = vmatprep.mubr.msk.f32.mxu0 %vm25371_vm0, %v28761_v51 }
0x217b   :  { %21796 = vmatmul.mubr.f32.gmra.mrb[64].mxu0 %v11236_v21  ;;  %v11109_v21 = vld [vmem:[#allocation4 + $0x560] sm:$0xff] }
0x217c   :  { %21798 = vmatprep.mubr.msk.f32.mxu0 %vm25371_vm0, %v28761_v51 }
0x217f   :  { %21799 = vmatmul.mubr.f32.gmra.mrb[66].mxu0 %v11246_v58 }
0x2180   :  { %21801 = vmatprep.mubr.msk.f32.mxu0 %vm25371_vm0, %v28761_v51 }
0x2183   :  { %21802 = vmatmul.mubr.f32.gmra.mrb[68].mxu0 %v11256_v60 }
0x2184   :  { %21804 = vmatprep.mubr.msk.f32.mxu0 %vm25371_vm0, %v28761_v51 }
0x2187   :  { %21805 = vmatmul.mubr.f32.gmra.mrb[70].mxu0 %v11266_v32  ;;  %v11890_v32 = vld [vmem:[#allocation4 + $0x588] sm:$0x3f] }
0x2188   :  { %21811 = vmatprep.mubr.msk.f32.mxu0 %vm25371_vm0, %v28761_v51 }
0x218b   :  { %21812 = vmatmul.mubr.f32.vlgmr.msra.gmra.mrb[58].mxu0 %v27115_v50 }
0x218c   :  { %23956 = vmatpush3.bf16.msra.mxu0 %v27151_v48  ;;  %21814 = vmatprep.mubr.msk.f32.mxu0 %vm25371_vm0, %v28761_v51 }
0x218f   :  { %21815 = vmatmul.mubr.f32.gmra.mrb[60].mxu0 %v27117_v7 }
0x2190   :  { %21817 = vmatprep.mubr.msk.f32.mxu0 %vm25371_vm0, %v28761_v51 }
0x2193   :  { %21818 = vmatmul.mubr.f32.gmra.mrb[62].mxu0 %v27126_v2 }
0x2194   :  { %21820 = vmatprep.mubr.msk.f32.mxu0 %vm25371_vm0, %v28761_v51 }
0x2197   :  { %21821 = vmatmul.mubr.f32.gmra.mrb[64].mxu0 %v27134_v10 }
0x2198   :  { %21823 = vmatprep.mubr.msk.f32.mxu0 %vm25371_vm0, %v28761_v51 }
0x219b   :  { %21824 = vmatmul.mubr.f32.gmra.mrb[66].mxu0 %v27149_v22 }
0x219c   :  { %21826 = vmatprep.mubr.msk.f32.mxu0 %vm25371_vm0, %v28761_v51 }
0x219f   :  { %21827 = vmatmul.mubr.f32.gmra.mrb[68].mxu0 %v27183_v36 }
0x21a0   :  { %21829 = vmatprep.mubr.msk.f32.mxu0 %vm25371_vm0, %v28761_v51 }
0x21a3   :  { %21830 = vmatmul.mubr.f32.gmra.mrb[70].mxu0 %v27199_v55 }
0x21a4   :  { %21836 = vmatprep.mubr.msk.f32.mxu0 %vm25371_vm0, %v28761_v51 }
0x21a7   :  { %21837 = vmatmul.mubr.f32.vlgmr.msra.gmra.mrb[58].mxu0 %v27115_v50  ;;  %v11889_v50 = vld [vmem:[#allocation4 + $0x580] sm:$0xff] }
0x21a8   :  { %21839 = vmatprep.mubr.msk.f32.mxu0 %vm25371_vm0, %v28761_v51 }
0x21ab   :  { %21840 = vmatmul.mubr.f32.gmra.mrb[60].mxu0 %v27117_v7  ;;  %v11894_v7 = vsel %vm9143_vm10, %v11889_v50, 0 }
0x21ac   :  { %21842 = vmatprep.mubr.msk.f32.mxu0 %vm25371_vm0, %v28761_v51  ;;  %v27341_v57 = vand.u32 4294901760, %v11894_v7 }
0x21ae   :  { %v27344_v44 = vsub.f32 %v11894_v7, %v27341_v57 }
0x21af   :  { %21843 = vmatmul.mubr.f32.gmra.mrb[62].mxu0 %v27126_v2 }
0x21b0   :  { %21845 = vmatprep.mubr.msk.f32.mxu0 %vm25371_vm0, %v28761_v51  ;;  %v11973_v2 = vand.u32 4294901760, %v27344_v44 }
0x21b2   :  { %v11974_v23 = vsub.f32 %v27344_v44, %v11973_v2 }
0x21b3   :  { %21846 = vmatmul.mubr.f32.gmra.mrb[64].mxu0 %v27134_v10 }
0x21b4   :  { %21848 = vmatprep.mubr.msk.f32.mxu0 %vm25371_vm0, %v28761_v51  ;;  %v11975_v59 = vand.u32 4294901760, %v11974_v23 }
0x21b7   :  { %21849 = vmatmul.mubr.f32.gmra.mrb[66].mxu0 %v27149_v22  ;;  %v11107_v22 = vld [vmem:[#allocation4 + $0x550] sm:$0xff] }
0x21b8   :  { %21851 = vmatprep.mubr.msk.f32.mxu0 %vm25371_vm0, %v28761_v51 }
0x21bb   :  { %21852 = vmatmul.mubr.f32.gmra.mrb[68].mxu0 %v27183_v36 }
0x21bc   :  { %21854 = vmatprep.mubr.msk.f32.mxu0 %vm25371_vm0, %v28761_v51 }
0x21bf   :  { %21855 = vmatmul.mubr.f32.gmra.mrb[70].mxu0 %v27199_v55 }
0x21c0   :  { %21871 = vmatprep.mubr.f32.mxu0 %v11975_v59 }
0x227a   :  { %v11814_v10 = vpop.f32.mrb[58].mxu0 }
0x227b   :  { %v24743_v28 = vadd.f32 %v11814_v10, %v11106_v54  ;;  %v21838_v8 = vpop.f32.mrb[59].mxu0 }
0x227d   :  { %v11861_v48 = vmul.f32 0.70710677, %v24743_v28  ;;  %v11854_v36 = vmul.f32 0.5, %v24743_v28  ;;  %v11897_v28 = vsel %vm9143_vm10, %v11890_v32, 0 }
0x227e   :  { %v11820_v5 = vpop.f32.mrb[60].mxu0 }
0x227f   :  { %25262 = verf.f32 %v11861_v48  ;;  %v24744_v12 = vadd.f32 %v11820_v5, %v11107_v22  ;;  %v21841_v0 = vpop.f32.mrb[61].mxu0 }
0x2281   :  { %v11862_v24 = vmul.f32 0.70710677, %v24744_v12  ;;  %v11855_v4 = vmul.f32 0.5, %v24744_v12 }
0x2282   :  { %v11826_v34 = vpop.f32.mrb[62].mxu0 }
0x2283   :  { %25264 = verf.f32 %v11862_v24  ;;  %v24745_v40 = vadd.f32 %v11826_v34, %v11108_v18  ;;  %v21844_v39 = vpop.f32.mrb[63].mxu0  ;;  %v27355_v24 = vand.u32 4294901760, %v11897_v28 }
0x2285   :  { %v11863_v26 = vmul.f32 0.70710677, %v24745_v40  ;;  %v11856_v16 = vmul.f32 0.5, %v24745_v40 }
0x2286   :  { %v11832_v14 = vpop.f32.mrb[64].mxu0 }
0x2287   :  { %25266 = verf.f32 %v11863_v26  ;;  %v24746_v38 = vadd.f32 %v11832_v14, %v11109_v21  ;;  %v21847_v19 = vpop.f32.mrb[65].mxu0 }
0x2289   :  { %v25263_v62 = vpop.eup %25262  ;;  %v11864_v35 = vmul.f32 0.70710677, %v24746_v38  ;;  %v11857_v12 = vmul.f32 0.5, %v24746_v38 }
0x228a   :  { %v11875_v15 = vadd.f32 1.0, %v25263_v62  ;;  %v11838_v1 = vpop.f32.mrb[66].mxu0 }
0x228b   :  { %25268 = verf.f32 %v11864_v35  ;;  %v24747_v3 = vadd.f32 %v11838_v1, %v11110_v25  ;;  %v21850_v37 = vpop.f32.mrb[67].mxu0 }
0x228c   :  { %v11882_v9 = vmul.f32 %v11875_v15, %v11854_v36  ;;  %v27362_v15 = vsub.f32 %v11897_v28, %v27355_v24 }
0x228d   :  { %v25265_v20 = vpop.eup %25264  ;;  %v11865_v13 = vmul.f32 0.70710677, %v24747_v3  ;;  %v11858_v19 = vmul.f32 0.5, %v24747_v3 }
0x228e   :  { %v11900_v6 = vand.u32 4294901760, %v11882_v9  ;;  %v11876_v58 = vadd.f32 1.0, %v25265_v20  ;;  %v11844_v31 = vpop.f32.mrb[68].mxu0 }
0x228f   :  { %25270 = verf.f32 %v11865_v13  ;;  %v24748_v55 = vadd.f32 %v11844_v31, %v11111_v53  ;;  %v21853_v11 = vpop.f32.mrb[69].mxu0 }
0x2290   :  { %v11993_v43 = vsub.f32 %v11882_v9, %v11900_v6  ;;  %v11883_v60 = vmul.f32 %v11876_v58, %v11855_v4  ;;  %v11983_v11 = vand.u32 4294901760, %v27362_v15 }
0x2291   :  { %v25267_v46 = vpop.eup %25266  ;;  %v11866_v63 = vmul.f32 0.70710677, %v24748_v55  ;;  %v11859_v13 = vmul.f32 0.5, %v24748_v55 }
0x2292   :  { %v11903_v41 = vand.u32 4294901760, %v11883_v60  ;;  %v11877_v30 = vadd.f32 1.0, %v25267_v46  ;;  %v11850_v61 = vpop.f32.mrb[70].mxu0  ;;  %v11994_v50 = vand.u32 4294901760, %v11993_v43 }
0x2293   :  { %25272 = verf.f32 %v11866_v63  ;;  %v24749_v7 = vadd.f32 %v11850_v61, %v11112_v29  ;;  %v21856_v23 = vpop.f32.mrb[71].mxu0 }
0x2294   :  { %v27350_v59 = vpack.c.bf16 %v11903_v41, %v11900_v6  ;;  %v12000_v54 = vsub.f32 %v11883_v60, %v11903_v41  ;;  %v11884_v10 = vmul.f32 %v11877_v30, %v11856_v16  ;;  %v11995_v48 = vsub.f32 %v11993_v43, %v11994_v50 }
0x2295   :  { %v25269_v8 = vpop.eup %25268  ;;  %v11867_v22 = vmul.f32 0.70710677, %v24749_v7  ;;  %v11860_v32 = vmul.f32 0.5, %v24749_v7 }
0x2296   :  { %v11906_v5 = vand.u32 4294901760, %v11884_v10  ;;  %v11878_v0 = vadd.f32 1.0, %v25269_v8  ;;  %23958 = vmatprep.subr.bf16.mxu0 %v27350_v59  ;;  %v12001_v18 = vand.u32 4294901760, %v12000_v54  ;;  %v27357_v34 = vpack.c.bf16 %v12000_v54, %v11993_v43 }
0x2297   :  { %25274 = verf.f32 %v11867_v22  ;;  %23960 = vmatpush3.bf16.msra.mxu0 %v27350_v59  ;;  %v11996_v25 = vand.u32 4294901760, %v11995_v48 }
0x2298   :  { %v12007_v40 = vsub.f32 %v11884_v10, %v11906_v5  ;;  %v11885_v39 = vmul.f32 %v11878_v0, %v11857_v12  ;;  %v12002_v21 = vsub.f32 %v12000_v54, %v12001_v18  ;;  %v27359_v26 = vpack.c.bf16 %v12001_v18, %v11994_v50 }
0x2299   :  { %v25271_v14 = vpop.eup %25270  ;;  %v11984_v50 = vsub.f32 %v27362_v15, %v11983_v11 }
0x229a   :  { %v11909_v38 = vand.u32 4294901760, %v11885_v39  ;;  %v11879_v62 = vadd.f32 1.0, %v25271_v14  ;;  %v12003_v35 = vand.u32 4294901760, %v12002_v21  ;;  %v12008_v36 = vand.u32 4294901760, %v12007_v40 }
0x229b   :  { %v11985_v12 = vand.u32 4294901760, %v11984_v50 }
0x229c   :  { %v27364_v1 = vpack.c.bf16 %v11909_v38, %v11906_v5  ;;  %v12014_v37 = vsub.f32 %v11885_v39, %v11909_v38  ;;  %v11886_v9 = vmul.f32 %v11879_v62, %v11858_v19  ;;  %v23969_v53 = vpack.c.bf16 %v12003_v35, %v11996_v25  ;;  %v13824_v35 = vld [vmem:[#allocation4 + $0x690] sm:$0xff] }
0x229d   :  { %v25273_v20 = vpop.eup %25272  ;;  %v12009_v6 = vsub.f32 %v12007_v40, %v12008_v36 }
0x229e   :  { %v11912_v4 = vand.u32 4294901760, %v11886_v9  ;;  %v11880_v58 = vadd.f32 1.0, %v25273_v20  ;;  %23962 = vmatprep.subr.bf16.mxu0 %v27364_v1  ;;  %v12015_v3 = vand.u32 4294901760, %v12014_v37  ;;  %v23985_v31 = vpack.c.bf16 %v12014_v37, %v12007_v40  ;;  %v13826_v20 = vld [vmem:[#allocation4 + $0x6a0] sm:$0xff] }
0x229f   :  { %23964 = vmatpush3.bf16.msra.mxu0 %v27364_v1  ;;  %v12010_v41 = vand.u32 4294901760, %v12009_v6 }
0x22a0   :  { %v12021_v43 = vsub.f32 %v11886_v9, %v11912_v4  ;;  %v11887_v60 = vmul.f32 %v11880_v58, %v11859_v13  ;;  %v12016_v29 = vsub.f32 %v12014_v37, %v12015_v3  ;;  %v27369_v46 = vpack.c.bf16 %v12015_v3, %v12008_v36  ;;  %v13825_v37 = vld [vmem:[#allocation4 + $0x698] sm:$0xff]  ;;  %v13827_v3 = vld [vmem:[#allocation4 + $0x6a8] sm:$0xff] }
0x22a1   :  { %v25275_v63 = vpop.eup %25274  ;;  %v13849_v58 = vsel %vm8361_vm8, %v13826_v20, 0 }
0x22a2   :  { %v11915_v55 = vand.u32 4294901760, %v11887_v60  ;;  %v11881_v16 = vadd.f32 1.0, %v25275_v63  ;;  %v12017_v30 = vand.u32 4294901760, %v12016_v29  ;;  %v12022_v61 = vand.u32 4294901760, %v12021_v43 }
0x22a3   :  { %v27452_v29 = vand.u32 4294901760, %v13849_v58 }
0x22a4   :  { %v27374_v23 = vpack.c.bf16 %v11915_v55, %v11912_v4  ;;  %v12028_v54 = vsub.f32 %v11887_v60, %v11915_v55  ;;  %v11888_v10 = vmul.f32 %v11881_v16, %v11860_v32  ;;  %v23973_v28 = vpack.c.bf16 %v12017_v30, %v12010_v41 }
0x22a5   :  { %v12023_v22 = vsub.f32 %v12021_v43, %v12022_v61  ;;  %v27464_v55 = vsub.f32 %v13849_v58, %v27452_v29 }
0x22a6   :  { %v27376_v8 = vand.u32 4294901760, %v11888_v10  ;;  %23966 = vmatprep.subr.bf16.mxu0 %v27374_v23  ;;  %v12029_v7 = vand.u32 4294901760, %v12028_v54  ;;  %v23989_v48 = vpack.c.bf16 %v12028_v54, %v12021_v43 }
0x22a7   :  { %23968 = vmatpush3.bf16.msra.mxu0 %v27374_v23  ;;  %v12024_v40 = vand.u32 4294901760, %v12023_v22 }
0x22a8   :  { %v12035_v5 = vsub.f32 %v11888_v10, %v27376_v8  ;;  %21869 = vmatprep.subr.mxu0 %v27376_v8  ;;  %v12030_v0 = vsub.f32 %v12028_v54, %v12029_v7  ;;  %v24013_v18 = vpack.c.bf16 %v12029_v7, %v12022_v61 }
0x22aa   :  { %v12031_v39 = vand.u32 4294901760, %v12030_v0  ;;  %v12036_v14 = vand.u32 4294901760, %v12035_v5 }
0x22ab   :  { %21870 = vmatpush3.msra.mxu0 %v27376_v8 }
0x22ac   :  { %23970 = vmatprep.subr.bf16.mxu0 %v23969_v53  ;;  %21872 = vmatmul.mubr.f32.vlgmr.msra.gmra.mrb[72].mxu0 %v11985_v12  ;;  %v23977_v21 = vpack.c.bf16 %v12031_v39, %v12024_v40  ;;  %v12037_v19 = vsub.f32 %v12035_v5, %v12036_v14 }
0x22ad   :  { %23972 = vmatpush3.bf16.msra.mxu0 %v23969_v53  ;;  %21888 = vmatprep.mubr.f32.mxu0 %v27341_v57  ;;  %v13846_v53 = vsel %vm8361_vm8, %v13825_v37, 0 }
0x22ae   :  { %23974 = vmatprep.subr.bf16.mxu0 %v23973_v28  ;;  %v12038_v25 = vand.u32 4294901760, %v12037_v19  ;;  %v27439_v4 = vand.u32 4294901760, %v13846_v53 }
0x22b0   :  { %v27450_v60 = vsub.f32 %v13846_v53, %v27439_v4 }
0x22b1   :  { %23976 = vmatpush3.bf16.msra.mxu0 %v23973_v28 }
0x22b2   :  { %23978 = vmatprep.subr.bf16.mxu0 %v23977_v21  ;;  %v13959_v41 = vand.u32 4294901760, %v27450_v60 }
0x22b4   :  { %v13960_v50 = vsub.f32 %v27450_v60, %v13959_v41 }
0x22b5   :  { %23980 = vmatpush3.bf16.msra.mxu0 %v23977_v21 }
0x22b6   :  { %21886 = vmatprep.subr.mxu0 %v12038_v25 }
0x22b9   :  { %21887 = vmatpush3.msra.mxu0 %v12038_v25  ;;  %v14612_v25 = vld [vmem:[#allocation4 + $0x6f0] sm:$0xff] }
0x22ba   :  { %23982 = vmatprep.subr.bf16.mxu0 %v27357_v34  ;;  %21889 = vmatmul.mubr.f32.vlgmr.msra.gmra.mrb[72].mxu0 %v27355_v24 }
0x22bb   :  { %23984 = vmatpush3.bf16.msra.mxu0 %v27357_v34  ;;  %21905 = vmatprep.mubr.f32.mxu0 %v27344_v44  ;;  %v13822_v44 = vld [vmem:[#allocation4 + $0x680] sm:$0xff]  ;;  %v13823_v34 = vld [vmem:[#allocation4 + $0x688] sm:$0xff] }
0x22bc   :  { %23986 = vmatprep.subr.bf16.mxu0 %v23985_v31  ;;  %v13840_v62 = vsel %vm8361_vm8, %v13823_v34, 0 }
0x22bd   :  { %v27418_v36 = vand.u32 4294901760, %v13840_v62 }
0x22bf   :  { %23988 = vmatpush3.bf16.msra.mxu0 %v23985_v31 }
0x22c0   :  { %23990 = vmatprep.subr.bf16.mxu0 %v23989_v48 }
0x22c3   :  { %23992 = vmatpush3.bf16.msra.mxu0 %v23989_v48 }
0x22c4   :  { %21903 = vmatprep.subr.mxu0 %v12035_v5 }
0x22c7   :  { %21904 = vmatpush3.msra.mxu0 %v12035_v5 }
0x22c8   :  { %23994 = vmatprep.subr.bf16.mxu0 %v27350_v59  ;;  %21906 = vmatmul.mubr.f32.vlgmr.msra.gmra.mrb[72].mxu0 %v27362_v15  ;;  %v13843_v15 = vsel %vm8361_vm8, %v13824_v35, 0 }
0x22c9   :  { %23996 = vmatpush3.bf16.msra.mxu0 %v27350_v59  ;;  %21922 = vmatprep.mubr.f32.mxu0 %v11973_v2  ;;  %v13837_v2 = vsel %vm8361_vm8, %v13822_v44, 0  ;;  %v27422_v9 = vand.u32 4294901760, %v13843_v15  ;;  %v14617_v44 = vsel %vm9143_vm10, %v14612_v25, 0 }
0x22ca   :  { %23998 = vmatprep.subr.bf16.mxu0 %v27364_v1  ;;  %v27407_v38 = vand.u32 4294901760, %v13837_v2 }
0x22cb   :  { %v27432_v13 = vsub.f32 %v13843_v15, %v27422_v9 }
0x22cd   :  { %24000 = vmatpush3.bf16.msra.mxu0 %v27364_v1  ;;  %v13949_v31 = vand.u32 4294901760, %v27432_v13 }
0x22ce   :  { %24002 = vmatprep.subr.bf16.mxu0 %v27374_v23 }
0x22cf   :  { %v13950_v63 = vsub.f32 %v27432_v13, %v13949_v31 }
0x22d1   :  { %24004 = vmatpush3.bf16.msra.mxu0 %v27374_v23  ;;  %v13951_v61 = vand.u32 4294901760, %v13950_v63 }
0x22d2   :  { %21920 = vmatprep.subr.mxu0 %v27376_v8 }
0x22d5   :  { %21921 = vmatpush3.msra.mxu0 %v27376_v8 }
0x22d6   :  { %24006 = vmatprep.subr.bf16.mxu0 %v27359_v26  ;;  %21923 = vmatmul.mubr.f32.vlgmr.msra.gmra.mrb[72].mxu0 %v11983_v11 }
0x22d7   :  { %24008 = vmatpush3.bf16.msra.mxu0 %v27359_v26  ;;  %21939 = vmatprep.mubr.f32.mxu0 %v27341_v57  ;;  %v27416_v26 = vsub.f32 %v13837_v2, %v27407_v38  ;;  %v27625_v2 = vand.u32 4294901760, %v14617_v44 }
0x22d8   :  { %24010 = vmatprep.subr.bf16.mxu0 %v27369_v46 }
0x22d9   :  { %v27628_v34 = vsub.f32 %v14617_v44, %v27625_v2  ;;  %v14613_v44 = vld [vmem:[#allocation4 + $0x6f8] sm:$0x3f] }
0x22db   :  { %24012 = vmatpush3.bf16.msra.mxu0 %v27369_v46  ;;  %v13852_v46 = vsel %vm8361_vm8, %v13827_v3, 0  ;;  %v13831_v3 = vld [vmem:[#allocation4 + $0x6c8] sm:$0xff] }
0x22dc   :  { %24014 = vmatprep.subr.bf16.mxu0 %v24013_v18  ;;  %v27466_v16 = vand.u32 4294901760, %v13852_v46 }
0x22de   :  { %v27478_v54 = vsub.f32 %v13852_v46, %v27466_v16 }
0x22df   :  { %24016 = vmatpush3.bf16.msra.mxu0 %v24013_v18 }
0x22e0   :  { %21937 = vmatprep.subr.mxu0 %v12036_v14 }
0x22e3   :  { %21938 = vmatpush3.msra.mxu0 %v12036_v14 }
0x22e4   :  { %24018 = vmatprep.subr.bf16.mxu0 %v27350_v59  ;;  %21940 = vmatmul.mubr.f32.vlgmr.msra.gmra.mrb[72].mxu0 %v27355_v24 }
0x22e5   :  { %24020 = vmatpush3.bf16.msra.mxu0 %v27350_v59  ;;  %21956 = vmatprep.mubr.f32.mxu0 %v27341_v57  ;;  %v13929_v59 = vand.u32 4294901760, %v27416_v26  ;;  %v27427_v57 = vsub.f32 %v13840_v62, %v27418_v36 }
0x22e6   :  { %24022 = vmatprep.subr.bf16.mxu0 %v27364_v1 }
0x22e7   :  { %v13939_v6 = vand.u32 4294901760, %v27427_v57 }
0x22e9   :  { %24024 = vmatpush3.bf16.msra.mxu0 %v27364_v1  ;;  %v13930_v1 = vsub.f32 %v27416_v26, %v13929_v59  ;;  %v13940_v43 = vsub.f32 %v27427_v57, %v13939_v6 }
0x22ea   :  { %24026 = vmatprep.subr.bf16.mxu0 %v27374_v23 }
0x22eb   :  { %v13931_v11 = vand.u32 4294901760, %v13930_v1  ;;  %v13941_v32 = vand.u32 4294901760, %v13940_v43 }
0x22ed   :  { %24028 = vmatpush3.bf16.msra.mxu0 %v27374_v23  ;;  %v13969_v23 = vand.u32 4294901760, %v27464_v55 }
0x22ee   :  { %21954 = vmatprep.subr.mxu0 %v27376_v8 }
0x22ef   :  { %v13970_v28 = vsub.f32 %v27464_v55, %v13969_v23 }
0x22f1   :  { %21955 = vmatpush3.msra.mxu0 %v27376_v8  ;;  %v13979_v8 = vand.u32 4294901760, %v27478_v54  ;;  %v13971_v7 = vand.u32 4294901760, %v13970_v28 }
0x22f2   :  { %21957 = vmatmul.mubr.f32.vlgmr.msra.gmra.mrb[72].mxu0 %v27355_v24  ;;  %24269 = vmatprep.subr.bf16.mxu0 %v28760_v45  ;;  %v13828_v24 = vld [vmem:[#allocation4 + $0x6b0] sm:$0xff] }
0x22f3   :  { %24271 = vmatpush3.bf16.msra.mxu0 %v27157_v47  ;;  %22239 = vmatprep.mubr.msk.f32.mxu0 %vm25371_vm0, %v28761_v51  ;;  %v13855_v30 = vsel %vm8361_vm8, %v13828_v24, 0  ;;  %v13980_v48 = vsub.f32 %v27478_v54, %v13979_v8 }
0x22f4   :  { %24272 = vmatprep.subr.bf16.mxu0 %v28760_v45  ;;  %v27480_v10 = vand.u32 4294901760, %v13855_v30 }
0x22f5   :  { %v13981_v12 = vand.u32 4294901760, %v13980_v48  ;;  %v13834_v48 = vld [vmem:[#allocation4 + $0x6e0] sm:$0xff] }
0x22f6   :  { %22240 = vmatmul.mubr.f32.vlgmr.msra.gmra.mrb[74].mxu0 %v13931_v11  ;;  %v13988_v22 = vsub.f32 %v13855_v30, %v27480_v10 }
0x22f7   :  { %24274 = vmatpush3.bf16.msra.mxu0 %v27201_v27  ;;  %22242 = vmatprep.mubr.msk.f32.mxu0 %vm25371_vm0, %v28761_v51  ;;  %v13961_v27 = vand.u32 4294901760, %v13960_v50  ;;  %v13833_v50 = vld [vmem:[#allocation4 + $0x6d8] sm:$0xff] }
0x22f8   :  { %24275 = vmatprep.subr.bf16.mxu0 %v28760_v45  ;;  %v13989_v5 = vand.u32 4294901760, %v13988_v22 }
0x22fa   :  { %22243 = vmatmul.mubr.f32.gmra.mrb[76].mxu0 %v13941_v32  ;;  %v13990_v0 = vsub.f32 %v13988_v22, %v13989_v5  ;;  %v13832_v32 = vld [vmem:[#allocation4 + $0x6d0] sm:$0xff] }
0x22fb   :  { %22245 = vmatprep.mubr.msk.f32.mxu0 %vm25371_vm0, %v28761_v51 }
0x22fc   :  { %v13991_v18 = vand.u32 4294901760, %v13990_v0 }
0x22fe   :  { %22246 = vmatmul.mubr.f32.gmra.mrb[78].mxu0 %v13951_v61 }
0x22ff   :  { %22248 = vmatprep.mubr.msk.f32.mxu0 %vm25371_vm0, %v28761_v51 }
0x2302   :  { %22249 = vmatmul.mubr.f32.gmra.mrb[80].mxu0 %v13961_v27 }
0x2303   :  { %22251 = vmatprep.mubr.msk.f32.mxu0 %vm25371_vm0, %v28761_v51 }
0x2306   :  { %22252 = vmatmul.mubr.f32.gmra.mrb[82].mxu0 %v13971_v7 }
0x2307   :  { %22254 = vmatprep.mubr.msk.f32.mxu0 %vm25371_vm0, %v28761_v51 }
0x230a   :  { %22255 = vmatmul.mubr.f32.gmra.mrb[84].mxu0 %v13981_v12 }
0x230b   :  { %22257 = vmatprep.mubr.msk.f32.mxu0 %vm25371_vm0, %v28761_v51 }
0x230e   :  { %22258 = vmatmul.mubr.f32.gmra.mrb[86].mxu0 %v13991_v18 }
0x230f   :  { %22264 = vmatprep.mubr.msk.f32.mxu0 %vm25371_vm0, %v28761_v51 }
0x2312   :  { %22265 = vmatmul.mubr.f32.vlgmr.msra.gmra.mrb[74].mxu0 %v27407_v38 }
0x2313   :  { %24277 = vmatpush3.bf16.msra.mxu0 %v24276_v17  ;;  %22267 = vmatprep.mubr.msk.f32.mxu0 %vm25371_vm0, %v28761_v51 }
0x2314   :  { %24278 = vmatprep.subr.bf16.mxu0 %v28760_v45 }
0x2316   :  { %22268 = vmatmul.mubr.f32.gmra.mrb[76].mxu0 %v27418_v36 }
0x2317   :  { %22270 = vmatprep.mubr.msk.f32.mxu0 %vm25371_vm0, %v28761_v51 }
0x231a   :  { %22271 = vmatmul.mubr.f32.gmra.mrb[78].mxu0 %v27422_v9 }
0x231b   :  { %22273 = vmatprep.mubr.msk.f32.mxu0 %vm25371_vm0, %v28761_v51 }
0x231e   :  { %22274 = vmatmul.mubr.f32.gmra.mrb[80].mxu0 %v27439_v4 }
0x231f   :  { %22276 = vmatprep.mubr.msk.f32.mxu0 %vm25371_vm0, %v28761_v51 }
0x2322   :  { %22277 = vmatmul.mubr.f32.gmra.mrb[82].mxu0 %v27452_v29 }
0x2323   :  { %22279 = vmatprep.mubr.msk.f32.mxu0 %vm25371_vm0, %v28761_v51 }
0x2326   :  { %22280 = vmatmul.mubr.f32.gmra.mrb[84].mxu0 %v27466_v16 }
0x2327   :  { %22282 = vmatprep.mubr.msk.f32.mxu0 %vm25371_vm0, %v28761_v51 }
0x232a   :  { %22283 = vmatmul.mubr.f32.gmra.mrb[86].mxu0 %v27480_v10 }
0x232b   :  { %22289 = vmatprep.mubr.msk.f32.mxu0 %vm25371_vm0, %v28761_v51 }
0x232e   :  { %22290 = vmatmul.mubr.f32.vlgmr.msra.gmra.mrb[74].mxu0 %v27416_v26  ;;  %v13829_v26 = vld [vmem:[#allocation4 + $0x6b8] sm:$0xff] }
0x232f   :  { %24280 = vmatpush3.bf16.msra.mxu0 %v27157_v47  ;;  %22292 = vmatprep.mubr.msk.f32.mxu0 %vm25371_vm0, %v28761_v51 }
0x2330   :  { %24281 = vmatprep.subr.bf16.mxu0 %v28760_v45 }
0x2332   :  { %22293 = vmatmul.mubr.f32.gmra.mrb[76].mxu0 %v27427_v57 }
0x2333   :  { %22295 = vmatprep.mubr.msk.f32.mxu0 %vm25371_vm0, %v28761_v51 }
0x2336   :  { %22296 = vmatmul.mubr.f32.gmra.mrb[78].mxu0 %v27432_v13 }
0x2337   :  { %22298 = vmatprep.mubr.msk.f32.mxu0 %vm25371_vm0, %v28761_v51 }
0x233a   :  { %22299 = vmatmul.mubr.f32.gmra.mrb[80].mxu0 %v27450_v60 }
0x233b   :  { %22301 = vmatprep.mubr.msk.f32.mxu0 %vm25371_vm0, %v28761_v51 }
0x233e   :  { %22302 = vmatmul.mubr.f32.gmra.mrb[82].mxu0 %v27464_v55 }
0x233f   :  { %22304 = vmatprep.mubr.msk.f32.mxu0 %vm25371_vm0, %v28761_v51 }
0x2342   :  { %22305 = vmatmul.mubr.f32.gmra.mrb[84].mxu0 %v27478_v54 }
0x2343   :  { %22307 = vmatprep.mubr.msk.f32.mxu0 %vm25371_vm0, %v28761_v51 }
0x2346   :  { %22308 = vmatmul.mubr.f32.gmra.mrb[86].mxu0 %v13988_v22 }
0x2347   :  { %22314 = vmatprep.mubr.msk.f32.mxu0 %vm25371_vm0, %v28761_v51 }
0x234a   :  { %22315 = vmatmul.mubr.f32.vlgmr.msra.gmra.mrb[74].mxu0 %v13929_v59 }
0x234b   :  { %24283 = vmatpush3.bf16.msra.mxu0 %v27187_v56  ;;  %22317 = vmatprep.mubr.msk.f32.mxu0 %vm25371_vm0, %v28761_v51 }
0x234c   :  { %24284 = vmatprep.subr.bf16.mxu0 %v28760_v45 }
0x234e   :  { %22318 = vmatmul.mubr.f32.gmra.mrb[76].mxu0 %v13939_v6 }
0x234f   :  { %22320 = vmatprep.mubr.msk.f32.mxu0 %vm25371_vm0, %v28761_v51 }
0x2352   :  { %22321 = vmatmul.mubr.f32.gmra.mrb[78].mxu0 %v13949_v31 }
0x2353   :  { %22323 = vmatprep.mubr.msk.f32.mxu0 %vm25371_vm0, %v28761_v51 }
0x2356   :  { %22324 = vmatmul.mubr.f32.gmra.mrb[80].mxu0 %v13959_v41 }
0x2357   :  { %22326 = vmatprep.mubr.msk.f32.mxu0 %vm25371_vm0, %v28761_v51 }
0x235a   :  { %22327 = vmatmul.mubr.f32.gmra.mrb[82].mxu0 %v13969_v23 }
0x235b   :  { %22329 = vmatprep.mubr.msk.f32.mxu0 %vm25371_vm0, %v28761_v51 }
0x235e   :  { %22330 = vmatmul.mubr.f32.gmra.mrb[84].mxu0 %v13979_v8 }
0x235f   :  { %22332 = vmatprep.mubr.msk.f32.mxu0 %vm25371_vm0, %v28761_v51 }
0x2362   :  { %22333 = vmatmul.mubr.f32.gmra.mrb[86].mxu0 %v13989_v5 }
0x2363   :  { %22339 = vmatprep.mubr.msk.f32.mxu0 %vm25371_vm0, %v28761_v51 }
0x2366   :  { %22340 = vmatmul.mubr.f32.vlgmr.msra.gmra.mrb[74].mxu0 %v27407_v38 }
0x2367   :  { %24286 = vmatpush3.bf16.msra.mxu0 %v27157_v47  ;;  %22342 = vmatprep.mubr.msk.f32.mxu0 %vm25371_vm0, %v28761_v51  ;;  %v11892_v47 = vld [vmem:[#allocation4 + $0x598] sm:$0x3f] }
0x236a   :  { %22343 = vmatmul.mubr.f32.gmra.mrb[76].mxu0 %v27418_v36 }
0x236b   :  { %22345 = vmatprep.mubr.msk.f32.mxu0 %vm25371_vm0, %v28761_v51 }
0x236e   :  { %22346 = vmatmul.mubr.f32.gmra.mrb[78].mxu0 %v27422_v9 }
0x236f   :  { %22348 = vmatprep.mubr.msk.f32.mxu0 %vm25371_vm0, %v28761_v51 }
0x2372   :  { %22349 = vmatmul.mubr.f32.gmra.mrb[80].mxu0 %v27439_v4 }
0x2373   :  { %22351 = vmatprep.mubr.msk.f32.mxu0 %vm25371_vm0, %v28761_v51 }
0x2376   :  { %22352 = vmatmul.mubr.f32.gmra.mrb[82].mxu0 %v27452_v29 }
0x2377   :  { %22354 = vmatprep.mubr.msk.f32.mxu0 %vm25371_vm0, %v28761_v51 }
0x237a   :  { %22355 = vmatmul.mubr.f32.gmra.mrb[84].mxu0 %v27466_v16 }
0x237b   :  { %22357 = vmatprep.mubr.msk.f32.mxu0 %vm25371_vm0, %v28761_v51 }
0x237e   :  { %22358 = vmatmul.mubr.f32.gmra.mrb[86].mxu0 %v27480_v10 }
0x237f   :  { %22364 = vmatprep.mubr.msk.f32.mxu0 %vm25371_vm0, %v28761_v51 }
0x2382   :  { %22365 = vmatmul.mubr.f32.vlgmr.msra.gmra.mrb[74].mxu0 %v27407_v38  ;;  %v14696_v38 = vand.u32 4294901760, %v27628_v34 }
0x2383   :  { %22367 = vmatprep.mubr.msk.f32.mxu0 %vm25371_vm0, %v28761_v51 }
0x2384   :  { %v14697_v62 = vsub.f32 %v27628_v34, %v14696_v38 }
0x2386   :  { %22368 = vmatmul.mubr.f32.gmra.mrb[76].mxu0 %v27418_v36  ;;  %v14698_v35 = vand.u32 4294901760, %v14697_v62 }
0x2387   :  { %22370 = vmatprep.mubr.msk.f32.mxu0 %vm25371_vm0, %v28761_v51 }
0x238a   :  { %22371 = vmatmul.mubr.f32.gmra.mrb[78].mxu0 %v27422_v9  ;;  %v13830_v9 = vld [vmem:[#allocation4 + $0x6c0] sm:$0xff] }
0x238b   :  { %22373 = vmatprep.mubr.msk.f32.mxu0 %vm25371_vm0, %v28761_v51 }
0x238e   :  { %22374 = vmatmul.mubr.f32.gmra.mrb[80].mxu0 %v27439_v4 }
0x238f   :  { %22376 = vmatprep.mubr.msk.f32.mxu0 %vm25371_vm0, %v28761_v51 }
0x2392   :  { %22377 = vmatmul.mubr.f32.gmra.mrb[82].mxu0 %v27452_v29 }
0x2393   :  { %22379 = vmatprep.mubr.msk.f32.mxu0 %vm25371_vm0, %v28761_v51 }
0x2396   :  { %22380 = vmatmul.mubr.f32.gmra.mrb[84].mxu0 %v27466_v16 }
0x2397   :  { %22382 = vmatprep.mubr.msk.f32.mxu0 %vm25371_vm0, %v28761_v51 }
0x239a   :  { %22383 = vmatmul.mubr.f32.gmra.mrb[86].mxu0 %v27480_v10 }
0x239b   :  { %22399 = vmatprep.mubr.f32.mxu0 %v14698_v35 }
0x23c5   :  { %v21958_v49 = vpop.f32.mrb[72].mxu0 }
0x23c6   :  { %v24750_v17 = vadd.f32 %v21958_v49, %v11892_v47  ;;  %v12456_v56 = vpop.f32.mrb[73].mxu0 }
0x23c7   :  { %v24751_v40 = vadd.f32 %v12456_v56, %v11891_v42 }
0x23c8   :  { %v27615_v39 = vadd.f32 %v24750_v17, %v27101_v33 }
0x23c9   :  { %v27618_v21 = vadd.f32 %v24751_v40, %v27103_v52 }
0x23ca   :  { %v12473_v14 = vsel %vm8311_vm7, %v27615_v39, 0.0 }
0x23cb   :  { %12474 = vadd.xlane.f32.xlu1 %v12473_v14  ;;  %v12470_v19 = vsel %vm1997_vm6, %v27618_v21, 0.0  ;;  %v13835_v14 = vld [vmem:[#allocation4 + $0x6e8] sm:$0xff] }
0x23cc   :  { %12471 = vadd.xlane.f32.xlu0 %v12470_v19 }
0x2455   :  { %v14537_v36 = vpop.f32.mrb[74].mxu0 }
0x2456   :  { %v24756_v15 = vadd.f32 %v14537_v36, %v13829_v26  ;;  %v22366_v37 = vpop.f32.mrb[75].mxu0 }
0x2458   :  { %v14584_v59 = vmul.f32 0.70710677, %v24756_v15  ;;  %v12475_v57 = vpop.xlane.xlu1 %12474  ;;  %v14577_v10 = vmul.f32 0.5, %v24756_v15 }
0x2459   :  { %v12477_v53 = vmul.f32 0.03125, %v12475_v57  ;;  %v14543_v20 = vpop.f32.mrb[76].mxu0  ;;  %v12472_v13 = vpop.xlane.xlu0 %12471 }
0x245a   :  { %25276 = verf.f32 %v14584_v59  ;;  %v24757_v1 = vadd.f32 %v14543_v20, %v13830_v9  ;;  %v12476_v6 = vmul.f32 0.03125, %v12472_v13  ;;  %v22369_v4 = vpop.f32.mrb[77].mxu0  ;;  %v14620_v20 = vsel %vm9143_vm10, %v14613_v44, 0 }
0x245b   :  { %v27635_v58 = vsub.f32 %v27615_v39, %v12477_v53 }
0x245c   :  { %v14585_v31 = vmul.f32 0.70710677, %v24757_v1  ;;  %v27638_v11 = vsub.f32 %v27618_v21, %v12476_v6  ;;  %v14578_v18 = vmul.f32 0.5, %v24757_v1 }
0x245d   :  { %v14549_v43 = vpop.f32.mrb[78].mxu0  ;;  %v12481_v60 = vmul.f32 %v27635_v58, %v27635_v58 }
0x245e   :  { %25278 = verf.f32 %v14585_v31  ;;  %v24758_v29 = vadd.f32 %v14549_v43, %v13831_v3  ;;  %v22372_v46 = vpop.f32.mrb[79].mxu0  ;;  %v12480_v24 = vmul.f32 %v27638_v11, %v27638_v11 }
0x245f   :  { %v12485_v63 = vsel %vm8311_vm7, %v12481_v60, 0.0  ;;  %v27651_v60 = vand.u32 4294901760, %v14620_v20 }
0x2460   :  { %v14586_v41 = vmul.f32 0.70710677, %v24758_v29  ;;  %12486 = vadd.xlane.f32.xlu1 %v12485_v63  ;;  %v12482_v55 = vsel %vm1997_vm6, %v12480_v24, 0.0  ;;  %v14579_v35 = vmul.f32 0.5, %v24758_v29 }
0x2461   :  { %v14555_v16 = vpop.f32.mrb[80].mxu0  ;;  %12483 = vadd.xlane.f32.xlu0 %v12482_v55 }
0x2462   :  { %25280 = verf.f32 %v14586_v41  ;;  %v24759_v30 = vadd.f32 %v14555_v16, %v13832_v32  ;;  %v22375_v61 = vpop.f32.mrb[81].mxu0 }
0x2464   :  { %v25277_v23 = vpop.eup %25276  ;;  %v14587_v54 = vmul.f32 0.70710677, %v24759_v30  ;;  %v14580_v3 = vmul.f32 0.5, %v24759_v30 }
0x2465   :  { %v14598_v27 = vadd.f32 1.0, %v25277_v23  ;;  %v14561_v28 = vpop.f32.mrb[82].mxu0 }
0x2466   :  { %25282 = verf.f32 %v14587_v54  ;;  %v24760_v8 = vadd.f32 %v14561_v28, %v13833_v50  ;;  %v22378_v22 = vpop.f32.mrb[83].mxu0  ;;  %v27658_v54 = vsub.f32 %v14620_v20, %v27651_v60  ;;  %v12509_v20 = vld [vmem:[#allocation4 + $0x5b8] sm:$0xff] }
0x2467   :  { %v14605_v7 = vmul.f32 %v14598_v27, %v14577_v10 }
0x2468   :  { %v25279_v5 = vpop.eup %25278  ;;  %v14588_v12 = vmul.f32 0.70710677, %v24760_v8  ;;  %v14581_v55 = vmul.f32 0.5, %v24760_v8 }
0x2469   :  { %v14623_v0 = vand.u32 4294901760, %v14605_v7  ;;  %v14599_v47 = vadd.f32 1.0, %v25279_v5  ;;  %v14567_v42 = vpop.f32.mrb[84].mxu0 }
0x246a   :  { %25284 = verf.f32 %v14588_v12  ;;  %v24761_v49 = vadd.f32 %v14567_v42, %v13834_v48  ;;  %v22381_v17 = vpop.f32.mrb[85].mxu0 }
0x246b   :  { %v14716_v56 = vsub.f32 %v14605_v7, %v14623_v0  ;;  %v14606_v40 = vmul.f32 %v14599_v47, %v14578_v18  ;;  %v14706_v47 = vand.u32 4294901760, %v27658_v54 }
0x246c   :  { %v25281_v19 = vpop.eup %25280  ;;  %v14589_v25 = vmul.f32 0.70710677, %v24761_v49  ;;  %v14582_v48 = vmul.f32 0.5, %v24761_v49 }
0x246d   :  { %v14626_v62 = vand.u32 4294901760, %v14606_v40  ;;  %v14600_v26 = vadd.f32 1.0, %v25281_v19  ;;  %v14573_v36 = vpop.f32.mrb[86].mxu0  ;;  %v14717_v15 = vand.u32 4294901760, %v14716_v56 }
0x246e   :  { %25286 = verf.f32 %v14589_v25  ;;  %v24762_v37 = vadd.f32 %v14573_v36, %v13835_v14  ;;  %v22384_v9 = vpop.f32.mrb[87].mxu0 }
0x246f   :  { %v27646_v59 = vpack.c.bf16 %v14626_v62, %v14623_v0  ;;  %v14723_v57 = vsub.f32 %v14606_v40, %v14626_v62  ;;  %v14607_v53 = vmul.f32 %v14600_v26, %v14579_v35  ;;  %v14718_v6 = vsub.f32 %v14716_v56, %v14717_v15 }
0x2470   :  { %v25283_v13 = vpop.eup %25282  ;;  %v14590_v1 = vmul.f32 0.70710677, %v24762_v37  ;;  %v14583_v19 = vmul.f32 0.5, %v24762_v37  ;;  %v14707_v26 = vsub.f32 %v27658_v54, %v14706_v47  ;;  %v12527_v37 = vand.u32 4294901760, %v12509_v20 }
0x2471   :  { %v14629_v4 = vand.u32 4294901760, %v14607_v53  ;;  %v14601_v31 = vadd.f32 1.0, %v25283_v13  ;;  %24288 = vmatprep.subr.bf16.mxu0 %v27646_v59  ;;  %v14724_v43 = vand.u32 4294901760, %v14723_v57  ;;  %v27653_v29 = vpack.c.bf16 %v14723_v57, %v14716_v56  ;;  %v12510_v13 = vld [vmem:[#allocation4 + $0x5c0] sm:$0xff] }
0x2472   :  { %25288 = verf.f32 %v14590_v1  ;;  %24290 = vmatpush3.bf16.msra.mxu0 %v27646_v59  ;;  %v14719_v16 = vand.u32 4294901760, %v14718_v6 }
0x2473   :  { %v14730_v46 = vsub.f32 %v14607_v53, %v14629_v4  ;;  %v14608_v24 = vmul.f32 %v14601_v31, %v14580_v3  ;;  %v14725_v63 = vsub.f32 %v14723_v57, %v14724_v43  ;;  %v27655_v32 = vpack.c.bf16 %v14724_v43, %v14717_v15  ;;  %v12508_v53 = vld [vmem:[#allocation4 + $0x5b0] sm:$0xff] }
0x2474   :  { %v25285_v41 = vpop.eup %25284  ;;  %v12524_v6 = vand.u32 4294901760, %v12508_v53  ;;  %v12530_v3 = vand.u32 4294901760, %v12510_v13 }
0x2475   :  { %v14632_v30 = vand.u32 4294901760, %v14608_v24  ;;  %v14602_v61 = vadd.f32 1.0, %v25285_v41  ;;  %v14726_v50 = vand.u32 4294901760, %v14725_v63  ;;  %v14731_v23 = vand.u32 4294901760, %v14730_v46 }
0x2476   :  { %v14708_v63 = vand.u32 4294901760, %v14707_v26  ;;  %v27678_v41 = vpack.c.bf16 %v12527_v37, %v12524_v6 }
0x2477   :  { %v27660_v10 = vpack.c.bf16 %v14632_v30, %v14629_v4  ;;  %v14737_v27 = vsub.f32 %v14608_v24, %v14632_v30  ;;  %v14609_v28 = vmul.f32 %v14602_v61, %v14581_v55  ;;  %v24299_v22 = vpack.c.bf16 %v14726_v50, %v14719_v16  ;;  %v12511_v4 = vld [vmem:[#allocation4 + $0x5c8] sm:$0xff] }
0x2478   :  { %v25287_v7 = vpop.eup %25286  ;;  %v14732_v5 = vsub.f32 %v14730_v46, %v14731_v23  ;;  %v12533_v24 = vand.u32 4294901760, %v12511_v4  ;;  %24030 = vmatprep.subr.bf16.mxu1 %v27678_v41 }
0x2479   :  { %v14635_v12 = vand.u32 4294901760, %v14609_v28  ;;  %v14603_v0 = vadd.f32 1.0, %v25287_v7  ;;  %24292 = vmatprep.subr.bf16.mxu0 %v27660_v10  ;;  %v14738_v8 = vand.u32 4294901760, %v14737_v27  ;;  %v27663_v18 = vpack.c.bf16 %v14737_v27, %v14730_v46  ;;  %24032 = vmatpush3.bf16.msra.mxu1 %v27678_v41 }
0x247a   :  { %24294 = vmatpush3.bf16.msra.mxu0 %v27660_v10  ;;  %v14733_v49 = vand.u32 4294901760, %v14732_v5  ;;  %v27684_v61 = vpack.c.bf16 %v12533_v24, %v12530_v3  ;;  %v12614_v7 = vsub.f32 %v12508_v53, %v12524_v6 }
0x247b   :  { %v14744_v42 = vsub.f32 %v14609_v28, %v14635_v12  ;;  %v14610_v17 = vmul.f32 %v14603_v0, %v14582_v48  ;;  %v14739_v56 = vsub.f32 %v14737_v27, %v14738_v8  ;;  %v27667_v40 = vpack.c.bf16 %v14738_v8, %v14731_v23 }
0x247c   :  { %v25289_v14 = vpop.eup %25288  ;;  %24034 = vmatprep.subr.bf16.mxu1 %v27684_v61  ;;  %v12621_v48 = vsub.f32 %v12509_v20, %v12527_v37  ;;  %v12615_v5 = vand.u32 4294901760, %v12614_v7  ;;  %v18506_v20 = vld [vmem:[#allocation4 + $0x5a8] ss:$0 sm:$0xff] }
0x247d   :  { %v14638_v25 = vand.u32 4294901760, %v14610_v17  ;;  %v14604_v44 = vadd.f32 1.0, %v25289_v14  ;;  %v14740_v62 = vand.u32 4294901760, %v14739_v56  ;;  %v14745_v35 = vand.u32 4294901760, %v14744_v42  ;;  %24036 = vmatpush3.bf16.msra.mxu1 %v27684_v61 }
0x247e   :  { %v12616_v8 = vsub.f32 %v12614_v7, %v12615_v5 }
0x247f   :  { %v27672_v36 = vpack.c.bf16 %v14638_v25, %v14635_v12  ;;  %v14751_v15 = vsub.f32 %v14610_v17, %v14638_v25  ;;  %v14611_v9 = vmul.f32 %v14604_v44, %v14583_v19  ;;  %v24303_v57 = vpack.c.bf16 %v14740_v62, %v14733_v49 }
0x2480   :  { %v14746_v1 = vsub.f32 %v14744_v42, %v14745_v35  ;;  %v12622_v12 = vand.u32 4294901760, %v12621_v48  ;;  %v12635_v17 = vsub.f32 %v12511_v4, %v12533_v24  ;;  %v12617_v14 = vand.u32 4294901760, %v12616_v8 }
0x2481   :  { %v27674_v31 = vand.u32 4294901760, %v14611_v9  ;;  %24296 = vmatprep.subr.bf16.mxu0 %v27672_v36  ;;  %v14752_v43 = vand.u32 4294901760, %v14751_v15  ;;  %v24319_v46 = vpack.c.bf16 %v14751_v15, %v14744_v42  ;;  %v12628_v42 = vsub.f32 %v12510_v13, %v12530_v3 }
0x2482   :  { %24298 = vmatpush3.bf16.msra.mxu0 %v27672_v36  ;;  %v14747_v50 = vand.u32 4294901760, %v14746_v1  ;;  %v12623_v56 = vsub.f32 %v12621_v48, %v12622_v12  ;;  %v12636_v49 = vand.u32 4294901760, %v12635_v17 }
0x2483   :  { %v14758_v55 = vsub.f32 %v14611_v9, %v27674_v31  ;;  %22397 = vmatprep.subr.mxu0 %v27674_v31  ;;  %v14753_v16 = vsub.f32 %v14751_v15, %v14752_v43  ;;  %v27682_v30 = vpack.c.bf16 %v14752_v43, %v14745_v35  ;;  %v12629_v19 = vand.u32 4294901760, %v12628_v42 }
0x2484   :  { %v12637_v62 = vsub.f32 %v12635_v17, %v12636_v49  ;;  %v27707_v53 = vpack.c.bf16 %v12635_v17, %v12628_v42 }
0x2485   :  { %v14754_v23 = vand.u32 4294901760, %v14753_v16  ;;  %v27690_v28 = vand.u32 4294901760, %v14758_v55  ;;  %v12630_v44 = vsub.f32 %v12628_v42, %v12629_v19  ;;  %v27784_v42 = vld [vmem:[#allocation4 + $0x600] sm:$0xff] }
0x2486   :  { %22398 = vmatpush3.msra.mxu0 %v27674_v31  ;;  %v12638_v15 = vand.u32 4294901760, %v12637_v62  ;;  %v13098_v17 = vand.u32 4294901760, %v27784_v42  ;;  %v27812_v62 = vld [vmem:[#allocation4 + $0x620] sm:$0xff] }
0x2487   :  { %24300 = vmatprep.subr.bf16.mxu0 %v24299_v22  ;;  %22400 = vmatmul.mubr.f32.vlgmr.msra.gmra.mrb[88].mxu0 %v14708_v63  ;;  %v24307_v27 = vpack.c.bf16 %v14754_v23, %v14747_v50  ;;  %v14760_v0 = vsub.f32 %v14758_v55, %v27690_v28  ;;  %v12631_v26 = vand.u32 4294901760, %v12630_v44  ;;  %v13062_v23 = vld [vmem:[#allocation4 + $0x5e0] sm:$0xff]  ;;  %v27810_v44 = vld [vmem:[#allocation4 + $0x618] sm:$0xff] }
0x2488   :  { %24302 = vmatpush3.bf16.msra.mxu0 %v24299_v22  ;;  %22416 = vmatprep.mubr.f32.mxu0 %v27625_v2  ;;  %v12624_v22 = vand.u32 4294901760, %v12623_v56 }
0x2489   :  { %24304 = vmatprep.subr.bf16.mxu0 %v24303_v57  ;;  %v14761_v25 = vand.u32 4294901760, %v14760_v0  ;;  %v27698_v9 = vpack.c.bf16 %v12638_v15, %v12631_v26  ;;  %v13110_v26 = vand.u32 4294901760, %v27812_v62 }
0x248a   :  { %v27695_v35 = vpack.c.bf16 %v12624_v22, %v12617_v14  ;;  %v27796_v14 = vld [vmem:[#allocation4 + $0x608] sm:$0xff] }
0x248c   :  { %24306 = vmatpush3.bf16.msra.mxu0 %v24303_v57  ;;  %24038 = vmatprep.subr.bf16.mxu1 %v27695_v35  ;;  %v27705_v57 = vpack.c.bf16 %v12621_v48, %v12614_v7  ;;  %v13063_v48 = vld [vmem:[#allocation4 + $0x5e8] sm:$0xff] }
0x248d   :  { %24308 = vmatprep.subr.bf16.mxu0 %v24307_v27 }
0x2490   :  { %24310 = vmatpush3.bf16.msra.mxu0 %v24307_v27 }
0x2491   :  { %22414 = vmatprep.subr.mxu0 %v14761_v25 }
0x2494   :  { %22415 = vmatpush3.msra.mxu0 %v14761_v25 }
0x2495   :  { %24312 = vmatprep.subr.bf16.mxu0 %v27653_v29  ;;  %22417 = vmatmul.mubr.f32.vlgmr.msra.gmra.mrb[88].mxu0 %v27651_v60 }
0x2496   :  { %24314 = vmatpush3.bf16.msra.mxu0 %v27653_v29  ;;  %22433 = vmatprep.mubr.f32.mxu0 %v27628_v34  ;;  %v27716_v29 = vpack.c.bf16 %v12622_v12, %v12615_v5  ;;  %v27777_v5 = vld [vmem:[#allocation4 + $0x5f0] sm:$0xff]  ;;  %v13089_v12 = vand.u32 4294901760, %v13063_v48 }
0x2497   :  { %24316 = vmatprep.subr.bf16.mxu0 %v27663_v18  ;;  %v13092_v0 = vand.u32 4294901760, %v27777_v5 }
0x2499   :  { %v27780_v8 = vpack.c.bf16 %v13092_v0, %v13089_v12 }
0x249a   :  { %24318 = vmatpush3.bf16.msra.mxu0 %v27663_v18  ;;  %v27720_v18 = vpack.c.bf16 %v12636_v49, %v12629_v19  ;;  %v27798_v19 = vld [vmem:[#allocation4 + $0x610] sm:$0xff]  ;;  %v13101_v49 = vand.u32 4294901760, %v27796_v14 }
0x249b   :  { %24320 = vmatprep.subr.bf16.mxu0 %v24319_v46  ;;  %v13104_v22 = vand.u32 4294901760, %v27798_v19 }
0x249d   :  { %v27808_v25 = vpack.c.bf16 %v13104_v22, %v13101_v49 }
0x249e   :  { %24322 = vmatpush3.bf16.msra.mxu0 %v24319_v46 }
0x249f   :  { %22431 = vmatprep.subr.mxu0 %v14758_v55 }
0x24a2   :  { %22432 = vmatpush3.msra.mxu0 %v14758_v55 }
0x24a3   :  { %24324 = vmatprep.subr.bf16.mxu0 %v27646_v59  ;;  %22434 = vmatmul.mubr.f32.vlgmr.msra.gmra.mrb[88].mxu0 %v27658_v54 }
0x24a4   :  { %24326 = vmatpush3.bf16.msra.mxu0 %v27646_v59  ;;  %22450 = vmatprep.mubr.f32.mxu0 %v14696_v38 }
0x24a5   :  { %24328 = vmatprep.subr.bf16.mxu0 %v27660_v10 }
0x24a8   :  { %24330 = vmatpush3.bf16.msra.mxu0 %v27660_v10 }
0x24a9   :  { %24332 = vmatprep.subr.bf16.mxu0 %v27672_v36 }
0x24ac   :  { %24334 = vmatpush3.bf16.msra.mxu0 %v27672_v36 }
0x24ad   :  { %22448 = vmatprep.subr.mxu0 %v27674_v31 }
0x24b0   :  { %22449 = vmatpush3.msra.mxu0 %v27674_v31 }
0x24b1   :  { %24336 = vmatprep.subr.bf16.mxu0 %v27655_v32  ;;  %22451 = vmatmul.mubr.f32.vlgmr.msra.gmra.mrb[88].mxu0 %v14706_v47  ;;  %v18505_v47 = vld [vmem:[#allocation4 + $0x5a0] ss:$0 sm:$0xff] }
0x24b2   :  { %24338 = vmatpush3.bf16.msra.mxu0 %v27655_v32  ;;  %22467 = vmatprep.mubr.f32.mxu0 %v27625_v2 }
0x24b3   :  { %24340 = vmatprep.subr.bf16.mxu0 %v27667_v40 }
0x24b6   :  { %24342 = vmatpush3.bf16.msra.mxu0 %v27667_v40 }
0x24b7   :  { %24344 = vmatprep.subr.bf16.mxu0 %v27682_v30 }
0x24ba   :  { %24346 = vmatpush3.bf16.msra.mxu0 %v27682_v30 }
0x24bb   :  { %22465 = vmatprep.subr.mxu0 %v27690_v28 }
0x24be   :  { %22466 = vmatpush3.msra.mxu0 %v27690_v28  ;;  %v13086_v28 = vand.u32 4294901760, %v13062_v23 }
0x24bf   :  { %24348 = vmatprep.subr.bf16.mxu0 %v27646_v59  ;;  %22468 = vmatmul.mubr.f32.vlgmr.msra.gmra.mrb[88].mxu0 %v27651_v60 }
0x24c0   :  { %24350 = vmatpush3.bf16.msra.mxu0 %v27646_v59  ;;  %22484 = vmatprep.mubr.f32.mxu0 %v27625_v2 }
0x24c1   :  { %24352 = vmatprep.subr.bf16.mxu0 %v27660_v10 }
0x24c4   :  { %24354 = vmatpush3.bf16.msra.mxu0 %v27660_v10 }
0x24c5   :  { %24356 = vmatprep.subr.bf16.mxu0 %v27672_v36 }
0x24c8   :  { %24358 = vmatpush3.bf16.msra.mxu0 %v27672_v36 }
0x24c9   :  { %22482 = vmatprep.subr.mxu0 %v27674_v31 }
0x24cc   :  { %22483 = vmatpush3.msra.mxu0 %v27674_v31 }
0x24cd   :  { %22485 = vmatmul.mubr.f32.vlgmr.msra.gmra.mrb[88].mxu0 %v27651_v60  ;;  %24599 = vmatprep.subr.bf16.mxu0 %v28760_v45 }
0x24ce   :  { %22767 = vmatprep.mubr.msk.f32.mxu0 %vm25371_vm0, %v28761_v51 }
0x24ed   :  { %v12487_v2 = vpop.xlane.xlu1 %12486 }
0x24ee   :  { %v12489_v34 = vmul.f32 0.03125, %v12487_v2  ;;  %v12484_v38 = vpop.xlane.xlu0 %12483  ;;  %v14615_v2 = vld [vmem:[#allocation4 + $0x708] sm:$0x3f] }
0x24ef   :  { %v12488_v59 = vmul.f32 0.03125, %v12484_v38  ;;  %v27840_v38 = vld [vmem:[#allocation4 + $0x640] sm:$0xff] }
0x24f0   :  { %v12491_v32 = vadd.f32 1e-05, %v12489_v34  ;;  %v27838_v34 = vld [vmem:[#allocation4 + $0x638] sm:$0xff] }
0x24f1   :  { %v12490_v54 = vadd.f32 1e-05, %v12488_v59  ;;  %v14614_v59 = vld [vmem:[#allocation4 + $0x700] sm:$0xff] }
0x24f2   :  { %25290 = vrsqrt.f32 %v12491_v32  ;;  %v13119_v32 = vand.u32 4294901760, %v27838_v34 }
0x24f3   :  { %25292 = vrsqrt.f32 %v12490_v54  ;;  %v13122_v54 = vand.u32 4294901760, %v27840_v38 }
0x24fc   :  { %v25291_v10 = vpop.eup %25290 }
0x24fd   :  { %v25293_v40 = vpop.eup %25292  ;;  %v12495_v36 = vmul.f32 %v25291_v10, %v27635_v58 }
0x24fe   :  { %v12494_v60 = vmul.f32 %v25293_v40, %v27638_v11  ;;  %v13061_v11 = vld [vmem:[#allocation4 + $0x5d8] sm:$0xff] }
0x24ff   :  { %v12501_v13 = vmul.f32 %v18505_v47, %v12495_v36  ;;  %v13083_v27 = vand.u32 4294901760, %v13061_v11  ;;  %v27850_v36 = vpack.c.bf16 %v13122_v54, %v13119_v32 }
0x2500   :  { %v12500_v1 = vmul.f32 %v18505_v47, %v12494_v60 }
0x2501   :  { %v12507_v6 = vadd.f32 %v18506_v20, %v12501_v13  ;;  %v27772_v7 = vpack.c.bf16 %v13086_v28, %v13083_v27  ;;  %v27852_v60 = vsub.f32 %v13061_v11, %v13083_v27 }
0x2502   :  { %v12506_v37 = vadd.f32 %v18506_v20, %v12500_v1  ;;  %v27854_v20 = vsub.f32 %v13062_v23, %v13086_v28  ;;  %v27856_v1 = vld [vmem:[#allocation4 + $0x648] sm:$0xff] }
0x2503   :  { %v12521_v4 = vsel %vm1997_vm6, %v12507_v6, 0  ;;  %v27858_v6 = vld [vmem:[#allocation4 + $0x650] sm:$0xff] }
0x2504   :  { %v12518_v3 = vsel %vm1997_vm6, %v12506_v37, 0  ;;  %v12602_v31 = vand.u32 4294901760, %v12521_v4 }
0x2505   :  { %v12592_v43 = vand.u32 4294901760, %v12518_v3 }
0x2506   :  { %v12603_v46 = vsub.f32 %v12521_v4, %v12602_v31  ;;  %v13125_v4 = vand.u32 4294901760, %v27856_v1 }
0x2507   :  { %v12593_v24 = vsub.f32 %v12518_v3, %v12592_v43  ;;  %v13128_v3 = vand.u32 4294901760, %v27858_v6 }
0x2508   :  { %v12604_v63 = vand.u32 4294901760, %v12603_v46 }
0x2509   :  { %v12594_v55 = vand.u32 4294901760, %v12593_v24 }
0x250a   :  { %v12605_v16 = vsub.f32 %v12603_v46, %v12604_v63 }
0x250b   :  { %v12595_v30 = vsub.f32 %v12593_v24, %v12594_v55 }
0x250c   :  { %v12606_v50 = vand.u32 4294901760, %v12605_v16 }
0x250d   :  { %v12596_v58 = vand.u32 4294901760, %v12595_v30  ;;  %v27891_v30 = vsub.f32 %v27777_v5, %v13092_v0 }
0x250f   :  { %21967 = vmatprep.mubr.f32.mxu1 %v12596_v58  ;;  %v28731_v23 = vand.u32 4294901760, %v27891_v30 }
0x2510   :  { %21968 = vmatmul.mubr.f32.vlgmr.msra.gmra.mrb[66].mxu1 %v12606_v50 }
0x2511   :  { %24040 = vmatpush3.bf16.msra.mxu1 %v27695_v35  ;;  %21978 = vmatprep.mubr.f32.mxu1 %v12592_v43  ;;  %v13107_v35 = vand.u32 4294901760, %v27810_v44 }
0x2512   :  { %24042 = vmatprep.subr.bf16.mxu1 %v27698_v9 }
0x2513   :  { %v27822_v15 = vpack.c.bf16 %v13110_v26, %v13107_v35 }
0x2515   :  { %24044 = vmatpush3.bf16.msra.mxu1 %v27698_v9  ;;  %v27824_v9 = vld [vmem:[#allocation4 + $0x628] sm:$0xff] }
0x2516   :  { %24046 = vmatprep.subr.bf16.mxu1 %v27705_v57 }
0x2518   :  { %21979 = vmatmul.mubr.f32.vlgmr.msra.gmra.mrb[66].mxu1 %v12602_v31 }
0x2519   :  { %24048 = vmatpush3.bf16.msra.mxu1 %v27705_v57  ;;  %21989 = vmatprep.mubr.f32.mxu1 %v12593_v24  ;;  %v27826_v57 = vld [vmem:[#allocation4 + $0x630] sm:$0xff] }
0x251a   :  { %24050 = vmatprep.subr.bf16.mxu1 %v27707_v53 }
0x251d   :  { %24052 = vmatpush3.bf16.msra.mxu1 %v27707_v53  ;;  %v13113_v53 = vand.u32 4294901760, %v27824_v9 }
0x251e   :  { %24054 = vmatprep.subr.bf16.mxu1 %v27678_v41 }
0x2520   :  { %21990 = vmatmul.mubr.f32.vlgmr.msra.gmra.mrb[66].mxu1 %v12603_v46  ;;  %v28733_v46 = vand.u32 4294901760, %v27854_v20 }
0x2521   :  { %24056 = vmatpush3.bf16.msra.mxu1 %v27678_v41  ;;  %22000 = vmatprep.mubr.f32.mxu1 %v12594_v55  ;;  %v27883_v55 = vsub.f32 %v13063_v48, %v13089_v12  ;;  %v27908_v48 = vsub.f32 %v27784_v42, %v13098_v17  ;;  %v13208_v12 = vsub.f32 %v27891_v30, %v28731_v23 }
0x2522   :  { %24058 = vmatprep.subr.bf16.mxu1 %v27684_v61  ;;  %v13194_v16 = vsub.f32 %v27854_v20, %v28733_v46 }
0x2523   :  { %v28732_v50 = vand.u32 4294901760, %v27883_v55 }
0x2524   :  { %v13195_v11 = vand.u32 4294901760, %v13194_v16 }
0x2525   :  { %24060 = vmatpush3.bf16.msra.mxu1 %v27684_v61  ;;  %v13201_v27 = vsub.f32 %v27883_v55, %v28732_v50 }
0x2526   :  { %24062 = vmatprep.subr.bf16.mxu1 %v27716_v29 }
0x2527   :  { %v13202_v0 = vand.u32 4294901760, %v13201_v27 }
0x2528   :  { %22001 = vmatmul.mubr.f32.vlgmr.msra.gmra.mrb[66].mxu1 %v12604_v63 }
0x2529   :  { %24064 = vmatpush3.bf16.msra.mxu1 %v27716_v29  ;;  %22011 = vmatprep.mubr.f32.mxu1 %v12592_v43  ;;  %v13116_v29 = vand.u32 4294901760, %v27826_v57 }
0x252a   :  { %24066 = vmatprep.subr.bf16.mxu1 %v27720_v18 }
0x252d   :  { %24068 = vmatpush3.bf16.msra.mxu1 %v27720_v18  ;;  %v27836_v18 = vpack.c.bf16 %v13116_v29, %v13113_v53 }
0x252e   :  { %24070 = vmatprep.subr.bf16.mxu1 %v27678_v41 }
0x2530   :  { %22012 = vmatmul.mubr.f32.vlgmr.msra.gmra.mrb[66].mxu1 %v12602_v31 }
0x2531   :  { %24072 = vmatpush3.bf16.msra.mxu1 %v27678_v41  ;;  %22022 = vmatprep.mubr.f32.mxu1 %v12592_v43  ;;  %v27782_v41 = vld [vmem:[#allocation4 + $0x5f8] sm:$0xff] }
0x2532   :  { %24074 = vmatprep.subr.bf16.mxu1 %v27684_v61 }
0x2535   :  { %24076 = vmatpush3.bf16.msra.mxu1 %v27684_v61  ;;  %v13095_v61 = vand.u32 4294901760, %v27782_v41 }
0x2536   :  { %24078 = vmatprep.subr.bf16.mxu1 %v27772_v7 }
0x2537   :  { %v27794_v56 = vpack.c.bf16 %v13098_v17, %v13095_v61  ;;  %v27903_v28 = vsub.f32 %v27782_v41, %v13095_v61  ;;  %v13209_v41 = vand.u32 4294901760, %v13208_v12  ;;  %v27927_v17 = vsub.f32 %v27796_v14, %v13101_v49 }
0x2538   :  { %22023 = vmatmul.mubr.f32.vlgmr.msra.gmra.mrb[66].mxu1 %v12602_v31  ;;  %v13186_v31 = vand.u32 4294901760, %v27852_v60 }
0x2539   :  { %24080 = vmatpush3.bf16.msra.mxu1 %v27772_v7 }
0x253a   :  { %24082 = vmatprep.subr.bf16.mxu1 %v27780_v8  ;;  %v13187_v63 = vsub.f32 %v27852_v60, %v13186_v31 }
0x253c   :  { %v13188_v58 = vand.u32 4294901760, %v13187_v63 }
0x253d   :  { %24084 = vmatpush3.bf16.msra.mxu1 %v27780_v8 }
0x253e   :  { %24086 = vmatprep.subr.bf16.mxu1 %v27794_v56  ;;  %v27910_v5 = vpack.c.bf16 %v13195_v11, %v13188_v58 }
0x2541   :  { %24088 = vmatpush3.bf16.msra.mxu1 %v27794_v56 }
0x2542   :  { %24090 = vmatprep.subr.bf16.mxu1 %v27808_v25 }
0x2545   :  { %24092 = vmatpush3.bf16.msra.mxu1 %v27808_v25 }
0x2546   :  { %24094 = vmatprep.subr.bf16.mxu1 %v27822_v15 }
0x2549   :  { %24096 = vmatpush3.bf16.msra.mxu1 %v27822_v15 }
0x254a   :  { %24098 = vmatprep.subr.bf16.mxu1 %v27836_v18 }
0x254d   :  { %24100 = vmatpush3.bf16.msra.mxu1 %v27836_v18 }
0x254e   :  { %24102 = vmatprep.subr.bf16.mxu1 %v27850_v36 }
0x2551   :  { %24104 = vmatpush3.bf16.msra.mxu1 %v27850_v36 }
0x25a0   :  { %v22486_v10 = vpop.f32.mrb[88].mxu0 }
0x25a1   :  { %v24763_v47 = vadd.f32 %v22486_v10, %v14615_v2  ;;  %v15179_v40 = vpop.f32.mrb[89].mxu0  ;;  %v28730_v2 = vand.u32 4294901760, %v27903_v28  ;;  %v27932_v10 = vsub.f32 %v27798_v19, %v13104_v22  ;;  %v27949_v19 = vsub.f32 %v27810_v44, %v13107_v35 }
0x25a2   :  { %v24764_v13 = vadd.f32 %v15179_v40, %v14614_v59  ;;  %v28729_v59 = vand.u32 4294901760, %v27908_v48  ;;  %v27954_v22 = vsub.f32 %v27812_v62, %v13110_v26  ;;  %v27966_v44 = vsub.f32 %v27824_v9, %v13113_v53 }
0x25a3   :  { %v27861_v37 = vadd.f32 %v24763_v47, %v27101_v33  ;;  %v27878_v33 = vpack.c.bf16 %v13128_v3, %v13125_v4  ;;  %v13215_v61 = vsub.f32 %v27903_v28, %v28730_v2  ;;  %v27934_v47 = vpack.c.bf16 %v13209_v41, %v13202_v0 }
0x25a4   :  { %v27868_v43 = vadd.f32 %v24764_v13, %v27103_v52  ;;  %v13222_v42 = vsub.f32 %v27908_v48, %v28729_v59  ;;  %v28727_v63 = vand.u32 4294901760, %v27932_v10  ;;  %v28726_v11 = vand.u32 4294901760, %v27949_v19 }
0x25a5   :  { %v15196_v24 = vsel %vm8311_vm7, %v27861_v37, 0.0  ;;  %24106 = vmatprep.subr.bf16.mxu1 %v27878_v33  ;;  %v13216_v40 = vand.u32 4294901760, %v13215_v61  ;;  %v28725_v27 = vand.u32 4294901760, %v27954_v22  ;;  %v27971_v62 = vsub.f32 %v27826_v57, %v13116_v29 }
0x25a6   :  { %15197 = vadd.xlane.f32.xlu1 %v15196_v24  ;;  %v15193_v52 = vsel %vm1997_vm6, %v27868_v43, 0.0  ;;  %24108 = vmatpush3.bf16.msra.mxu1 %v27878_v33  ;;  %v13223_v13 = vand.u32 4294901760, %v13222_v42  ;;  %v28728_v24 = vand.u32 4294901760, %v27927_v17  ;;  %v13236_v49 = vsub.f32 %v27932_v10, %v28727_v63 }
0x25a7   :  { %15194 = vadd.xlane.f32.xlu0 %v15193_v52  ;;  %24110 = vmatprep.subr.bf16.mxu1 %v27910_v5  ;;  %v13243_v0 = vsub.f32 %v27949_v19, %v28726_v11  ;;  %v13250_v35 = vsub.f32 %v27954_v22, %v28725_v27  ;;  %v28724_v41 = vand.u32 4294901760, %v27966_v44  ;;  %v28723_v61 = vand.u32 4294901760, %v27971_v62 }
0x25a8   :  { %v27938_v52 = vpack.c.bf16 %v13223_v13, %v13216_v40  ;;  %v13229_v14 = vsub.f32 %v27927_v17, %v28728_v24  ;;  %v13237_v58 = vand.u32 4294901760, %v13236_v49  ;;  %v27987_v57 = vsub.f32 %v27838_v34, %v13119_v32 }
0x25a9   :  { %v13244_v26 = vand.u32 4294901760, %v13243_v0  ;;  %v13251_v42 = vand.u32 4294901760, %v13250_v35  ;;  %v13257_v9 = vsub.f32 %v27966_v44, %v28724_v41  ;;  %v13264_v53 = vsub.f32 %v27971_v62, %v28723_v61 }
0x25aa   :  { %v13230_v16 = vand.u32 4294901760, %v13229_v14  ;;  %v27992_v29 = vsub.f32 %v27840_v38, %v13122_v54  ;;  %v28722_v49 = vand.u32 4294901760, %v27987_v57  ;;  %v28009_v38 = vsub.f32 %v27856_v1, %v13125_v4 }
0x25ab   :  { %v27994_v40 = vpack.c.bf16 %v13251_v42, %v13244_v26  ;;  %v13258_v13 = vand.u32 4294901760, %v13257_v9  ;;  %v13265_v14 = vand.u32 4294901760, %v13264_v53  ;;  %v28014_v54 = vsub.f32 %v27858_v6, %v13128_v3 }
0x25ac   :  { %v27958_v12 = vpack.c.bf16 %v13237_v58, %v13230_v16  ;;  %v28721_v16 = vand.u32 4294901760, %v27992_v29  ;;  %v13271_v34 = vsub.f32 %v27987_v57, %v28722_v49  ;;  %v28720_v26 = vand.u32 4294901760, %v28009_v38 }
0x25ad   :  { %v27998_v58 = vpack.c.bf16 %v13265_v14, %v13258_v13  ;;  %v28719_v42 = vand.u32 4294901760, %v28014_v54  ;;  %v28030_v3 = vpack.c.bf16 %v27854_v20, %v27852_v60  ;;  %v28034_v14 = vpack.c.bf16 %v27891_v30, %v27883_v55 }
0x25ae   :  { %v13278_v32 = vsub.f32 %v27992_v29, %v28721_v16  ;;  %v13272_v0 = vand.u32 4294901760, %v13271_v34  ;;  %v13285_v53 = vsub.f32 %v28009_v38, %v28720_v26  ;;  %v28038_v34 = vpack.c.bf16 %v27908_v48, %v27903_v28 }
0x25af   :  { %v13292_v1 = vsub.f32 %v28014_v54, %v28719_v42  ;;  %v28765_v60 = vand.u32 4294901760, %v27903_v28  ;;  %v28771_v28 = vand.u32 4294901760, %v27966_v44 }
0x25b0   :  { %v13279_v35 = vand.u32 4294901760, %v13278_v32  ;;  %v13286_v4 = vand.u32 4294901760, %v13285_v53  ;;  %v28042_v32 = vpack.c.bf16 %v27932_v10, %v27927_v17  ;;  %v28054_v53 = vpack.c.bf16 %v27992_v29, %v27987_v57 }
0x25b1   :  { %v13293_v13 = vand.u32 4294901760, %v13292_v1  ;;  %v28058_v1 = vpack.c.bf16 %v28014_v54, %v28009_v38 }
0x25b2   :  { %v28018_v9 = vpack.c.bf16 %v13279_v35, %v13272_v0  ;;  %v28046_v0 = vpack.c.bf16 %v27954_v22, %v27949_v19  ;;  %v28050_v35 = vpack.c.bf16 %v27971_v62, %v27966_v44  ;;  %v15231_v44 = vld [vmem:[#allocation4 + $0x720] sm:$0xff] }
0x25b3   :  { %v28026_v6 = vpack.c.bf16 %v13293_v13, %v13286_v4  ;;  %v18507_v4 = vld [vmem:[#allocation4 + $0x5d0] ss:$0 sm:$0xff] }
0x260b   :  { %v22024_v13 = vpop.f32.mrb[66].mxu1 }
0x260c   :  { %v24752_v42 = vadd.f32 %v22024_v13, %v18507_v4  ;;  %v13041_v26 = vpop.f32.mrb[67].mxu1 }
0x260d   :  { %v24753_v16 = vadd.f32 %v18507_v4, %v13041_v26 }
0x260e   :  { %v13054_v49 = vmul.f32 0.70710677, %v24752_v42  ;;  %v13052_v11 = vmul.f32 0.5, %v24752_v42 }
0x260f   :  { %v13053_v61 = vmul.f32 0.70710677, %v24753_v16  ;;  %v13051_v24 = vmul.f32 0.5, %v24753_v16 }
0x2610   :  { %25294 = verf.f32 %v13054_v49 }
0x2611   :  { %25296 = verf.f32 %v13053_v61 }
0x261a   :  { %v25295_v41 = vpop.eup %25294 }
0x261b   :  { %v25297_v27 = vpop.eup %25296  ;;  %v13058_v63 = vadd.f32 1.0, %v25295_v41 }
0x261c   :  { %v13057_v59 = vadd.f32 1.0, %v25297_v27 }
0x261d   :  { %v13060_v2 = vmul.f32 %v13058_v63, %v13052_v11 }
0x261e   :  { %v13059_v23 = vmul.f32 %v13057_v59, %v13051_v24 }
0x261f   :  { %v28060_v50 = vand.u32 4294901760, %v13060_v2 }
0x2620   :  { %v28062_v46 = vand.u32 4294901760, %v13059_v23 }
0x2621   :  { %v28065_v13 = vsub.f32 %v13060_v2, %v28060_v50 }
0x2622   :  { %v13164_v26 = vsub.f32 %v13059_v23, %v28062_v46 }
0x2623   :  { %v13175_v49 = vand.u32 4294901760, %v28065_v13 }
0x2624   :  { %v13165_v61 = vand.u32 4294901760, %v13164_v26 }
0x2625   :  { %v13176_v41 = vsub.f32 %v28065_v13, %v13175_v49 }
0x2626   :  { %v13166_v16 = vsub.f32 %v13164_v26, %v13165_v61 }
0x2627   :  { %v13177_v63 = vand.u32 4294901760, %v13176_v41 }
0x2628   :  { %v13167_v27 = vand.u32 4294901760, %v13166_v16 }
0x262a   :  { %22057 = vmatprep.mubr.f32.mxu1 %v13167_v27 }
0x262b   :  { %22058 = vmatmul.mubr.f32.vlgmr.msra.gmra.mrb[68].mxu1 %v13177_v63 }
0x262c   :  { %24112 = vmatpush3.bf16.msra.mxu1 %v27910_v5  ;;  %22092 = vmatprep.mubr.f32.mxu1 %v28062_v46 }
0x262d   :  { %24114 = vmatprep.subr.bf16.mxu1 %v27934_v47 }
0x2630   :  { %24116 = vmatpush3.bf16.msra.mxu1 %v27934_v47 }
0x2631   :  { %24118 = vmatprep.subr.bf16.mxu1 %v27938_v52 }
0x2633   :  { %v15198_v23 = vpop.xlane.xlu1 %15197 }
0x2634   :  { %v15200_v2 = vmul.f32 0.03125, %v15198_v23  ;;  %24120 = vmatpush3.bf16.msra.mxu1 %v27938_v52  ;;  %v15195_v59 = vpop.xlane.xlu0 %15194 }
0x2635   :  { %v15199_v24 = vmul.f32 0.03125, %v15195_v59  ;;  %24122 = vmatprep.subr.bf16.mxu1 %v27958_v12  ;;  %v18513_v59 = vld [vmem:[#allocation4 + $0x710] ss:$0 sm:$0xff] }
0x2636   :  { %v28080_v11 = vsub.f32 %v27861_v37, %v15200_v2 }
0x2637   :  { %v28083_v5 = vsub.f32 %v27868_v43, %v15199_v24 }
0x2638   :  { %24124 = vmatpush3.bf16.msra.mxu1 %v27958_v12  ;;  %v15204_v47 = vmul.f32 %v28080_v11, %v28080_v11  ;;  %v28762_v12 = vand.u32 4294901760, %v27854_v20  ;;  %v28766_v20 = vand.u32 4294901760, %v27908_v48  ;;  %v28772_v48 = vand.u32 4294901760, %v27971_v62  ;;  %v15232_v62 = vld [vmem:[#allocation4 + $0x728] sm:$0xff] }
0x2639   :  { %24126 = vmatprep.subr.bf16.mxu1 %v27994_v40  ;;  %v15203_v52 = vmul.f32 %v28083_v5, %v28083_v5 }
0x263a   :  { %v15208_v42 = vsel %vm8311_vm7, %v15204_v47, 0.0 }
0x263b   :  { %15209 = vadd.xlane.f32.xlu1 %v15208_v42  ;;  %v15205_v4 = vsel %vm1997_vm6, %v15203_v52, 0.0  ;;  %v18514_v42 = vld [vmem:[#allocation4 + $0x718] ss:$0 sm:$0xff] }
0x263c   :  { %24128 = vmatpush3.bf16.msra.mxu1 %v27994_v40  ;;  %15206 = vadd.xlane.f32.xlu0 %v15205_v4  ;;  %v24205_v40 = vpack.c.bf16 %v28762_v12, %v13186_v31  ;;  %v24213_v31 = vpack.c.bf16 %v28766_v20, %v28765_v60 }
0x263d   :  { %24130 = vmatprep.subr.bf16.mxu1 %v27998_v58 }
0x2640   :  { %24132 = vmatpush3.bf16.msra.mxu1 %v27998_v58  ;;  %v28763_v58 = vand.u32 4294901760, %v27883_v55  ;;  %v28768_v55 = vand.u32 4294901760, %v27932_v10  ;;  %v28774_v10 = vand.u32 4294901760, %v27992_v29 }
0x2641   :  { %24134 = vmatprep.subr.bf16.mxu1 %v28018_v9 }
0x2644   :  { %24136 = vmatpush3.bf16.msra.mxu1 %v28018_v9  ;;  %v28764_v9 = vand.u32 4294901760, %v27891_v30 }
0x2645   :  { %24138 = vmatprep.subr.bf16.mxu1 %v28026_v6 }
0x2648   :  { %24140 = vmatpush3.bf16.msra.mxu1 %v28026_v6  ;;  %v24209_v6 = vpack.c.bf16 %v28764_v9, %v28763_v58 }
0x2649   :  { %24142 = vmatprep.subr.bf16.mxu1 %v28030_v3 }
0x264b   :  { %22093 = vmatmul.mubr.f32.vlgmr.msra.gmra.mrb[68].mxu1 %v28060_v50 }
0x264c   :  { %24144 = vmatpush3.bf16.msra.mxu1 %v28030_v3  ;;  %22127 = vmatprep.mubr.f32.mxu1 %v13164_v26  ;;  %v28767_v3 = vand.u32 4294901760, %v27927_v17  ;;  %v28773_v17 = vand.u32 4294901760, %v27987_v57  ;;  %v15247_v57 = vand.u32 4294901760, %v15231_v44 }
0x264d   :  { %24146 = vmatprep.subr.bf16.mxu1 %v28034_v14 }
0x264e   :  { %v24217_v30 = vpack.c.bf16 %v28768_v55, %v28767_v3 }
0x2650   :  { %24148 = vmatpush3.bf16.msra.mxu1 %v28034_v14  ;;  %v28769_v14 = vand.u32 4294901760, %v27949_v19  ;;  %v28775_v19 = vand.u32 4294901760, %v28009_v38  ;;  %v15234_v38 = vld [vmem:[#allocation4 + $0x738] sm:$0xff] }
0x2651   :  { %24150 = vmatprep.subr.bf16.mxu1 %v28038_v34 }
0x2654   :  { %24152 = vmatpush3.bf16.msra.mxu1 %v28038_v34  ;;  %v28770_v34 = vand.u32 4294901760, %v27954_v22  ;;  %v28776_v22 = vand.u32 4294901760, %v28014_v54 }
0x2655   :  { %24154 = vmatprep.subr.bf16.mxu1 %v28042_v32 }
0x2658   :  { %24156 = vmatpush3.bf16.msra.mxu1 %v28042_v32  ;;  %v24221_v32 = vpack.c.bf16 %v28770_v34, %v28769_v14 }
0x2659   :  { %24158 = vmatprep.subr.bf16.mxu1 %v28046_v0 }
0x265c   :  { %24160 = vmatpush3.bf16.msra.mxu1 %v28046_v0  ;;  %v24225_v0 = vpack.c.bf16 %v28772_v48, %v28771_v28 }
0x265d   :  { %24162 = vmatprep.subr.bf16.mxu1 %v28050_v35 }
0x2660   :  { %24164 = vmatpush3.bf16.msra.mxu1 %v28050_v35  ;;  %v24229_v35 = vpack.c.bf16 %v28774_v10, %v28773_v17 }
0x2661   :  { %24166 = vmatprep.subr.bf16.mxu1 %v28054_v53 }
0x2664   :  { %24168 = vmatpush3.bf16.msra.mxu1 %v28054_v53  ;;  %v24233_v53 = vpack.c.bf16 %v28776_v22, %v28775_v19 }
0x2665   :  { %24170 = vmatprep.subr.bf16.mxu1 %v28058_v1 }
0x2668   :  { %24172 = vmatpush3.bf16.msra.mxu1 %v28058_v1  ;;  %v15256_v1 = vand.u32 4294901760, %v15234_v38 }
0x2669   :  { %24174 = vmatprep.subr.bf16.mxu1 %v27772_v7 }
0x266a   :  { %v15358_v4 = vsub.f32 %v15234_v38, %v15256_v1 }
0x266b   :  { %22128 = vmatmul.mubr.f32.vlgmr.msra.gmra.mrb[68].mxu1 %v28065_v13 }
0x266c   :  { %24176 = vmatpush3.bf16.msra.mxu1 %v27772_v7  ;;  %22162 = vmatprep.mubr.f32.mxu1 %v13165_v61  ;;  %v15359_v60 = vand.u32 4294901760, %v15358_v4 }
0x266d   :  { %24178 = vmatprep.subr.bf16.mxu1 %v27780_v8 }
0x2670   :  { %24180 = vmatpush3.bf16.msra.mxu1 %v27780_v8 }
0x2671   :  { %24182 = vmatprep.subr.bf16.mxu1 %v27794_v56 }
0x2674   :  { %24184 = vmatpush3.bf16.msra.mxu1 %v27794_v56 }
0x2675   :  { %24186 = vmatprep.subr.bf16.mxu1 %v27808_v25 }
0x2678   :  { %24188 = vmatpush3.bf16.msra.mxu1 %v27808_v25 }
0x2679   :  { %24190 = vmatprep.subr.bf16.mxu1 %v27822_v15 }
0x267c   :  { %24192 = vmatpush3.bf16.msra.mxu1 %v27822_v15 }
0x267d   :  { %24194 = vmatprep.subr.bf16.mxu1 %v27836_v18 }
0x2680   :  { %24196 = vmatpush3.bf16.msra.mxu1 %v27836_v18 }
0x2681   :  { %24198 = vmatprep.subr.bf16.mxu1 %v27850_v36 }
0x2684   :  { %24200 = vmatpush3.bf16.msra.mxu1 %v27850_v36 }
0x2685   :  { %24202 = vmatprep.subr.bf16.mxu1 %v27878_v33 }
0x2688   :  { %24204 = vmatpush3.bf16.msra.mxu1 %v27878_v33 }
0x2689   :  { %24206 = vmatprep.subr.bf16.mxu1 %v24205_v40 }
0x268b   :  { %22163 = vmatmul.mubr.f32.vlgmr.msra.gmra.mrb[68].mxu1 %v13175_v49 }
0x268c   :  { %24208 = vmatpush3.bf16.msra.mxu1 %v24205_v40  ;;  %22197 = vmatprep.mubr.f32.mxu1 %v28062_v46 }
0x268d   :  { %24210 = vmatprep.subr.bf16.mxu1 %v24209_v6 }
0x2690   :  { %24212 = vmatpush3.bf16.msra.mxu1 %v24209_v6 }
0x2691   :  { %24214 = vmatprep.subr.bf16.mxu1 %v24213_v31 }
0x2694   :  { %24216 = vmatpush3.bf16.msra.mxu1 %v24213_v31 }
0x2695   :  { %24218 = vmatprep.subr.bf16.mxu1 %v24217_v30 }
0x2698   :  { %24220 = vmatpush3.bf16.msra.mxu1 %v24217_v30 }
0x2699   :  { %24222 = vmatprep.subr.bf16.mxu1 %v24221_v32 }
0x269c   :  { %24224 = vmatpush3.bf16.msra.mxu1 %v24221_v32 }
0x269d   :  { %24226 = vmatprep.subr.bf16.mxu1 %v24225_v0 }
0x26a0   :  { %24228 = vmatpush3.bf16.msra.mxu1 %v24225_v0 }
0x26a1   :  { %24230 = vmatprep.subr.bf16.mxu1 %v24229_v35 }
0x26a4   :  { %24232 = vmatpush3.bf16.msra.mxu1 %v24229_v35 }
0x26a5   :  { %24234 = vmatprep.subr.bf16.mxu1 %v24233_v53 }
0x26a8   :  { %24236 = vmatpush3.bf16.msra.mxu1 %v24233_v53 }
0x26a9   :  { %24238 = vmatprep.subr.bf16.mxu1 %v27772_v7 }
0x26ab   :  { %22198 = vmatmul.mubr.f32.vlgmr.msra.gmra.mrb[68].mxu1 %v28060_v50 }
0x26ac   :  { %24240 = vmatpush3.bf16.msra.mxu1 %v27772_v7  ;;  %22232 = vmatprep.mubr.f32.mxu1 %v28062_v46  ;;  %v15250_v7 = vand.u32 4294901760, %v15232_v62  ;;  %v28182_v46 = vsub.f32 %v15231_v44, %v15247_v57 }
0x26ad   :  { %24242 = vmatprep.subr.bf16.mxu1 %v27780_v8 }
0x26ae   :  { %v15338_v29 = vand.u32 4294901760, %v28182_v46 }
0x26b0   :  { %24244 = vmatpush3.bf16.msra.mxu1 %v27780_v8  ;;  %v28184_v8 = vsub.f32 %v15232_v62, %v15250_v7 }
0x26b1   :  { %24246 = vmatprep.subr.bf16.mxu1 %v27794_v56 }
0x26b2   :  { %v24375_v22 = vpack.c.bf16 %v28184_v8, %v28182_v46 }
0x26b4   :  { %24248 = vmatpush3.bf16.msra.mxu1 %v27794_v56  ;;  %v15233_v56 = vld [vmem:[#allocation4 + $0x730] sm:$0xff] }
0x26b5   :  { %24250 = vmatprep.subr.bf16.mxu1 %v27808_v25  ;;  %v15253_v54 = vand.u32 4294901760, %v15233_v56 }
0x26b8   :  { %24252 = vmatpush3.bf16.msra.mxu1 %v27808_v25  ;;  %v15345_v25 = vand.u32 4294901760, %v28184_v8 }
0x26b9   :  { %24254 = vmatprep.subr.bf16.mxu1 %v27822_v15 }
0x26ba   :  { %v15346_v13 = vsub.f32 %v28184_v8, %v15345_v25  ;;  %v24391_v44 = vpack.c.bf16 %v15345_v25, %v15338_v29  ;;  %v15787_v25 = vld [vmem:[#allocation4 + $0x760] sm:$0xff] }
0x26bc   :  { %24256 = vmatpush3.bf16.msra.mxu1 %v27822_v15  ;;  %v28192_v15 = vpack.c.bf16 %v15250_v7, %v15247_v57  ;;  %v15347_v16 = vand.u32 4294901760, %v15346_v13  ;;  %v15784_v57 = vld [vmem:[#allocation4 + $0x748] sm:$0xff]  ;;  %v15785_v7 = vld [vmem:[#allocation4 + $0x750] sm:$0xff] }
0x26bd   :  { %24258 = vmatprep.subr.bf16.mxu1 %v27836_v18  ;;  %v15809_v8 = vand.u32 4294901760, %v15785_v7 }
0x26c0   :  { %24260 = vmatpush3.bf16.msra.mxu1 %v27836_v18  ;;  %v15339_v18 = vsub.f32 %v28182_v46, %v15338_v29  ;;  %v15806_v46 = vand.u32 4294901760, %v15784_v57  ;;  %v15786_v29 = vld [vmem:[#allocation4 + $0x758] sm:$0xff] }
0x26c1   :  { %24262 = vmatprep.subr.bf16.mxu1 %v27850_v36  ;;  %v15812_v38 = vand.u32 4294901760, %v15786_v29 }
0x26c2   :  { %v15340_v41 = vand.u32 4294901760, %v15339_v18  ;;  %v15789_v18 = vld [vmem:[#allocation4 + $0x770] sm:$0xff] }
0x26c4   :  { %24264 = vmatpush3.bf16.msra.mxu1 %v27850_v36  ;;  %v28202_v36 = vpack.c.bf16 %v15256_v1, %v15253_v54  ;;  %v15788_v1 = vld [vmem:[#allocation4 + $0x768] sm:$0xff] }
0x26c5   :  { %24266 = vmatprep.subr.bf16.mxu1 %v27878_v33  ;;  %v15818_v13 = vand.u32 4294901760, %v15788_v1 }
0x26c8   :  { %24268 = vmatpush3.bf16.msra.mxu1 %v27878_v33  ;;  %v15210_v26 = vpop.xlane.xlu1 %15209  ;;  %v24367_v33 = vpack.c.bf16 %v15347_v16, %v15340_v41 }
0x26c9   :  { %v15212_v49 = vmul.f32 0.03125, %v15210_v26  ;;  %v15207_v61 = vpop.xlane.xlu0 %15206  ;;  %24360 = vmatprep.subr.bf16.mxu1 %v28192_v15  ;;  %v15821_v26 = vand.u32 4294901760, %v15789_v18 }
0x26ca   :  { %v15211_v27 = vmul.f32 0.03125, %v15207_v61  ;;  %v15790_v61 = vld [vmem:[#allocation4 + $0x778] sm:$0xff] }
0x26cb   :  { %v15214_v63 = vadd.f32 1e-05, %v15212_v49  ;;  %22233 = vmatmul.mubr.f32.vlgmr.msra.gmra.mrb[68].mxu1 %v28060_v50  ;;  %v15351_v50 = vsub.f32 %v15233_v56, %v15253_v54  ;;  %v28226_v56 = vpack.c.bf16 %v15809_v8, %v15806_v46  ;;  %v15815_v54 = vand.u32 4294901760, %v15787_v25 }
0x26cc   :  { %v15213_v23 = vadd.f32 1e-05, %v15211_v27  ;;  %24362 = vmatpush3.bf16.msra.mxu1 %v28192_v15  ;;  %v28234_v49 = vpack.c.bf16 %v15821_v26, %v15818_v13  ;;  %v15824_v41 = vand.u32 4294901760, %v15790_v61 }
0x26cd   :  { %25298 = vrsqrt.f32 %v15214_v63  ;;  %24364 = vmatprep.subr.bf16.mxu1 %v28202_v36  ;;  %v15352_v6 = vand.u32 4294901760, %v15351_v50  ;;  %v24379_v53 = vpack.c.bf16 %v15358_v4, %v15351_v50  ;;  %v28240_v63 = vld [vmem:[#allocation4 + $0x788] sm:$0xff] }
0x26ce   :  { %25300 = vrsqrt.f32 %v15213_v23  ;;  %v28242_v23 = vld [vmem:[#allocation4 + $0x790] sm:$0xff] }
0x26cf   :  { %v15353_v14 = vsub.f32 %v15351_v50, %v15352_v6  ;;  %v24395_v62 = vpack.c.bf16 %v15359_v60, %v15352_v6  ;;  %v28274_v6 = vsub.f32 %v15784_v57, %v15806_v46 }
0x26d0   :  { %24366 = vmatpush3.bf16.msra.mxu1 %v28202_v36 }
0x26d1   :  { %24368 = vmatprep.subr.bf16.mxu1 %v24367_v33  ;;  %v15354_v48 = vand.u32 4294901760, %v15353_v14 }
0x26d7   :  { %v25299_v2 = vpop.eup %25298 }
0x26d8   :  { %v25301_v24 = vpop.eup %25300  ;;  %v15218_v47 = vmul.f32 %v25299_v2, %v28080_v11  ;;  %v15360_v11 = vsub.f32 %v15358_v4, %v15359_v60  ;;  %v15833_v2 = vand.u32 4294901760, %v28242_v23  ;;  %v28260_v4 = vld [vmem:[#allocation4 + $0x7a8] sm:$0xff]  ;;  %v28276_v60 = vsub.f32 %v15785_v7, %v15809_v8 }
0x26d9   :  { %v15217_v52 = vmul.f32 %v25301_v24, %v28083_v5  ;;  %v28250_v24 = vld [vmem:[#allocation4 + $0x798] sm:$0xff] }
0x26da   :  { %v15224_v12 = vmul.f32 %v18513_v59, %v15218_v47  ;;  %v15361_v0 = vand.u32 4294901760, %v15360_v11  ;;  %v28252_v47 = vld [vmem:[#allocation4 + $0x7a0] sm:$0xff]  ;;  %v28748_v14 = vand.u32 4294901760, %v28276_v60 }
0x26db   :  { %v15223_v40 = vmul.f32 %v18513_v59, %v15217_v52  ;;  %v15836_v52 = vand.u32 4294901760, %v28250_v24 }
0x26dc   :  { %v15230_v58 = vadd.f32 %v18514_v42, %v15224_v12  ;;  %v24371_v19 = vpack.c.bf16 %v15361_v0, %v15354_v48  ;;  %v28262_v12 = vld [vmem:[#allocation4 + $0x7b0] sm:$0xff] }
0x26dd   :  { %v15229_v9 = vadd.f32 %v18514_v42, %v15223_v40  ;;  %v15839_v42 = vand.u32 4294901760, %v28252_v47  ;;  %v15842_v40 = vand.u32 4294901760, %v28260_v4 }
0x26de   :  { %v15244_v20 = vsel %vm1997_vm6, %v15230_v58, 0  ;;  %v15845_v58 = vand.u32 4294901760, %v28262_v12 }
0x26df   :  { %v15241_v31 = vsel %vm1997_vm6, %v15229_v9, 0  ;;  %v15325_v3 = vand.u32 4294901760, %v15244_v20  ;;  %v28258_v50 = vpack.c.bf16 %v15839_v42, %v15836_v52 }
0x26e0   :  { %v15315_v55 = vand.u32 4294901760, %v15241_v31  ;;  %v28272_v9 = vpack.c.bf16 %v15845_v58, %v15842_v40 }
0x26e1   :  { %v15326_v30 = vsub.f32 %v15244_v20, %v15325_v3  ;;  %v28278_v20 = vld [vmem:[#allocation4 + $0x7b8] sm:$0xff] }
0x26e2   :  { %v15316_v34 = vsub.f32 %v15241_v31, %v15315_v55  ;;  %v28280_v31 = vld [vmem:[#allocation4 + $0x7c0] sm:$0xff] }
0x26e3   :  { %v15327_v5 = vand.u32 4294901760, %v15326_v30 }
0x26e4   :  { %v15317_v32 = vand.u32 4294901760, %v15316_v34 }
0x26e5   :  { %v15328_v28 = vsub.f32 %v15326_v30, %v15327_v5 }
0x26e6   :  { %v15318_v17 = vsub.f32 %v15316_v34, %v15317_v32 }
0x26e7   :  { %v15329_v35 = vand.u32 4294901760, %v15328_v28  ;;  %v28302_v28 = vsub.f32 %v15787_v25, %v15815_v54  ;;  %v28329_v25 = vsub.f32 %v15790_v61, %v15824_v41 }
0x26e8   :  { %v15319_v10 = vand.u32 4294901760, %v15318_v17 }
0x26ea   :  { %22495 = vmatprep.mubr.f32.mxu1 %v15319_v10  ;;  %v28746_v10 = vand.u32 4294901760, %v28302_v28 }
0x26eb   :  { %22496 = vmatmul.mubr.f32.vlgmr.msra.gmra.mrb[70].mxu1 %v15329_v35 }
0x26ec   :  { %24370 = vmatpush3.bf16.msra.mxu1 %v24367_v33  ;;  %22506 = vmatprep.mubr.f32.mxu1 %v15315_v55  ;;  %v15830_v33 = vand.u32 4294901760, %v28240_v63 }
0x26ed   :  { %24372 = vmatprep.subr.bf16.mxu1 %v24371_v19 }
0x26ee   :  { %v28248_v59 = vpack.c.bf16 %v15833_v2, %v15830_v33 }
0x26f0   :  { %24374 = vmatpush3.bf16.msra.mxu1 %v24371_v19 }
0x26f1   :  { %24376 = vmatprep.subr.bf16.mxu1 %v24375_v22 }
0x26f3   :  { %22507 = vmatmul.mubr.f32.vlgmr.msra.gmra.mrb[70].mxu1 %v15325_v3 }
0x26f4   :  { %24378 = vmatpush3.bf16.msra.mxu1 %v24375_v22  ;;  %22517 = vmatprep.mubr.f32.mxu1 %v15316_v34  ;;  %v28313_v22 = vsub.f32 %v15788_v1, %v15818_v13  ;;  %v28743_v13 = vand.u32 4294901760, %v28329_v25 }
0x26f5   :  { %24380 = vmatprep.subr.bf16.mxu1 %v24379_v53 }
0x26f6   :  { %v28745_v57 = vand.u32 4294901760, %v28313_v22 }
0x26f8   :  { %24382 = vmatpush3.bf16.msra.mxu1 %v24379_v53  ;;  %v28315_v53 = vsub.f32 %v15789_v18, %v15821_v26  ;;  %v15938_v8 = vsub.f32 %v28313_v22, %v28745_v57 }
0x26f9   :  { %24384 = vmatprep.subr.bf16.mxu1 %v28192_v15 }
0x26fa   :  { %v28744_v7 = vand.u32 4294901760, %v28315_v53  ;;  %v15939_v1 = vand.u32 4294901760, %v15938_v8 }
0x26fb   :  { %22518 = vmatmul.mubr.f32.vlgmr.msra.gmra.mrb[70].mxu1 %v15326_v30  ;;  %v15909_v30 = vand.u32 4294901760, %v28274_v6 }
0x26fc   :  { %24386 = vmatpush3.bf16.msra.mxu1 %v28192_v15  ;;  %22528 = vmatprep.mubr.f32.mxu1 %v15317_v32  ;;  %v28300_v32 = vsub.f32 %v15786_v29, %v15812_v38  ;;  %v15945_v29 = vsub.f32 %v28315_v53, %v28744_v7 }
0x26fd   :  { %24388 = vmatprep.subr.bf16.mxu1 %v28202_v36  ;;  %v15910_v34 = vsub.f32 %v28274_v6, %v15909_v30 }
0x26fe   :  { %v28747_v17 = vand.u32 4294901760, %v28300_v32  ;;  %v15946_v18 = vand.u32 4294901760, %v15945_v29 }
0x26ff   :  { %v15911_v48 = vand.u32 4294901760, %v15910_v34 }
0x2700   :  { %24390 = vmatpush3.bf16.msra.mxu1 %v28202_v36  ;;  %v15924_v19 = vsub.f32 %v28300_v32, %v28747_v17  ;;  %v28337_v34 = vpack.c.bf16 %v15946_v18, %v15939_v1 }
0x2701   :  { %24392 = vmatprep.subr.bf16.mxu1 %v24391_v44 }
0x2703   :  { %22529 = vmatmul.mubr.f32.vlgmr.msra.gmra.mrb[70].mxu1 %v15327_v5  ;;  %v15917_v5 = vsub.f32 %v28276_v60, %v28748_v14 }
0x2704   :  { %24394 = vmatpush3.bf16.msra.mxu1 %v24391_v44  ;;  %22539 = vmatprep.mubr.f32.mxu1 %v15315_v55  ;;  %v15931_v44 = vsub.f32 %v28302_v28, %v28746_v10 }
0x2705   :  { %24396 = vmatprep.subr.bf16.mxu1 %v24395_v62  ;;  %v15918_v0 = vand.u32 4294901760, %v15917_v5  ;;  %v15952_v5 = vsub.f32 %v28329_v25, %v28743_v13 }
0x2706   :  { %v15932_v46 = vand.u32 4294901760, %v15931_v44 }
0x2707   :  { %v28308_v35 = vpack.c.bf16 %v15918_v0, %v15911_v48 }
0x2708   :  { %24398 = vmatpush3.bf16.msra.mxu1 %v24395_v62  ;;  %v15925_v62 = vand.u32 4294901760, %v15924_v19 }
0x2709   :  { %24400 = vmatprep.subr.bf16.mxu1 %v28192_v15 }
0x270b   :  { %22540 = vmatmul.mubr.f32.vlgmr.msra.gmra.mrb[70].mxu1 %v15325_v3 }
0x270c   :  { %24402 = vmatpush3.bf16.msra.mxu1 %v28192_v15  ;;  %22550 = vmatprep.mubr.f32.mxu1 %v15315_v55  ;;  %v28230_v15 = vpack.c.bf16 %v15815_v54, %v15812_v38  ;;  %v15851_v55 = vand.u32 4294901760, %v28280_v31  ;;  %v28333_v54 = vpack.c.bf16 %v15932_v46, %v15925_v62  ;;  %v28359_v46 = vsub.f32 %v28250_v24, %v15836_v52 }
0x270d   :  { %24404 = vmatprep.subr.bf16.mxu1 %v28202_v36  ;;  %v28383_v52 = vsub.f32 %v28262_v12, %v15845_v58 }
0x270e   :  { %v28405_v58 = vsub.f32 %v28280_v31, %v15851_v55 }
0x2710   :  { %24406 = vmatpush3.bf16.msra.mxu1 %v28202_v36  ;;  %v15791_v36 = vld [vmem:[#allocation4 + $0x780] sm:$0xff] }
0x2711   :  { %24408 = vmatprep.subr.bf16.mxu1 %v28226_v56  ;;  %v15827_v16 = vand.u32 4294901760, %v15791_v36 }
0x2713   :  { %22551 = vmatmul.mubr.f32.vlgmr.msra.gmra.mrb[70].mxu1 %v15325_v3  ;;  %v28238_v27 = vpack.c.bf16 %v15827_v16, %v15824_v41  ;;  %v15848_v3 = vand.u32 4294901760, %v28278_v20  ;;  %v28331_v38 = vsub.f32 %v15791_v36, %v15827_v16  ;;  %v28346_v36 = vsub.f32 %v28240_v63, %v15830_v33 }
0x2714   :  { %24410 = vmatpush3.bf16.msra.mxu1 %v28226_v56  ;;  %v28349_v41 = vsub.f32 %v28242_v23, %v15833_v2  ;;  %v15953_v16 = vand.u32 4294901760, %v15952_v5  ;;  %v28362_v63 = vsub.f32 %v28252_v47, %v15839_v42  ;;  %v28739_v2 = vand.u32 4294901760, %v28359_v46 }
0x2715   :  { %24412 = vmatprep.subr.bf16.mxu1 %v28230_v15  ;;  %v28292_v11 = vpack.c.bf16 %v15851_v55, %v15848_v3  ;;  %v28742_v26 = vand.u32 4294901760, %v28331_v38  ;;  %v28741_v0 = vand.u32 4294901760, %v28346_v36  ;;  %v28378_v47 = vsub.f32 %v28260_v4, %v15842_v40 }
0x2716   :  { %v28740_v19 = vand.u32 4294901760, %v28349_v41  ;;  %v28738_v8 = vand.u32 4294901760, %v28362_v63  ;;  %v15980_v1 = vsub.f32 %v28359_v46, %v28739_v2  ;;  %v28400_v12 = vsub.f32 %v28278_v20, %v15848_v3 }
0x2717   :  { %v15959_v61 = vsub.f32 %v28331_v38, %v28742_v26  ;;  %v15966_v62 = vsub.f32 %v28346_v36, %v28741_v0 }
0x2718   :  { %24414 = vmatpush3.bf16.msra.mxu1 %v28230_v15  ;;  %v15973_v23 = vsub.f32 %v28349_v41, %v28740_v19  ;;  %v15987_v24 = vsub.f32 %v28362_v63, %v28738_v8  ;;  %v15981_v18 = vand.u32 4294901760, %v15980_v1  ;;  %v18508_v1 = vld [vmem:[#allocation4 + $0x658] ss:$0 sm:$0xff] }
0x2719   :  { %24416 = vmatprep.subr.bf16.mxu1 %v28234_v49  ;;  %v15960_v48 = vand.u32 4294901760, %v15959_v61  ;;  %v15967_v33 = vand.u32 4294901760, %v15966_v62  ;;  %v28735_v61 = vand.u32 4294901760, %v28378_v47 }
0x271a   :  { %v15974_v29 = vand.u32 4294901760, %v15973_v23  ;;  %v15988_v5 = vand.u32 4294901760, %v15987_v24 }
0x271b   :  { %v28353_v44 = vpack.c.bf16 %v15960_v48, %v15953_v16  ;;  %v28734_v16 = vand.u32 4294901760, %v28383_v52  ;;  %v15994_v4 = vsub.f32 %v28378_v47, %v28735_v61 }
0x271c   :  { %24418 = vmatpush3.bf16.msra.mxu1 %v28234_v49  ;;  %v28385_v42 = vpack.c.bf16 %v15974_v29, %v15967_v33  ;;  %v28389_v48 = vpack.c.bf16 %v15988_v5, %v15981_v18  ;;  %v28737_v33 = vand.u32 4294901760, %v28400_v12  ;;  %v28736_v29 = vand.u32 4294901760, %v28405_v58 }
0x271d   :  { %24420 = vmatprep.subr.bf16.mxu1 %v28238_v27  ;;  %v16001_v40 = vsub.f32 %v28383_v52, %v28734_v16  ;;  %v15995_v62 = vand.u32 4294901760, %v15994_v4 }
0x271e   :  { %v16008_v18 = vsub.f32 %v28400_v12, %v28737_v33  ;;  %v16015_v20 = vsub.f32 %v28405_v58, %v28736_v29 }
0x271f   :  { %v16002_v23 = vand.u32 4294901760, %v16001_v40 }
0x2720   :  { %24422 = vmatpush3.bf16.msra.mxu1 %v28238_v27  ;;  %v16009_v31 = vand.u32 4294901760, %v16008_v18  ;;  %v16016_v4 = vand.u32 4294901760, %v16015_v20  ;;  %v24471_v18 = vpack.c.bf16 %v28276_v60, %v28274_v6  ;;  %v24487_v20 = vpack.c.bf16 %v28349_v41, %v28346_v36 }
0x2721   :  { %24424 = vmatprep.subr.bf16.mxu1 %v28248_v59  ;;  %v28409_v24 = vpack.c.bf16 %v16002_v23, %v15995_v62  ;;  %v28780_v6 = vand.u32 4294901760, %v28313_v22 }
0x2722   :  { %v24467_v61 = vpack.c.bf16 %v16016_v4, %v16009_v31  ;;  %v24495_v31 = vpack.c.bf16 %v28383_v52, %v28378_v47 }
0x2724   :  { %24426 = vmatpush3.bf16.msra.mxu1 %v28248_v59 }
0x2725   :  { %24428 = vmatprep.subr.bf16.mxu1 %v28258_v50 }
0x2728   :  { %24430 = vmatpush3.bf16.msra.mxu1 %v28258_v50 }
0x2729   :  { %24432 = vmatprep.subr.bf16.mxu1 %v28272_v9 }
0x272c   :  { %24434 = vmatpush3.bf16.msra.mxu1 %v28272_v9 }
0x272d   :  { %24436 = vmatprep.subr.bf16.mxu1 %v28292_v11 }
0x2730   :  { %24438 = vmatpush3.bf16.msra.mxu1 %v28292_v11 }
0x2731   :  { %24440 = vmatprep.subr.bf16.mxu1 %v28308_v35 }
0x279e   :  { %v22234_v3 = vpop.f32.mrb[68].mxu1 }
0x279f   :  { %v24754_v55 = vadd.f32 %v22234_v3, %v18508_v1  ;;  %v13756_v5 = vpop.f32.mrb[69].mxu1  ;;  %v24491_v3 = vpack.c.bf16 %v28362_v63, %v28359_v46 }
0x27a0   :  { %v24755_v40 = vadd.f32 %v18508_v1, %v13756_v5  ;;  %v24475_v1 = vpack.c.bf16 %v28302_v28, %v28300_v32 }
0x27a1   :  { %v28418_v16 = vadd.f32 %v24754_v55, %v27615_v39  ;;  %v24479_v39 = vpack.c.bf16 %v28315_v53, %v28313_v22  ;;  %v18515_v55 = vld [vmem:[#allocation4 + $0x740] ss:$0 sm:$0xff]  ;;  %v28786_v22 = vand.u32 4294901760, %v28359_v46 }
0x27a2   :  { %v28421_v62 = vadd.f32 %v24755_v40, %v27618_v21  ;;  %v24483_v21 = vpack.c.bf16 %v28331_v38, %v28329_v25 }
0x27a3   :  { %v13773_v23 = vsel %vm8311_vm7, %v28418_v16, 0.0 }
0x27a4   :  { %13774 = vadd.xlane.f32.xlu0 %v13773_v23  ;;  %v13770_v29 = vsel %vm1997_vm6, %v28421_v62, 0.0 }
0x27a5   :  { %13771 = vadd.xlane.f32.xlu1 %v13770_v29  ;;  %v24499_v29 = vpack.c.bf16 %v28405_v58, %v28400_v12 }
0x27e6   :  { %v22552_v5 = vpop.f32.mrb[70].mxu1 }
0x27e7   :  { %v24765_v4 = vadd.f32 %v22552_v5, %v18515_v55  ;;  %v15764_v40 = vpop.f32.mrb[71].mxu1 }
0x27e8   :  { %v24766_v23 = vadd.f32 %v18515_v55, %v15764_v40 }
0x27e9   :  { %v15777_v33 = vmul.f32 0.70710677, %v24765_v4  ;;  %v15775_v0 = vmul.f32 0.5, %v24765_v4 }
0x27ea   :  { %v15776_v8 = vmul.f32 0.70710677, %v24766_v23  ;;  %v15774_v13 = vmul.f32 0.5, %v24766_v23 }
0x27eb   :  { %25302 = verf.f32 %v15777_v33 }
0x27ec   :  { %25304 = verf.f32 %v15776_v8 }
0x27f5   :  { %v25303_v2 = vpop.eup %25302 }
0x27f6   :  { %v25305_v19 = vpop.eup %25304  ;;  %v15781_v26 = vadd.f32 1.0, %v25303_v2 }
0x27f7   :  { %v15780_v7 = vadd.f32 1.0, %v25305_v19 }
0x27f8   :  { %v15783_v57 = vmul.f32 %v15781_v26, %v15775_v0  ;;  %v28785_v0 = vand.u32 4294901760, %v28349_v41  ;;  %v28791_v41 = vand.u32 4294901760, %v28405_v58 }
0x27f9   :  { %v15782_v10 = vmul.f32 %v15780_v7, %v15774_v13  ;;  %v28779_v7 = vand.u32 4294901760, %v28302_v28  ;;  %v28782_v13 = vand.u32 4294901760, %v28329_v25  ;;  %v28788_v25 = vand.u32 4294901760, %v28378_v47 }
0x27fa   :  { %v28443_v17 = vand.u32 4294901760, %v15783_v57 }
0x27fb   :  { %v28445_v14 = vand.u32 4294901760, %v15782_v10 }
0x27fc   :  { %v28448_v5 = vsub.f32 %v15783_v57, %v28443_v17  ;;  %v28778_v57 = vand.u32 4294901760, %v28300_v32  ;;  %v28783_v32 = vand.u32 4294901760, %v28331_v38  ;;  %v28789_v38 = vand.u32 4294901760, %v28383_v52 }
0x27fd   :  { %v15887_v55 = vsub.f32 %v15782_v10, %v28445_v14  ;;  %v28777_v10 = vand.u32 4294901760, %v28276_v60  ;;  %v28781_v60 = vand.u32 4294901760, %v28315_v53  ;;  %v28787_v53 = vand.u32 4294901760, %v28362_v63 }
0x27fe   :  { %v15898_v33 = vand.u32 4294901760, %v28448_v5  ;;  %v24547_v28 = vpack.c.bf16 %v28783_v32, %v28782_v13 }
0x27ff   :  { %v15888_v8 = vand.u32 4294901760, %v15887_v55 }
0x2800   :  { %v15899_v2 = vsub.f32 %v28448_v5, %v15898_v33 }
0x2801   :  { %v15889_v4 = vsub.f32 %v15887_v55, %v15888_v8 }
0x2802   :  { %v15900_v26 = vand.u32 4294901760, %v15899_v2  ;;  %v16531_v2 = vld [vmem:[#allocation4 + $0x7e0] sm:$0x3] }
0x2803   :  { %v15890_v19 = vand.u32 4294901760, %v15889_v4  ;;  %v16533_v4 = vsel %vm8361_vm8, %v16531_v2, 0 }
0x2805   :  { %22585 = vmatprep.mubr.f32.mxu1 %v15890_v19  ;;  %v28560_v19 = vand.u32 4294901760, %v16533_v4 }
0x2806   :  { %22586 = vmatmul.mubr.f32.vlgmr.msra.gmra.mrb[72].mxu1 %v15900_v26 }
0x2807   :  { %24442 = vmatpush3.bf16.msra.mxu1 %v28308_v35  ;;  %22620 = vmatprep.mubr.f32.mxu1 %v28445_v14  ;;  %v24535_v35 = vpack.c.bf16 %v28777_v10, %v15909_v30  ;;  %v24543_v30 = vpack.c.bf16 %v28781_v60, %v28780_v6  ;;  %v28563_v26 = vsub.f32 %v16533_v4, %v28560_v19  ;;  %v18510_v6 = vld [vmem:[#allocation4 + $0x668] ss:$0 sm:$0xff] }
0x2808   :  { %24444 = vmatprep.subr.bf16.mxu1 %v28333_v54 }
0x280b   :  { %24446 = vmatpush3.bf16.msra.mxu1 %v28333_v54  ;;  %v24539_v54 = vpack.c.bf16 %v28779_v7, %v28778_v57 }
0x280c   :  { %24448 = vmatprep.subr.bf16.mxu1 %v28337_v34 }
0x280f   :  { %24450 = vmatpush3.bf16.msra.mxu1 %v28337_v34  ;;  %v28784_v34 = vand.u32 4294901760, %v28346_v36  ;;  %v28790_v36 = vand.u32 4294901760, %v28400_v12 }
0x2810   :  { %24452 = vmatprep.subr.bf16.mxu1 %v28353_v44 }
0x2813   :  { %24454 = vmatpush3.bf16.msra.mxu1 %v28353_v44  ;;  %v24551_v44 = vpack.c.bf16 %v28785_v0, %v28784_v34 }
0x2814   :  { %24456 = vmatprep.subr.bf16.mxu1 %v28385_v42 }
0x2817   :  { %24458 = vmatpush3.bf16.msra.mxu1 %v28385_v42  ;;  %v24555_v42 = vpack.c.bf16 %v28787_v53, %v28786_v22 }
0x2818   :  { %24460 = vmatprep.subr.bf16.mxu1 %v28389_v48 }
0x281b   :  { %24462 = vmatpush3.bf16.msra.mxu1 %v28389_v48  ;;  %v24563_v48 = vpack.c.bf16 %v28791_v41, %v28790_v36 }
0x281c   :  { %24464 = vmatprep.subr.bf16.mxu1 %v28409_v24 }
0x281f   :  { %24466 = vmatpush3.bf16.msra.mxu1 %v28409_v24 }
0x2820   :  { %24468 = vmatprep.subr.bf16.mxu1 %v24467_v61 }
0x2823   :  { %24470 = vmatpush3.bf16.msra.mxu1 %v24467_v61  ;;  %v24559_v61 = vpack.c.bf16 %v28789_v38, %v28788_v25 }
0x2824   :  { %24472 = vmatprep.subr.bf16.mxu1 %v24471_v18 }
0x2826   :  { %22621 = vmatmul.mubr.f32.vlgmr.msra.gmra.mrb[72].mxu1 %v28443_v17 }
0x2827   :  { %24474 = vmatpush3.bf16.msra.mxu1 %v24471_v18  ;;  %22655 = vmatprep.mubr.f32.mxu1 %v15887_v55 }
0x2828   :  { %24476 = vmatprep.subr.bf16.mxu1 %v24475_v1 }
0x282b   :  { %24478 = vmatpush3.bf16.msra.mxu1 %v24475_v1 }
0x282c   :  { %24480 = vmatprep.subr.bf16.mxu1 %v24479_v39 }
0x282f   :  { %24482 = vmatpush3.bf16.msra.mxu1 %v24479_v39 }
0x2830   :  { %24484 = vmatprep.subr.bf16.mxu1 %v24483_v21 }
0x2833   :  { %24486 = vmatpush3.bf16.msra.mxu1 %v24483_v21 }
0x2834   :  { %24488 = vmatprep.subr.bf16.mxu1 %v24487_v20 }
0x2837   :  { %24490 = vmatpush3.bf16.msra.mxu1 %v24487_v20 }
0x2838   :  { %24492 = vmatprep.subr.bf16.mxu1 %v24491_v3 }
0x283b   :  { %24494 = vmatpush3.bf16.msra.mxu1 %v24491_v3 }
0x283c   :  { %24496 = vmatprep.subr.bf16.mxu1 %v24495_v31 }
0x283f   :  { %24498 = vmatpush3.bf16.msra.mxu1 %v24495_v31 }
0x2840   :  { %24500 = vmatprep.subr.bf16.mxu1 %v24499_v29 }
0x2843   :  { %24502 = vmatpush3.bf16.msra.mxu1 %v24499_v29 }
0x2844   :  { %24504 = vmatprep.subr.bf16.mxu1 %v28226_v56 }
0x2846   :  { %22656 = vmatmul.mubr.f32.vlgmr.msra.gmra.mrb[72].mxu1 %v28448_v5 }
0x2847   :  { %24506 = vmatpush3.bf16.msra.mxu1 %v28226_v56  ;;  %22690 = vmatprep.mubr.f32.mxu1 %v15888_v8 }
0x2848   :  { %24508 = vmatprep.subr.bf16.mxu1 %v28230_v15 }
0x284b   :  { %24510 = vmatpush3.bf16.msra.mxu1 %v28230_v15 }
0x284c   :  { %24512 = vmatprep.subr.bf16.mxu1 %v28234_v49 }
0x284f   :  { %24514 = vmatpush3.bf16.msra.mxu1 %v28234_v49 }
0x2850   :  { %24516 = vmatprep.subr.bf16.mxu1 %v28238_v27 }
0x2853   :  { %24518 = vmatpush3.bf16.msra.mxu1 %v28238_v27 }
0x2854   :  { %24520 = vmatprep.subr.bf16.mxu1 %v28248_v59 }
0x2857   :  { %24522 = vmatpush3.bf16.msra.mxu1 %v28248_v59 }
0x2858   :  { %24524 = vmatprep.subr.bf16.mxu1 %v28258_v50 }
0x285b   :  { %24526 = vmatpush3.bf16.msra.mxu1 %v28258_v50 }
0x285c   :  { %24528 = vmatprep.subr.bf16.mxu1 %v28272_v9 }
0x285f   :  { %24530 = vmatpush3.bf16.msra.mxu1 %v28272_v9 }
0x2860   :  { %24532 = vmatprep.subr.bf16.mxu1 %v28292_v11 }
0x2863   :  { %24534 = vmatpush3.bf16.msra.mxu1 %v28292_v11 }
0x2864   :  { %24536 = vmatprep.subr.bf16.mxu1 %v24535_v35 }
0x2866   :  { %22691 = vmatmul.mubr.f32.vlgmr.msra.gmra.mrb[72].mxu1 %v15898_v33 }
0x2867   :  { %24538 = vmatpush3.bf16.msra.mxu1 %v24535_v35  ;;  %22725 = vmatprep.mubr.f32.mxu1 %v28445_v14  ;;  %v18509_v35 = vld [vmem:[#allocation4 + $0x660] ss:$0 sm:$0xff] }
0x2868   :  { %24540 = vmatprep.subr.bf16.mxu1 %v24539_v54 }
0x286b   :  { %24542 = vmatpush3.bf16.msra.mxu1 %v24539_v54 }
0x286c   :  { %24544 = vmatprep.subr.bf16.mxu1 %v24543_v30 }
0x286f   :  { %24546 = vmatpush3.bf16.msra.mxu1 %v24543_v30  ;;  %v28566_v30 = vand.u32 4294901760, %v28563_v26 }
0x2870   :  { %24548 = vmatprep.subr.bf16.mxu1 %v24547_v28 }
0x2871   :  { %v16608_v0 = vsub.f32 %v28563_v26, %v28566_v30 }
0x2873   :  { %24550 = vmatpush3.bf16.msra.mxu1 %v24547_v28  ;;  %v28571_v38 = vand.u32 4294901760, %v16608_v0 }
0x2874   :  { %24552 = vmatprep.subr.bf16.mxu1 %v24551_v44 }
0x2877   :  { %24554 = vmatpush3.bf16.msra.mxu1 %v24551_v44 }
0x2878   :  { %24556 = vmatprep.subr.bf16.mxu1 %v24555_v42 }
0x287b   :  { %24558 = vmatpush3.bf16.msra.mxu1 %v24555_v42 }
0x287c   :  { %24560 = vmatprep.subr.bf16.mxu1 %v24559_v61 }
0x287f   :  { %24562 = vmatpush3.bf16.msra.mxu1 %v24559_v61 }
0x2880   :  { %24564 = vmatprep.subr.bf16.mxu1 %v24563_v48 }
0x2883   :  { %24566 = vmatpush3.bf16.msra.mxu1 %v24563_v48 }
0x2884   :  { %24568 = vmatprep.subr.bf16.mxu1 %v28226_v56 }
0x2886   :  { %22726 = vmatmul.mubr.f32.vlgmr.msra.gmra.mrb[72].mxu1 %v28443_v17 }
0x2887   :  { %24570 = vmatpush3.bf16.msra.mxu1 %v28226_v56  ;;  %22760 = vmatprep.mubr.f32.mxu1 %v28445_v14  ;;  %v13775_v56 = vpop.xlane.xlu0 %13774  ;;  %v18516_v14 = vld [vmem:[#allocation4 + $0x7c8] ss:$0 sm:$0xff] }
0x2888   :  { %24572 = vmatprep.subr.bf16.mxu1 %v28230_v15 }
0x288b   :  { %24574 = vmatpush3.bf16.msra.mxu1 %v28230_v15  ;;  %v13772_v15 = vpop.xlane.xlu1 %13771 }
0x288c   :  { %24576 = vmatprep.subr.bf16.mxu1 %v28234_v49 }
0x288f   :  { %24578 = vmatpush3.bf16.msra.mxu1 %v28234_v49  ;;  %v13777_v49 = vmul.f32 0.03125, %v13775_v56 }
0x2890   :  { %24580 = vmatprep.subr.bf16.mxu1 %v28238_v27 }
0x2891   :  { %v13779_v46 = vsub.f32 %v28418_v16, %v13777_v49 }
0x2893   :  { %24582 = vmatpush3.bf16.msra.mxu1 %v28238_v27  ;;  %v13776_v27 = vmul.f32 0.03125, %v13772_v15 }
0x2894   :  { %24584 = vmatprep.subr.bf16.mxu1 %v28248_v59 }
0x2895   :  { %v13778_v47 = vsub.f32 %v28421_v62, %v13776_v27 }
0x2897   :  { %24586 = vmatpush3.bf16.msra.mxu1 %v28248_v59  ;;  %v13780_v24 = vmul.f32 %v13778_v47, %v13778_v47 }
0x2898   :  { %24588 = vmatprep.subr.bf16.mxu1 %v28258_v50 }
0x2899   :  { %v13782_v16 = vsel %vm1997_vm6, %v13780_v24, 0.0  ;;  %v18518_v24 = vld [vmem:[#allocation4 + $0x7d8] ss:$0 sm:$0xff] }
0x289b   :  { %24590 = vmatpush3.bf16.msra.mxu1 %v28258_v50 }
0x289c   :  { %24592 = vmatprep.subr.bf16.mxu1 %v28272_v9 }
0x289f   :  { %24594 = vmatpush3.bf16.msra.mxu1 %v28272_v9 }
0x28a0   :  { %24596 = vmatprep.subr.bf16.mxu1 %v28292_v11 }
0x28a3   :  { %24598 = vmatpush3.bf16.msra.mxu1 %v28292_v11 }
0x28a6   :  { %22761 = vmatmul.mubr.f32.vlgmr.msra.gmra.mrb[72].mxu1 %v28443_v17  ;;  %v13781_v17 = vmul.f32 %v13779_v46, %v13779_v46 }
0x28a8   :  { %v13785_v18 = vsel %vm8311_vm7, %v13781_v17, 0.0 }
0x2979   :  { %v22762_v59 = vpop.f32.mrb[72].mxu1 }
0x297a   :  { %v24767_v63 = vadd.f32 %v22762_v59, %v18516_v14  ;;  %v16479_v50 = vpop.f32.mrb[73].mxu1 }
0x297b   :  { %v24768_v52 = vadd.f32 %v18516_v14, %v16479_v50 }
0x297c   :  { %v16490_v9 = vadd.f32 %v24767_v63, %v27861_v37 }
0x297d   :  { %v16489_v12 = vadd.f32 %v24768_v52, %v27868_v43 }
0x297e   :  { %v16496_v11 = vsel %vm8311_vm7, %v16490_v9, 0.0 }
0x297f   :  { %16497 = vadd.xlane.f32.xlu0 %v16496_v11  ;;  %v16493_v58 = vsel %vm1997_vm6, %v16489_v12, 0.0 }
0x2980   :  { %16494 = vadd.xlane.f32.xlu1 %v16493_v58 }
0x2983   :  { %13786 = vadd.xlane.f32.xlu0 %v13785_v18 }
0x2984   :  { %13783 = vadd.xlane.f32.xlu1 %v13782_v16 }
0x2a0c   :  { %v16498_v62 = vpop.xlane.xlu0 %16497 }
0x2a0d   :  { %v16500_v1 = vmul.f32 0.03125, %v16498_v62  ;;  %v16495_v39 = vpop.xlane.xlu1 %16494 }
0x2a0e   :  { %v16499_v37 = vmul.f32 0.03125, %v16495_v39 }
0x2a0f   :  { %v28549_v21 = vsub.f32 %v16490_v9, %v16500_v1 }
0x2a10   :  { %v28551_v43 = vsub.f32 %v16489_v12, %v16499_v37  ;;  %v13787_v20 = vpop.xlane.xlu0 %13786  ;;  %v18517_v12 = vld [vmem:[#allocation4 + $0x7d0] ss:$0 sm:$0xff] }
0x2a11   :  { %v13789_v3 = vmul.f32 0.03125, %v13787_v20  ;;  %v13784_v31 = vpop.xlane.xlu1 %13783  ;;  %v16504_v29 = vmul.f32 %v28549_v21, %v28549_v21 }
0x2a12   :  { %v13788_v40 = vmul.f32 0.03125, %v13784_v31  ;;  %v16503_v23 = vmul.f32 %v28551_v43, %v28551_v43 }
0x2a13   :  { %v13791_v5 = vadd.f32 1e-05, %v13789_v3  ;;  %v16508_v55 = vsel %vm8311_vm7, %v16504_v29, 0.0 }
0x2a14   :  { %v13790_v33 = vadd.f32 1e-05, %v13788_v40  ;;  %16509 = vadd.xlane.f32.xlu0 %v16508_v55  ;;  %v16505_v8 = vsel %vm1997_vm6, %v16503_v23, 0.0 }
0x2a15   :  { %25306 = vrsqrt.f32 %v13791_v5  ;;  %16506 = vadd.xlane.f32.xlu1 %v16505_v8 }
0x2a16   :  { %25308 = vrsqrt.f32 %v13790_v33 }
0x2a1f   :  { %v25307_v10 = vpop.eup %25306 }
0x2a20   :  { %v25309_v57 = vpop.eup %25308  ;;  %v13795_v7 = vmul.f32 %v25307_v10, %v13779_v46  ;;  %v17466_v10 = vld [vmem:[#allocation4 + $0x808] sm:$0xff] }
0x2a21   :  { %v13794_v54 = vmul.f32 %v25309_v57, %v13778_v47  ;;  %v17474_v57 = vand.u32 4294901760, %v17466_v10 }
0x2a22   :  { %v13801_v60 = vmul.f32 %v18509_v35, %v13795_v7 }
0x2a23   :  { %v13800_v13 = vmul.f32 %v18509_v35, %v13794_v54  ;;  %v17467_v35 = vld [vmem:[#allocation4 + $0x810] sm:$0xff] }
0x2a24   :  { %v13807_v32 = vadd.f32 %v18510_v6, %v13801_v60  ;;  %v17477_v7 = vand.u32 4294901760, %v17467_v35 }
0x2a25   :  { %v13806_v28 = vadd.f32 %v18510_v6, %v13800_v13  ;;  %v28628_v6 = vsub.f32 %v17466_v10, %v17474_v57  ;;  %v17469_v13 = vld [vmem:[#allocation4 + $0x820] sm:$0xff] }
0x2a26   :  { %v16536_v34 = vsel %vm8383_vm9, %v13807_v32, 0  ;;  %v28626_v54 = vpack.c.bf16 %v17477_v7, %v17474_v57  ;;  %v17561_v60 = vsub.f32 %v17467_v35, %v17477_v7  ;;  %v17483_v32 = vand.u32 4294901760, %v17469_v13  ;;  %v17464_v35 = vld [vmem:[#allocation4 + $0x7f8] sm:$0xff]  ;;  %v17465_v57 = vld [vmem:[#allocation4 + $0x800] sm:$0xff] }
0x2a27   :  { %v16539_v44 = vand.u32 4294901760, %v13806_v28  ;;  %v16542_v22 = vand.u32 4294901760, %v16536_v34 }
0x2a29   :  { %v24600_v53 = vpack.c.bf16 %v16542_v22, %v16539_v44  ;;  %v16617_v42 = vsub.f32 %v13806_v28, %v16539_v44  ;;  %v16624_v25 = vsub.f32 %v16536_v34, %v16542_v22  ;;  %v17555_v28 = vand.u32 4294901760, %v28628_v6 }
0x2a2a   :  { %v17562_v34 = vand.u32 4294901760, %v17561_v60  ;;  %v17575_v22 = vsub.f32 %v17469_v13, %v17483_v32  ;;  %v17971_v13 = vand.u32 4294901760, %v17465_v57 }
0x2a2b   :  { %24601 = vmatpush3.bf16.msra.mxu0 %v24600_v53  ;;  %v16618_v61 = vand.u32 4294901760, %v16617_v42  ;;  %v16625_v36 = vand.u32 4294901760, %v16624_v25  ;;  %v24606_v27 = vpack.c.bf16 %v16624_v25, %v16617_v42 }
0x2a2c   :  { %24602 = vmatprep.subr.bf16.mxu0 %v28760_v45 }
0x2a2d   :  { %v16619_v41 = vsub.f32 %v16617_v42, %v16618_v61  ;;  %v16626_v48 = vsub.f32 %v16624_v25, %v16625_v36  ;;  %v24612_v14 = vpack.c.bf16 %v16625_v36, %v16618_v61  ;;  %v17563_v42 = vsub.f32 %v17561_v60, %v17562_v34 }
0x2a2e   :  { %22768 = vmatmul.mubr.f32.vlgmr.msra.gmra.mrb[90].mxu0 %v28571_v38  ;;  %v17576_v61 = vand.u32 4294901760, %v17575_v22 }
0x2a2f   :  { %v16620_v56 = vand.u32 4294901760, %v16619_v41  ;;  %v16627_v15 = vand.u32 4294901760, %v16626_v48  ;;  %22774 = vmatprep.mubr.msk.f32.mxu0 %vm25371_vm0, %v28761_v51  ;;  %v17564_v36 = vand.u32 4294901760, %v17563_v42 }
0x2a30   :  { %v17577_v48 = vsub.f32 %v17575_v22, %v17576_v61 }
0x2a31   :  { %v24603_v49 = vpack.c.bf16 %v16627_v15, %v16620_v56 }
0x2a33   :  { %24604 = vmatpush3.bf16.msra.mxu0 %v24603_v49  ;;  %v17578_v49 = vand.u32 4294901760, %v17577_v48 }
0x2a34   :  { %24605 = vmatprep.subr.bf16.mxu0 %v28760_v45 }
0x2a36   :  { %22775 = vmatmul.mubr.f32.vlgmr.msra.gmra.mrb[90].mxu0 %v28560_v19 }
0x2a37   :  { %24607 = vmatpush3.bf16.msra.mxu0 %v24606_v27  ;;  %22781 = vmatprep.mubr.msk.f32.mxu0 %vm25371_vm0, %v28761_v51 }
0x2a38   :  { %24608 = vmatprep.subr.bf16.mxu0 %v28760_v45 }
0x2a3e   :  { %22782 = vmatmul.mubr.f32.vlgmr.msra.gmra.mrb[90].mxu0 %v28563_v26 }
0x2a3f   :  { %24610 = vmatpush3.bf16.msra.mxu0 %v24600_v53  ;;  %22788 = vmatprep.mubr.msk.f32.mxu0 %vm25371_vm0, %v28761_v51 }
0x2a40   :  { %24611 = vmatprep.subr.bf16.mxu0 %v28760_v45 }
0x2a46   :  { %22789 = vmatmul.mubr.f32.vlgmr.msra.gmra.mrb[90].mxu0 %v28566_v30 }
0x2a47   :  { %24613 = vmatpush3.bf16.msra.mxu0 %v24612_v14  ;;  %22795 = vmatprep.mubr.msk.f32.mxu0 %vm25371_vm0, %v28761_v51  ;;  %v24648_v14 = vpack.c.bf16 %v17561_v60, %v28628_v6 }
0x2a48   :  { %24614 = vmatprep.subr.bf16.mxu0 %v28760_v45 }
0x2a4e   :  { %22796 = vmatmul.mubr.f32.vlgmr.msra.gmra.mrb[90].mxu0 %v28560_v19 }
0x2a4f   :  { %24616 = vmatpush3.bf16.msra.mxu0 %v24600_v53  ;;  %22802 = vmatprep.mubr.msk.f32.mxu0 %vm25371_vm0, %v28761_v51  ;;  %v17556_v53 = vsub.f32 %v28628_v6, %v17555_v28 }
0x2a50   :  { %24617 = vmatprep.subr.bf16.mxu0 %v28760_v45 }
0x2a51   :  { %v17557_v25 = vand.u32 4294901760, %v17556_v53 }
0x2a53   :  { %v24642_v56 = vpack.c.bf16 %v17564_v36, %v17557_v25 }
0x2a56   :  { %22803 = vmatmul.mubr.f32.vlgmr.msra.gmra.mrb[90].mxu0 %v28560_v19 }
0x2a57   :  { %22809 = vmatprep.mubr.msk.f32.mxu0 %vm25371_vm0, %v28761_v51 }
0x2aa1   :  { %v16510_v59 = vpop.xlane.xlu0 %16509 }
0x2aa2   :  { %v16512_v46 = vmul.f32 0.03125, %v16510_v59  ;;  %v16507_v63 = vpop.xlane.xlu1 %16506 }
0x2aa3   :  { %v16511_v50 = vmul.f32 0.03125, %v16507_v63 }
0x2aa4   :  { %v16514_v47 = vadd.f32 1e-05, %v16512_v46  ;;  %v24660_v46 = vpack.c.bf16 %v17562_v34, %v17555_v28 }
0x2aa5   :  { %v16513_v52 = vadd.f32 1e-05, %v16511_v50 }
0x2aa6   :  { %25310 = vrsqrt.f32 %v16514_v47 }
0x2aa7   :  { %25312 = vrsqrt.f32 %v16513_v52 }
0x2ab0   :  { %v25311_v9 = vpop.eup %25310 }
0x2ab1   :  { %v25313_v11 = vpop.eup %25312  ;;  %v16518_v17 = vmul.f32 %v25311_v9, %v28549_v21 }
0x2ab2   :  { %v16517_v58 = vmul.f32 %v25313_v11, %v28551_v43 }
0x2ab3   :  { %v16524_v18 = vmul.f32 %v18517_v12, %v16518_v17 }
0x2ab4   :  { %v16523_v16 = vmul.f32 %v18517_v12, %v16517_v58 }
0x2ab5   :  { %v16530_v62 = vadd.f32 %v18518_v24, %v16524_v18 }
0x2ab6   :  { %v16529_v1 = vadd.f32 %v18518_v24, %v16523_v16 }
0x2ab7   :  { %v16998_v39 = vsel %vm8383_vm9, %v16530_v62, 0 }
0x2ab8   :  { %v17001_v37 = vand.u32 4294901760, %v16529_v1  ;;  %v17004_v20 = vand.u32 4294901760, %v16998_v39 }
0x2aba   :  { %v24618_v3 = vpack.c.bf16 %v17004_v20, %v17001_v37  ;;  %v17079_v31 = vsub.f32 %v16529_v1, %v17001_v37  ;;  %v17086_v29 = vsub.f32 %v16998_v39, %v17004_v20 }
0x2abc   :  { %24619 = vmatpush3.bf16.msra.mxu0 %v24618_v3  ;;  %v17080_v40 = vand.u32 4294901760, %v17079_v31  ;;  %v17087_v23 = vand.u32 4294901760, %v17086_v29  ;;  %v24624_v8 = vpack.c.bf16 %v17086_v29, %v17079_v31 }
0x2abd   :  { %24620 = vmatprep.subr.bf16.mxu0 %v28760_v45 }
0x2abe   :  { %v17081_v21 = vsub.f32 %v17079_v31, %v17080_v40  ;;  %v17088_v5 = vsub.f32 %v17086_v29, %v17087_v23  ;;  %v24630_v2 = vpack.c.bf16 %v17087_v23, %v17080_v40 }
0x2abf   :  { %22810 = vmatmul.mubr.f32.vlgmr.msra.gmra.mrb[92].mxu0 %v28571_v38 }
0x2ac0   :  { %v17082_v43 = vand.u32 4294901760, %v17081_v21  ;;  %v17089_v55 = vand.u32 4294901760, %v17088_v5  ;;  %22816 = vmatprep.mubr.msk.f32.mxu0 %vm25371_vm0, %v28761_v51 }
0x2ac2   :  { %v24621_v33 = vpack.c.bf16 %v17089_v55, %v17082_v43 }
0x2ac4   :  { %24622 = vmatpush3.bf16.msra.mxu0 %v24621_v33  ;;  %v17462_v33 = vld [vmem:[#allocation4 + $0x7e8] sm:$0xff] }
0x2ac5   :  { %24623 = vmatprep.subr.bf16.mxu0 %v28760_v45 }
0x2ac7   :  { %22817 = vmatmul.mubr.f32.vlgmr.msra.gmra.mrb[94].mxu0 %v28560_v19 }
0x2ac8   :  { %24625 = vmatpush3.bf16.msra.mxu0 %v24624_v8  ;;  %22823 = vmatprep.mubr.msk.f32.mxu0 %vm25371_vm0, %v28761_v51  ;;  %v17463_v8 = vld [vmem:[#allocation4 + $0x7f0] sm:$0xff] }
0x2ac9   :  { %24626 = vmatprep.subr.bf16.mxu0 %v28760_v45  ;;  %v17965_v10 = vand.u32 4294901760, %v17463_v8 }
0x2acb   :  { %22824 = vmatmul.mubr.f32.vlgmr.msra.gmra.mrb[96].mxu0 %v28563_v26  ;;  %v18049_v60 = vsub.f32 %v17463_v8, %v17965_v10 }
0x2acc   :  { %24628 = vmatpush3.bf16.msra.mxu0 %v24618_v3  ;;  %22830 = vmatprep.mubr.msk.f32.mxu0 %vm25371_vm0, %v28761_v51 }
0x2acd   :  { %24629 = vmatprep.subr.bf16.mxu0 %v28760_v45  ;;  %v18050_v34 = vand.u32 4294901760, %v18049_v60 }
0x2acf   :  { %22831 = vmatmul.mubr.f32.vlgmr.msra.gmra.mrb[98].mxu0 %v28566_v30  ;;  %v17468_v30 = vld [vmem:[#allocation4 + $0x818] sm:$0xff]  ;;  %v18051_v42 = vsub.f32 %v18049_v60, %v18050_v34 }
0x2ad0   :  { %24631 = vmatpush3.bf16.msra.mxu0 %v24630_v2  ;;  %22837 = vmatprep.mubr.msk.f32.mxu0 %vm25371_vm0, %v28761_v51 }
0x2ad1   :  { %24632 = vmatprep.subr.bf16.mxu0 %v28760_v45 }
0x2ad3   :  { %22838 = vmatmul.mubr.f32.vlgmr.msra.gmra.mrb[100].mxu0 %v28560_v19 }
0x2ad4   :  { %24634 = vmatpush3.bf16.msra.mxu0 %v24618_v3  ;;  %22844 = vmatprep.mubr.msk.f32.mxu0 %vm25371_vm0, %v28761_v51 }
0x2ad5   :  { %24635 = vmatprep.subr.bf16.mxu0 %v28760_v45 }
0x2ad7   :  { %22845 = vmatmul.mubr.f32.vlgmr.msra.gmra.mrb[102].mxu0 %v28560_v19  ;;  %v17480_v19 = vand.u32 4294901760, %v17468_v30 }
0x2ad8   :  { %22855 = vmatprep.mubr.msk.f32.mxu0 %vm25371_vm0, %v28761_v51  ;;  %24637 = vmatpush3.bf16.msra.mxu0 %v28626_v54 }
0x2ad9   :  { %24638 = vmatprep.subr.bf16.mxu0 %v28760_v45  ;;  %v28633_v0 = vpack.c.bf16 %v17483_v32, %v17480_v19  ;;  %v17568_v44 = vsub.f32 %v17468_v30, %v17480_v19  ;;  %v17968_v30 = vand.u32 4294901760, %v17464_v35  ;;  %v18063_v32 = vsub.f32 %v17465_v57, %v17971_v13 }
0x2adb   :  { %v17569_v38 = vand.u32 4294901760, %v17568_v44  ;;  %v24651_v59 = vpack.c.bf16 %v17575_v22, %v17568_v44 }
0x2adc   :  { %24640 = vmatpush3.bf16.msra.mxu0 %v28633_v0 }
0x2add   :  { %24641 = vmatprep.subr.bf16.mxu0 %v28760_v45  ;;  %v17570_v41 = vsub.f32 %v17568_v44, %v17569_v38  ;;  %v24663_v63 = vpack.c.bf16 %v17576_v61, %v17569_v38  ;;  %v18064_v38 = vand.u32 4294901760, %v18063_v32 }
0x2adf   :  { %v17571_v15 = vand.u32 4294901760, %v17570_v41  ;;  %v18052_v41 = vand.u32 4294901760, %v18051_v42 }
0x2ae1   :  { %v24645_v27 = vpack.c.bf16 %v17578_v49, %v17571_v15 }
0x2b29   :  { %v28624_v4 = vpop.f32.mrb[90].mxu0 }
0x2b2a   :  { %v22804_v26 = vpop.f32.mrb[91].mxu0  ;;  %v17459_v2 = vmax.f32 %v28624_v4, 0.0 }
0x2b2b   :  { %v17962_v26 = vand.u32 4294901760, %v17462_v33 }
0x2b2c   :  { %v17959_v7 = vsel %vm1997_vm6, %v17459_v2, 0 }
0x2b2d   :  { %v18042_v6 = vsub.f32 %v17462_v33, %v17962_v26  ;;  %v28660_v19 = vand.u32 4294901760, %v17959_v7  ;;  %v24672_v22 = vpack.c.bf16 %v17965_v10, %v17962_v26 }
0x2b2f   :  { %v18043_v28 = vand.u32 4294901760, %v18042_v6  ;;  %v18031_v44 = vsub.f32 %v17959_v7, %v28660_v19 }
0x2b31   :  { %v18044_v53 = vsub.f32 %v18042_v6, %v18043_v28  ;;  %v18032_v61 = vand.u32 4294901760, %v18031_v44 }
0x2b33   :  { %v18045_v36 = vand.u32 4294901760, %v18044_v53 }
0x2b35   :  { %v24678_v15 = vpack.c.bf16 %v18052_v41, %v18045_v36 }
0x2b92   :  { %v17073_v50 = vpop.f32.mrb[92].mxu0 }
0x2b93   :  { %v22811_v47 = vpop.f32.mrb[93].mxu0 }
0x2b9a   :  { %v17154_v52 = vpop.f32.mrb[94].mxu0 }
0x2b9b   :  { %v17155_v9 = vadd.f32 %v17154_v52, %v17073_v50  ;;  %v22818_v12 = vpop.f32.mrb[95].mxu0  ;;  %v24696_v50 = vpack.c.bf16 %v18050_v34, %v18043_v28  ;;  %v18452_v28 = vlaneseq }
0x2b9d   :  { %v18453_v34 = vand.u32 127, %v18452_v28 }
0x2b9e   :  { %v17230_v11 = vpop.f32.mrb[96].mxu0 }
0x2b9f   :  { %v17231_v17 = vadd.f32 %v17230_v11, %v17155_v9  ;;  %v22825_v58 = vpop.f32.mrb[97].mxu0  ;;  %vm18454_vm11 = vcmp.ge.s32.totalorder %v18453_v34, 8 }
0x2ba2   :  { %v17305_v24 = vpop.f32.mrb[98].mxu0 }
0x2ba3   :  { %v17306_v18 = vadd.f32 %v17305_v24, %v17231_v17  ;;  %v22832_v16 = vpop.f32.mrb[99].mxu0 }
0x2ba6   :  { %v17382_v62 = vpop.f32.mrb[100].mxu0 }
0x2ba7   :  { %v17383_v1 = vadd.f32 %v17382_v62, %v17306_v18  ;;  %v22839_v39 = vpop.f32.mrb[101].mxu0 }
0x2baa   :  { %v17455_v37 = vpop.f32.mrb[102].mxu0 }
0x2bab   :  { %v17456_v20 = vadd.f32 %v17455_v37, %v17383_v1  ;;  %v22846_v3 = vpop.f32.mrb[103].mxu0 }
0x2bad   :  { %v17460_v31 = vadd.f32 %v17456_v20, %v28624_v4  ;;  %v18056_v4 = vsub.f32 %v17464_v35, %v17968_v30 }
0x2baf   :  { %v17461_v29 = vmax.f32 %v17460_v31, 0.0  ;;  %v18057_v25 = vand.u32 4294901760, %v18056_v4 }
0x2bb1   :  { %v17471_v40 = vsel %vm1997_vm6, %v17461_v29, 0  ;;  %v18058_v48 = vsub.f32 %v18056_v4, %v18057_v25  ;;  %v24699_v47 = vpack.c.bf16 %v18064_v38, %v18057_v25 }
0x2bb2   :  { %v17542_v23 = vand.u32 4294901760, %v17471_v40 }
0x2bb3   :  { %v18059_v49 = vand.u32 4294901760, %v18058_v48 }
0x2bb4   :  { %v17543_v21 = vsub.f32 %v17471_v40, %v17542_v23 }
0x2bb6   :  { %v17544_v5 = vand.u32 4294901760, %v17543_v21 }
0x2bb8   :  { %v17545_v43 = vsub.f32 %v17543_v21, %v17544_v5 }
0x2bba   :  { %v17546_v55 = vand.u32 4294901760, %v17545_v43 }
0x2bbc   :  { %22856 = vmatmul.mubr.f32.vlgmr.msra.gmra.mrb[104].mxu0 %v17546_v55 }
0x2bbd   :  { %24643 = vmatpush3.bf16.msra.mxu0 %v24642_v56  ;;  %22866 = vmatprep.mubr.msk.f32.mxu0 %vm25371_vm0, %v28761_v51  ;;  %v18065_v56 = vsub.f32 %v18063_v32, %v18064_v38 }
0x2bbe   :  { %24644 = vmatprep.subr.bf16.mxu0 %v28760_v45 }
0x2bc1   :  { %24646 = vmatpush3.bf16.msra.mxu0 %v24645_v27  ;;  %v18066_v27 = vand.u32 4294901760, %v18065_v56 }
0x2bc2   :  { %24647 = vmatprep.subr.bf16.mxu0 %v28760_v45 }
0x2bc4   :  { %22867 = vmatmul.mubr.f32.vlgmr.msra.gmra.mrb[106].mxu0 %v17542_v23 }
0x2bc5   :  { %24649 = vmatpush3.bf16.msra.mxu0 %v24648_v14  ;;  %22877 = vmatprep.mubr.msk.f32.mxu0 %vm25371_vm0, %v28761_v51 }
0x2bc6   :  { %24650 = vmatprep.subr.bf16.mxu0 %v28760_v45 }
0x2bc9   :  { %24652 = vmatpush3.bf16.msra.mxu0 %v24651_v59  ;;  %v24681_v59 = vpack.c.bf16 %v18066_v27, %v18059_v49 }
0x2bca   :  { %24653 = vmatprep.subr.bf16.mxu0 %v28760_v45 }
0x2bcc   :  { %22878 = vmatmul.mubr.f32.vlgmr.msra.gmra.mrb[108].mxu0 %v17543_v21 }
0x2bcd   :  { %24655 = vmatpush3.bf16.msra.mxu0 %v28626_v54  ;;  %22888 = vmatprep.mubr.msk.f32.mxu0 %vm25371_vm0, %v28761_v51 }
0x2bce   :  { %24656 = vmatprep.subr.bf16.mxu0 %v28760_v45 }
0x2bd1   :  { %24658 = vmatpush3.bf16.msra.mxu0 %v28633_v0 }
0x2bd2   :  { %24659 = vmatprep.subr.bf16.mxu0 %v28760_v45 }
0x2bd4   :  { %22889 = vmatmul.mubr.f32.vlgmr.msra.gmra.mrb[110].mxu0 %v17544_v5 }
0x2bd5   :  { %24661 = vmatpush3.bf16.msra.mxu0 %v24660_v46  ;;  %22899 = vmatprep.mubr.msk.f32.mxu0 %vm25371_vm0, %v28761_v51  ;;  %v24684_v46 = vpack.c.bf16 %v18049_v60, %v18042_v6  ;;  %v18519_v6 = vld [vmem:[#allocation4 + $0x828] ss:$0 sm:$0xff] }
0x2bd6   :  { %24662 = vmatprep.subr.bf16.mxu0 %v28760_v45 }
0x2bd9   :  { %24664 = vmatpush3.bf16.msra.mxu0 %v24663_v63  ;;  %v24687_v63 = vpack.c.bf16 %v18063_v32, %v18056_v4 }
0x2bda   :  { %24665 = vmatprep.subr.bf16.mxu0 %v28760_v45 }
0x2bdc   :  { %22900 = vmatmul.mubr.f32.vlgmr.msra.gmra.mrb[112].mxu0 %v17542_v23 }
0x2bdd   :  { %24667 = vmatpush3.bf16.msra.mxu0 %v28626_v54  ;;  %22910 = vmatprep.mubr.msk.f32.mxu0 %vm25371_vm0, %v28761_v51  ;;  %v24675_v54 = vpack.c.bf16 %v17971_v13, %v17968_v30 }
0x2bde   :  { %24668 = vmatprep.subr.bf16.mxu0 %v28760_v45 }
0x2be1   :  { %24670 = vmatpush3.bf16.msra.mxu0 %v28633_v0  ;;  %v18033_v0 = vsub.f32 %v18031_v44, %v18032_v61 }
0x2be2   :  { %24671 = vmatprep.subr.bf16.mxu0 %v28760_v45 }
0x2be3   :  { %v18034_v14 = vand.u32 4294901760, %v18033_v0 }
0x2be4   :  { %22911 = vmatmul.mubr.f32.vlgmr.msra.gmra.mrb[114].mxu0 %v17542_v23 }
0x2be5   :  { %24673 = vmatpush3.bf16.msra.mxu0 %v24672_v22  ;;  %22921 = vmatprep.mubr.msk.f32.mxu0 %vm25371_vm0, %v28761_v51 }
0x2be6   :  { %24674 = vmatprep.subr.bf16.mxu0 %v28760_v45 }
0x2be9   :  { %24676 = vmatpush3.bf16.msra.mxu0 %v24675_v54 }
0x2bea   :  { %24677 = vmatprep.subr.bf16.mxu0 %v28760_v45 }
0x2bec   :  { %22922 = vmatmul.mubr.f32.vlgmr.msra.gmra.mrb[116].mxu0 %v18034_v14 }
0x2bed   :  { %24679 = vmatpush3.bf16.msra.mxu0 %v24678_v15  ;;  %22932 = vmatprep.mubr.msk.f32.mxu0 %vm25371_vm0, %v28761_v51 }
0x2bee   :  { %24680 = vmatprep.subr.bf16.mxu0 %v28760_v45 }
0x2bf1   :  { %24682 = vmatpush3.bf16.msra.mxu0 %v24681_v59 }
0x2bf2   :  { %24683 = vmatprep.subr.bf16.mxu0 %v28760_v45 }
0x2bf4   :  { %22933 = vmatmul.mubr.f32.vlgmr.msra.gmra.mrb[118].mxu0 %v28660_v19 }
0x2bf5   :  { %24685 = vmatpush3.bf16.msra.mxu0 %v24684_v46  ;;  %22943 = vmatprep.mubr.msk.f32.mxu0 %vm25371_vm0, %v28761_v51 }
0x2bf6   :  { %24686 = vmatprep.subr.bf16.mxu0 %v28760_v45 }
0x2bf9   :  { %24688 = vmatpush3.bf16.msra.mxu0 %v24687_v63 }
0x2bfa   :  { %24689 = vmatprep.subr.bf16.mxu0 %v28760_v45 }
0x2bfc   :  { %22944 = vmatmul.mubr.f32.vlgmr.msra.gmra.mrb[120].mxu0 %v18031_v44 }
0x2bfd   :  { %24691 = vmatpush3.bf16.msra.mxu0 %v24672_v22  ;;  %22954 = vmatprep.mubr.msk.f32.mxu0 %vm25371_vm0, %v28761_v51 }
0x2bfe   :  { %24692 = vmatprep.subr.bf16.mxu0 %v28760_v45 }
0x2c01   :  { %24694 = vmatpush3.bf16.msra.mxu0 %v24675_v54 }
0x2c02   :  { %24695 = vmatprep.subr.bf16.mxu0 %v28760_v45 }
0x2c04   :  { %22955 = vmatmul.mubr.f32.vlgmr.msra.gmra.mrb[122].mxu0 %v18032_v61 }
0x2c05   :  { %24697 = vmatpush3.bf16.msra.mxu0 %v24696_v50  ;;  %22965 = vmatprep.mubr.msk.f32.mxu0 %vm25371_vm0, %v28761_v51 }
0x2c06   :  { %24698 = vmatprep.subr.bf16.mxu0 %v28760_v45 }
0x2c09   :  { %24700 = vmatpush3.bf16.msra.mxu0 %v24699_v47 }
0x2c0a   :  { %24701 = vmatprep.subr.bf16.mxu0 %v28760_v45 }
0x2c0c   :  { %22966 = vmatmul.mubr.f32.vlgmr.msra.gmra.mrb[124].mxu0 %v28660_v19 }
0x2c0d   :  { %24703 = vmatpush3.bf16.msra.mxu0 %v24672_v22  ;;  %22976 = vmatprep.mubr.msk.f32.mxu0 %vm25371_vm0, %v28761_v51 }
0x2c0e   :  { %24704 = vmatprep.subr.bf16.mxu0 %v28760_v45 }
0x2c11   :  { %24706 = vmatpush3.bf16.msra.mxu0 %v24675_v54 }
0x2c14   :  { %22977 = vmatmul.mubr.f32.vlgmr.msra.gmra.mrb[126].mxu0 %v28660_v19 }
0x2c8f   :  { %v17548_v52 = vpop.f32.mrb[104].mxu0 }
0x2c90   :  { %v22857_v9 = vpop.f32.mrb[105].mxu0 }
0x2c97   :  { %v17639_v12 = vpop.f32.mrb[106].mxu0 }
0x2c98   :  { %v17640_v11 = vadd.f32 %v17639_v12, %v17548_v52  ;;  %v22868_v17 = vpop.f32.mrb[107].mxu0 }
0x2c9f   :  { %v17719_v58 = vpop.f32.mrb[108].mxu0 }
0x2ca0   :  { %v17720_v24 = vadd.f32 %v17719_v58, %v17640_v11  ;;  %v22879_v18 = vpop.f32.mrb[109].mxu0 }
0x2ca7   :  { %v17796_v16 = vpop.f32.mrb[110].mxu0 }
0x2ca8   :  { %v17797_v62 = vadd.f32 %v17796_v16, %v17720_v24  ;;  %v22890_v1 = vpop.f32.mrb[111].mxu0 }
0x2caf   :  { %v17879_v39 = vpop.f32.mrb[112].mxu0 }
0x2cb0   :  { %v17880_v37 = vadd.f32 %v17879_v39, %v17797_v62  ;;  %v22901_v20 = vpop.f32.mrb[113].mxu0 }
0x2cb7   :  { %v17954_v51 = vpop.f32.mrb[114].mxu0 }
0x2cb8   :  { %v17955_v3 = vadd.f32 %v17954_v51, %v17880_v37  ;;  %v22912_v45 = vpop.f32.mrb[115].mxu0 }
0x2cbf   :  { %v18036_v31 = vpop.f32.mrb[116].mxu0 }
0x2cc0   :  { %v18037_v29 = vadd.f32 %v18036_v31, %v17955_v3  ;;  %v22923_v40 = vpop.f32.mrb[117].mxu0 }
0x2cc7   :  { %v18127_v23 = vpop.f32.mrb[118].mxu0 }
0x2cc8   :  { %v18128_v21 = vadd.f32 %v18127_v23, %v18037_v29  ;;  %v22934_v5 = vpop.f32.mrb[119].mxu0 }
0x2ccf   :  { %v18207_v43 = vpop.f32.mrb[120].mxu0 }
0x2cd0   :  { %v18208_v55 = vadd.f32 %v18207_v43, %v18128_v21  ;;  %v22945_v33 = vpop.f32.mrb[121].mxu0 }
0x2cd7   :  { %v18284_v8 = vpop.f32.mrb[122].mxu0 }
0x2cd8   :  { %v18285_v2 = vadd.f32 %v18284_v8, %v18208_v55  ;;  %v22956_v26 = vpop.f32.mrb[123].mxu0 }
0x2cdf   :  { %v18367_v10 = vpop.f32.mrb[124].mxu0 }
0x2ce0   :  { %v18368_v35 = vadd.f32 %v18367_v10, %v18285_v2  ;;  %v22967_v57 = vpop.f32.mrb[125].mxu0 }
0x2ce7   :  { %v18442_v7 = vpop.f32.mrb[126].mxu0 }
0x2ce8   :  { %v18443_v60 = vadd.f32 %v18442_v7, %v18368_v35  ;;  %v22978_v30 = vpop.f32.mrb[127].mxu0 }
0x2cea   :  { %v18451_v13 = vadd.f32 %v18519_v6, %v18443_v60 }
0x2cec   :  { %v18520_v19 = vmul.f32 -1.442695, %v18451_v13 }
0x2cee   :  { %25314 = vpow2.f32 %v18520_v19 }
0x2cf8   :  { %v25315_v4 = vpop.eup %25314 }
0x2cf9   :  { %v18458_v32 = vadd.f32 1.0, %v25315_v4 }
0x2cfb   :  { %25316 = vrcp.f32 %v18458_v32 }
0x2d05   :  { %v25317_v44 = vpop.eup %25316 }
0x2d06   :  { %v18461_v22 = vsel %vm18454_vm11, %v25317_v44, %v18451_v13 }
0x2d07   :  { %18463 = vst.msk [vmem:[%s28703_s4] sm:$0x3] %vm18462_vm12, %v18461_v22 }
0x2d08   :  { %18468 = vsyncpa [#allocation3], 1 }
0x2d09   :  { %18469 = vsyncpa [#allocation5], 1 }

</bundles_post_ra>
